<compile_context>
chip_gen: v7x
topology: tpu7x:2x2x1
jax: 0.10.0
libtpu: 0.0.40
codegen_flags: <defaults>
</compile_context>

<pallas_src>
import jax
import jax.numpy as jnp
from jax.experimental import pallas as pl
from jax.experimental.pallas import tpu as pltpu

EPS = 1e-5
MATMUL_DTYPE = jnp.bfloat16   # MXU operand dtype; accumulation stays f32


def _fold_bn(gamma, beta, mean, var, eps=EPS):
    scale = gamma / jnp.sqrt(var + eps)
    bias = beta - mean * scale
    return scale, bias


# ----------------------------------------------------------------------------
# Fused kernel: 1x1 conv+BN+PReLU -> depthwise 3x3/s2 conv+BN+PReLU
#               -> CBAM channel attention -> CBAM spatial attention
#               -> 1x1 projection conv+BN.
# Grid over sample blocks ("parallel"); all intermediates stay on-chip.
# ----------------------------------------------------------------------------
def _fused_depthwise_kernel(xsd_ref, w1_ref, b1_ref, s1_ref,
                            dww_ref, dwb_ref, dws_ref,
                            fc1w_ref, fc1b_ref, fc2w_ref, fc2b_ref,
                            spw_ref, projw_ref, projb_ref,
                            o_ref,
                            planes_ref, pads_ref, pool_ref):
    B, _, Ho, Wo, Cin = xsd_ref.shape
    G = dww_ref.shape[1]
    hw = Ho * Wo

    # --- 1x1 conv + BN(folded) + PReLU over every (sample, parity, i, j)
    # position: one MXU matmul with M = B*4*Ho*Wo = B*H*W (bf16 in, f32 acc).
    x_all = xsd_ref[...].reshape(B * 4 * hw, Cin)
    y = jnp.dot(x_all, w1_ref[...], preferred_element_type=jnp.float32)
    y = y + b1_ref[...]
    y = jnp.where(y >= 0.0, y, y * s1_ref[...])
    y = y.reshape(B, 4, Ho, Wo, G)

    # --- scatter the stride-2 parity sub-grids into zero-padded planes so the
    # 3x3/stride-2 depthwise taps become contiguous window slices.
    #   plane(p,q)[i,j] == zero-padded-conv1-output[2i+p, 2j+q]
    #   xsd parity index 2r+c holds x[2i+r, 2j+c]  =>  y[b, 2r+c] = ysub(r,c)
    planes_ref[...] = jnp.zeros(planes_ref.shape, planes_ref.dtype)
    pads_ref[...] = jnp.zeros(pads_ref.shape, pads_ref.dtype)
    for b in range(B):
        planes_ref[b * 4 + 0, 1:, 1:, :] = y[b, 3]     # plane(0,0) <- y[2i+1,2j+1]
        planes_ref[b * 4 + 1, 1:, :Wo, :] = y[b, 2]    # plane(0,1) <- y[2i+1,2j  ]
        planes_ref[b * 4 + 2, :Ho, 1:, :] = y[b, 1]    # plane(1,0) <- y[2i  ,2j+1]
        planes_ref[b * 4 + 3, :Ho, :Wo, :] = y[b, 0]   # plane(1,1) <- y[2i  ,2j  ]

    for b in range(B):
        # --- depthwise 3x3 / stride-2 conv + BN(folded) + PReLU --------------
        planes = [planes_ref[b * 4 + k] for k in range(4)]
        acc = jnp.zeros((Ho, Wo, G), jnp.float32)
        for kh in range(3):
            for kw in range(3):
                pidx = 2 * (kh % 2) + (kw % 2)
                a, c = kh // 2, kw // 2
                tap = planes[pidx][a:a + Ho, c:c + Wo, :]
                acc = acc + tap * dww_ref[kh * 3 + kw]
        z = acc + dwb_ref[...]
        z = jnp.where(z >= 0.0, z, z * dws_ref[...])                # (Ho,Wo,G)

        # --- CBAM channel attention: avg+max pooled through ONE batched MLP --
        z2 = z.reshape(hw, G)
        pool_ref[0:1, :] = jnp.sum(z2, axis=0, keepdims=True) * (1.0 / hw)
        pool_ref[1:2, :] = jnp.max(z2, axis=0, keepdims=True)
        pooled = pool_ref[...]                                      # (2, G)
        h = jnp.dot(pooled, fc1w_ref[...], preferred_element_type=jnp.float32)
        h = jnp.maximum(h + fc1b_ref[...], 0.0)
        att2 = jnp.dot(h, fc2w_ref[...],
                       preferred_element_type=jnp.float32) + fc2b_ref[...]
        att_c = jax.nn.sigmoid(att2[0:1, :] + att2[1:2, :])         # (1, G)
        zc = z * att_c

        # --- CBAM spatial attention: 7x7 conv over [max-map, mean-map] + BN --
        m_map = jnp.max(zc, axis=2, keepdims=True)                  # (Ho,Wo,1)
        a_map = jnp.sum(zc, axis=2, keepdims=True) * (1.0 / G)      # (Ho,Wo,1)
        pads_ref[0:1, 3:3 + Ho, 3:3 + Wo, :] = m_map[None]
        pads_ref[1:2, 3:3 + Ho, 3:3 + Wo, :] = a_map[None]
        sacc = jnp.zeros((Ho, Wo, 1), jnp.float32)
        for kh in range(7):
            for kw in range(7):
                t_max = pads_ref[0, kh:kh + Ho, kw:kw + Wo, :]
                t_avg = pads_ref[1, kh:kh + Ho, kw:kw + Wo, :]
                sacc = (sacc + t_max * spw_ref[kh * 7 + kw]
                        + t_avg * spw_ref[49 + kh * 7 + kw])
        att_s = jax.nn.sigmoid(sacc + spw_ref[98])                  # (Ho,Wo,1)
        zs = zc * att_s                                             # (Ho,Wo,G)

        # --- projection 1x1 conv + BN (scale folded into bf16 weights) -------
        out2 = jnp.dot(zs.reshape(hw, G).astype(projw_ref.dtype), projw_ref[...],
                       preferred_element_type=jnp.float32) + projb_ref[...]
        o_ref[b:b + 1, :, :] = out2[None]


# ----------------------------------------------------------------------------
# Full DepthWise forward
# ----------------------------------------------------------------------------
def depthwise_forward(x_nchw, p, ksize=3, stride=2, padding=1,
                      samples_per_block=None):
    assert ksize == 3 and stride == 2 and padding == 1, "module defaults only"
    x = jnp.transpose(x_nchw, (0, 2, 3, 1)).astype(jnp.float32)     # NCHW->NHWC
    N, H, W, Cin = x.shape
    assert H % 2 == 0 and W % 2 == 0, "even spatial dims required for stride-2"
    G = p["conv_w"].shape[1]
    mid = p["fc1_w"].shape[1]
    Cout = p["proj_w"].shape[1]
    Ho, Wo = H // 2, W // 2
    hw = Ho * Wo
    # Note: Wo should be a multiple of 8 for copy-free in-kernel reshapes.

    # Samples per grid step: keep >= 2 independent "parallel" grid steps when
    # possible (v7x has 2 TensorCores); otherwise batch samples per step.
    if samples_per_block is None:
        samples_per_block = 2 if (N % 2 == 0 and N >= 4) else 1
    B = samples_per_block
    assert N % B == 0

    # Fold BN scales into conv weights; big matmul operands go to bf16.
    conv_wf = (p["conv_w"] * p["conv_scale"][None, :]).astype(MATMUL_DTYPE)
    dw_wf = (p["dw_w"] * p["dw_scale"][None, None, :]).reshape(9, G)
    proj_wf = (p["proj_w"] * p["proj_scale"][None, :]).astype(MATMUL_DTYPE)
    sp_wf = jnp.concatenate([(p["sp_w"] * p["sp_scale"]).reshape(-1),
                             jnp.reshape(p["sp_bias"], (1,))]).astype(jnp.float32)

    # Space-to-depth the (small) input once: both the 1x1 conv and the
    # stride-2 depthwise taps then see contiguous blocks (no im2col, no HBM
    # round-trip of the conv1 activation).
    xsd = x.reshape(N, Ho, 2, Wo, 2, Cin).transpose(0, 2, 4, 1, 3, 5)
    xsd = xsd.reshape(N, 4, Ho, Wo, Cin).astype(MATMUL_DTYPE)

    # Re-derived per-shape VMEM budget (v7x: 64 MiB physical, 32 MiB default
    # scoped); double-buffered in/out blocks + weights + scratch, with slack.
    f32b = 4
    vmem_est = (2 * (B * 4 * Ho * Wo * Cin) * 2                 # xsd blocks (bf16)
                + 2 * (B * hw * Cout) * f32b                    # output blocks
                + (B * 4 * (Ho + 1) * (Wo + 1) * G) * f32b      # plane scratch
                + (2 * (Ho + 6) * (Wo + 6) + 2 * G) * f32b      # map/pool scratch
                + 4 * (Cin * G + G * mid + mid * G + G * Cout + 16 * G) * f32b)
    vmem_limit = int(min(max(2 * vmem_est, 16 * 1024 * 1024), 120 * 1024 * 1024))

    out = pl.pallas_call(
        _fused_depthwise_kernel,
        out_shape=jax.ShapeDtypeStruct((N, hw, Cout), jnp.float32),
        grid_spec=pltpu.PrefetchScalarGridSpec(
            num_scalar_prefetch=0,
            grid=(N // B,),
            in_specs=[
                pl.BlockSpec((B, 4, Ho, Wo, Cin), lambda n: (n, 0, 0, 0, 0)),
                pl.BlockSpec((Cin, G), lambda n: (0, 0)),
                pl.BlockSpec((1, G), lambda n: (0, 0)),
                pl.BlockSpec((1, G), lambda n: (0, 0)),
                pl.BlockSpec((9, G), lambda n: (0, 0)),
                pl.BlockSpec((1, G), lambda n: (0, 0)),
                pl.BlockSpec((1, G), lambda n: (0, 0)),
                pl.BlockSpec((G, mid), lambda n: (0, 0)),
                pl.BlockSpec((1, mid), lambda n: (0, 0)),
                pl.BlockSpec((mid, G), lambda n: (0, 0)),
                pl.BlockSpec((1, G), lambda n: (0, 0)),
                pl.BlockSpec(memory_space=pltpu.MemorySpace.SMEM),   # sp weights
                pl.BlockSpec((G, Cout), lambda n: (0, 0)),
                pl.BlockSpec((1, Cout), lambda n: (0, 0)),
            ],
            out_specs=pl.BlockSpec((B, hw, Cout), lambda n: (n, 0, 0)),
            scratch_shapes=[
                pltpu.VMEM((B * 4, Ho + 1, Wo + 1, G), jnp.float32),  # dw planes
                pltpu.VMEM((2, Ho + 6, Wo + 6, 1), jnp.float32),      # spatial maps
                pltpu.VMEM((2, G), jnp.float32),                      # avg/max pool
            ],
        ),
        compiler_params=pltpu.CompilerParams(
            dimension_semantics=("parallel",),
            vmem_limit_bytes=vmem_limit),
    )(xsd, conv_wf, p["conv_bias"].reshape(1, G), p["conv_slope"].reshape(1, G),
      dw_wf, p["dw_bias"].reshape(1, G), p["dw_slope"].reshape(1, G),
      p["fc1_w"], p["fc1_b"].reshape(1, mid), p["fc2_w"], p["fc2_b"].reshape(1, G),
      sp_wf, proj_wf, p["proj_bias"].reshape(1, Cout))

    o = out.reshape(N, Ho, Wo, Cout)
    # residual=False (module default); stride=2 precludes a residual add anyway.
    return jnp.transpose(o, (0, 3, 1, 2))                       # back to NCHW


# ----------------------------------------------------------------------------
# Deterministic parameter init (shapes dictated by the nn.Module __init__)
# ----------------------------------------------------------------------------
def init_params(key, in_channels, out_channels, groups, reduction_ratio=16):
    mid = groups // reduction_ratio
    ks = jax.random.split(key, 12)

    def nrm(k, shape, s=0.1):
        return s * jax.random.normal(k, shape, jnp.float32)

    def bn(k, c):
        k1, k2, k3, k4 = jax.random.split(k, 4)
        gamma = jax.random.uniform(k1, (c,), jnp.float32, 0.5, 1.5)
        beta = nrm(k2, (c,))
        mean = nrm(k3, (c,))
        var = jax.random.uniform(k4, (c,), jnp.float32, 0.5, 1.5)
        return _fold_bn(gamma, beta, mean, var)

    p = {}
    p["conv_w"] = nrm(ks[0], (in_channels, groups))            # Conv2d(in, g, 1)
    p["conv_scale"], p["conv_bias"] = bn(ks[1], groups)
    p["conv_slope"] = jnp.full((groups,), 0.25, jnp.float32)   # PReLU init
    p["dw_w"] = nrm(ks[2], (3, 3, groups))                     # depthwise taps
    p["dw_scale"], p["dw_bias"] = bn(ks[3], groups)
    p["dw_slope"] = jnp.full((groups,), 0.25, jnp.float32)
    p["fc1_w"] = nrm(ks[4], (groups, mid))                     # Linear(g, mid)
    p["fc1_b"] = nrm(ks[5], (mid,))
    p["fc2_w"] = nrm(ks[6], (mid, groups))                     # Linear(mid, g)
    p["fc2_b"] = nrm(ks[7], (groups,))
    p["sp_w"] = nrm(ks[8], (2, 7, 7))                          # Conv2d(2,1,7)
    sps, spb = bn(ks[9], 1)
    p["sp_scale"], p["sp_bias"] = sps[0], spb[0]
    p["proj_w"] = nrm(ks[10], (groups, out_channels))          # Conv2d(g, out, 1)
    p["proj_scale"], p["proj_bias"] = bn(ks[11], out_channels)
    return p


# ----------------------------------------------------------------------------
# Pure-JAX reference (same math, no Pallas) for a correctness check
# ----------------------------------------------------------------------------
def reference_forward(x_nchw, p, ksize=3, stride=2, padding=1):
    hp = jax.lax.Precision.HIGHEST
    prelu = lambda v, s: jnp.where(v >= 0, v, v * s)
    x = jnp.transpose(x_nchw, (0, 2, 3, 1)).astype(jnp.float32)
    N, H, W, Cin = x.shape
    G = p["conv_w"].shape[1]
    y = jnp.dot(x.reshape(-1, Cin), p["conv_w"], precision=hp)
    y = prelu(y * p["conv_scale"] + p["conv_bias"], p["conv_slope"]).reshape(N, H, W, G)
    Ho = (H + 2 * padding - ksize) // stride + 1
    Wo = (W + 2 * padding - ksize) // stride + 1
    ypad = jnp.pad(y, [(0, 0), (padding, padding), (padding, padding), (0, 0)])
    acc = jnp.zeros((N, Ho, Wo, G), jnp.float32)
    for kh in range(ksize):
        for kw in range(ksize):
            acc += ypad[:, kh:kh + stride * Ho:stride, kw:kw + stride * Wo:stride, :] * p["dw_w"][kh, kw]
    z = prelu(acc * p["dw_scale"] + p["dw_bias"], p["dw_slope"])
    avg, mx = z.mean(axis=(1, 2)), z.max(axis=(1, 2))
    mlp = lambda v: jnp.dot(jnp.maximum(jnp.dot(v, p["fc1_w"], precision=hp) + p["fc1_b"], 0.0),
                            p["fc2_w"], precision=hp) + p["fc2_b"]
    z = z * jax.nn.sigmoid(mlp(avg) + mlp(mx))[:, None, None, :]
    mp = jnp.pad(z.max(axis=-1, keepdims=True), [(0, 0), (3, 3), (3, 3), (0, 0)])
    ap = jnp.pad(z.mean(axis=-1, keepdims=True), [(0, 0), (3, 3), (3, 3), (0, 0)])
    sacc = jnp.zeros((N, Ho, Wo, 1), jnp.float32)
    for kh in range(7):
        for kw in range(7):
            sacc += mp[:, kh:kh + Ho, kw:kw + Wo, :] * p["sp_w"][0, kh, kw]
            sacc += ap[:, kh:kh + Ho, kw:kw + Wo, :] * p["sp_w"][1, kh, kw]
    z = z * jax.nn.sigmoid(sacc * p["sp_scale"] + p["sp_bias"])
    o = jnp.dot(z.reshape(-1, G), p["proj_w"], precision=hp)
    o = (o * p["proj_scale"] + p["proj_bias"]).reshape(N, Ho, Wo, -1)
    return jnp.transpose(o, (0, 3, 1, 2))


if __name__ == "__main__":
    key = jax.random.PRNGKey(0)
    kx, kp = jax.random.split(key)
    # DepthWise(in_channels=16, out_channels=32, groups=32), input NCHW (2,16,16,16)
    N, Cin, H, W = 2, 16, 16, 16
    G, Cout = 32, 32
    x_nchw = jax.random.normal(kx, (N, Cin, H, W), jnp.float32)
    params = init_params(kp, Cin, Cout, G, reduction_ratio=16)

    out = jax.jit(depthwise_forward)(x_nchw, params)
    out = jax.block_until_ready(out)

    assert out.shape == (N, Cout, H // 2, W // 2), out.shape
    assert bool(jnp.all(jnp.isfinite(out)))
    ref = reference_forward(x_nchw, params)
    err = float(jnp.max(jnp.abs(out - ref)))
    # bf16 MXU operands (f32 accumulation) vs. f32-HIGHEST reference.
    assert err < 3e-2, f"mismatch vs reference: {err}"
    print("KERNEL_OK")
</pallas_src>

<mosaic_0001>
module attributes {stable_mosaic.version = 11 : i64} {
  func.func @_fused_depthwise_kernel(%arg0: i32, %arg1: memref<1x4x8x8x16xbf16, #tpu.memory_space<vmem>>, %arg2: memref<16x32xbf16, #tpu.memory_space<vmem>>, %arg3: memref<1x32xf32, #tpu.memory_space<vmem>>, %arg4: memref<1x32xf32, #tpu.memory_space<vmem>>, %arg5: memref<9x32xf32, #tpu.memory_space<vmem>>, %arg6: memref<1x32xf32, #tpu.memory_space<vmem>>, %arg7: memref<1x32xf32, #tpu.memory_space<vmem>>, %arg8: memref<32x2xf32, #tpu.memory_space<vmem>>, %arg9: memref<1x2xf32, #tpu.memory_space<vmem>>, %arg10: memref<2x32xf32, #tpu.memory_space<vmem>>, %arg11: memref<1x32xf32, #tpu.memory_space<vmem>>, %arg12: memref<99xf32, #tpu.memory_space<smem>>, %arg13: memref<32x32xbf16, #tpu.memory_space<vmem>>, %arg14: memref<1x32xf32, #tpu.memory_space<vmem>>, %arg15: memref<1x64x32xf32, #tpu.memory_space<vmem>>, %arg16: memref<4x9x9x32xf32, #tpu.memory_space<vmem>>, %arg17: memref<2x14x14x1xf32, #tpu.memory_space<vmem>>, %arg18: memref<2x32xf32, #tpu.memory_space<vmem>>) attributes {dimension_semantics = [#tpu.dimension_semantics<parallel>], iteration_bounds = array<i64: 2>, scalar_prefetch = 0 : i64, scratch_operands = 3 : i64, tpu.core_type = #tpu.core_type<tc>, window_params = [{transform_indices = @transform_0, window_bounds = array<i64: 1, 4, 8, 8, 16>}, {pipeline_mode = #tpu.pipeline_mode<synchronous>, transform_indices = @transform_1, window_bounds = array<i64: 16, 32>}, {pipeline_mode = #tpu.pipeline_mode<synchronous>, transform_indices = @transform_2, window_bounds = array<i64: 1, 32>}, {pipeline_mode = #tpu.pipeline_mode<synchronous>, transform_indices = @transform_3, window_bounds = array<i64: 1, 32>}, {pipeline_mode = #tpu.pipeline_mode<synchronous>, transform_indices = @transform_4, window_bounds = array<i64: 9, 32>}, {pipeline_mode = #tpu.pipeline_mode<synchronous>, transform_indices = @transform_5, window_bounds = array<i64: 1, 32>}, {pipeline_mode = #tpu.pipeline_mode<synchronous>, transform_indices = @transform_6, window_bounds = array<i64: 1, 32>}, {pipeline_mode = #tpu.pipeline_mode<synchronous>, transform_indices = @transform_7, window_bounds = array<i64: 32, 2>}, {pipeline_mode = #tpu.pipeline_mode<synchronous>, transform_indices = @transform_8, window_bounds = array<i64: 1, 2>}, {pipeline_mode = #tpu.pipeline_mode<synchronous>, transform_indices = @transform_9, window_bounds = array<i64: 2, 32>}, {pipeline_mode = #tpu.pipeline_mode<synchronous>, transform_indices = @transform_10, window_bounds = array<i64: 1, 32>}, {transform_indices = @transform_11, window_bounds = array<i64: 99>}, {pipeline_mode = #tpu.pipeline_mode<synchronous>, transform_indices = @transform_12, window_bounds = array<i64: 32, 32>}, {pipeline_mode = #tpu.pipeline_mode<synchronous>, transform_indices = @transform_13, window_bounds = array<i64: 1, 32>}, {transform_indices = @transform_14, window_bounds = array<i64: 1, 64, 32>}]} {
    %c0 = arith.constant 0 : index
    %c0_0 = arith.constant 0 : index
    %c0_1 = arith.constant 0 : index
    %c0_2 = arith.constant 0 : index
    %c0_3 = arith.constant 0 : index
    %0 = vector.load %arg1[%c0, %c0_0, %c0_1, %c0_2, %c0_3] : memref<1x4x8x8x16xbf16, #tpu.memory_space<vmem>>, vector<1x4x8x8x16xbf16>
    %1 = vector.shape_cast %0 : vector<1x4x8x8x16xbf16> to vector<256x16xbf16>
    %c0_4 = arith.constant 0 : index
    %c0_5 = arith.constant 0 : index
    %2 = vector.load %arg2[%c0_4, %c0_5] : memref<16x32xbf16, #tpu.memory_space<vmem>>, vector<16x32xbf16>
    %cst = arith.constant dense<0.000000e+00> : vector<256x32xf32>
    %3 = tpu.matmul %1, %2, %cst {dimension_numbers = #tpu.dot_dimension_numbers<[1], [0], [0], [1], [0, 0, 1, 1], [], []>} : vector<256x16xbf16>, vector<16x32xbf16>, vector<256x32xf32> -> vector<256x32xf32>
    %c0_6 = arith.constant 0 : index
    %c0_7 = arith.constant 0 : index
    %4 = vector.load %arg3[%c0_6, %c0_7] : memref<1x32xf32, #tpu.memory_space<vmem>>, vector<1x32xf32>
    %5 = vector.broadcast %4 : vector<1x32xf32> to vector<256x32xf32>
    %6 = arith.addf %3, %5 : vector<256x32xf32>
    %cst_8 = arith.constant 0.000000e+00 : f32
    %7 = vector.broadcast %cst_8 : f32 to vector<256x32xf32>
    %8 = arith.cmpf oge, %6, %7 : vector<256x32xf32>
    %c0_9 = arith.constant 0 : index
    %c0_10 = arith.constant 0 : index
    %9 = vector.load %arg4[%c0_9, %c0_10] : memref<1x32xf32, #tpu.memory_space<vmem>>, vector<1x32xf32>
    %10 = vector.broadcast %9 : vector<1x32xf32> to vector<256x32xf32>
    %11 = arith.mulf %6, %10 : vector<256x32xf32>
    %12 = arith.select %8, %6, %11 : vector<256x32xi1>, vector<256x32xf32>
    %13 = vector.shape_cast %12 : vector<256x32xf32> to vector<1x4x8x8x32xf32>
    %cst_11 = arith.constant 0.000000e+00 : f32
    %14 = vector.broadcast %cst_11 : f32 to vector<4x9x9x32xf32>
    %c0_12 = arith.constant 0 : index
    %c0_13 = arith.constant 0 : index
    %c0_14 = arith.constant 0 : index
    %c0_15 = arith.constant 0 : index
    %15 = vector.load %arg16[%c0_12, %c0_13, %c0_14, %c0_15] : memref<4x9x9x32xf32, #tpu.memory_space<vmem>>, vector<4x9x9x32xf32>
    tpu.vector_store %arg16[%c0_12, %c0_13, %c0_14, %c0_15], %14 {strides = array<i32>} : memref<4x9x9x32xf32, #tpu.memory_space<vmem>>, vector<4x9x9x32xf32>,
    %cst_16 = arith.constant 0.000000e+00 : f32
    %16 = vector.broadcast %cst_16 : f32 to vector<2x14x14x1xf32>
    %c0_17 = arith.constant 0 : index
    %c0_18 = arith.constant 0 : index
    %c0_19 = arith.constant 0 : index
    %c0_20 = arith.constant 0 : index
    %17 = vector.load %arg17[%c0_17, %c0_18, %c0_19, %c0_20] : memref<2x14x14x1xf32, #tpu.memory_space<vmem>>, vector<2x14x14x1xf32>
    tpu.vector_store %arg17[%c0_17, %c0_18, %c0_19, %c0_20], %16 {strides = array<i32>} : memref<2x14x14x1xf32, #tpu.memory_space<vmem>>, vector<2x14x14x1xf32>,
    %18 = vector.extract_strided_slice %13 {offsets = [0, 3, 0, 0, 0], sizes = [1, 1, 8, 8, 32], strides = [1, 1, 1, 1, 1]} : vector<1x4x8x8x32xf32> to vector<1x1x8x8x32xf32>
    %19 = vector.shape_cast %18 : vector<1x1x8x8x32xf32> to vector<8x8x32xf32>
    %c0_21 = arith.constant 0 : index
    %c1 = arith.constant 1 : index
    %c1_22 = arith.constant 1 : index
    %c0_23 = arith.constant 0 : index
    %20 = vector.load %arg16[%c0_21, %c1, %c1_22, %c0_23] : memref<4x9x9x32xf32, #tpu.memory_space<vmem>>, vector<1x8x8x32xf32>
    %21 = vector.shape_cast %20 : vector<1x8x8x32xf32> to vector<8x8x32xf32>
    %22 = vector.shape_cast %19 : vector<8x8x32xf32> to vector<1x8x8x32xf32>
    tpu.vector_store %arg16[%c0_21, %c1, %c1_22, %c0_23], %22 {strides = array<i32>} : memref<4x9x9x32xf32, #tpu.memory_space<vmem>>, vector<1x8x8x32xf32>,
    %23 = vector.extract_strided_slice %13 {offsets = [0, 2, 0, 0, 0], sizes = [1, 1, 8, 8, 32], strides = [1, 1, 1, 1, 1]} : vector<1x4x8x8x32xf32> to vector<1x1x8x8x32xf32>
    %24 = vector.shape_cast %23 : vector<1x1x8x8x32xf32> to vector<8x8x32xf32>
    %c1_24 = arith.constant 1 : index
    %c1_25 = arith.constant 1 : index
    %c0_26 = arith.constant 0 : index
    %c0_27 = arith.constant 0 : index
    %25 = vector.load %arg16[%c1_24, %c1_25, %c0_26, %c0_27] : memref<4x9x9x32xf32, #tpu.memory_space<vmem>>, vector<1x8x8x32xf32>
    %26 = vector.shape_cast %25 : vector<1x8x8x32xf32> to vector<8x8x32xf32>
    %27 = vector.shape_cast %24 : vector<8x8x32xf32> to vector<1x8x8x32xf32>
    tpu.vector_store %arg16[%c1_24, %c1_25, %c0_26, %c0_27], %27 {strides = array<i32>} : memref<4x9x9x32xf32, #tpu.memory_space<vmem>>, vector<1x8x8x32xf32>,
    %28 = vector.extract_strided_slice %13 {offsets = [0, 1, 0, 0, 0], sizes = [1, 1, 8, 8, 32], strides = [1, 1, 1, 1, 1]} : vector<1x4x8x8x32xf32> to vector<1x1x8x8x32xf32>
    %29 = vector.shape_cast %28 : vector<1x1x8x8x32xf32> to vector<8x8x32xf32>
    %c2 = arith.constant 2 : index
    %c0_28 = arith.constant 0 : index
    %c1_29 = arith.constant 1 : index
    %c0_30 = arith.constant 0 : index
    %30 = vector.load %arg16[%c2, %c0_28, %c1_29, %c0_30] : memref<4x9x9x32xf32, #tpu.memory_space<vmem>>, vector<1x8x8x32xf32>
    %31 = vector.shape_cast %30 : vector<1x8x8x32xf32> to vector<8x8x32xf32>
    %32 = vector.shape_cast %29 : vector<8x8x32xf32> to vector<1x8x8x32xf32>
    tpu.vector_store %arg16[%c2, %c0_28, %c1_29, %c0_30], %32 {strides = array<i32>} : memref<4x9x9x32xf32, #tpu.memory_space<vmem>>, vector<1x8x8x32xf32>,
    %33 = vector.extract_strided_slice %13 {offsets = [0, 0, 0, 0, 0], sizes = [1, 1, 8, 8, 32], strides = [1, 1, 1, 1, 1]} : vector<1x4x8x8x32xf32> to vector<1x1x8x8x32xf32>
    %34 = vector.shape_cast %33 : vector<1x1x8x8x32xf32> to vector<8x8x32xf32>
    %c3 = arith.constant 3 : index
    %c0_31 = arith.constant 0 : index
    %c0_32 = arith.constant 0 : index
    %c0_33 = arith.constant 0 : index
    %35 = vector.load %arg16[%c3, %c0_31, %c0_32, %c0_33] : memref<4x9x9x32xf32, #tpu.memory_space<vmem>>, vector<1x8x8x32xf32>
    %36 = vector.shape_cast %35 : vector<1x8x8x32xf32> to vector<8x8x32xf32>
    %37 = vector.shape_cast %34 : vector<8x8x32xf32> to vector<1x8x8x32xf32>
    tpu.vector_store %arg16[%c3, %c0_31, %c0_32, %c0_33], %37 {strides = array<i32>} : memref<4x9x9x32xf32, #tpu.memory_space<vmem>>, vector<1x8x8x32xf32>,
    %c0_34 = arith.constant 0 : index
    %c0_35 = arith.constant 0 : index
    %c0_36 = arith.constant 0 : index
    %c0_37 = arith.constant 0 : index
    %38 = vector.load %arg16[%c0_34, %c0_35, %c0_36, %c0_37] : memref<4x9x9x32xf32, #tpu.memory_space<vmem>>, vector<1x9x9x32xf32>
    %39 = vector.shape_cast %38 : vector<1x9x9x32xf32> to vector<9x9x32xf32>
    %c1_38 = arith.constant 1 : index
    %c0_39 = arith.constant 0 : index
    %c0_40 = arith.constant 0 : index
    %c0_41 = arith.constant 0 : index
    %40 = vector.load %arg16[%c1_38, %c0_39, %c0_40, %c0_41] : memref<4x9x9x32xf32, #tpu.memory_space<vmem>>, vector<1x9x9x32xf32>
    %41 = vector.shape_cast %40 : vector<1x9x9x32xf32> to vector<9x9x32xf32>
    %c2_42 = arith.constant 2 : index
    %c0_43 = arith.constant 0 : index
    %c0_44 = arith.constant 0 : index
    %c0_45 = arith.constant 0 : index
    %42 = vector.load %arg16[%c2_42, %c0_43, %c0_44, %c0_45] : memref<4x9x9x32xf32, #tpu.memory_space<vmem>>, vector<1x9x9x32xf32>
    %43 = vector.shape_cast %42 : vector<1x9x9x32xf32> to vector<9x9x32xf32>
    %c3_46 = arith.constant 3 : index
    %c0_47 = arith.constant 0 : index
    %c0_48 = arith.constant 0 : index
    %c0_49 = arith.constant 0 : index
    %44 = vector.load %arg16[%c3_46, %c0_47, %c0_48, %c0_49] : memref<4x9x9x32xf32, #tpu.memory_space<vmem>>, vector<1x9x9x32xf32>
    %45 = vector.shape_cast %44 : vector<1x9x9x32xf32> to vector<9x9x32xf32>
    %cst_50 = arith.constant 0.000000e+00 : f32
    %46 = vector.broadcast %cst_50 : f32 to vector<8x8x32xf32>
    %47 = vector.extract_strided_slice %39 {offsets = [0, 0, 0], sizes = [8, 8, 32], strides = [1, 1, 1]} : vector<9x9x32xf32> to vector<8x8x32xf32>
    %c0_51 = arith.constant 0 : index
    %c0_52 = arith.constant 0 : index
    %48 = vector.load %arg5[%c0_51, %c0_52] : memref<9x32xf32, #tpu.memory_space<vmem>>, vector<1x32xf32>
    %49 = vector.shape_cast %48 : vector<1x32xf32> to vector<32xf32>
    %50 = vector.shape_cast %49 : vector<32xf32> to vector<1x1x32xf32>
    %51 = vector.broadcast %50 : vector<1x1x32xf32> to vector<8x8x32xf32>
    %52 = arith.mulf %47, %51 : vector<8x8x32xf32>
    %53 = arith.addf %46, %52 : vector<8x8x32xf32>
    %54 = vector.extract_strided_slice %41 {offsets = [0, 0, 0], sizes = [8, 8, 32], strides = [1, 1, 1]} : vector<9x9x32xf32> to vector<8x8x32xf32>
    %c1_53 = arith.constant 1 : index
    %c0_54 = arith.constant 0 : index
    %55 = vector.load %arg5[%c1_53, %c0_54] : memref<9x32xf32, #tpu.memory_space<vmem>>, vector<1x32xf32>
    %56 = vector.shape_cast %55 : vector<1x32xf32> to vector<32xf32>
    %57 = vector.shape_cast %56 : vector<32xf32> to vector<1x1x32xf32>
    %58 = vector.broadcast %57 : vector<1x1x32xf32> to vector<8x8x32xf32>
    %59 = arith.mulf %54, %58 : vector<8x8x32xf32>
    %60 = arith.addf %53, %59 : vector<8x8x32xf32>
    %61 = vector.extract_strided_slice %39 {offsets = [0, 1, 0], sizes = [8, 8, 32], strides = [1, 1, 1]} : vector<9x9x32xf32> to vector<8x8x32xf32>
    %c2_55 = arith.constant 2 : index
    %c0_56 = arith.constant 0 : index
    %62 = vector.load %arg5[%c2_55, %c0_56] : memref<9x32xf32, #tpu.memory_space<vmem>>, vector<1x32xf32>
    %63 = vector.shape_cast %62 : vector<1x32xf32> to vector<32xf32>
    %64 = vector.shape_cast %63 : vector<32xf32> to vector<1x1x32xf32>
    %65 = vector.broadcast %64 : vector<1x1x32xf32> to vector<8x8x32xf32>
    %66 = arith.mulf %61, %65 : vector<8x8x32xf32>
    %67 = arith.addf %60, %66 : vector<8x8x32xf32>
    %68 = vector.extract_strided_slice %43 {offsets = [0, 0, 0], sizes = [8, 8, 32], strides = [1, 1, 1]} : vector<9x9x32xf32> to vector<8x8x32xf32>
    %c3_57 = arith.constant 3 : index
    %c0_58 = arith.constant 0 : index
    %69 = vector.load %arg5[%c3_57, %c0_58] : memref<9x32xf32, #tpu.memory_space<vmem>>, vector<1x32xf32>
    %70 = vector.shape_cast %69 : vector<1x32xf32> to vector<32xf32>
    %71 = vector.shape_cast %70 : vector<32xf32> to vector<1x1x32xf32>
    %72 = vector.broadcast %71 : vector<1x1x32xf32> to vector<8x8x32xf32>
    %73 = arith.mulf %68, %72 : vector<8x8x32xf32>
    %74 = arith.addf %67, %73 : vector<8x8x32xf32>
    %75 = vector.extract_strided_slice %45 {offsets = [0, 0, 0], sizes = [8, 8, 32], strides = [1, 1, 1]} : vector<9x9x32xf32> to vector<8x8x32xf32>
    %c4 = arith.constant 4 : index
    %c0_59 = arith.constant 0 : index
    %76 = vector.load %arg5[%c4, %c0_59] : memref<9x32xf32, #tpu.memory_space<vmem>>, vector<1x32xf32>
    %77 = vector.shape_cast %76 : vector<1x32xf32> to vector<32xf32>
    %78 = vector.shape_cast %77 : vector<32xf32> to vector<1x1x32xf32>
    %79 = vector.broadcast %78 : vector<1x1x32xf32> to vector<8x8x32xf32>
    %80 = arith.mulf %75, %79 : vector<8x8x32xf32>
    %81 = arith.addf %74, %80 : vector<8x8x32xf32>
    %82 = vector.extract_strided_slice %43 {offsets = [0, 1, 0], sizes = [8, 8, 32], strides = [1, 1, 1]} : vector<9x9x32xf32> to vector<8x8x32xf32>
    %c5 = arith.constant 5 : index
    %c0_60 = arith.constant 0 : index
    %83 = vector.load %arg5[%c5, %c0_60] : memref<9x32xf32, #tpu.memory_space<vmem>>, vector<1x32xf32>
    %84 = vector.shape_cast %83 : vector<1x32xf32> to vector<32xf32>
    %85 = vector.shape_cast %84 : vector<32xf32> to vector<1x1x32xf32>
    %86 = vector.broadcast %85 : vector<1x1x32xf32> to vector<8x8x32xf32>
    %87 = arith.mulf %82, %86 : vector<8x8x32xf32>
    %88 = arith.addf %81, %87 : vector<8x8x32xf32>
    %89 = vector.extract_strided_slice %39 {offsets = [1, 0, 0], sizes = [8, 8, 32], strides = [1, 1, 1]} : vector<9x9x32xf32> to vector<8x8x32xf32>
    %c6 = arith.constant 6 : index
    %c0_61 = arith.constant 0 : index
    %90 = vector.load %arg5[%c6, %c0_61] : memref<9x32xf32, #tpu.memory_space<vmem>>, vector<1x32xf32>
    %91 = vector.shape_cast %90 : vector<1x32xf32> to vector<32xf32>
    %92 = vector.shape_cast %91 : vector<32xf32> to vector<1x1x32xf32>
    %93 = vector.broadcast %92 : vector<1x1x32xf32> to vector<8x8x32xf32>
    %94 = arith.mulf %89, %93 : vector<8x8x32xf32>
    %95 = arith.addf %88, %94 : vector<8x8x32xf32>
    %96 = vector.extract_strided_slice %41 {offsets = [1, 0, 0], sizes = [8, 8, 32], strides = [1, 1, 1]} : vector<9x9x32xf32> to vector<8x8x32xf32>
    %c7 = arith.constant 7 : index
    %c0_62 = arith.constant 0 : index
    %97 = vector.load %arg5[%c7, %c0_62] : memref<9x32xf32, #tpu.memory_space<vmem>>, vector<1x32xf32>
    %98 = vector.shape_cast %97 : vector<1x32xf32> to vector<32xf32>
    %99 = vector.shape_cast %98 : vector<32xf32> to vector<1x1x32xf32>
    %100 = vector.broadcast %99 : vector<1x1x32xf32> to vector<8x8x32xf32>
    %101 = arith.mulf %96, %100 : vector<8x8x32xf32>
    %102 = arith.addf %95, %101 : vector<8x8x32xf32>
    %103 = vector.extract_strided_slice %39 {offsets = [1, 1, 0], sizes = [8, 8, 32], strides = [1, 1, 1]} : vector<9x9x32xf32> to vector<8x8x32xf32>
    %c8 = arith.constant 8 : index
    %c0_63 = arith.constant 0 : index
    %104 = vector.load %arg5[%c8, %c0_63] : memref<9x32xf32, #tpu.memory_space<vmem>>, vector<1x32xf32>
    %105 = vector.shape_cast %104 : vector<1x32xf32> to vector<32xf32>
    %106 = vector.shape_cast %105 : vector<32xf32> to vector<1x1x32xf32>
    %107 = vector.broadcast %106 : vector<1x1x32xf32> to vector<8x8x32xf32>
    %108 = arith.mulf %103, %107 : vector<8x8x32xf32>
    %109 = arith.addf %102, %108 : vector<8x8x32xf32>
    %c0_64 = arith.constant 0 : index
    %c0_65 = arith.constant 0 : index
    %110 = vector.load %arg6[%c0_64, %c0_65] : memref<1x32xf32, #tpu.memory_space<vmem>>, vector<1x32xf32>
    %111 = vector.shape_cast %110 : vector<1x32xf32> to vector<1x1x32xf32>
    %112 = vector.broadcast %111 : vector<1x1x32xf32> to vector<8x8x32xf32>
    %113 = arith.addf %109, %112 : vector<8x8x32xf32>
    %cst_66 = arith.constant 0.000000e+00 : f32
    %114 = vector.broadcast %cst_66 : f32 to vector<8x8x32xf32>
    %115 = arith.cmpf oge, %113, %114 : vector<8x8x32xf32>
    %c0_67 = arith.constant 0 : index
    %c0_68 = arith.constant 0 : index
    %116 = vector.load %arg7[%c0_67, %c0_68] : memref<1x32xf32, #tpu.memory_space<vmem>>, vector<1x32xf32>
    %117 = vector.shape_cast %116 : vector<1x32xf32> to vector<1x1x32xf32>
    %118 = vector.broadcast %117 : vector<1x1x32xf32> to vector<8x8x32xf32>
    %119 = arith.mulf %113, %118 : vector<8x8x32xf32>
    %120 = arith.select %115, %113, %119 : vector<8x8x32xi1>, vector<8x8x32xf32>
    %121 = vector.shape_cast %120 : vector<8x8x32xf32> to vector<64x32xf32>
    %cst_69 = arith.constant dense<0.000000e+00> : vector<32xf32>
    %122 = vector.multi_reduction <add>, %121, %cst_69 [0] : vector<64x32xf32> to vector<32xf32>
    %123 = vector.shape_cast %122 : vector<32xf32> to vector<1x32xf32>
    %cst_70 = arith.constant 1.562500e-02 : f32
    %124 = vector.broadcast %cst_70 : f32 to vector<1x32xf32>
    %125 = arith.mulf %123, %124 : vector<1x32xf32>
    %c0_71 = arith.constant 0 : index
    %c0_72 = arith.constant 0 : index
    %126 = vector.load %arg18[%c0_71, %c0_72] : memref<2x32xf32, #tpu.memory_space<vmem>>, vector<1x32xf32>
    tpu.vector_store %arg18[%c0_71, %c0_72], %125 {strides = array<i32>} : memref<2x32xf32, #tpu.memory_space<vmem>>, vector<1x32xf32>,
    %cst_73 = arith.constant dense<0xFF800000> : vector<32xf32>
    %127 = vector.multi_reduction <maximumf>, %121, %cst_73 [0] : vector<64x32xf32> to vector<32xf32>
    %128 = vector.shape_cast %127 : vector<32xf32> to vector<1x32xf32>
    %c1_74 = arith.constant 1 : index
    %c0_75 = arith.constant 0 : index
    %129 = vector.load %arg18[%c1_74, %c0_75] : memref<2x32xf32, #tpu.memory_space<vmem>>, vector<1x32xf32>
    tpu.vector_store %arg18[%c1_74, %c0_75], %128 {strides = array<i32>} : memref<2x32xf32, #tpu.memory_space<vmem>>, vector<1x32xf32>,
    %c0_76 = arith.constant 0 : index
    %c0_77 = arith.constant 0 : index
    %130 = vector.load %arg18[%c0_76, %c0_77] : memref<2x32xf32, #tpu.memory_space<vmem>>, vector<2x32xf32>
    %c0_78 = arith.constant 0 : index
    %c0_79 = arith.constant 0 : index
    %131 = vector.load %arg8[%c0_78, %c0_79] : memref<32x2xf32, #tpu.memory_space<vmem>>, vector<32x2xf32>
    %cst_80 = arith.constant dense<0.000000e+00> : vector<2x2xf32>
    %132 = tpu.matmul %130, %131, %cst_80 {dimension_numbers = #tpu.dot_dimension_numbers<[1], [0], [0], [1], [0, 0, 1, 1], [], []>} : vector<2x32xf32>, vector<32x2xf32>, vector<2x2xf32> -> vector<2x2xf32>
    %c0_81 = arith.constant 0 : index
    %c0_82 = arith.constant 0 : index
    %133 = vector.load %arg9[%c0_81, %c0_82] : memref<1x2xf32, #tpu.memory_space<vmem>>, vector<1x2xf32>
    %134 = vector.broadcast %133 : vector<1x2xf32> to vector<2x2xf32>
    %135 = arith.addf %132, %134 : vector<2x2xf32>
    %cst_83 = arith.constant 0.000000e+00 : f32
    %136 = vector.broadcast %cst_83 : f32 to vector<2x2xf32>
    %137 = arith.maximumf %135, %136 : vector<2x2xf32>
    %c0_84 = arith.constant 0 : index
    %c0_85 = arith.constant 0 : index
    %138 = vector.load %arg10[%c0_84, %c0_85] : memref<2x32xf32, #tpu.memory_space<vmem>>, vector<2x32xf32>
    %cst_86 = arith.constant dense<0.000000e+00> : vector<2x32xf32>
    %139 = tpu.matmul %137, %138, %cst_86 {dimension_numbers = #tpu.dot_dimension_numbers<[1], [0], [0], [1], [0, 0, 1, 1], [], []>} : vector<2x2xf32>, vector<2x32xf32>, vector<2x32xf32> -> vector<2x32xf32>
    %c0_87 = arith.constant 0 : index
    %c0_88 = arith.constant 0 : index
    %140 = vector.load %arg11[%c0_87, %c0_88] : memref<1x32xf32, #tpu.memory_space<vmem>>, vector<1x32xf32>
    %141 = vector.broadcast %140 : vector<1x32xf32> to vector<2x32xf32>
    %142 = arith.addf %139, %141 : vector<2x32xf32>
    %143 = vector.extract_strided_slice %142 {offsets = [0, 0], sizes = [1, 32], strides = [1, 1]} : vector<2x32xf32> to vector<1x32xf32>
    %144 = vector.extract_strided_slice %142 {offsets = [1, 0], sizes = [1, 32], strides = [1, 1]} : vector<2x32xf32> to vector<1x32xf32>
    %145 = arith.addf %143, %144 : vector<1x32xf32>
    %146 = arith.negf %145 : vector<1x32xf32>
    %147 = math.exp %146 : vector<1x32xf32>
    %cst_89 = arith.constant 1.000000e+00 : f32
    %148 = vector.broadcast %cst_89 : f32 to vector<1x32xf32>
    %149 = arith.addf %148, %147 : vector<1x32xf32>
    %150 = arith.divf %148, %149 : vector<1x32xf32>
    %151 = vector.shape_cast %150 : vector<1x32xf32> to vector<1x1x32xf32>
    %152 = vector.broadcast %151 : vector<1x1x32xf32> to vector<8x8x32xf32>
    %153 = arith.mulf %120, %152 : vector<8x8x32xf32>
    %cst_90 = arith.constant dense<0xFF800000> : vector<8x8xf32>
    %154 = vector.multi_reduction <maximumf>, %153, %cst_90 [2] : vector<8x8x32xf32> to vector<8x8xf32>
    %155 = vector.shape_cast %154 : vector<8x8xf32> to vector<8x8x1xf32>
    %cst_91 = arith.constant dense<0.000000e+00> : vector<8x8xf32>
    %156 = vector.multi_reduction <add>, %153, %cst_91 [2] : vector<8x8x32xf32> to vector<8x8xf32>
    %157 = vector.shape_cast %156 : vector<8x8xf32> to vector<8x8x1xf32>
    %cst_92 = arith.constant 3.125000e-02 : f32
    %158 = vector.broadcast %cst_92 : f32 to vector<8x8x1xf32>
    %159 = arith.mulf %157, %158 : vector<8x8x1xf32>
    %160 = vector.shape_cast %155 : vector<8x8x1xf32> to vector<1x8x8x1xf32>
    %c0_93 = arith.constant 0 : index
    %c3_94 = arith.constant 3 : index
    %c3_95 = arith.constant 3 : index
    %c0_96 = arith.constant 0 : index
    %161 = vector.load %arg17[%c0_93, %c3_94, %c3_95, %c0_96] : memref<2x14x14x1xf32, #tpu.memory_space<vmem>>, vector<1x8x8x1xf32>
    tpu.vector_store %arg17[%c0_93, %c3_94, %c3_95, %c0_96], %160 {strides = array<i32>} : memref<2x14x14x1xf32, #tpu.memory_space<vmem>>, vector<1x8x8x1xf32>,
    %162 = vector.shape_cast %159 : vector<8x8x1xf32> to vector<1x8x8x1xf32>
    %c1_97 = arith.constant 1 : index
    %c3_98 = arith.constant 3 : index
    %c3_99 = arith.constant 3 : index
    %c0_100 = arith.constant 0 : index
    %163 = vector.load %arg17[%c1_97, %c3_98, %c3_99, %c0_100] : memref<2x14x14x1xf32, #tpu.memory_space<vmem>>, vector<1x8x8x1xf32>
    tpu.vector_store %arg17[%c1_97, %c3_98, %c3_99, %c0_100], %162 {strides = array<i32>} : memref<2x14x14x1xf32, #tpu.memory_space<vmem>>, vector<1x8x8x1xf32>,
    %cst_101 = arith.constant 0.000000e+00 : f32
    %164 = vector.broadcast %cst_101 : f32 to vector<8x8x1xf32>
    %c0_102 = arith.constant 0 : index
    %c0_103 = arith.constant 0 : index
    %c0_104 = arith.constant 0 : index
    %c0_105 = arith.constant 0 : index
    %165 = vector.load %arg17[%c0_102, %c0_103, %c0_104, %c0_105] : memref<2x14x14x1xf32, #tpu.memory_space<vmem>>, vector<1x8x8x1xf32>
    %166 = vector.shape_cast %165 : vector<1x8x8x1xf32> to vector<8x8x1xf32>
    %c1_106 = arith.constant 1 : index
    %c0_107 = arith.constant 0 : index
    %c0_108 = arith.constant 0 : index
    %c0_109 = arith.constant 0 : index
    %167 = vector.load %arg17[%c1_106, %c0_107, %c0_108, %c0_109] : memref<2x14x14x1xf32, #tpu.memory_space<vmem>>, vector<1x8x8x1xf32>
    %168 = vector.shape_cast %167 : vector<1x8x8x1xf32> to vector<8x8x1xf32>
    %c0_110 = arith.constant 0 : index
    %169 = memref.load %arg12[%c0_110] : memref<99xf32, #tpu.memory_space<smem>>
    %170 = vector.broadcast %169 : f32 to vector<8x8x1xf32>
    %171 = arith.mulf %166, %170 : vector<8x8x1xf32>
    %172 = arith.addf %164, %171 : vector<8x8x1xf32>
    %c49 = arith.constant 49 : index
    %173 = memref.load %arg12[%c49] : memref<99xf32, #tpu.memory_space<smem>>
    %174 = vector.broadcast %173 : f32 to vector<8x8x1xf32>
    %175 = arith.mulf %168, %174 : vector<8x8x1xf32>
    %176 = arith.addf %172, %175 : vector<8x8x1xf32>
    %c0_111 = arith.constant 0 : index
    %c0_112 = arith.constant 0 : index
    %c1_113 = arith.constant 1 : index
    %c0_114 = arith.constant 0 : index
    %177 = vector.load %arg17[%c0_111, %c0_112, %c1_113, %c0_114] : memref<2x14x14x1xf32, #tpu.memory_space<vmem>>, vector<1x8x8x1xf32>
    %178 = vector.shape_cast %177 : vector<1x8x8x1xf32> to vector<8x8x1xf32>
    %c1_115 = arith.constant 1 : index
    %c0_116 = arith.constant 0 : index
    %c1_117 = arith.constant 1 : index
    %c0_118 = arith.constant 0 : index
    %179 = vector.load %arg17[%c1_115, %c0_116, %c1_117, %c0_118] : memref<2x14x14x1xf32, #tpu.memory_space<vmem>>, vector<1x8x8x1xf32>
    %180 = vector.shape_cast %179 : vector<1x8x8x1xf32> to vector<8x8x1xf32>
    %c1_119 = arith.constant 1 : index
    %181 = memref.load %arg12[%c1_119] : memref<99xf32, #tpu.memory_space<smem>>
    %182 = vector.broadcast %181 : f32 to vector<8x8x1xf32>
    %183 = arith.mulf %178, %182 : vector<8x8x1xf32>
    %184 = arith.addf %176, %183 : vector<8x8x1xf32>
    %c50 = arith.constant 50 : index
    %185 = memref.load %arg12[%c50] : memref<99xf32, #tpu.memory_space<smem>>
    %186 = vector.broadcast %185 : f32 to vector<8x8x1xf32>
    %187 = arith.mulf %180, %186 : vector<8x8x1xf32>
    %188 = arith.addf %184, %187 : vector<8x8x1xf32>
    %c0_120 = arith.constant 0 : index
    %c0_121 = arith.constant 0 : index
    %c2_122 = arith.constant 2 : index
    %c0_123 = arith.constant 0 : index
    %189 = vector.load %arg17[%c0_120, %c0_121, %c2_122, %c0_123] : memref<2x14x14x1xf32, #tpu.memory_space<vmem>>, vector<1x8x8x1xf32>
    %190 = vector.shape_cast %189 : vector<1x8x8x1xf32> to vector<8x8x1xf32>
    %c1_124 = arith.constant 1 : index
    %c0_125 = arith.constant 0 : index
    %c2_126 = arith.constant 2 : index
    %c0_127 = arith.constant 0 : index
    %191 = vector.load %arg17[%c1_124, %c0_125, %c2_126, %c0_127] : memref<2x14x14x1xf32, #tpu.memory_space<vmem>>, vector<1x8x8x1xf32>
    %192 = vector.shape_cast %191 : vector<1x8x8x1xf32> to vector<8x8x1xf32>
    %c2_128 = arith.constant 2 : index
    %193 = memref.load %arg12[%c2_128] : memref<99xf32, #tpu.memory_space<smem>>
    %194 = vector.broadcast %193 : f32 to vector<8x8x1xf32>
    %195 = arith.mulf %190, %194 : vector<8x8x1xf32>
    %196 = arith.addf %188, %195 : vector<8x8x1xf32>
    %c51 = arith.constant 51 : index
    %197 = memref.load %arg12[%c51] : memref<99xf32, #tpu.memory_space<smem>>
    %198 = vector.broadcast %197 : f32 to vector<8x8x1xf32>
    %199 = arith.mulf %192, %198 : vector<8x8x1xf32>
    %200 = arith.addf %196, %199 : vector<8x8x1xf32>
    %c0_129 = arith.constant 0 : index
    %c0_130 = arith.constant 0 : index
    %c3_131 = arith.constant 3 : index
    %c0_132 = arith.constant 0 : index
    %201 = vector.load %arg17[%c0_129, %c0_130, %c3_131, %c0_132] : memref<2x14x14x1xf32, #tpu.memory_space<vmem>>, vector<1x8x8x1xf32>
    %202 = vector.shape_cast %201 : vector<1x8x8x1xf32> to vector<8x8x1xf32>
    %c1_133 = arith.constant 1 : index
    %c0_134 = arith.constant 0 : index
    %c3_135 = arith.constant 3 : index
    %c0_136 = arith.constant 0 : index
    %203 = vector.load %arg17[%c1_133, %c0_134, %c3_135, %c0_136] : memref<2x14x14x1xf32, #tpu.memory_space<vmem>>, vector<1x8x8x1xf32>
    %204 = vector.shape_cast %203 : vector<1x8x8x1xf32> to vector<8x8x1xf32>
    %c3_137 = arith.constant 3 : index
    %205 = memref.load %arg12[%c3_137] : memref<99xf32, #tpu.memory_space<smem>>
    %206 = vector.broadcast %205 : f32 to vector<8x8x1xf32>
    %207 = arith.mulf %202, %206 : vector<8x8x1xf32>
    %208 = arith.addf %200, %207 : vector<8x8x1xf32>
    %c52 = arith.constant 52 : index
    %209 = memref.load %arg12[%c52] : memref<99xf32, #tpu.memory_space<smem>>
    %210 = vector.broadcast %209 : f32 to vector<8x8x1xf32>
    %211 = arith.mulf %204, %210 : vector<8x8x1xf32>
    %212 = arith.addf %208, %211 : vector<8x8x1xf32>
    %c0_138 = arith.constant 0 : index
    %c0_139 = arith.constant 0 : index
    %c4_140 = arith.constant 4 : index
    %c0_141 = arith.constant 0 : index
    %213 = vector.load %arg17[%c0_138, %c0_139, %c4_140, %c0_141] : memref<2x14x14x1xf32, #tpu.memory_space<vmem>>, vector<1x8x8x1xf32>
    %214 = vector.shape_cast %213 : vector<1x8x8x1xf32> to vector<8x8x1xf32>
    %c1_142 = arith.constant 1 : index
    %c0_143 = arith.constant 0 : index
    %c4_144 = arith.constant 4 : index
    %c0_145 = arith.constant 0 : index
    %215 = vector.load %arg17[%c1_142, %c0_143, %c4_144, %c0_145] : memref<2x14x14x1xf32, #tpu.memory_space<vmem>>, vector<1x8x8x1xf32>
    %216 = vector.shape_cast %215 : vector<1x8x8x1xf32> to vector<8x8x1xf32>
    %c4_146 = arith.constant 4 : index
    %217 = memref.load %arg12[%c4_146] : memref<99xf32, #tpu.memory_space<smem>>
    %218 = vector.broadcast %217 : f32 to vector<8x8x1xf32>
    %219 = arith.mulf %214, %218 : vector<8x8x1xf32>
    %220 = arith.addf %212, %219 : vector<8x8x1xf32>
    %c53 = arith.constant 53 : index
    %221 = memref.load %arg12[%c53] : memref<99xf32, #tpu.memory_space<smem>>
    %222 = vector.broadcast %221 : f32 to vector<8x8x1xf32>
    %223 = arith.mulf %216, %222 : vector<8x8x1xf32>
    %224 = arith.addf %220, %223 : vector<8x8x1xf32>
    %c0_147 = arith.constant 0 : index
    %c0_148 = arith.constant 0 : index
    %c5_149 = arith.constant 5 : index
    %c0_150 = arith.constant 0 : index
    %225 = vector.load %arg17[%c0_147, %c0_148, %c5_149, %c0_150] : memref<2x14x14x1xf32, #tpu.memory_space<vmem>>, vector<1x8x8x1xf32>
    %226 = vector.shape_cast %225 : vector<1x8x8x1xf32> to vector<8x8x1xf32>
    %c1_151 = arith.constant 1 : index
    %c0_152 = arith.constant 0 : index
    %c5_153 = arith.constant 5 : index
    %c0_154 = arith.constant 0 : index
    %227 = vector.load %arg17[%c1_151, %c0_152, %c5_153, %c0_154] : memref<2x14x14x1xf32, #tpu.memory_space<vmem>>, vector<1x8x8x1xf32>
    %228 = vector.shape_cast %227 : vector<1x8x8x1xf32> to vector<8x8x1xf32>
    %c5_155 = arith.constant 5 : index
    %229 = memref.load %arg12[%c5_155] : memref<99xf32, #tpu.memory_space<smem>>
    %230 = vector.broadcast %229 : f32 to vector<8x8x1xf32>
    %231 = arith.mulf %226, %230 : vector<8x8x1xf32>
    %232 = arith.addf %224, %231 : vector<8x8x1xf32>
    %c54 = arith.constant 54 : index
    %233 = memref.load %arg12[%c54] : memref<99xf32, #tpu.memory_space<smem>>
    %234 = vector.broadcast %233 : f32 to vector<8x8x1xf32>
    %235 = arith.mulf %228, %234 : vector<8x8x1xf32>
    %236 = arith.addf %232, %235 : vector<8x8x1xf32>
    %c0_156 = arith.constant 0 : index
    %c0_157 = arith.constant 0 : index
    %c6_158 = arith.constant 6 : index
    %c0_159 = arith.constant 0 : index
    %237 = vector.load %arg17[%c0_156, %c0_157, %c6_158, %c0_159] : memref<2x14x14x1xf32, #tpu.memory_space<vmem>>, vector<1x8x8x1xf32>
    %238 = vector.shape_cast %237 : vector<1x8x8x1xf32> to vector<8x8x1xf32>
    %c1_160 = arith.constant 1 : index
    %c0_161 = arith.constant 0 : index
    %c6_162 = arith.constant 6 : index
    %c0_163 = arith.constant 0 : index
    %239 = vector.load %arg17[%c1_160, %c0_161, %c6_162, %c0_163] : memref<2x14x14x1xf32, #tpu.memory_space<vmem>>, vector<1x8x8x1xf32>
    %240 = vector.shape_cast %239 : vector<1x8x8x1xf32> to vector<8x8x1xf32>
    %c6_164 = arith.constant 6 : index
    %241 = memref.load %arg12[%c6_164] : memref<99xf32, #tpu.memory_space<smem>>
    %242 = vector.broadcast %241 : f32 to vector<8x8x1xf32>
    %243 = arith.mulf %238, %242 : vector<8x8x1xf32>
    %244 = arith.addf %236, %243 : vector<8x8x1xf32>
    %c55 = arith.constant 55 : index
    %245 = memref.load %arg12[%c55] : memref<99xf32, #tpu.memory_space<smem>>
    %246 = vector.broadcast %245 : f32 to vector<8x8x1xf32>
    %247 = arith.mulf %240, %246 : vector<8x8x1xf32>
    %248 = arith.addf %244, %247 : vector<8x8x1xf32>
    %c0_165 = arith.constant 0 : index
    %c1_166 = arith.constant 1 : index
    %c0_167 = arith.constant 0 : index
    %c0_168 = arith.constant 0 : index
    %249 = vector.load %arg17[%c0_165, %c1_166, %c0_167, %c0_168] : memref<2x14x14x1xf32, #tpu.memory_space<vmem>>, vector<1x8x8x1xf32>
    %250 = vector.shape_cast %249 : vector<1x8x8x1xf32> to vector<8x8x1xf32>
    %c1_169 = arith.constant 1 : index
    %c1_170 = arith.constant 1 : index
    %c0_171 = arith.constant 0 : index
    %c0_172 = arith.constant 0 : index
    %251 = vector.load %arg17[%c1_169, %c1_170, %c0_171, %c0_172] : memref<2x14x14x1xf32, #tpu.memory_space<vmem>>, vector<1x8x8x1xf32>
    %252 = vector.shape_cast %251 : vector<1x8x8x1xf32> to vector<8x8x1xf32>
    %c7_173 = arith.constant 7 : index
    %253 = memref.load %arg12[%c7_173] : memref<99xf32, #tpu.memory_space<smem>>
    %254 = vector.broadcast %253 : f32 to vector<8x8x1xf32>
    %255 = arith.mulf %250, %254 : vector<8x8x1xf32>
    %256 = arith.addf %248, %255 : vector<8x8x1xf32>
    %c56 = arith.constant 56 : index
    %257 = memref.load %arg12[%c56] : memref<99xf32, #tpu.memory_space<smem>>
    %258 = vector.broadcast %257 : f32 to vector<8x8x1xf32>
    %259 = arith.mulf %252, %258 : vector<8x8x1xf32>
    %260 = arith.addf %256, %259 : vector<8x8x1xf32>
    %c0_174 = arith.constant 0 : index
    %c1_175 = arith.constant 1 : index
    %c1_176 = arith.constant 1 : index
    %c0_177 = arith.constant 0 : index
    %261 = vector.load %arg17[%c0_174, %c1_175, %c1_176, %c0_177] : memref<2x14x14x1xf32, #tpu.memory_space<vmem>>, vector<1x8x8x1xf32>
    %262 = vector.shape_cast %261 : vector<1x8x8x1xf32> to vector<8x8x1xf32>
    %c1_178 = arith.constant 1 : index
    %c1_179 = arith.constant 1 : index
    %c1_180 = arith.constant 1 : index
    %c0_181 = arith.constant 0 : index
    %263 = vector.load %arg17[%c1_178, %c1_179, %c1_180, %c0_181] : memref<2x14x14x1xf32, #tpu.memory_space<vmem>>, vector<1x8x8x1xf32>
    %264 = vector.shape_cast %263 : vector<1x8x8x1xf32> to vector<8x8x1xf32>
    %c8_182 = arith.constant 8 : index
    %265 = memref.load %arg12[%c8_182] : memref<99xf32, #tpu.memory_space<smem>>
    %266 = vector.broadcast %265 : f32 to vector<8x8x1xf32>
    %267 = arith.mulf %262, %266 : vector<8x8x1xf32>
    %268 = arith.addf %260, %267 : vector<8x8x1xf32>
    %c57 = arith.constant 57 : index
    %269 = memref.load %arg12[%c57] : memref<99xf32, #tpu.memory_space<smem>>
    %270 = vector.broadcast %269 : f32 to vector<8x8x1xf32>
    %271 = arith.mulf %264, %270 : vector<8x8x1xf32>
    %272 = arith.addf %268, %271 : vector<8x8x1xf32>
    %c0_183 = arith.constant 0 : index
    %c1_184 = arith.constant 1 : index
    %c2_185 = arith.constant 2 : index
    %c0_186 = arith.constant 0 : index
    %273 = vector.load %arg17[%c0_183, %c1_184, %c2_185, %c0_186] : memref<2x14x14x1xf32, #tpu.memory_space<vmem>>, vector<1x8x8x1xf32>
    %274 = vector.shape_cast %273 : vector<1x8x8x1xf32> to vector<8x8x1xf32>
    %c1_187 = arith.constant 1 : index
    %c1_188 = arith.constant 1 : index
    %c2_189 = arith.constant 2 : index
    %c0_190 = arith.constant 0 : index
    %275 = vector.load %arg17[%c1_187, %c1_188, %c2_189, %c0_190] : memref<2x14x14x1xf32, #tpu.memory_space<vmem>>, vector<1x8x8x1xf32>
    %276 = vector.shape_cast %275 : vector<1x8x8x1xf32> to vector<8x8x1xf32>
    %c9 = arith.constant 9 : index
    %277 = memref.load %arg12[%c9] : memref<99xf32, #tpu.memory_space<smem>>
    %278 = vector.broadcast %277 : f32 to vector<8x8x1xf32>
    %279 = arith.mulf %274, %278 : vector<8x8x1xf32>
    %280 = arith.addf %272, %279 : vector<8x8x1xf32>
    %c58 = arith.constant 58 : index
    %281 = memref.load %arg12[%c58] : memref<99xf32, #tpu.memory_space<smem>>
    %282 = vector.broadcast %281 : f32 to vector<8x8x1xf32>
    %283 = arith.mulf %276, %282 : vector<8x8x1xf32>
    %284 = arith.addf %280, %283 : vector<8x8x1xf32>
    %c0_191 = arith.constant 0 : index
    %c1_192 = arith.constant 1 : index
    %c3_193 = arith.constant 3 : index
    %c0_194 = arith.constant 0 : index
    %285 = vector.load %arg17[%c0_191, %c1_192, %c3_193, %c0_194] : memref<2x14x14x1xf32, #tpu.memory_space<vmem>>, vector<1x8x8x1xf32>
    %286 = vector.shape_cast %285 : vector<1x8x8x1xf32> to vector<8x8x1xf32>
    %c1_195 = arith.constant 1 : index
    %c1_196 = arith.constant 1 : index
    %c3_197 = arith.constant 3 : index
    %c0_198 = arith.constant 0 : index
    %287 = vector.load %arg17[%c1_195, %c1_196, %c3_197, %c0_198] : memref<2x14x14x1xf32, #tpu.memory_space<vmem>>, vector<1x8x8x1xf32>
    %288 = vector.shape_cast %287 : vector<1x8x8x1xf32> to vector<8x8x1xf32>
    %c10 = arith.constant 10 : index
    %289 = memref.load %arg12[%c10] : memref<99xf32, #tpu.memory_space<smem>>
    %290 = vector.broadcast %289 : f32 to vector<8x8x1xf32>
    %291 = arith.mulf %286, %290 : vector<8x8x1xf32>
    %292 = arith.addf %284, %291 : vector<8x8x1xf32>
    %c59 = arith.constant 59 : index
    %293 = memref.load %arg12[%c59] : memref<99xf32, #tpu.memory_space<smem>>
    %294 = vector.broadcast %293 : f32 to vector<8x8x1xf32>
    %295 = arith.mulf %288, %294 : vector<8x8x1xf32>
    %296 = arith.addf %292, %295 : vector<8x8x1xf32>
    %c0_199 = arith.constant 0 : index
    %c1_200 = arith.constant 1 : index
    %c4_201 = arith.constant 4 : index
    %c0_202 = arith.constant 0 : index
    %297 = vector.load %arg17[%c0_199, %c1_200, %c4_201, %c0_202] : memref<2x14x14x1xf32, #tpu.memory_space<vmem>>, vector<1x8x8x1xf32>
    %298 = vector.shape_cast %297 : vector<1x8x8x1xf32> to vector<8x8x1xf32>
    %c1_203 = arith.constant 1 : index
    %c1_204 = arith.constant 1 : index
    %c4_205 = arith.constant 4 : index
    %c0_206 = arith.constant 0 : index
    %299 = vector.load %arg17[%c1_203, %c1_204, %c4_205, %c0_206] : memref<2x14x14x1xf32, #tpu.memory_space<vmem>>, vector<1x8x8x1xf32>
    %300 = vector.shape_cast %299 : vector<1x8x8x1xf32> to vector<8x8x1xf32>
    %c11 = arith.constant 11 : index
    %301 = memref.load %arg12[%c11] : memref<99xf32, #tpu.memory_space<smem>>
    %302 = vector.broadcast %301 : f32 to vector<8x8x1xf32>
    %303 = arith.mulf %298, %302 : vector<8x8x1xf32>
    %304 = arith.addf %296, %303 : vector<8x8x1xf32>
    %c60 = arith.constant 60 : index
    %305 = memref.load %arg12[%c60] : memref<99xf32, #tpu.memory_space<smem>>
    %306 = vector.broadcast %305 : f32 to vector<8x8x1xf32>
    %307 = arith.mulf %300, %306 : vector<8x8x1xf32>
    %308 = arith.addf %304, %307 : vector<8x8x1xf32>
    %c0_207 = arith.constant 0 : index
    %c1_208 = arith.constant 1 : index
    %c5_209 = arith.constant 5 : index
    %c0_210 = arith.constant 0 : index
    %309 = vector.load %arg17[%c0_207, %c1_208, %c5_209, %c0_210] : memref<2x14x14x1xf32, #tpu.memory_space<vmem>>, vector<1x8x8x1xf32>
    %310 = vector.shape_cast %309 : vector<1x8x8x1xf32> to vector<8x8x1xf32>
    %c1_211 = arith.constant 1 : index
    %c1_212 = arith.constant 1 : index
    %c5_213 = arith.constant 5 : index
    %c0_214 = arith.constant 0 : index
    %311 = vector.load %arg17[%c1_211, %c1_212, %c5_213, %c0_214] : memref<2x14x14x1xf32, #tpu.memory_space<vmem>>, vector<1x8x8x1xf32>
    %312 = vector.shape_cast %311 : vector<1x8x8x1xf32> to vector<8x8x1xf32>
    %c12 = arith.constant 12 : index
    %313 = memref.load %arg12[%c12] : memref<99xf32, #tpu.memory_space<smem>>
    %314 = vector.broadcast %313 : f32 to vector<8x8x1xf32>
    %315 = arith.mulf %310, %314 : vector<8x8x1xf32>
    %316 = arith.addf %308, %315 : vector<8x8x1xf32>
    %c61 = arith.constant 61 : index
    %317 = memref.load %arg12[%c61] : memref<99xf32, #tpu.memory_space<smem>>
    %318 = vector.broadcast %317 : f32 to vector<8x8x1xf32>
    %319 = arith.mulf %312, %318 : vector<8x8x1xf32>
    %320 = arith.addf %316, %319 : vector<8x8x1xf32>
    %c0_215 = arith.constant 0 : index
    %c1_216 = arith.constant 1 : index
    %c6_217 = arith.constant 6 : index
    %c0_218 = arith.constant 0 : index
    %321 = vector.load %arg17[%c0_215, %c1_216, %c6_217, %c0_218] : memref<2x14x14x1xf32, #tpu.memory_space<vmem>>, vector<1x8x8x1xf32>
    %322 = vector.shape_cast %321 : vector<1x8x8x1xf32> to vector<8x8x1xf32>
    %c1_219 = arith.constant 1 : index
    %c1_220 = arith.constant 1 : index
    %c6_221 = arith.constant 6 : index
    %c0_222 = arith.constant 0 : index
    %323 = vector.load %arg17[%c1_219, %c1_220, %c6_221, %c0_222] : memref<2x14x14x1xf32, #tpu.memory_space<vmem>>, vector<1x8x8x1xf32>
    %324 = vector.shape_cast %323 : vector<1x8x8x1xf32> to vector<8x8x1xf32>
    %c13 = arith.constant 13 : index
    %325 = memref.load %arg12[%c13] : memref<99xf32, #tpu.memory_space<smem>>
    %326 = vector.broadcast %325 : f32 to vector<8x8x1xf32>
    %327 = arith.mulf %322, %326 : vector<8x8x1xf32>
    %328 = arith.addf %320, %327 : vector<8x8x1xf32>
    %c62 = arith.constant 62 : index
    %329 = memref.load %arg12[%c62] : memref<99xf32, #tpu.memory_space<smem>>
    %330 = vector.broadcast %329 : f32 to vector<8x8x1xf32>
    %331 = arith.mulf %324, %330 : vector<8x8x1xf32>
    %332 = arith.addf %328, %331 : vector<8x8x1xf32>
    %c0_223 = arith.constant 0 : index
    %c2_224 = arith.constant 2 : index
    %c0_225 = arith.constant 0 : index
    %c0_226 = arith.constant 0 : index
    %333 = vector.load %arg17[%c0_223, %c2_224, %c0_225, %c0_226] : memref<2x14x14x1xf32, #tpu.memory_space<vmem>>, vector<1x8x8x1xf32>
    %334 = vector.shape_cast %333 : vector<1x8x8x1xf32> to vector<8x8x1xf32>
    %c1_227 = arith.constant 1 : index
    %c2_228 = arith.constant 2 : index
    %c0_229 = arith.constant 0 : index
    %c0_230 = arith.constant 0 : index
    %335 = vector.load %arg17[%c1_227, %c2_228, %c0_229, %c0_230] : memref<2x14x14x1xf32, #tpu.memory_space<vmem>>, vector<1x8x8x1xf32>
    %336 = vector.shape_cast %335 : vector<1x8x8x1xf32> to vector<8x8x1xf32>
    %c14 = arith.constant 14 : index
    %337 = memref.load %arg12[%c14] : memref<99xf32, #tpu.memory_space<smem>>
    %338 = vector.broadcast %337 : f32 to vector<8x8x1xf32>
    %339 = arith.mulf %334, %338 : vector<8x8x1xf32>
    %340 = arith.addf %332, %339 : vector<8x8x1xf32>
    %c63 = arith.constant 63 : index
    %341 = memref.load %arg12[%c63] : memref<99xf32, #tpu.memory_space<smem>>
    %342 = vector.broadcast %341 : f32 to vector<8x8x1xf32>
    %343 = arith.mulf %336, %342 : vector<8x8x1xf32>
    %344 = arith.addf %340, %343 : vector<8x8x1xf32>
    %c0_231 = arith.constant 0 : index
    %c2_232 = arith.constant 2 : index
    %c1_233 = arith.constant 1 : index
    %c0_234 = arith.constant 0 : index
    %345 = vector.load %arg17[%c0_231, %c2_232, %c1_233, %c0_234] : memref<2x14x14x1xf32, #tpu.memory_space<vmem>>, vector<1x8x8x1xf32>
    %346 = vector.shape_cast %345 : vector<1x8x8x1xf32> to vector<8x8x1xf32>
    %c1_235 = arith.constant 1 : index
    %c2_236 = arith.constant 2 : index
    %c1_237 = arith.constant 1 : index
    %c0_238 = arith.constant 0 : index
    %347 = vector.load %arg17[%c1_235, %c2_236, %c1_237, %c0_238] : memref<2x14x14x1xf32, #tpu.memory_space<vmem>>, vector<1x8x8x1xf32>
    %348 = vector.shape_cast %347 : vector<1x8x8x1xf32> to vector<8x8x1xf32>
    %c15 = arith.constant 15 : index
    %349 = memref.load %arg12[%c15] : memref<99xf32, #tpu.memory_space<smem>>
    %350 = vector.broadcast %349 : f32 to vector<8x8x1xf32>
    %351 = arith.mulf %346, %350 : vector<8x8x1xf32>
    %352 = arith.addf %344, %351 : vector<8x8x1xf32>
    %c64 = arith.constant 64 : index
    %353 = memref.load %arg12[%c64] : memref<99xf32, #tpu.memory_space<smem>>
    %354 = vector.broadcast %353 : f32 to vector<8x8x1xf32>
    %355 = arith.mulf %348, %354 : vector<8x8x1xf32>
    %356 = arith.addf %352, %355 : vector<8x8x1xf32>
    %c0_239 = arith.constant 0 : index
    %c2_240 = arith.constant 2 : index
    %c2_241 = arith.constant 2 : index
    %c0_242 = arith.constant 0 : index
    %357 = vector.load %arg17[%c0_239, %c2_240, %c2_241, %c0_242] : memref<2x14x14x1xf32, #tpu.memory_space<vmem>>, vector<1x8x8x1xf32>
    %358 = vector.shape_cast %357 : vector<1x8x8x1xf32> to vector<8x8x1xf32>
    %c1_243 = arith.constant 1 : index
    %c2_244 = arith.constant 2 : index
    %c2_245 = arith.constant 2 : index
    %c0_246 = arith.constant 0 : index
    %359 = vector.load %arg17[%c1_243, %c2_244, %c2_245, %c0_246] : memref<2x14x14x1xf32, #tpu.memory_space<vmem>>, vector<1x8x8x1xf32>
    %360 = vector.shape_cast %359 : vector<1x8x8x1xf32> to vector<8x8x1xf32>
    %c16 = arith.constant 16 : index
    %361 = memref.load %arg12[%c16] : memref<99xf32, #tpu.memory_space<smem>>
    %362 = vector.broadcast %361 : f32 to vector<8x8x1xf32>
    %363 = arith.mulf %358, %362 : vector<8x8x1xf32>
    %364 = arith.addf %356, %363 : vector<8x8x1xf32>
    %c65 = arith.constant 65 : index
    %365 = memref.load %arg12[%c65] : memref<99xf32, #tpu.memory_space<smem>>
    %366 = vector.broadcast %365 : f32 to vector<8x8x1xf32>
    %367 = arith.mulf %360, %366 : vector<8x8x1xf32>
    %368 = arith.addf %364, %367 : vector<8x8x1xf32>
    %c0_247 = arith.constant 0 : index
    %c2_248 = arith.constant 2 : index
    %c3_249 = arith.constant 3 : index
    %c0_250 = arith.constant 0 : index
    %369 = vector.load %arg17[%c0_247, %c2_248, %c3_249, %c0_250] : memref<2x14x14x1xf32, #tpu.memory_space<vmem>>, vector<1x8x8x1xf32>
    %370 = vector.shape_cast %369 : vector<1x8x8x1xf32> to vector<8x8x1xf32>
    %c1_251 = arith.constant 1 : index
    %c2_252 = arith.constant 2 : index
    %c3_253 = arith.constant 3 : index
    %c0_254 = arith.constant 0 : index
    %371 = vector.load %arg17[%c1_251, %c2_252, %c3_253, %c0_254] : memref<2x14x14x1xf32, #tpu.memory_space<vmem>>, vector<1x8x8x1xf32>
    %372 = vector.shape_cast %371 : vector<1x8x8x1xf32> to vector<8x8x1xf32>
    %c17 = arith.constant 17 : index
    %373 = memref.load %arg12[%c17] : memref<99xf32, #tpu.memory_space<smem>>
    %374 = vector.broadcast %373 : f32 to vector<8x8x1xf32>
    %375 = arith.mulf %370, %374 : vector<8x8x1xf32>
    %376 = arith.addf %368, %375 : vector<8x8x1xf32>
    %c66 = arith.constant 66 : index
    %377 = memref.load %arg12[%c66] : memref<99xf32, #tpu.memory_space<smem>>
    %378 = vector.broadcast %377 : f32 to vector<8x8x1xf32>
    %379 = arith.mulf %372, %378 : vector<8x8x1xf32>
    %380 = arith.addf %376, %379 : vector<8x8x1xf32>
    %c0_255 = arith.constant 0 : index
    %c2_256 = arith.constant 2 : index
    %c4_257 = arith.constant 4 : index
    %c0_258 = arith.constant 0 : index
    %381 = vector.load %arg17[%c0_255, %c2_256, %c4_257, %c0_258] : memref<2x14x14x1xf32, #tpu.memory_space<vmem>>, vector<1x8x8x1xf32>
    %382 = vector.shape_cast %381 : vector<1x8x8x1xf32> to vector<8x8x1xf32>
    %c1_259 = arith.constant 1 : index
    %c2_260 = arith.constant 2 : index
    %c4_261 = arith.constant 4 : index
    %c0_262 = arith.constant 0 : index
    %383 = vector.load %arg17[%c1_259, %c2_260, %c4_261, %c0_262] : memref<2x14x14x1xf32, #tpu.memory_space<vmem>>, vector<1x8x8x1xf32>
    %384 = vector.shape_cast %383 : vector<1x8x8x1xf32> to vector<8x8x1xf32>
    %c18 = arith.constant 18 : index
    %385 = memref.load %arg12[%c18] : memref<99xf32, #tpu.memory_space<smem>>
    %386 = vector.broadcast %385 : f32 to vector<8x8x1xf32>
    %387 = arith.mulf %382, %386 : vector<8x8x1xf32>
    %388 = arith.addf %380, %387 : vector<8x8x1xf32>
    %c67 = arith.constant 67 : index
    %389 = memref.load %arg12[%c67] : memref<99xf32, #tpu.memory_space<smem>>
    %390 = vector.broadcast %389 : f32 to vector<8x8x1xf32>
    %391 = arith.mulf %384, %390 : vector<8x8x1xf32>
    %392 = arith.addf %388, %391 : vector<8x8x1xf32>
    %c0_263 = arith.constant 0 : index
    %c2_264 = arith.constant 2 : index
    %c5_265 = arith.constant 5 : index
    %c0_266 = arith.constant 0 : index
    %393 = vector.load %arg17[%c0_263, %c2_264, %c5_265, %c0_266] : memref<2x14x14x1xf32, #tpu.memory_space<vmem>>, vector<1x8x8x1xf32>
    %394 = vector.shape_cast %393 : vector<1x8x8x1xf32> to vector<8x8x1xf32>
    %c1_267 = arith.constant 1 : index
    %c2_268 = arith.constant 2 : index
    %c5_269 = arith.constant 5 : index
    %c0_270 = arith.constant 0 : index
    %395 = vector.load %arg17[%c1_267, %c2_268, %c5_269, %c0_270] : memref<2x14x14x1xf32, #tpu.memory_space<vmem>>, vector<1x8x8x1xf32>
    %396 = vector.shape_cast %395 : vector<1x8x8x1xf32> to vector<8x8x1xf32>
    %c19 = arith.constant 19 : index
    %397 = memref.load %arg12[%c19] : memref<99xf32, #tpu.memory_space<smem>>
    %398 = vector.broadcast %397 : f32 to vector<8x8x1xf32>
    %399 = arith.mulf %394, %398 : vector<8x8x1xf32>
    %400 = arith.addf %392, %399 : vector<8x8x1xf32>
    %c68 = arith.constant 68 : index
    %401 = memref.load %arg12[%c68] : memref<99xf32, #tpu.memory_space<smem>>
    %402 = vector.broadcast %401 : f32 to vector<8x8x1xf32>
    %403 = arith.mulf %396, %402 : vector<8x8x1xf32>
    %404 = arith.addf %400, %403 : vector<8x8x1xf32>
    %c0_271 = arith.constant 0 : index
    %c2_272 = arith.constant 2 : index
    %c6_273 = arith.constant 6 : index
    %c0_274 = arith.constant 0 : index
    %405 = vector.load %arg17[%c0_271, %c2_272, %c6_273, %c0_274] : memref<2x14x14x1xf32, #tpu.memory_space<vmem>>, vector<1x8x8x1xf32>
    %406 = vector.shape_cast %405 : vector<1x8x8x1xf32> to vector<8x8x1xf32>
    %c1_275 = arith.constant 1 : index
    %c2_276 = arith.constant 2 : index
    %c6_277 = arith.constant 6 : index
    %c0_278 = arith.constant 0 : index
    %407 = vector.load %arg17[%c1_275, %c2_276, %c6_277, %c0_278] : memref<2x14x14x1xf32, #tpu.memory_space<vmem>>, vector<1x8x8x1xf32>
    %408 = vector.shape_cast %407 : vector<1x8x8x1xf32> to vector<8x8x1xf32>
    %c20 = arith.constant 20 : index
    %409 = memref.load %arg12[%c20] : memref<99xf32, #tpu.memory_space<smem>>
    %410 = vector.broadcast %409 : f32 to vector<8x8x1xf32>
    %411 = arith.mulf %406, %410 : vector<8x8x1xf32>
    %412 = arith.addf %404, %411 : vector<8x8x1xf32>
    %c69 = arith.constant 69 : index
    %413 = memref.load %arg12[%c69] : memref<99xf32, #tpu.memory_space<smem>>
    %414 = vector.broadcast %413 : f32 to vector<8x8x1xf32>
    %415 = arith.mulf %408, %414 : vector<8x8x1xf32>
    %416 = arith.addf %412, %415 : vector<8x8x1xf32>
    %c0_279 = arith.constant 0 : index
    %c3_280 = arith.constant 3 : index
    %c0_281 = arith.constant 0 : index
    %c0_282 = arith.constant 0 : index
    %417 = vector.load %arg17[%c0_279, %c3_280, %c0_281, %c0_282] : memref<2x14x14x1xf32, #tpu.memory_space<vmem>>, vector<1x8x8x1xf32>
    %418 = vector.shape_cast %417 : vector<1x8x8x1xf32> to vector<8x8x1xf32>
    %c1_283 = arith.constant 1 : index
    %c3_284 = arith.constant 3 : index
    %c0_285 = arith.constant 0 : index
    %c0_286 = arith.constant 0 : index
    %419 = vector.load %arg17[%c1_283, %c3_284, %c0_285, %c0_286] : memref<2x14x14x1xf32, #tpu.memory_space<vmem>>, vector<1x8x8x1xf32>
    %420 = vector.shape_cast %419 : vector<1x8x8x1xf32> to vector<8x8x1xf32>
    %c21 = arith.constant 21 : index
    %421 = memref.load %arg12[%c21] : memref<99xf32, #tpu.memory_space<smem>>
    %422 = vector.broadcast %421 : f32 to vector<8x8x1xf32>
    %423 = arith.mulf %418, %422 : vector<8x8x1xf32>
    %424 = arith.addf %416, %423 : vector<8x8x1xf32>
    %c70 = arith.constant 70 : index
    %425 = memref.load %arg12[%c70] : memref<99xf32, #tpu.memory_space<smem>>
    %426 = vector.broadcast %425 : f32 to vector<8x8x1xf32>
    %427 = arith.mulf %420, %426 : vector<8x8x1xf32>
    %428 = arith.addf %424, %427 : vector<8x8x1xf32>
    %c0_287 = arith.constant 0 : index
    %c3_288 = arith.constant 3 : index
    %c1_289 = arith.constant 1 : index
    %c0_290 = arith.constant 0 : index
    %429 = vector.load %arg17[%c0_287, %c3_288, %c1_289, %c0_290] : memref<2x14x14x1xf32, #tpu.memory_space<vmem>>, vector<1x8x8x1xf32>
    %430 = vector.shape_cast %429 : vector<1x8x8x1xf32> to vector<8x8x1xf32>
    %c1_291 = arith.constant 1 : index
    %c3_292 = arith.constant 3 : index
    %c1_293 = arith.constant 1 : index
    %c0_294 = arith.constant 0 : index
    %431 = vector.load %arg17[%c1_291, %c3_292, %c1_293, %c0_294] : memref<2x14x14x1xf32, #tpu.memory_space<vmem>>, vector<1x8x8x1xf32>
    %432 = vector.shape_cast %431 : vector<1x8x8x1xf32> to vector<8x8x1xf32>
    %c22 = arith.constant 22 : index
    %433 = memref.load %arg12[%c22] : memref<99xf32, #tpu.memory_space<smem>>
    %434 = vector.broadcast %433 : f32 to vector<8x8x1xf32>
    %435 = arith.mulf %430, %434 : vector<8x8x1xf32>
    %436 = arith.addf %428, %435 : vector<8x8x1xf32>
    %c71 = arith.constant 71 : index
    %437 = memref.load %arg12[%c71] : memref<99xf32, #tpu.memory_space<smem>>
    %438 = vector.broadcast %437 : f32 to vector<8x8x1xf32>
    %439 = arith.mulf %432, %438 : vector<8x8x1xf32>
    %440 = arith.addf %436, %439 : vector<8x8x1xf32>
    %c0_295 = arith.constant 0 : index
    %c3_296 = arith.constant 3 : index
    %c2_297 = arith.constant 2 : index
    %c0_298 = arith.constant 0 : index
    %441 = vector.load %arg17[%c0_295, %c3_296, %c2_297, %c0_298] : memref<2x14x14x1xf32, #tpu.memory_space<vmem>>, vector<1x8x8x1xf32>
    %442 = vector.shape_cast %441 : vector<1x8x8x1xf32> to vector<8x8x1xf32>
    %c1_299 = arith.constant 1 : index
    %c3_300 = arith.constant 3 : index
    %c2_301 = arith.constant 2 : index
    %c0_302 = arith.constant 0 : index
    %443 = vector.load %arg17[%c1_299, %c3_300, %c2_301, %c0_302] : memref<2x14x14x1xf32, #tpu.memory_space<vmem>>, vector<1x8x8x1xf32>
    %444 = vector.shape_cast %443 : vector<1x8x8x1xf32> to vector<8x8x1xf32>
    %c23 = arith.constant 23 : index
    %445 = memref.load %arg12[%c23] : memref<99xf32, #tpu.memory_space<smem>>
    %446 = vector.broadcast %445 : f32 to vector<8x8x1xf32>
    %447 = arith.mulf %442, %446 : vector<8x8x1xf32>
    %448 = arith.addf %440, %447 : vector<8x8x1xf32>
    %c72 = arith.constant 72 : index
    %449 = memref.load %arg12[%c72] : memref<99xf32, #tpu.memory_space<smem>>
    %450 = vector.broadcast %449 : f32 to vector<8x8x1xf32>
    %451 = arith.mulf %444, %450 : vector<8x8x1xf32>
    %452 = arith.addf %448, %451 : vector<8x8x1xf32>
    %c0_303 = arith.constant 0 : index
    %c3_304 = arith.constant 3 : index
    %c3_305 = arith.constant 3 : index
    %c0_306 = arith.constant 0 : index
    %453 = vector.load %arg17[%c0_303, %c3_304, %c3_305, %c0_306] : memref<2x14x14x1xf32, #tpu.memory_space<vmem>>, vector<1x8x8x1xf32>
    %454 = vector.shape_cast %453 : vector<1x8x8x1xf32> to vector<8x8x1xf32>
    %c1_307 = arith.constant 1 : index
    %c3_308 = arith.constant 3 : index
    %c3_309 = arith.constant 3 : index
    %c0_310 = arith.constant 0 : index
    %455 = vector.load %arg17[%c1_307, %c3_308, %c3_309, %c0_310] : memref<2x14x14x1xf32, #tpu.memory_space<vmem>>, vector<1x8x8x1xf32>
    %456 = vector.shape_cast %455 : vector<1x8x8x1xf32> to vector<8x8x1xf32>
    %c24 = arith.constant 24 : index
    %457 = memref.load %arg12[%c24] : memref<99xf32, #tpu.memory_space<smem>>
    %458 = vector.broadcast %457 : f32 to vector<8x8x1xf32>
    %459 = arith.mulf %454, %458 : vector<8x8x1xf32>
    %460 = arith.addf %452, %459 : vector<8x8x1xf32>
    %c73 = arith.constant 73 : index
    %461 = memref.load %arg12[%c73] : memref<99xf32, #tpu.memory_space<smem>>
    %462 = vector.broadcast %461 : f32 to vector<8x8x1xf32>
    %463 = arith.mulf %456, %462 : vector<8x8x1xf32>
    %464 = arith.addf %460, %463 : vector<8x8x1xf32>
    %c0_311 = arith.constant 0 : index
    %c3_312 = arith.constant 3 : index
    %c4_313 = arith.constant 4 : index
    %c0_314 = arith.constant 0 : index
    %465 = vector.load %arg17[%c0_311, %c3_312, %c4_313, %c0_314] : memref<2x14x14x1xf32, #tpu.memory_space<vmem>>, vector<1x8x8x1xf32>
    %466 = vector.shape_cast %465 : vector<1x8x8x1xf32> to vector<8x8x1xf32>
    %c1_315 = arith.constant 1 : index
    %c3_316 = arith.constant 3 : index
    %c4_317 = arith.constant 4 : index
    %c0_318 = arith.constant 0 : index
    %467 = vector.load %arg17[%c1_315, %c3_316, %c4_317, %c0_318] : memref<2x14x14x1xf32, #tpu.memory_space<vmem>>, vector<1x8x8x1xf32>
    %468 = vector.shape_cast %467 : vector<1x8x8x1xf32> to vector<8x8x1xf32>
    %c25 = arith.constant 25 : index
    %469 = memref.load %arg12[%c25] : memref<99xf32, #tpu.memory_space<smem>>
    %470 = vector.broadcast %469 : f32 to vector<8x8x1xf32>
    %471 = arith.mulf %466, %470 : vector<8x8x1xf32>
    %472 = arith.addf %464, %471 : vector<8x8x1xf32>
    %c74 = arith.constant 74 : index
    %473 = memref.load %arg12[%c74] : memref<99xf32, #tpu.memory_space<smem>>
    %474 = vector.broadcast %473 : f32 to vector<8x8x1xf32>
    %475 = arith.mulf %468, %474 : vector<8x8x1xf32>
    %476 = arith.addf %472, %475 : vector<8x8x1xf32>
    %c0_319 = arith.constant 0 : index
    %c3_320 = arith.constant 3 : index
    %c5_321 = arith.constant 5 : index
    %c0_322 = arith.constant 0 : index
    %477 = vector.load %arg17[%c0_319, %c3_320, %c5_321, %c0_322] : memref<2x14x14x1xf32, #tpu.memory_space<vmem>>, vector<1x8x8x1xf32>
    %478 = vector.shape_cast %477 : vector<1x8x8x1xf32> to vector<8x8x1xf32>
    %c1_323 = arith.constant 1 : index
    %c3_324 = arith.constant 3 : index
    %c5_325 = arith.constant 5 : index
    %c0_326 = arith.constant 0 : index
    %479 = vector.load %arg17[%c1_323, %c3_324, %c5_325, %c0_326] : memref<2x14x14x1xf32, #tpu.memory_space<vmem>>, vector<1x8x8x1xf32>
    %480 = vector.shape_cast %479 : vector<1x8x8x1xf32> to vector<8x8x1xf32>
    %c26 = arith.constant 26 : index
    %481 = memref.load %arg12[%c26] : memref<99xf32, #tpu.memory_space<smem>>
    %482 = vector.broadcast %481 : f32 to vector<8x8x1xf32>
    %483 = arith.mulf %478, %482 : vector<8x8x1xf32>
    %484 = arith.addf %476, %483 : vector<8x8x1xf32>
    %c75 = arith.constant 75 : index
    %485 = memref.load %arg12[%c75] : memref<99xf32, #tpu.memory_space<smem>>
    %486 = vector.broadcast %485 : f32 to vector<8x8x1xf32>
    %487 = arith.mulf %480, %486 : vector<8x8x1xf32>
    %488 = arith.addf %484, %487 : vector<8x8x1xf32>
    %c0_327 = arith.constant 0 : index
    %c3_328 = arith.constant 3 : index
    %c6_329 = arith.constant 6 : index
    %c0_330 = arith.constant 0 : index
    %489 = vector.load %arg17[%c0_327, %c3_328, %c6_329, %c0_330] : memref<2x14x14x1xf32, #tpu.memory_space<vmem>>, vector<1x8x8x1xf32>
    %490 = vector.shape_cast %489 : vector<1x8x8x1xf32> to vector<8x8x1xf32>
    %c1_331 = arith.constant 1 : index
    %c3_332 = arith.constant 3 : index
    %c6_333 = arith.constant 6 : index
    %c0_334 = arith.constant 0 : index
    %491 = vector.load %arg17[%c1_331, %c3_332, %c6_333, %c0_334] : memref<2x14x14x1xf32, #tpu.memory_space<vmem>>, vector<1x8x8x1xf32>
    %492 = vector.shape_cast %491 : vector<1x8x8x1xf32> to vector<8x8x1xf32>
    %c27 = arith.constant 27 : index
    %493 = memref.load %arg12[%c27] : memref<99xf32, #tpu.memory_space<smem>>
    %494 = vector.broadcast %493 : f32 to vector<8x8x1xf32>
    %495 = arith.mulf %490, %494 : vector<8x8x1xf32>
    %496 = arith.addf %488, %495 : vector<8x8x1xf32>
    %c76 = arith.constant 76 : index
    %497 = memref.load %arg12[%c76] : memref<99xf32, #tpu.memory_space<smem>>
    %498 = vector.broadcast %497 : f32 to vector<8x8x1xf32>
    %499 = arith.mulf %492, %498 : vector<8x8x1xf32>
    %500 = arith.addf %496, %499 : vector<8x8x1xf32>
    %c0_335 = arith.constant 0 : index
    %c4_336 = arith.constant 4 : index
    %c0_337 = arith.constant 0 : index
    %c0_338 = arith.constant 0 : index
    %501 = vector.load %arg17[%c0_335, %c4_336, %c0_337, %c0_338] : memref<2x14x14x1xf32, #tpu.memory_space<vmem>>, vector<1x8x8x1xf32>
    %502 = vector.shape_cast %501 : vector<1x8x8x1xf32> to vector<8x8x1xf32>
    %c1_339 = arith.constant 1 : index
    %c4_340 = arith.constant 4 : index
    %c0_341 = arith.constant 0 : index
    %c0_342 = arith.constant 0 : index
    %503 = vector.load %arg17[%c1_339, %c4_340, %c0_341, %c0_342] : memref<2x14x14x1xf32, #tpu.memory_space<vmem>>, vector<1x8x8x1xf32>
    %504 = vector.shape_cast %503 : vector<1x8x8x1xf32> to vector<8x8x1xf32>
    %c28 = arith.constant 28 : index
    %505 = memref.load %arg12[%c28] : memref<99xf32, #tpu.memory_space<smem>>
    %506 = vector.broadcast %505 : f32 to vector<8x8x1xf32>
    %507 = arith.mulf %502, %506 : vector<8x8x1xf32>
    %508 = arith.addf %500, %507 : vector<8x8x1xf32>
    %c77 = arith.constant 77 : index
    %509 = memref.load %arg12[%c77] : memref<99xf32, #tpu.memory_space<smem>>
    %510 = vector.broadcast %509 : f32 to vector<8x8x1xf32>
    %511 = arith.mulf %504, %510 : vector<8x8x1xf32>
    %512 = arith.addf %508, %511 : vector<8x8x1xf32>
    %c0_343 = arith.constant 0 : index
    %c4_344 = arith.constant 4 : index
    %c1_345 = arith.constant 1 : index
    %c0_346 = arith.constant 0 : index
    %513 = vector.load %arg17[%c0_343, %c4_344, %c1_345, %c0_346] : memref<2x14x14x1xf32, #tpu.memory_space<vmem>>, vector<1x8x8x1xf32>
    %514 = vector.shape_cast %513 : vector<1x8x8x1xf32> to vector<8x8x1xf32>
    %c1_347 = arith.constant 1 : index
    %c4_348 = arith.constant 4 : index
    %c1_349 = arith.constant 1 : index
    %c0_350 = arith.constant 0 : index
    %515 = vector.load %arg17[%c1_347, %c4_348, %c1_349, %c0_350] : memref<2x14x14x1xf32, #tpu.memory_space<vmem>>, vector<1x8x8x1xf32>
    %516 = vector.shape_cast %515 : vector<1x8x8x1xf32> to vector<8x8x1xf32>
    %c29 = arith.constant 29 : index
    %517 = memref.load %arg12[%c29] : memref<99xf32, #tpu.memory_space<smem>>
    %518 = vector.broadcast %517 : f32 to vector<8x8x1xf32>
    %519 = arith.mulf %514, %518 : vector<8x8x1xf32>
    %520 = arith.addf %512, %519 : vector<8x8x1xf32>
    %c78 = arith.constant 78 : index
    %521 = memref.load %arg12[%c78] : memref<99xf32, #tpu.memory_space<smem>>
    %522 = vector.broadcast %521 : f32 to vector<8x8x1xf32>
    %523 = arith.mulf %516, %522 : vector<8x8x1xf32>
    %524 = arith.addf %520, %523 : vector<8x8x1xf32>
    %c0_351 = arith.constant 0 : index
    %c4_352 = arith.constant 4 : index
    %c2_353 = arith.constant 2 : index
    %c0_354 = arith.constant 0 : index
    %525 = vector.load %arg17[%c0_351, %c4_352, %c2_353, %c0_354] : memref<2x14x14x1xf32, #tpu.memory_space<vmem>>, vector<1x8x8x1xf32>
    %526 = vector.shape_cast %525 : vector<1x8x8x1xf32> to vector<8x8x1xf32>
    %c1_355 = arith.constant 1 : index
    %c4_356 = arith.constant 4 : index
    %c2_357 = arith.constant 2 : index
    %c0_358 = arith.constant 0 : index
    %527 = vector.load %arg17[%c1_355, %c4_356, %c2_357, %c0_358] : memref<2x14x14x1xf32, #tpu.memory_space<vmem>>, vector<1x8x8x1xf32>
    %528 = vector.shape_cast %527 : vector<1x8x8x1xf32> to vector<8x8x1xf32>
    %c30 = arith.constant 30 : index
    %529 = memref.load %arg12[%c30] : memref<99xf32, #tpu.memory_space<smem>>
    %530 = vector.broadcast %529 : f32 to vector<8x8x1xf32>
    %531 = arith.mulf %526, %530 : vector<8x8x1xf32>
    %532 = arith.addf %524, %531 : vector<8x8x1xf32>
    %c79 = arith.constant 79 : index
    %533 = memref.load %arg12[%c79] : memref<99xf32, #tpu.memory_space<smem>>
    %534 = vector.broadcast %533 : f32 to vector<8x8x1xf32>
    %535 = arith.mulf %528, %534 : vector<8x8x1xf32>
    %536 = arith.addf %532, %535 : vector<8x8x1xf32>
    %c0_359 = arith.constant 0 : index
    %c4_360 = arith.constant 4 : index
    %c3_361 = arith.constant 3 : index
    %c0_362 = arith.constant 0 : index
    %537 = vector.load %arg17[%c0_359, %c4_360, %c3_361, %c0_362] : memref<2x14x14x1xf32, #tpu.memory_space<vmem>>, vector<1x8x8x1xf32>
    %538 = vector.shape_cast %537 : vector<1x8x8x1xf32> to vector<8x8x1xf32>
    %c1_363 = arith.constant 1 : index
    %c4_364 = arith.constant 4 : index
    %c3_365 = arith.constant 3 : index
    %c0_366 = arith.constant 0 : index
    %539 = vector.load %arg17[%c1_363, %c4_364, %c3_365, %c0_366] : memref<2x14x14x1xf32, #tpu.memory_space<vmem>>, vector<1x8x8x1xf32>
    %540 = vector.shape_cast %539 : vector<1x8x8x1xf32> to vector<8x8x1xf32>
    %c31 = arith.constant 31 : index
    %541 = memref.load %arg12[%c31] : memref<99xf32, #tpu.memory_space<smem>>
    %542 = vector.broadcast %541 : f32 to vector<8x8x1xf32>
    %543 = arith.mulf %538, %542 : vector<8x8x1xf32>
    %544 = arith.addf %536, %543 : vector<8x8x1xf32>
    %c80 = arith.constant 80 : index
    %545 = memref.load %arg12[%c80] : memref<99xf32, #tpu.memory_space<smem>>
    %546 = vector.broadcast %545 : f32 to vector<8x8x1xf32>
    %547 = arith.mulf %540, %546 : vector<8x8x1xf32>
    %548 = arith.addf %544, %547 : vector<8x8x1xf32>
    %c0_367 = arith.constant 0 : index
    %c4_368 = arith.constant 4 : index
    %c4_369 = arith.constant 4 : index
    %c0_370 = arith.constant 0 : index
    %549 = vector.load %arg17[%c0_367, %c4_368, %c4_369, %c0_370] : memref<2x14x14x1xf32, #tpu.memory_space<vmem>>, vector<1x8x8x1xf32>
    %550 = vector.shape_cast %549 : vector<1x8x8x1xf32> to vector<8x8x1xf32>
    %c1_371 = arith.constant 1 : index
    %c4_372 = arith.constant 4 : index
    %c4_373 = arith.constant 4 : index
    %c0_374 = arith.constant 0 : index
    %551 = vector.load %arg17[%c1_371, %c4_372, %c4_373, %c0_374] : memref<2x14x14x1xf32, #tpu.memory_space<vmem>>, vector<1x8x8x1xf32>
    %552 = vector.shape_cast %551 : vector<1x8x8x1xf32> to vector<8x8x1xf32>
    %c32 = arith.constant 32 : index
    %553 = memref.load %arg12[%c32] : memref<99xf32, #tpu.memory_space<smem>>
    %554 = vector.broadcast %553 : f32 to vector<8x8x1xf32>
    %555 = arith.mulf %550, %554 : vector<8x8x1xf32>
    %556 = arith.addf %548, %555 : vector<8x8x1xf32>
    %c81 = arith.constant 81 : index
    %557 = memref.load %arg12[%c81] : memref<99xf32, #tpu.memory_space<smem>>
    %558 = vector.broadcast %557 : f32 to vector<8x8x1xf32>
    %559 = arith.mulf %552, %558 : vector<8x8x1xf32>
    %560 = arith.addf %556, %559 : vector<8x8x1xf32>
    %c0_375 = arith.constant 0 : index
    %c4_376 = arith.constant 4 : index
    %c5_377 = arith.constant 5 : index
    %c0_378 = arith.constant 0 : index
    %561 = vector.load %arg17[%c0_375, %c4_376, %c5_377, %c0_378] : memref<2x14x14x1xf32, #tpu.memory_space<vmem>>, vector<1x8x8x1xf32>
    %562 = vector.shape_cast %561 : vector<1x8x8x1xf32> to vector<8x8x1xf32>
    %c1_379 = arith.constant 1 : index
    %c4_380 = arith.constant 4 : index
    %c5_381 = arith.constant 5 : index
    %c0_382 = arith.constant 0 : index
    %563 = vector.load %arg17[%c1_379, %c4_380, %c5_381, %c0_382] : memref<2x14x14x1xf32, #tpu.memory_space<vmem>>, vector<1x8x8x1xf32>
    %564 = vector.shape_cast %563 : vector<1x8x8x1xf32> to vector<8x8x1xf32>
    %c33 = arith.constant 33 : index
    %565 = memref.load %arg12[%c33] : memref<99xf32, #tpu.memory_space<smem>>
    %566 = vector.broadcast %565 : f32 to vector<8x8x1xf32>
    %567 = arith.mulf %562, %566 : vector<8x8x1xf32>
    %568 = arith.addf %560, %567 : vector<8x8x1xf32>
    %c82 = arith.constant 82 : index
    %569 = memref.load %arg12[%c82] : memref<99xf32, #tpu.memory_space<smem>>
    %570 = vector.broadcast %569 : f32 to vector<8x8x1xf32>
    %571 = arith.mulf %564, %570 : vector<8x8x1xf32>
    %572 = arith.addf %568, %571 : vector<8x8x1xf32>
    %c0_383 = arith.constant 0 : index
    %c4_384 = arith.constant 4 : index
    %c6_385 = arith.constant 6 : index
    %c0_386 = arith.constant 0 : index
    %573 = vector.load %arg17[%c0_383, %c4_384, %c6_385, %c0_386] : memref<2x14x14x1xf32, #tpu.memory_space<vmem>>, vector<1x8x8x1xf32>
    %574 = vector.shape_cast %573 : vector<1x8x8x1xf32> to vector<8x8x1xf32>
    %c1_387 = arith.constant 1 : index
    %c4_388 = arith.constant 4 : index
    %c6_389 = arith.constant 6 : index
    %c0_390 = arith.constant 0 : index
    %575 = vector.load %arg17[%c1_387, %c4_388, %c6_389, %c0_390] : memref<2x14x14x1xf32, #tpu.memory_space<vmem>>, vector<1x8x8x1xf32>
    %576 = vector.shape_cast %575 : vector<1x8x8x1xf32> to vector<8x8x1xf32>
    %c34 = arith.constant 34 : index
    %577 = memref.load %arg12[%c34] : memref<99xf32, #tpu.memory_space<smem>>
    %578 = vector.broadcast %577 : f32 to vector<8x8x1xf32>
    %579 = arith.mulf %574, %578 : vector<8x8x1xf32>
    %580 = arith.addf %572, %579 : vector<8x8x1xf32>
    %c83 = arith.constant 83 : index
    %581 = memref.load %arg12[%c83] : memref<99xf32, #tpu.memory_space<smem>>
    %582 = vector.broadcast %581 : f32 to vector<8x8x1xf32>
    %583 = arith.mulf %576, %582 : vector<8x8x1xf32>
    %584 = arith.addf %580, %583 : vector<8x8x1xf32>
    %c0_391 = arith.constant 0 : index
    %c5_392 = arith.constant 5 : index
    %c0_393 = arith.constant 0 : index
    %c0_394 = arith.constant 0 : index
    %585 = vector.load %arg17[%c0_391, %c5_392, %c0_393, %c0_394] : memref<2x14x14x1xf32, #tpu.memory_space<vmem>>, vector<1x8x8x1xf32>
    %586 = vector.shape_cast %585 : vector<1x8x8x1xf32> to vector<8x8x1xf32>
    %c1_395 = arith.constant 1 : index
    %c5_396 = arith.constant 5 : index
    %c0_397 = arith.constant 0 : index
    %c0_398 = arith.constant 0 : index
    %587 = vector.load %arg17[%c1_395, %c5_396, %c0_397, %c0_398] : memref<2x14x14x1xf32, #tpu.memory_space<vmem>>, vector<1x8x8x1xf32>
    %588 = vector.shape_cast %587 : vector<1x8x8x1xf32> to vector<8x8x1xf32>
    %c35 = arith.constant 35 : index
    %589 = memref.load %arg12[%c35] : memref<99xf32, #tpu.memory_space<smem>>
    %590 = vector.broadcast %589 : f32 to vector<8x8x1xf32>
    %591 = arith.mulf %586, %590 : vector<8x8x1xf32>
    %592 = arith.addf %584, %591 : vector<8x8x1xf32>
    %c84 = arith.constant 84 : index
    %593 = memref.load %arg12[%c84] : memref<99xf32, #tpu.memory_space<smem>>
    %594 = vector.broadcast %593 : f32 to vector<8x8x1xf32>
    %595 = arith.mulf %588, %594 : vector<8x8x1xf32>
    %596 = arith.addf %592, %595 : vector<8x8x1xf32>
    %c0_399 = arith.constant 0 : index
    %c5_400 = arith.constant 5 : index
    %c1_401 = arith.constant 1 : index
    %c0_402 = arith.constant 0 : index
    %597 = vector.load %arg17[%c0_399, %c5_400, %c1_401, %c0_402] : memref<2x14x14x1xf32, #tpu.memory_space<vmem>>, vector<1x8x8x1xf32>
    %598 = vector.shape_cast %597 : vector<1x8x8x1xf32> to vector<8x8x1xf32>
    %c1_403 = arith.constant 1 : index
    %c5_404 = arith.constant 5 : index
    %c1_405 = arith.constant 1 : index
    %c0_406 = arith.constant 0 : index
    %599 = vector.load %arg17[%c1_403, %c5_404, %c1_405, %c0_406] : memref<2x14x14x1xf32, #tpu.memory_space<vmem>>, vector<1x8x8x1xf32>
    %600 = vector.shape_cast %599 : vector<1x8x8x1xf32> to vector<8x8x1xf32>
    %c36 = arith.constant 36 : index
    %601 = memref.load %arg12[%c36] : memref<99xf32, #tpu.memory_space<smem>>
    %602 = vector.broadcast %601 : f32 to vector<8x8x1xf32>
    %603 = arith.mulf %598, %602 : vector<8x8x1xf32>
    %604 = arith.addf %596, %603 : vector<8x8x1xf32>
    %c85 = arith.constant 85 : index
    %605 = memref.load %arg12[%c85] : memref<99xf32, #tpu.memory_space<smem>>
    %606 = vector.broadcast %605 : f32 to vector<8x8x1xf32>
    %607 = arith.mulf %600, %606 : vector<8x8x1xf32>
    %608 = arith.addf %604, %607 : vector<8x8x1xf32>
    %c0_407 = arith.constant 0 : index
    %c5_408 = arith.constant 5 : index
    %c2_409 = arith.constant 2 : index
    %c0_410 = arith.constant 0 : index
    %609 = vector.load %arg17[%c0_407, %c5_408, %c2_409, %c0_410] : memref<2x14x14x1xf32, #tpu.memory_space<vmem>>, vector<1x8x8x1xf32>
    %610 = vector.shape_cast %609 : vector<1x8x8x1xf32> to vector<8x8x1xf32>
    %c1_411 = arith.constant 1 : index
    %c5_412 = arith.constant 5 : index
    %c2_413 = arith.constant 2 : index
    %c0_414 = arith.constant 0 : index
    %611 = vector.load %arg17[%c1_411, %c5_412, %c2_413, %c0_414] : memref<2x14x14x1xf32, #tpu.memory_space<vmem>>, vector<1x8x8x1xf32>
    %612 = vector.shape_cast %611 : vector<1x8x8x1xf32> to vector<8x8x1xf32>
    %c37 = arith.constant 37 : index
    %613 = memref.load %arg12[%c37] : memref<99xf32, #tpu.memory_space<smem>>
    %614 = vector.broadcast %613 : f32 to vector<8x8x1xf32>
    %615 = arith.mulf %610, %614 : vector<8x8x1xf32>
    %616 = arith.addf %608, %615 : vector<8x8x1xf32>
    %c86 = arith.constant 86 : index
    %617 = memref.load %arg12[%c86] : memref<99xf32, #tpu.memory_space<smem>>
    %618 = vector.broadcast %617 : f32 to vector<8x8x1xf32>
    %619 = arith.mulf %612, %618 : vector<8x8x1xf32>
    %620 = arith.addf %616, %619 : vector<8x8x1xf32>
    %c0_415 = arith.constant 0 : index
    %c5_416 = arith.constant 5 : index
    %c3_417 = arith.constant 3 : index
    %c0_418 = arith.constant 0 : index
    %621 = vector.load %arg17[%c0_415, %c5_416, %c3_417, %c0_418] : memref<2x14x14x1xf32, #tpu.memory_space<vmem>>, vector<1x8x8x1xf32>
    %622 = vector.shape_cast %621 : vector<1x8x8x1xf32> to vector<8x8x1xf32>
    %c1_419 = arith.constant 1 : index
    %c5_420 = arith.constant 5 : index
    %c3_421 = arith.constant 3 : index
    %c0_422 = arith.constant 0 : index
    %623 = vector.load %arg17[%c1_419, %c5_420, %c3_421, %c0_422] : memref<2x14x14x1xf32, #tpu.memory_space<vmem>>, vector<1x8x8x1xf32>
    %624 = vector.shape_cast %623 : vector<1x8x8x1xf32> to vector<8x8x1xf32>
    %c38 = arith.constant 38 : index
    %625 = memref.load %arg12[%c38] : memref<99xf32, #tpu.memory_space<smem>>
    %626 = vector.broadcast %625 : f32 to vector<8x8x1xf32>
    %627 = arith.mulf %622, %626 : vector<8x8x1xf32>
    %628 = arith.addf %620, %627 : vector<8x8x1xf32>
    %c87 = arith.constant 87 : index
    %629 = memref.load %arg12[%c87] : memref<99xf32, #tpu.memory_space<smem>>
    %630 = vector.broadcast %629 : f32 to vector<8x8x1xf32>
    %631 = arith.mulf %624, %630 : vector<8x8x1xf32>
    %632 = arith.addf %628, %631 : vector<8x8x1xf32>
    %c0_423 = arith.constant 0 : index
    %c5_424 = arith.constant 5 : index
    %c4_425 = arith.constant 4 : index
    %c0_426 = arith.constant 0 : index
    %633 = vector.load %arg17[%c0_423, %c5_424, %c4_425, %c0_426] : memref<2x14x14x1xf32, #tpu.memory_space<vmem>>, vector<1x8x8x1xf32>
    %634 = vector.shape_cast %633 : vector<1x8x8x1xf32> to vector<8x8x1xf32>
    %c1_427 = arith.constant 1 : index
    %c5_428 = arith.constant 5 : index
    %c4_429 = arith.constant 4 : index
    %c0_430 = arith.constant 0 : index
    %635 = vector.load %arg17[%c1_427, %c5_428, %c4_429, %c0_430] : memref<2x14x14x1xf32, #tpu.memory_space<vmem>>, vector<1x8x8x1xf32>
    %636 = vector.shape_cast %635 : vector<1x8x8x1xf32> to vector<8x8x1xf32>
    %c39 = arith.constant 39 : index
    %637 = memref.load %arg12[%c39] : memref<99xf32, #tpu.memory_space<smem>>
    %638 = vector.broadcast %637 : f32 to vector<8x8x1xf32>
    %639 = arith.mulf %634, %638 : vector<8x8x1xf32>
    %640 = arith.addf %632, %639 : vector<8x8x1xf32>
    %c88 = arith.constant 88 : index
    %641 = memref.load %arg12[%c88] : memref<99xf32, #tpu.memory_space<smem>>
    %642 = vector.broadcast %641 : f32 to vector<8x8x1xf32>
    %643 = arith.mulf %636, %642 : vector<8x8x1xf32>
    %644 = arith.addf %640, %643 : vector<8x8x1xf32>
    %c0_431 = arith.constant 0 : index
    %c5_432 = arith.constant 5 : index
    %c5_433 = arith.constant 5 : index
    %c0_434 = arith.constant 0 : index
    %645 = vector.load %arg17[%c0_431, %c5_432, %c5_433, %c0_434] : memref<2x14x14x1xf32, #tpu.memory_space<vmem>>, vector<1x8x8x1xf32>
    %646 = vector.shape_cast %645 : vector<1x8x8x1xf32> to vector<8x8x1xf32>
    %c1_435 = arith.constant 1 : index
    %c5_436 = arith.constant 5 : index
    %c5_437 = arith.constant 5 : index
    %c0_438 = arith.constant 0 : index
    %647 = vector.load %arg17[%c1_435, %c5_436, %c5_437, %c0_438] : memref<2x14x14x1xf32, #tpu.memory_space<vmem>>, vector<1x8x8x1xf32>
    %648 = vector.shape_cast %647 : vector<1x8x8x1xf32> to vector<8x8x1xf32>
    %c40 = arith.constant 40 : index
    %649 = memref.load %arg12[%c40] : memref<99xf32, #tpu.memory_space<smem>>
    %650 = vector.broadcast %649 : f32 to vector<8x8x1xf32>
    %651 = arith.mulf %646, %650 : vector<8x8x1xf32>
    %652 = arith.addf %644, %651 : vector<8x8x1xf32>
    %c89 = arith.constant 89 : index
    %653 = memref.load %arg12[%c89] : memref<99xf32, #tpu.memory_space<smem>>
    %654 = vector.broadcast %653 : f32 to vector<8x8x1xf32>
    %655 = arith.mulf %648, %654 : vector<8x8x1xf32>
    %656 = arith.addf %652, %655 : vector<8x8x1xf32>
    %c0_439 = arith.constant 0 : index
    %c5_440 = arith.constant 5 : index
    %c6_441 = arith.constant 6 : index
    %c0_442 = arith.constant 0 : index
    %657 = vector.load %arg17[%c0_439, %c5_440, %c6_441, %c0_442] : memref<2x14x14x1xf32, #tpu.memory_space<vmem>>, vector<1x8x8x1xf32>
    %658 = vector.shape_cast %657 : vector<1x8x8x1xf32> to vector<8x8x1xf32>
    %c1_443 = arith.constant 1 : index
    %c5_444 = arith.constant 5 : index
    %c6_445 = arith.constant 6 : index
    %c0_446 = arith.constant 0 : index
    %659 = vector.load %arg17[%c1_443, %c5_444, %c6_445, %c0_446] : memref<2x14x14x1xf32, #tpu.memory_space<vmem>>, vector<1x8x8x1xf32>
    %660 = vector.shape_cast %659 : vector<1x8x8x1xf32> to vector<8x8x1xf32>
    %c41 = arith.constant 41 : index
    %661 = memref.load %arg12[%c41] : memref<99xf32, #tpu.memory_space<smem>>
    %662 = vector.broadcast %661 : f32 to vector<8x8x1xf32>
    %663 = arith.mulf %658, %662 : vector<8x8x1xf32>
    %664 = arith.addf %656, %663 : vector<8x8x1xf32>
    %c90 = arith.constant 90 : index
    %665 = memref.load %arg12[%c90] : memref<99xf32, #tpu.memory_space<smem>>
    %666 = vector.broadcast %665 : f32 to vector<8x8x1xf32>
    %667 = arith.mulf %660, %666 : vector<8x8x1xf32>
    %668 = arith.addf %664, %667 : vector<8x8x1xf32>
    %c0_447 = arith.constant 0 : index
    %c6_448 = arith.constant 6 : index
    %c0_449 = arith.constant 0 : index
    %c0_450 = arith.constant 0 : index
    %669 = vector.load %arg17[%c0_447, %c6_448, %c0_449, %c0_450] : memref<2x14x14x1xf32, #tpu.memory_space<vmem>>, vector<1x8x8x1xf32>
    %670 = vector.shape_cast %669 : vector<1x8x8x1xf32> to vector<8x8x1xf32>
    %c1_451 = arith.constant 1 : index
    %c6_452 = arith.constant 6 : index
    %c0_453 = arith.constant 0 : index
    %c0_454 = arith.constant 0 : index
    %671 = vector.load %arg17[%c1_451, %c6_452, %c0_453, %c0_454] : memref<2x14x14x1xf32, #tpu.memory_space<vmem>>, vector<1x8x8x1xf32>
    %672 = vector.shape_cast %671 : vector<1x8x8x1xf32> to vector<8x8x1xf32>
    %c42 = arith.constant 42 : index
    %673 = memref.load %arg12[%c42] : memref<99xf32, #tpu.memory_space<smem>>
    %674 = vector.broadcast %673 : f32 to vector<8x8x1xf32>
    %675 = arith.mulf %670, %674 : vector<8x8x1xf32>
    %676 = arith.addf %668, %675 : vector<8x8x1xf32>
    %c91 = arith.constant 91 : index
    %677 = memref.load %arg12[%c91] : memref<99xf32, #tpu.memory_space<smem>>
    %678 = vector.broadcast %677 : f32 to vector<8x8x1xf32>
    %679 = arith.mulf %672, %678 : vector<8x8x1xf32>
    %680 = arith.addf %676, %679 : vector<8x8x1xf32>
    %c0_455 = arith.constant 0 : index
    %c6_456 = arith.constant 6 : index
    %c1_457 = arith.constant 1 : index
    %c0_458 = arith.constant 0 : index
    %681 = vector.load %arg17[%c0_455, %c6_456, %c1_457, %c0_458] : memref<2x14x14x1xf32, #tpu.memory_space<vmem>>, vector<1x8x8x1xf32>
    %682 = vector.shape_cast %681 : vector<1x8x8x1xf32> to vector<8x8x1xf32>
    %c1_459 = arith.constant 1 : index
    %c6_460 = arith.constant 6 : index
    %c1_461 = arith.constant 1 : index
    %c0_462 = arith.constant 0 : index
    %683 = vector.load %arg17[%c1_459, %c6_460, %c1_461, %c0_462] : memref<2x14x14x1xf32, #tpu.memory_space<vmem>>, vector<1x8x8x1xf32>
    %684 = vector.shape_cast %683 : vector<1x8x8x1xf32> to vector<8x8x1xf32>
    %c43 = arith.constant 43 : index
    %685 = memref.load %arg12[%c43] : memref<99xf32, #tpu.memory_space<smem>>
    %686 = vector.broadcast %685 : f32 to vector<8x8x1xf32>
    %687 = arith.mulf %682, %686 : vector<8x8x1xf32>
    %688 = arith.addf %680, %687 : vector<8x8x1xf32>
    %c92 = arith.constant 92 : index
    %689 = memref.load %arg12[%c92] : memref<99xf32, #tpu.memory_space<smem>>
    %690 = vector.broadcast %689 : f32 to vector<8x8x1xf32>
    %691 = arith.mulf %684, %690 : vector<8x8x1xf32>
    %692 = arith.addf %688, %691 : vector<8x8x1xf32>
    %c0_463 = arith.constant 0 : index
    %c6_464 = arith.constant 6 : index
    %c2_465 = arith.constant 2 : index
    %c0_466 = arith.constant 0 : index
    %693 = vector.load %arg17[%c0_463, %c6_464, %c2_465, %c0_466] : memref<2x14x14x1xf32, #tpu.memory_space<vmem>>, vector<1x8x8x1xf32>
    %694 = vector.shape_cast %693 : vector<1x8x8x1xf32> to vector<8x8x1xf32>
    %c1_467 = arith.constant 1 : index
    %c6_468 = arith.constant 6 : index
    %c2_469 = arith.constant 2 : index
    %c0_470 = arith.constant 0 : index
    %695 = vector.load %arg17[%c1_467, %c6_468, %c2_469, %c0_470] : memref<2x14x14x1xf32, #tpu.memory_space<vmem>>, vector<1x8x8x1xf32>
    %696 = vector.shape_cast %695 : vector<1x8x8x1xf32> to vector<8x8x1xf32>
    %c44 = arith.constant 44 : index
    %697 = memref.load %arg12[%c44] : memref<99xf32, #tpu.memory_space<smem>>
    %698 = vector.broadcast %697 : f32 to vector<8x8x1xf32>
    %699 = arith.mulf %694, %698 : vector<8x8x1xf32>
    %700 = arith.addf %692, %699 : vector<8x8x1xf32>
    %c93 = arith.constant 93 : index
    %701 = memref.load %arg12[%c93] : memref<99xf32, #tpu.memory_space<smem>>
    %702 = vector.broadcast %701 : f32 to vector<8x8x1xf32>
    %703 = arith.mulf %696, %702 : vector<8x8x1xf32>
    %704 = arith.addf %700, %703 : vector<8x8x1xf32>
    %c0_471 = arith.constant 0 : index
    %c6_472 = arith.constant 6 : index
    %c3_473 = arith.constant 3 : index
    %c0_474 = arith.constant 0 : index
    %705 = vector.load %arg17[%c0_471, %c6_472, %c3_473, %c0_474] : memref<2x14x14x1xf32, #tpu.memory_space<vmem>>, vector<1x8x8x1xf32>
    %706 = vector.shape_cast %705 : vector<1x8x8x1xf32> to vector<8x8x1xf32>
    %c1_475 = arith.constant 1 : index
    %c6_476 = arith.constant 6 : index
    %c3_477 = arith.constant 3 : index
    %c0_478 = arith.constant 0 : index
    %707 = vector.load %arg17[%c1_475, %c6_476, %c3_477, %c0_478] : memref<2x14x14x1xf32, #tpu.memory_space<vmem>>, vector<1x8x8x1xf32>
    %708 = vector.shape_cast %707 : vector<1x8x8x1xf32> to vector<8x8x1xf32>
    %c45 = arith.constant 45 : index
    %709 = memref.load %arg12[%c45] : memref<99xf32, #tpu.memory_space<smem>>
    %710 = vector.broadcast %709 : f32 to vector<8x8x1xf32>
    %711 = arith.mulf %706, %710 : vector<8x8x1xf32>
    %712 = arith.addf %704, %711 : vector<8x8x1xf32>
    %c94 = arith.constant 94 : index
    %713 = memref.load %arg12[%c94] : memref<99xf32, #tpu.memory_space<smem>>
    %714 = vector.broadcast %713 : f32 to vector<8x8x1xf32>
    %715 = arith.mulf %708, %714 : vector<8x8x1xf32>
    %716 = arith.addf %712, %715 : vector<8x8x1xf32>
    %c0_479 = arith.constant 0 : index
    %c6_480 = arith.constant 6 : index
    %c4_481 = arith.constant 4 : index
    %c0_482 = arith.constant 0 : index
    %717 = vector.load %arg17[%c0_479, %c6_480, %c4_481, %c0_482] : memref<2x14x14x1xf32, #tpu.memory_space<vmem>>, vector<1x8x8x1xf32>
    %718 = vector.shape_cast %717 : vector<1x8x8x1xf32> to vector<8x8x1xf32>
    %c1_483 = arith.constant 1 : index
    %c6_484 = arith.constant 6 : index
    %c4_485 = arith.constant 4 : index
    %c0_486 = arith.constant 0 : index
    %719 = vector.load %arg17[%c1_483, %c6_484, %c4_485, %c0_486] : memref<2x14x14x1xf32, #tpu.memory_space<vmem>>, vector<1x8x8x1xf32>
    %720 = vector.shape_cast %719 : vector<1x8x8x1xf32> to vector<8x8x1xf32>
    %c46 = arith.constant 46 : index
    %721 = memref.load %arg12[%c46] : memref<99xf32, #tpu.memory_space<smem>>
    %722 = vector.broadcast %721 : f32 to vector<8x8x1xf32>
    %723 = arith.mulf %718, %722 : vector<8x8x1xf32>
    %724 = arith.addf %716, %723 : vector<8x8x1xf32>
    %c95 = arith.constant 95 : index
    %725 = memref.load %arg12[%c95] : memref<99xf32, #tpu.memory_space<smem>>
    %726 = vector.broadcast %725 : f32 to vector<8x8x1xf32>
    %727 = arith.mulf %720, %726 : vector<8x8x1xf32>
    %728 = arith.addf %724, %727 : vector<8x8x1xf32>
    %c0_487 = arith.constant 0 : index
    %c6_488 = arith.constant 6 : index
    %c5_489 = arith.constant 5 : index
    %c0_490 = arith.constant 0 : index
    %729 = vector.load %arg17[%c0_487, %c6_488, %c5_489, %c0_490] : memref<2x14x14x1xf32, #tpu.memory_space<vmem>>, vector<1x8x8x1xf32>
    %730 = vector.shape_cast %729 : vector<1x8x8x1xf32> to vector<8x8x1xf32>
    %c1_491 = arith.constant 1 : index
    %c6_492 = arith.constant 6 : index
    %c5_493 = arith.constant 5 : index
    %c0_494 = arith.constant 0 : index
    %731 = vector.load %arg17[%c1_491, %c6_492, %c5_493, %c0_494] : memref<2x14x14x1xf32, #tpu.memory_space<vmem>>, vector<1x8x8x1xf32>
    %732 = vector.shape_cast %731 : vector<1x8x8x1xf32> to vector<8x8x1xf32>
    %c47 = arith.constant 47 : index
    %733 = memref.load %arg12[%c47] : memref<99xf32, #tpu.memory_space<smem>>
    %734 = vector.broadcast %733 : f32 to vector<8x8x1xf32>
    %735 = arith.mulf %730, %734 : vector<8x8x1xf32>
    %736 = arith.addf %728, %735 : vector<8x8x1xf32>
    %c96 = arith.constant 96 : index
    %737 = memref.load %arg12[%c96] : memref<99xf32, #tpu.memory_space<smem>>
    %738 = vector.broadcast %737 : f32 to vector<8x8x1xf32>
    %739 = arith.mulf %732, %738 : vector<8x8x1xf32>
    %740 = arith.addf %736, %739 : vector<8x8x1xf32>
    %c0_495 = arith.constant 0 : index
    %c6_496 = arith.constant 6 : index
    %c6_497 = arith.constant 6 : index
    %c0_498 = arith.constant 0 : index
    %741 = vector.load %arg17[%c0_495, %c6_496, %c6_497, %c0_498] : memref<2x14x14x1xf32, #tpu.memory_space<vmem>>, vector<1x8x8x1xf32>
    %742 = vector.shape_cast %741 : vector<1x8x8x1xf32> to vector<8x8x1xf32>
    %c1_499 = arith.constant 1 : index
    %c6_500 = arith.constant 6 : index
    %c6_501 = arith.constant 6 : index
    %c0_502 = arith.constant 0 : index
    %743 = vector.load %arg17[%c1_499, %c6_500, %c6_501, %c0_502] : memref<2x14x14x1xf32, #tpu.memory_space<vmem>>, vector<1x8x8x1xf32>
    %744 = vector.shape_cast %743 : vector<1x8x8x1xf32> to vector<8x8x1xf32>
    %c48 = arith.constant 48 : index
    %745 = memref.load %arg12[%c48] : memref<99xf32, #tpu.memory_space<smem>>
    %746 = vector.broadcast %745 : f32 to vector<8x8x1xf32>
    %747 = arith.mulf %742, %746 : vector<8x8x1xf32>
    %748 = arith.addf %740, %747 : vector<8x8x1xf32>
    %c97 = arith.constant 97 : index
    %749 = memref.load %arg12[%c97] : memref<99xf32, #tpu.memory_space<smem>>
    %750 = vector.broadcast %749 : f32 to vector<8x8x1xf32>
    %751 = arith.mulf %744, %750 : vector<8x8x1xf32>
    %752 = arith.addf %748, %751 : vector<8x8x1xf32>
    %c98 = arith.constant 98 : index
    %753 = memref.load %arg12[%c98] : memref<99xf32, #tpu.memory_space<smem>>
    %754 = vector.broadcast %753 : f32 to vector<8x8x1xf32>
    %755 = arith.addf %752, %754 : vector<8x8x1xf32>
    %756 = arith.negf %755 : vector<8x8x1xf32>
    %757 = math.exp %756 : vector<8x8x1xf32>
    %cst_503 = arith.constant 1.000000e+00 : f32
    %758 = vector.broadcast %cst_503 : f32 to vector<8x8x1xf32>
    %759 = arith.addf %758, %757 : vector<8x8x1xf32>
    %760 = arith.divf %758, %759 : vector<8x8x1xf32>
    %761 = vector.broadcast %760 : vector<8x8x1xf32> to vector<8x8x32xf32>
    %762 = arith.mulf %153, %761 : vector<8x8x32xf32>
    %763 = vector.shape_cast %762 : vector<8x8x32xf32> to vector<64x32xf32>
    %764 = arith.truncf %763 : vector<64x32xf32> to vector<64x32xbf16>
    %c0_504 = arith.constant 0 : index
    %c0_505 = arith.constant 0 : index
    %765 = vector.load %arg13[%c0_504, %c0_505] : memref<32x32xbf16, #tpu.memory_space<vmem>>, vector<32x32xbf16>
    %cst_506 = arith.constant dense<0.000000e+00> : vector<64x32xf32>
    %766 = tpu.matmul %764, %765, %cst_506 {dimension_numbers = #tpu.dot_dimension_numbers<[1], [0], [0], [1], [0, 0, 1, 1], [], []>} : vector<64x32xbf16>, vector<32x32xbf16>, vector<64x32xf32> -> vector<64x32xf32>
    %c0_507 = arith.constant 0 : index
    %c0_508 = arith.constant 0 : index
    %767 = vector.load %arg14[%c0_507, %c0_508] : memref<1x32xf32, #tpu.memory_space<vmem>>, vector<1x32xf32>
    %768 = vector.broadcast %767 : vector<1x32xf32> to vector<64x32xf32>
    %769 = arith.addf %766, %768 : vector<64x32xf32>
    %770 = vector.shape_cast %769 : vector<64x32xf32> to vector<1x64x32xf32>
    %c0_509 = arith.constant 0 : index
    %c0_510 = arith.constant 0 : index
    %c0_511 = arith.constant 0 : index
    %771 = vector.load %arg15[%c0_509, %c0_510, %c0_511] : memref<1x64x32xf32, #tpu.memory_space<vmem>>, vector<1x64x32xf32>
    tpu.vector_store %arg15[%c0_509, %c0_510, %c0_511], %770 {strides = array<i32>} : memref<1x64x32xf32, #tpu.memory_space<vmem>>, vector<1x64x32xf32>,
    return
  }
  func.func @transform_0(%arg0: i32) -> (i32, i32, i32, i32, i32) {
    %c0_i32 = arith.constant 0 : i32
    %c0_i32_0 = arith.constant 0 : i32
    %c0_i32_1 = arith.constant 0 : i32
    %c0_i32_2 = arith.constant 0 : i32
    %c0_i32_3 = arith.constant 0 : i32
    return %arg0, %c0_i32, %c0_i32_0, %c0_i32_1, %c0_i32_2 : i32, i32, i32, i32, i32
  }
  func.func @transform_1(%arg0: i32) -> (i32, i32) {
    %c0_i32 = arith.constant 0 : i32
    %c0_i32_0 = arith.constant 0 : i32
    %c0_i32_1 = arith.constant 0 : i32
    return %c0_i32, %c0_i32_0 : i32, i32
  }
  func.func @transform_2(%arg0: i32) -> (i32, i32) {
    %c0_i32 = arith.constant 0 : i32
    %c0_i32_0 = arith.constant 0 : i32
    %c0_i32_1 = arith.constant 0 : i32
    return %c0_i32, %c0_i32_0 : i32, i32
  }
  func.func @transform_3(%arg0: i32) -> (i32, i32) {
    %c0_i32 = arith.constant 0 : i32
    %c0_i32_0 = arith.constant 0 : i32
    %c0_i32_1 = arith.constant 0 : i32
    return %c0_i32, %c0_i32_0 : i32, i32
  }
  func.func @transform_4(%arg0: i32) -> (i32, i32) {
    %c0_i32 = arith.constant 0 : i32
    %c0_i32_0 = arith.constant 0 : i32
    %c0_i32_1 = arith.constant 0 : i32
    return %c0_i32, %c0_i32_0 : i32, i32
  }
  func.func @transform_5(%arg0: i32) -> (i32, i32) {
    %c0_i32 = arith.constant 0 : i32
    %c0_i32_0 = arith.constant 0 : i32
    %c0_i32_1 = arith.constant 0 : i32
    return %c0_i32, %c0_i32_0 : i32, i32
  }
  func.func @transform_6(%arg0: i32) -> (i32, i32) {
    %c0_i32 = arith.constant 0 : i32
    %c0_i32_0 = arith.constant 0 : i32
    %c0_i32_1 = arith.constant 0 : i32
    return %c0_i32, %c0_i32_0 : i32, i32
  }
  func.func @transform_7(%arg0: i32) -> (i32, i32) {
    %c0_i32 = arith.constant 0 : i32
    %c0_i32_0 = arith.constant 0 : i32
    %c0_i32_1 = arith.constant 0 : i32
    return %c0_i32, %c0_i32_0 : i32, i32
  }
  func.func @transform_8(%arg0: i32) -> (i32, i32) {
    %c0_i32 = arith.constant 0 : i32
    %c0_i32_0 = arith.constant 0 : i32
    %c0_i32_1 = arith.constant 0 : i32
    return %c0_i32, %c0_i32_0 : i32, i32
  }
  func.func @transform_9(%arg0: i32) -> (i32, i32) {
    %c0_i32 = arith.constant 0 : i32
    %c0_i32_0 = arith.constant 0 : i32
    %c0_i32_1 = arith.constant 0 : i32
    return %c0_i32, %c0_i32_0 : i32, i32
  }
  func.func @transform_10(%arg0: i32) -> (i32, i32) {
    %c0_i32 = arith.constant 0 : i32
    %c0_i32_0 = arith.constant 0 : i32
    %c0_i32_1 = arith.constant 0 : i32
    return %c0_i32, %c0_i32_0 : i32, i32
  }
  func.func @transform_11(%arg0: i32) -> i32 {
    %c0_i32 = arith.constant 0 : i32
    %c0_i32_0 = arith.constant 0 : i32
    return %c0_i32 : i32
  }
  func.func @transform_12(%arg0: i32) -> (i32, i32) {
    %c0_i32 = arith.constant 0 : i32
    %c0_i32_0 = arith.constant 0 : i32
    %c0_i32_1 = arith.constant 0 : i32
    return %c0_i32, %c0_i32_0 : i32, i32
  }
  func.func @transform_13(%arg0: i32) -> (i32, i32) {
    %c0_i32 = arith.constant 0 : i32
    %c0_i32_0 = arith.constant 0 : i32
    %c0_i32_1 = arith.constant 0 : i32
    return %c0_i32, %c0_i32_0 : i32, i32
  }
  func.func @transform_14(%arg0: i32) -> (i32, i32, i32) {
    %c0_i32 = arith.constant 0 : i32
    %c0_i32_0 = arith.constant 0 : i32
    %c0_i32_1 = arith.constant 0 : i32
    return %arg0, %c0_i32, %c0_i32_0 : i32, i32, i32
  }
}

</mosaic_0001>

<bundles_post_ra>
// kernel: depthwise_forward.1
= control target key start
LH: loop header
LB: loop body
LE: loop exit
PB: predicated region body
PF: predicated region fallthrough
CT: control target
= control target key end

     0   :  { %s9325_s0 = inlined_call_operand.vmem [shape: bf16[2,4,8,8,16], index: 0, kind: input, shape index: {}]   ;;  %s9326_s1 = inlined_call_operand.vmem [shape: bf16[16,32], index: 1, kind: input, shape index: {}]   ;;  %s9327_s2 = inlined_call_operand.vmem [shape: f32[1,32], index: 2, kind: input, shape index: {}]   ;;  %s9328_s3 = inlined_call_operand.vmem [shape: f32[1,32], index: 3, kind: input, shape index: {}]   ;;  %s9329_s4 = inlined_call_operand.vmem [shape: f32[9,32], index: 4, kind: input, shape index: {}]   ;;  %s9330_s5 = inlined_call_operand.vmem [shape: f32[1,32], index: 5, kind: input, shape index: {}]   ;;  %s9331_s6 = inlined_call_operand.vmem [shape: f32[1,32], index: 6, kind: input, shape index: {}]   ;;  %s9332_s7 = inlined_call_operand.vmem [shape: f32[32,2], index: 7, kind: input, shape index: {}]   ;;  %s9333_s8 = inlined_call_operand.vmem [shape: f32[1,2], index: 8, kind: input, shape index: {}]   ;;  %s9334_s9 = inlined_call_operand.vmem [shape: f32[2,32], index: 9, kind: input, shape index: {}]   ;;  %s9335_s10 = inlined_call_operand.vmem [shape: f32[1,32], index: 10, kind: input, shape index: {}]   ;;  %s9336_s11 = inlined_call_operand.vmem [shape: f32[99], index: 11, kind: input, shape index: {}]   ;;  %s9337_s12 = inlined_call_operand.vmem [shape: bf16[32,32], index: 12, kind: input, shape index: {}]   ;;  %s9338_s13 = inlined_call_operand.vmem [shape: f32[1,32], index: 13, kind: input, shape index: {}]   ;;  %s9339_s14 = inlined_call_operand.hbm [shape: f32[2,64,32], index: 14, kind: output, shape index: {}]  }
   0x1   :  { %9602 = sst [smem:[#allocation313_spill]] %s9325_s0 }
   0x2   :  { %9603 = sst [smem:[#allocation314_spill]] %s9326_s1 }
   0x3   :  { %9604 = sst [smem:[#allocation315_spill]] %s9327_s2 }
   0x4   :  { %9605 = sst [smem:[#allocation316_spill]] %s9328_s3 }
   0x5   :  { %9606 = sst [smem:[#allocation317_spill]] %s9329_s4 }
   0x6   :  { %9607 = sst [smem:[#allocation318_spill]] %s9330_s5 }
   0x7   :  { %9608 = sst [smem:[#allocation319_spill]] %s9331_s6 }
   0x8   :  { %9609 = sst [smem:[#allocation320_spill]] %s9332_s7 }
   0x9   :  { %9610 = sst [smem:[#allocation321_spill]] %s9333_s8 }
   0xa   :  { %9611 = sst [smem:[#allocation322_spill]] %s9334_s9 }
   0xb   :  { %9612 = sst [smem:[#allocation323_spill]] %s9335_s10 }
   0xc   :  { %9613 = sst [smem:[#allocation324_spill]] %s9336_s11 }
   0xd   :  { %9614 = sst [smem:[#allocation325_spill]] %s9337_s12 }
   0xe   :  { %9615 = sst [smem:[#allocation326_spill]] %s9338_s13 }
   0xf   :  { %9616 = sst [smem:[#allocation327_spill]] %s9339_s14 }
  0x10   :  { %19 = vsyncpa [#allocation7], 0 }
  0x11   :  { %20 = vsyncpa [#allocation6], 0 }
  0x12   :  { %22 = vsyncpa [#allocation6 + $0x1], 0  ;;  %s5284_s29 = smov 0   ;;  %s5286_s30 = smov 0  }
  0x13   :  { %s5288_s15 = smov 0   ;;  %s5290_s16 = smov 0  }
  0x14 LB: > { %9617 = sst [smem:[#allocation11_spill]] %s5187_s29  ;;  %s5305_s17 = sadd.s32 4294967295, %s5199_s16   ;;  %s5199_s16 = sphi %s5290_s16, %s10614_s16   ;;  %s5195_s15 = sphi %s5288_s15, %s10617_s15   ;;  %s5191_s30 = sphi %s5286_s30, %s10616_s30   ;;  %s5187_s29 = sphi %s5284_s29, %s10615_s29  }
  0x15   : > { %9618 = sst [smem:[#allocation12_spill]] %s5191_s30  ;;  %s4723_s18 = sadd.s32 4294967294, %s5199_s16  }
  0x16   : > { %9619 = sst [smem:[#allocation13_spill]] %s5195_s15  ;;  %s5309_s19 = sadd.s32 1, %s5199_s16  }
  0x17   : > { %9620 = sst [smem:[#allocation14_spill]] %s5199_s16  ;;  %s334_s20 = sadd.s32 1, %s5195_s15 }
  0x18   : > { %9621 = sst [smem:[#allocation15_spill]] %s5305_s17  ;;  %s331_s21 = ssub.s32 %s5199_s16, %s5309_s19 }
  0x19   : > { %9622 = sst [smem:[#allocation16_spill]] %s5309_s19  ;;  %p344_p0 = scmp.ne.s32.totalorder %s5195_s15, %s5191_s30 }
  0x1a   : > { %p332_p1 = scmp.eq.s32.totalorder %s331_s21, 0  ;;  %p345_p2 = scmp.eq.s32.totalorder %s5305_s17, 1 }
  0x1b   : > { %p350_p3 = scmp.ne.s32.totalorder %s5191_s30, %s5187_s29  ;;  %p351_p4 = scmp.eq.s32.totalorder %s4723_s18, 1 }
  0x1c   : > { %s5320_s22 = scalar_select %p332_p1, %s5195_s15, %s334_s20  }
  0x1d   : > { %p5322_p5 = por %p345_p2, %p344_p0  ;;  %p5326_p6 = por %p351_p4, %p350_p3 }
  0x1e   : > { %9623 = sst [smem:[#allocation17_spill]] %s5320_s22  ;;  %p4724_p7 = scmp.ge.s32.totalorder %s5199_s16, 1 }
  0x1f   : > { %s9624_s23 = scalar_select %p5322_p5, 1, 0 }
  0x20   : > { %s9626_s24 = scalar_select %p5326_p6, 1, 0 }
  0x21   : > { %9625 = sst [smem:[#allocation18_spill]] %s9624_s23  ;;  %p358_p8 = scmp.lt.s32.totalorder %s5199_s16, 3 }
  0x22   : > { %9627 = sst [smem:[#allocation19_spill]] %s9626_s24  ;;  %p5018_p9 = scmp.eq.s32.totalorder %s5305_s17, 0 }
  0x23   : > { %p5333_p10 = pnand %p4724_p7, %p358_p8  ;;  %s9629_s11 = sld [smem:[#allocation324_spill]] }
  0x25   : > { %p5010_p11 = pneg %p5333_p10 }
  0x27   : > { %p5011_p12 = pnand %p5018_p9, %p5010_p11 }
  0x29   : > { %s401_s28 = sshll.u32 %s9629_s11, 4  ;;  %p5120_p0 = pneg %p5011_p12  ;;  %s402_s28 = int_to_ptr.vmem [resolvable:$true] %s401_s28 }
  0x2a   : > { %s5118_s18 = scalar_lea.vmem %s402_s28, 16  ;;  %p5126_p3 = scmp.lt.s32.totalorder %s402_s28, %s402_s28 }
  0x2b   : > { %p5119_p13 = scmp.ne.s32.totalorder %s402_s28, %s5118_s18  ;;  %p5127_p4 = scmp.lt.s32.totalorder %s5118_s18, %s5118_s18 }
  0x2d   : > { %p5121_p1 = pnand %p5120_p0, %p5119_p13  ;;  %p5128_p7 = por %p5127_p4, %p5126_p3 }
  0x2f   : > { %p5122_p2 = pneg %p5121_p1 }
  0x31   : > { %p5129_p8 = pnand %p5128_p7, %p5122_p2 }
  0x33   : > { %5132 = shalt.err (!%p5129_p8)
}
  0x34   : > { %s5201_s20 = smov [#allocation5]   ;;  %428 = sbr.rel (%p5333_p10) target bundleno = 1898 (0x76a), region = 76 }
  0x35   : > { %5013 = dma.vmem_to_smem (!%p5011_p12), %s402_s28, 16, %s5201_s20, [#allocation7]  }
  0x3b   : > { %5178 = dma.done.wait (%p5018_p9), [#allocation7], 16  }
  0x3c   : > { %5180 = vsyncadd (%p5018_p9), [#allocation7], 4294967280 }
  0x3d   : > { %434 = sfence }
  0x3e   : > { %s9630_s1 = sld [smem:[#allocation314_spill]]  ;;  %p475_p11 = scmp.lt.s32.totalorder %s5305_s17, 1  ;;  %vm608_vm0 = vcmask 130048   ;;  %vm921_vm1 = vcmask 261120   ;;  %v9340_v17 = vmov 0.0   ;;  %vm923_vm2 = vcmask 253952  }
  0x3f   : > { %s9631_s0 = sld [smem:[#allocation313_spill]]  ;;  %981 = vst.msk [vmem:[#allocation2 + $0x1d0] sm:$0xff] %vm921_vm1, %v9340_v17  ;;  %922 = vst.msk [vmem:[#allocation2] sm:$0xff] %vm921_vm1, %v9340_v17  ;;  %s9632_s7 = sld [smem:[#allocation320_spill]]  ;;  %v5203_v21 = vmov 0.0|0.0   ;;  %vm5204_vm3 = vmmov 0  }
  0x40   : > { %s476_s27 = scalar_select %p475_p11, %s5305_s17, 1  ;;  %925 = vst.msk [vmem:[#allocation2 + $0x10] sm:$0xff] %vm921_vm1, %v9340_v17  ;;  %927 = vst.msk [vmem:[#allocation2 + $0x20] sm:$0xff] %vm921_vm1, %v9340_v17 }
  0x41   : > { %929 = vst.msk [vmem:[#allocation2 + $0x30] sm:$0xff] %vm921_vm1, %v9340_v17  ;;  %931 = vst.msk [vmem:[#allocation2 + $0x40] sm:$0xff] %vm921_vm1, %v9340_v17  ;;  %s9633_s2 = sld [smem:[#allocation315_spill]]  ;;  %s9634_s3 = sld [smem:[#allocation316_spill]] }
  0x42   : > { %s4902_s25 = sshll.u32 %s476_s27, 7  ;;  %933 = vst.msk [vmem:[#allocation2 + $0x50] sm:$0xff] %vm921_vm1, %v9340_v17  ;;  %935 = vst.msk [vmem:[#allocation2 + $0x60] sm:$0xff] %vm921_vm1, %v9340_v17  ;;  %s9635_s4 = sld [smem:[#allocation317_spill]] }
  0x43   : > { %937 = vst.msk [vmem:[#allocation2 + $0x70] sm:$0xff] %vm921_vm1, %v9340_v17  ;;  %939 = vst.msk [vmem:[#allocation2 + $0x80] sm:$0xff] %vm921_vm1, %v9340_v17  ;;  %s9649_s5 = sld [smem:[#allocation318_spill]]  ;;  %s9650_s6 = sld [smem:[#allocation319_spill]] }
  0x44   : > { %v5062_v0 = vld [vmem:[%s9630_s1] sm:$0xff]   ;;  %941 = vst.msk [vmem:[#allocation2 + $0x90] sm:$0xff] %vm921_vm1, %v9340_v17  ;;  %943 = vst.msk [vmem:[#allocation2 + $0xa0] sm:$0xff] %vm921_vm1, %v9340_v17  ;;  %s9664_s9 = sld [smem:[#allocation322_spill]]  ;;  %s9665_s8 = sld [smem:[#allocation321_spill]] }
  0x45   : > { %4934 = vmatprep.subr.bf16.mxu0 %v5062_v0  ;;  %5002 = vmatprep.subr.bf16.mxu1 %v5062_v0  ;;  %s5358_s20 = scalar_lea.vmem %s9631_s0, %s4902_s25  ;;  %945 = vst.msk [vmem:[#allocation2 + $0xb0] sm:$0xff] %vm921_vm1, %v9340_v17  ;;  %947 = vst.msk [vmem:[#allocation2 + $0xc0] sm:$0xff] %vm921_vm1, %v9340_v17  ;;  %v1591_v18 = vld [vmem:[%s9632_s7] sm:$0xff]  ;;  %v1592_v19 = vld [vmem:[%s9632_s7 + $0x8] sm:$0xff]  ;;  %s9666_s10 = sld [smem:[#allocation323_spill]] }
  0x46   : > { %4935 = vmatpush3.bf16.msra.mxu0 %v5062_v0  ;;  %5003 = vmatpush3.bf16.msra.mxu1 %v5062_v0  ;;  %v5063_v1 = vld [vmem:[%s5358_s20] sm:$0xff]   ;;  %v5064_v2 = vld [vmem:[%s5358_s20 + $0x8] sm:$0xff]   ;;  %v5065_v3 = vld [vmem:[%s5358_s20 + $0x10] sm:$0xff]   ;;  %949 = vst.msk [vmem:[#allocation2 + $0xd0] sm:$0xff] %vm921_vm1, %v9340_v17  ;;  %v4997_v22 = vpack.c.bf16 %v1592_v19, %v1591_v18  ;;  %s1875_s21 = sld [smem:[#allocation5]]  ;;  %s4784_s26 = sld [smem:[#allocation5 + $0x31]] }
  0x47   : > { %4936 = vmatprep.mubr.msk.bf16.mxu0 %vm608_vm0, %v5063_v1  ;;  %v5066_v4 = vld [vmem:[%s5358_s20 + $0x18] sm:$0xff]   ;;  %v5069_v5 = vld [vmem:[%s5358_s20 + $0x60] sm:$0xff]   ;;  %v5070_v6 = vld [vmem:[%s5358_s20 + $0x68] sm:$0xff]   ;;  %951 = vst.msk [vmem:[#allocation2 + $0xe0] sm:$0xff] %vm921_vm1, %v9340_v17  ;;  %4996 = vmatprep.subr.bf16.mxu1 %v5203_v21  ;;  %s4785_s27 = sld [smem:[#allocation5 + $0x1]]  ;;  %s4786_s25 = sld [smem:[#allocation5 + $0x32]] }
  0x48   : > { %v5067_v7 = vld [vmem:[%s5358_s20 + $0x20] sm:$0xff]   ;;  %4960 = vmatprep.mubr.msk.bf16.mxu1 %vm608_vm0, %v5069_v5  ;;  %v5075_v8 = vld [vmem:[%s5358_s20 + $0x70] sm:$0xff]   ;;  %v5076_v9 = vld [vmem:[%s5358_s20 + $0x78] sm:$0xff]   ;;  %953 = vst.msk [vmem:[#allocation2 + $0xf0] sm:$0xff] %vm921_vm1, %v9340_v17  ;;  %s4787_s0 = sld [smem:[#allocation5 + $0x2]]  ;;  %s4788_s28 = sld [smem:[#allocation5 + $0x33]] }
  0x49   : > { %4937 = vmatmul.mubr.msk.bf16.vlgmr.msra.gmra.mrb[0].mxu0 %vm608_vm0, %v5064_v2  ;;  %4961 = vmatmul.mubr.msk.bf16.vlgmr.msra.gmra.mrb[0].mxu1 %vm608_vm0, %v5070_v6  ;;  %v5068_v10 = vld [vmem:[%s5358_s20 + $0x28] sm:$0xff]   ;;  %v5071_v11 = vld [vmem:[%s5358_s20 + $0x30] sm:$0xff]   ;;  %v5072_v12 = vld [vmem:[%s5358_s20 + $0x38] sm:$0xff]   ;;  %955 = vst.msk [vmem:[#allocation2 + $0x100] sm:$0xff] %vm921_vm1, %v9340_v17  ;;  %s4789_s18 = sld [smem:[#allocation5 + $0x3]]  ;;  %s6455_s1 = sld [smem:[#allocation5 + $0x4a]] }
  0x4a   : > { %4940 = vmatprep.mubr.msk.bf16.mxu0 %vm608_vm0, %v5065_v3  ;;  %4964 = vmatprep.mubr.msk.bf16.mxu1 %vm608_vm0, %v5075_v8  ;;  %v5073_v13 = vld [vmem:[%s5358_s20 + $0x40] sm:$0xff]   ;;  %v5074_v14 = vld [vmem:[%s5358_s20 + $0x48] sm:$0xff]   ;;  %v5077_v15 = vld [vmem:[%s5358_s20 + $0x50] sm:$0xff]   ;;  %957 = vst.msk [vmem:[#allocation2 + $0x110] sm:$0xff] %vm921_vm1, %v9340_v17  ;;  %s6485_s11 = sld [smem:[#allocation5 + $0x4f]]  ;;  %s6492_s22 = sld [smem:[#allocation5 + $0x1c]] }
  0x4b   : > { %v5078_v16 = vld [vmem:[%s5358_s20 + $0x58] sm:$0xff]   ;;  %959 = vst.msk [vmem:[#allocation2 + $0x120] sm:$0xff] %vm921_vm1, %v9340_v17  ;;  %961 = vst.msk [vmem:[#allocation2 + $0x130] sm:$0xff] %vm921_vm1, %v9340_v17  ;;  %v1593_v20 = vld [vmem:[%s9632_s7 + $0x10] sm:$0xff]  ;;  %4998 = vmatpush3.bf16.msra.mxu1 %v4997_v22  ;;  %s4790_s20 = sld [smem:[#allocation5 + $0x34]]  ;;  %s6494_s15 = sld [smem:[#allocation5 + $0x1d]] }
  0x4c   : > { %963 = vst.msk [vmem:[#allocation2 + $0x140] sm:$0xff] %vm921_vm1, %v9340_v17  ;;  %965 = vst.msk [vmem:[#allocation2 + $0x150] sm:$0xff] %vm921_vm1, %v9340_v17  ;;  %v1594_v23 = vld [vmem:[%s9632_s7 + $0x18] sm:$0xff]  ;;  %4999 = vmatprep.subr.bf16.mxu1 %v5203_v21  ;;  %v5511_v25 = vld [vmem:[%s9633_s2] ss:$0 sm:$0xff]  ;;  %s6457_s2 = sld [smem:[#allocation5 + $0x4b]] }
  0x4d   : > { %967 = vst.msk [vmem:[#allocation2 + $0x160] sm:$0xff] %vm921_vm1, %v9340_v17  ;;  %969 = vst.msk [vmem:[#allocation2 + $0x170] sm:$0xff] %vm921_vm1, %v9340_v17  ;;  %v5000_v24 = vpack.c.bf16 %v1594_v23, %v1593_v20  ;;  %v5516_v27 = vld [vmem:[%s9634_s3] ss:$0 sm:$0xff]  ;;  %s6459_s3 = sld [smem:[#allocation5 + $0x4c]]  ;;  %s6474_s7 = sld [smem:[#allocation5 + $0x19]] }
  0x4e   : > { %971 = vst.msk [vmem:[#allocation2 + $0x180] sm:$0xff] %vm921_vm1, %v9340_v17  ;;  %973 = vst.msk [vmem:[#allocation2 + $0x190] sm:$0xff] %vm921_vm1, %v9340_v17  ;;  %s6496_s19 = sld [smem:[#allocation5 + $0x1e]]  ;;  %s6498_s24 = sld [smem:[#allocation5 + $0x50]] }
  0x4f   : > { %977 = vst.msk [vmem:[#allocation2 + $0x1b0] sm:$0xff] %vm921_vm1, %v9340_v17  ;;  %979 = vst.msk [vmem:[#allocation2 + $0x1c0] sm:$0xff] %vm921_vm1, %v9340_v17  ;;  %5001 = vmatpush3.bf16.msra.mxu1 %v5000_v24  ;;  %s6500_s29 = sld [smem:[#allocation5 + $0x51]]  ;;  %s6502_s16 = sld [smem:[#allocation5 + $0x52]] }
  0x50   : > { %983 = vst.msk [vmem:[#allocation2 + $0x1e0] sm:$0xff] %vm921_vm1, %v9340_v17  ;;  %985 = vst.msk [vmem:[#allocation2 + $0x1f0] sm:$0xff] %vm921_vm1, %v9340_v17  ;;  %4979 = vmatprep.subr.mxu1 %v9340_v17  ;;  %s6512_s14 = sld [smem:[#allocation5 + $0x54]]  ;;  %s6518_s23 = sld [smem:[#allocation5 + $0x56]] }
  0x51   : > { %4941 = vmatmul.mubr.msk.bf16.gmra.mrb[4].mxu0 %vm608_vm0, %v5066_v4  ;;  %4965 = vmatmul.mubr.msk.bf16.gmra.mrb[4].mxu1 %vm608_vm0, %v5076_v9  ;;  %987 = vst.msk [vmem:[#allocation2 + $0x200] sm:$0xff] %vm921_vm1, %v9340_v17  ;;  %989 = vst.msk [vmem:[#allocation2 + $0x210] sm:$0xff] %vm921_vm1, %v9340_v17  ;;  %s6521_s17 = sld [smem:[#allocation5 + $0x57]]  ;;  %s6523_s13 = sld [smem:[#allocation5 + $0x58]] }
  0x52   : > { %4944 = vmatprep.mubr.msk.bf16.mxu0 %vm608_vm0, %v5067_v7  ;;  %991 = vst.msk [vmem:[#allocation2 + $0x220] sm:$0xff] %vm921_vm1, %v9340_v17  ;;  %4976 = vmatprep.mubr.msk.f32.mxu1 %vm5204_vm3, %v9340_v17  ;;  %s6537_s30 = sld [smem:[#allocation5 + $0x59]]  ;;  %s6539_s12 = sld [smem:[#allocation5 + $0x5a]] }
  0x53   : > { %964 = vst.msk [vmem:[#allocation2 + $0x148] sm:$0x1] %vm923_vm2, %v9340_v17  ;;  %924 = vst.msk [vmem:[#allocation2 + $0x8] sm:$0x1] %vm923_vm2, %v9340_v17 }
  0x54   : > { %926 = vst.msk [vmem:[#allocation2 + $0x18] sm:$0x1] %vm923_vm2, %v9340_v17  ;;  %928 = vst.msk [vmem:[#allocation2 + $0x28] sm:$0x1] %vm923_vm2, %v9340_v17 }
  0x55   : > { %930 = vst.msk [vmem:[#allocation2 + $0x38] sm:$0x1] %vm923_vm2, %v9340_v17  ;;  %932 = vst.msk [vmem:[#allocation2 + $0x48] sm:$0x1] %vm923_vm2, %v9340_v17 }
  0x56   : > { %934 = vst.msk [vmem:[#allocation2 + $0x58] sm:$0x1] %vm923_vm2, %v9340_v17  ;;  %936 = vst.msk [vmem:[#allocation2 + $0x68] sm:$0x1] %vm923_vm2, %v9340_v17 }
  0x57   : > { %938 = vst.msk [vmem:[#allocation2 + $0x78] sm:$0x1] %vm923_vm2, %v9340_v17  ;;  %940 = vst.msk [vmem:[#allocation2 + $0x88] sm:$0x1] %vm923_vm2, %v9340_v17 }
  0x58   : > { %960 = vst.msk [vmem:[#allocation2 + $0x128] sm:$0x1] %vm923_vm2, %v9340_v17  ;;  %962 = vst.msk [vmem:[#allocation2 + $0x138] sm:$0x1] %vm923_vm2, %v9340_v17 }
  0x59   : > { %4945 = vmatmul.mubr.msk.bf16.gmra.mrb[8].mxu0 %vm608_vm0, %v5068_v10  ;;  %966 = vst.msk [vmem:[#allocation2 + $0x158] sm:$0x1] %vm923_vm2, %v9340_v17  ;;  %968 = vst.msk [vmem:[#allocation2 + $0x168] sm:$0x1] %vm923_vm2, %v9340_v17 }
  0x5a   : > { %4948 = vmatprep.mubr.msk.bf16.mxu0 %vm608_vm0, %v5071_v11  ;;  %970 = vst.msk [vmem:[#allocation2 + $0x178] sm:$0x1] %vm923_vm2, %v9340_v17  ;;  %972 = vst.msk [vmem:[#allocation2 + $0x188] sm:$0x1] %vm923_vm2, %v9340_v17 }
  0x5b   : > { %974 = vst.msk [vmem:[#allocation2 + $0x198] sm:$0x1] %vm923_vm2, %v9340_v17 }
  0x61   : > { %4949 = vmatmul.mubr.msk.bf16.gmra.mrb[12].mxu0 %vm608_vm0, %v5072_v12 }
  0x62   : > { %4952 = vmatprep.mubr.msk.bf16.mxu0 %vm608_vm0, %v5073_v13 }
  0x69   : > { %4953 = vmatmul.mubr.msk.bf16.gmra.mrb[16].mxu0 %vm608_vm0, %v5074_v14 }
  0x6a   : > { %4956 = vmatprep.mubr.msk.bf16.mxu0 %vm608_vm0, %v5077_v15 }
  0x71   : > { %4957 = vmatmul.mubr.msk.bf16.gmra.mrb[20].mxu0 %vm608_vm0, %v5078_v16 }
 0x11c   : > { %v4938_v26 = vpop.f32.mrb[0].mxu0  ;;  %v4962_v41 = vpop.f32.mrb[0].mxu1 }
 0x11d   : > { %v700_v28 = vadd.f32 %v4938_v26, %v5511_v25  ;;  %v691_v29 = vpop.f32.mrb[1].mxu0  ;;  %v796_v43 = vadd.f32 %v4962_v41, %v5511_v25  ;;  %v787_v44 = vpop.f32.mrb[1].mxu1 }
 0x11e   : > { %v692_v30 = vadd.f32 %v5511_v25, %v691_v29  ;;  %v4939_v31 = vpop.f32.mrb[2].mxu0  ;;  %v788_v47 = vadd.f32 %v5511_v25, %v787_v44  ;;  %v4963_v48 = vpop.f32.mrb[2].mxu1  ;;  %v5589_v44 = vld [vmem:[%s9635_s4 + $0x1] ss:$0 sm:$0xff] }
 0x11f   : > { %vm820_vm4 = vcmp.ge.f32.partialorder %v700_v28, 0.0  ;;  %v859_v32 = vmul.f32 %v5516_v27, %v700_v28  ;;  %v703_v33 = vadd.f32 %v4939_v31, %v5511_v25  ;;  %v694_v34 = vpop.f32.mrb[3].mxu0  ;;  %vm844_vm8 = vcmp.ge.f32.partialorder %v796_v43, 0.0  ;;  %v790_v53 = vpop.f32.mrb[3].mxu1 }
 0x120   : > { %vm818_vm5 = vcmp.ge.f32.partialorder %v692_v30, 0.0  ;;  %v857_v35 = vmul.f32 %v5516_v27, %v692_v30  ;;  %v695_v36 = vadd.f32 %v5511_v25, %v694_v34  ;;  %v883_v51 = vmul.f32 %v5516_v27, %v796_v43 }
 0x121   : > { %v891_v37 = vsel %vm820_vm4, %v700_v28, %v859_v32  ;;  %vm821_vm6 = vcmp.ge.f32.partialorder %v703_v33, 0.0  ;;  %v860_v38 = vmul.f32 %v5516_v27, %v703_v33  ;;  %v799_v52 = vadd.f32 %v4963_v48, %v5511_v25 }
 0x122   : > { %1083 = vst.msk [vmem:[#allocation2 + $0x1d0] sm:$0xff] %vm921_vm1, %v891_v37  ;;  %v889_v39 = vsel %vm818_vm5, %v692_v30, %v857_v35  ;;  %vm819_vm7 = vcmp.ge.f32.partialorder %v695_v36, 0.0  ;;  %v858_v40 = vmul.f32 %v5516_v27, %v695_v36  ;;  %vm842_vm9 = vcmp.ge.f32.partialorder %v788_v47, 0.0  ;;  %v1090_v37 = vld [vmem:[#allocation2 + $0x8] sm:$0x1] }
 0x123   : > { %1081 = vst.msk [vmem:[#allocation2 + $0x1b0] sm:$0xff] %vm921_vm1, %v889_v39  ;;  %v892_v42 = vsel %vm821_vm6, %v703_v33, %v860_v38  ;;  %v881_v56 = vmul.f32 %v5516_v27, %v788_v47  ;;  %v791_v57 = vadd.f32 %v5511_v25, %v790_v53  ;;  %v915_v61 = vsel %vm844_vm8, %v796_v43, %v883_v51  ;;  %v5578_v38 = vld [vmem:[%s9635_s4 + $0x2] ss:$0 sm:$0xff]  ;;  %v5584_v43 = vld [vmem:[%s9635_s4] ss:$0 sm:$0xff] }
 0x124   : > { %1084 = vst.msk [vmem:[#allocation2 + $0x1e0] sm:$0xff] %vm921_vm1, %v892_v42  ;;  %v890_v45 = vsel %vm819_vm7, %v695_v36, %v858_v40  ;;  %v4942_v46 = vpop.f32.mrb[4].mxu0  ;;  %1056 = vst.msk [vmem:[#allocation2 + $0x31] sm:$0xff] %vm921_vm1, %v915_v61  ;;  %vm845_vm14 = vcmp.ge.f32.partialorder %v799_v52, 0.0  ;;  %v5548_v5 = vpop.f32.mrb[4].mxu1  ;;  %v884_v7 = vmul.f32 %v5516_v27, %v799_v52  ;;  %v1089_v36 = vld [vmem:[#allocation2] sm:$0xff] }
 0x125   : > { %1082 = vst.msk [vmem:[#allocation2 + $0x1c0] sm:$0xff] %vm921_vm1, %v890_v45  ;;  %v716_v49 = vadd.f32 %v4942_v46, %v5511_v25  ;;  %v707_v50 = vpop.f32.mrb[5].mxu0  ;;  %v913_v0 = vsel %vm842_vm9, %v788_v47, %v881_v56  ;;  %vm843_vm15 = vcmp.ge.f32.partialorder %v791_v57, 0.0  ;;  %v5552_v8 = vpop.f32.mrb[5].mxu1  ;;  %v882_v11 = vmul.f32 %v5516_v27, %v791_v57  ;;  %v1108_v42 = vld [vmem:[#allocation2 + $0x90] sm:$0xff] }
 0x126   : > { %v708_v54 = vadd.f32 %v5511_v25, %v707_v50  ;;  %v4943_v55 = vpop.f32.mrb[6].mxu0  ;;  %1054 = vst.msk [vmem:[#allocation2 + $0x11] sm:$0xff] %vm921_vm1, %v913_v0  ;;  %v5556_v12 = vpop.f32.mrb[6].mxu1  ;;  %v916_v15 = vsel %vm845_vm14, %v799_v52, %v884_v7  ;;  %v1188_v45 = vmul.f32 %v5578_v38, %v1089_v36  ;;  %v1189_v46 = vmul.f32 %v5578_v38, %v1090_v37 }
 0x127   : > { %vm824_vm10 = vcmp.ge.f32.partialorder %v716_v49, 0.0  ;;  %v863_v58 = vmul.f32 %v5516_v27, %v716_v49  ;;  %v719_v59 = vadd.f32 %v4943_v55, %v5511_v25  ;;  %v710_v60 = vpop.f32.mrb[7].mxu0  ;;  %v5560_v16 = vpop.f32.mrb[7].mxu1  ;;  %1057 = vst.msk [vmem:[#allocation2 + $0x41] sm:$0xff] %vm921_vm1, %v916_v15  ;;  %v914_v20 = vsel %vm843_vm15, %v791_v57, %v882_v11 }
 0x128   : > { %vm822_vm11 = vcmp.ge.f32.partialorder %v708_v54, 0.0  ;;  %v861_v62 = vmul.f32 %v5516_v27, %v708_v54  ;;  %v711_v63 = vadd.f32 %v5511_v25, %v710_v60  ;;  %1055 = vst.msk [vmem:[#allocation2 + $0x21] sm:$0xff] %vm921_vm1, %v914_v20  ;;  %v1146_v50 = vmul.f32 %v5584_v43, %v1089_v36 }
 0x129   : > { %v895_v1 = vsel %vm824_vm10, %v716_v49, %v863_v58  ;;  %vm825_vm12 = vcmp.ge.f32.partialorder %v719_v59, 0.0  ;;  %v864_v2 = vmul.f32 %v5516_v27, %v719_v59  ;;  %v1167_v51 = vmul.f32 %v5589_v44, %v1108_v42 }
 0x12a   : > { %1087 = vst.msk [vmem:[#allocation2 + $0x210] sm:$0xff] %vm921_vm1, %v895_v1  ;;  %v893_v3 = vsel %vm822_vm11, %v708_v54, %v861_v62  ;;  %vm823_vm13 = vcmp.ge.f32.partialorder %v711_v63, 0.0  ;;  %v862_v4 = vmul.f32 %v5516_v27, %v711_v63  ;;  %v1221_v54 = vrot.slane %v1188_v45, 1  ;;  %v1135_v1 = vld [vmem:[#allocation2 + $0x1d0] sm:$0xff] }
 0x12b   : > { %1085 = vst.msk [vmem:[#allocation2 + $0x1f0] sm:$0xff] %vm921_vm1, %v893_v3  ;;  %v896_v6 = vsel %vm825_vm12, %v719_v59, %v864_v2  ;;  %v1222_v55 = vrot.slane %v1189_v46, 1  ;;  %vm1220_vm8 = vcmask 1046528   ;;  %v1175_v60 = vadd.f32 %v1167_v51, %v1146_v50  ;;  %v5608_v61 = vld [vmem:[#allocation2 + $0x30] sm:$0xff]  ;;  %v1096_v62 = vld [vmem:[#allocation2 + $0x38] sm:$0x1] }
 0x12c   : > { %1088 = vst.msk [vmem:[#allocation2 + $0x220] sm:$0xff] %vm921_vm1, %v896_v6  ;;  %v894_v9 = vsel %vm823_vm13, %v711_v63, %v862_v4  ;;  %v4946_v10 = vpop.f32.mrb[8].mxu0  ;;  %v5615_v2 = vld [vmem:[%s9635_s4 + $0x4] ss:$0 sm:$0xff]  ;;  %v5621_v4 = vld [vmem:[%s9635_s4 + $0x8] ss:$0 sm:$0xff] }
 0x12d   : > { %1086 = vst.msk [vmem:[#allocation2 + $0x200] sm:$0xff] %vm921_vm1, %v894_v9  ;;  %v732_v13 = vadd.f32 %v4946_v10, %v5511_v25  ;;  %v723_v14 = vpop.f32.mrb[9].mxu0  ;;  %9636 = vst [vmem:[#allocation20_spill] sm:$0xff] %v5615_v2  ;;  %v1223_v3 = vsel %vm1220_vm8, %v1221_v54, %v1222_v55  ;;  %v1133_v7 = vld [vmem:[#allocation2 + $0x1b0] sm:$0xff]  ;;  %v1136_v9 = vld [vmem:[#allocation2 + $0x1e0] sm:$0xff]  ;;  %v1432_v36 = vmul.f32 %v5621_v4, %v1096_v62 }
 0x12e   : > { %v724_v18 = vadd.f32 %v5511_v25, %v723_v14  ;;  %v4947_v19 = vpop.f32.mrb[10].mxu0  ;;  %v1134_v10 = vld [vmem:[#allocation2 + $0x1c0] sm:$0xff]  ;;  %v5627_v14 = vadd.f32 %v5548_v5, %v5511_v25  ;;  %v5668_v37 = vld [vmem:[#allocation2 + $0x10] sm:$0xff] }
 0x12f   : > { %vm828_vm0 = vcmp.ge.f32.partialorder %v732_v13, 0.0  ;;  %v867_v21 = vmul.f32 %v5516_v27, %v732_v13  ;;  %v735_v22 = vadd.f32 %v4947_v19, %v5511_v25  ;;  %v726_v23 = vpop.f32.mrb[11].mxu0  ;;  %v5634_v19 = vmul.f32 %v5578_v38, %v1096_v62  ;;  %v5700_v50 = vld [vmem:[%s9635_s4 + $0x3] ss:$0 sm:$0xff] }
 0x130   : > { %vm826_vm4 = vcmp.ge.f32.partialorder %v724_v18, 0.0  ;;  %v865_v24 = vmul.f32 %v5516_v27, %v724_v18  ;;  %v727_v26 = vadd.f32 %v5511_v25, %v726_v23  ;;  %v5641_v23 = vadd.f32 %v1223_v3, %v1175_v60 }
 0x131   : > { %v899_v28 = vsel %vm828_vm0, %v732_v13, %v867_v21  ;;  %vm829_vm5 = vcmp.ge.f32.partialorder %v735_v22, 0.0  ;;  %v868_v29 = vmul.f32 %v5516_v27, %v735_v22  ;;  %v5639_v21 = vmul.f32 %v5615_v2, %v1135_v1 }
 0x132   : > { %1074 = vst.msk [vmem:[#allocation2 + $0x141] sm:$0xff] %vm921_vm1, %v899_v28  ;;  %v897_v30 = vsel %vm826_vm4, %v724_v18, %v865_v24  ;;  %vm827_vm6 = vcmp.ge.f32.partialorder %v727_v26, 0.0  ;;  %v866_v31 = vmul.f32 %v5516_v27, %v727_v26  ;;  %v1137_v15 = vld [vmem:[#allocation2 + $0x1f0] sm:$0xff]  ;;  %v5631_v18 = vmul.f32 %v5578_v38, %v5608_v61 }
 0x133   : > { %1072 = vst.msk [vmem:[#allocation2 + $0x121] sm:$0xff] %vm921_vm1, %v897_v30  ;;  %v900_v32 = vsel %vm829_vm5, %v735_v22, %v868_v29  ;;  %v1140_v22 = vld [vmem:[#allocation2 + $0x220] sm:$0xff]  ;;  %v5647_v24 = vmul.f32 %v5615_v2, %v1133_v7  ;;  %v5653_v28 = vmul.f32 %v5615_v2, %v1134_v10  ;;  %v1431_v30 = vmul.f32 %v5621_v4, %v5608_v61 }
 0x134   : > { %1075 = vst.msk [vmem:[#allocation2 + $0x151] sm:$0xff] %vm921_vm1, %v900_v32  ;;  %v898_v33 = vsel %vm827_vm6, %v727_v26, %v866_v31  ;;  %v4950_v34 = vpop.f32.mrb[12].mxu0  ;;  %v5650_v26 = vmul.f32 %v5615_v2, %v1136_v9  ;;  %v5658_v29 = vld [vmem:[%s9635_s4 + $0x5] ss:$0 sm:$0xff]  ;;  %v1092_v31 = vld [vmem:[#allocation2 + $0x18] sm:$0x1]  ;;  %v5681_v42 = vmul.f32 %v5615_v2, %v1140_v22  ;;  %v5711_v55 = vmul.f32 %v5621_v4, %v5668_v37 }
 0x135   : > { %1073 = vst.msk [vmem:[#allocation2 + $0x131] sm:$0xff] %vm921_vm1, %v898_v33  ;;  %v739_v35 = vpop.f32.mrb[13].mxu0  ;;  %v748_v40 = vadd.f32 %v4950_v34, %v5511_v25  ;;  %v5665_v33 = vmul.f32 %v5615_v2, %v1137_v15  ;;  %vm848_vm12 = vcmp.ge.f32.partialorder %v5627_v14, 0.0  ;;  %v5707_v54 = vmul.f32 %v5578_v38, %v1092_v31 }
 0x136   : > { %v4951_v39 = vpop.f32.mrb[14].mxu0  ;;  %v740_v49 = vadd.f32 %v5511_v25, %v739_v35  ;;  %9637 = vst [vmem:[#allocation21_spill] sm:$0xff] %v5681_v42  ;;  %v5718_v1 = vmul.f32 %v5621_v4, %v1092_v31 }
 0x137   : > { %v742_v41 = vpop.f32.mrb[15].mxu0  ;;  %vm832_vm7 = vcmp.ge.f32.partialorder %v748_v40, 0.0  ;;  %v871_v47 = vmul.f32 %v5516_v27, %v748_v40  ;;  %v751_v52 = vadd.f32 %v4951_v39, %v5511_v25  ;;  %v5672_v39 = vmul.f32 %v5516_v27, %v5627_v14 }
 0x138   : > { %v743_v56 = vadd.f32 %v5511_v25, %v742_v41  ;;  %vm830_vm9 = vcmp.ge.f32.partialorder %v740_v49, 0.0  ;;  %v869_v63 = vmul.f32 %v5516_v27, %v740_v49 }
 0x139   : > { %v903_v48 = vsel %vm832_vm7, %v748_v40, %v871_v47  ;;  %vm833_vm10 = vcmp.ge.f32.partialorder %v751_v52, 0.0  ;;  %v872_v0 = vmul.f32 %v5516_v27, %v751_v52  ;;  %v1121_v34 = vld [vmem:[#allocation2 + $0x140] sm:$0xff]  ;;  %v1122_v35 = vld [vmem:[#allocation2 + $0x148] sm:$0x1]  ;;  %v5676_v40 = vadd.f32 %v5511_v25, %v5552_v8 }
 0x13a   : > { %1078 = vst.msk [vmem:[#allocation2 + $0x181] sm:$0xff] %vm921_vm1, %v903_v48  ;;  %vm831_vm11 = vcmp.ge.f32.partialorder %v743_v56, 0.0  ;;  %v870_v6 = vmul.f32 %v5516_v27, %v743_v56  ;;  %v901_v11 = vsel %vm830_vm9, %v740_v49, %v869_v63  ;;  %v5688_v47 = vld [vmem:[%s9635_s4 + $0x6] ss:$0 sm:$0xff]  ;;  %v5692_v48 = vmul.f32 %v5578_v38, %v5668_v37  ;;  %v1118_v63 = vld [vmem:[#allocation2 + $0x128] sm:$0x1] }
 0x13b   : > { %v904_v13 = vsel %vm833_vm10, %v751_v52, %v872_v0  ;;  %1076 = vst.msk [vmem:[#allocation2 + $0x161] sm:$0xff] %vm921_vm1, %v901_v11  ;;  %9638 = vst [vmem:[#allocation22_spill] sm:$0xff] %v5688_v47  ;;  %v1138_v49 = vld [vmem:[#allocation2 + $0x200] sm:$0xff]  ;;  %v5704_v52 = vmul.f32 %v5688_v47, %v5608_v61  ;;  %v1312_v60 = vmul.f32 %v5658_v29, %v1121_v34  ;;  %v1465_v0 = vrot.slane %v1431_v30, 1  ;;  %v1123_v3 = vld [vmem:[#allocation2 + $0x150] sm:$0xff] }
 0x13c   : > { %v5599_v53 = vpop.f32.mrb[16].mxu0  ;;  %1079 = vst.msk [vmem:[#allocation2 + $0x191] sm:$0xff] %vm921_vm1, %v904_v13  ;;  %v902_v20 = vsel %vm831_vm11, %v743_v56, %v870_v6  ;;  %v1117_v51 = vld [vmem:[#allocation2 + $0x120] sm:$0xff]  ;;  %v1313_v62 = vmul.f32 %v5658_v29, %v1122_v35  ;;  %v1466_v6 = vrot.slane %v1432_v36, 1  ;;  %v5724_v10 = vmul.f32 %v5615_v2, %v1138_v49  ;;  %v1124_v11 = vld [vmem:[#allocation2 + $0x158] sm:$0x1] }
 0x13d   : > { %v5602_v57 = vpop.f32.mrb[17].mxu0  ;;  %1077 = vst.msk [vmem:[#allocation2 + $0x171] sm:$0xff] %vm921_vm1, %v902_v20  ;;  %v764_v56 = vadd.f32 %v5599_v53, %v5511_v25  ;;  %v1266_v53 = vmul.f32 %v5700_v50, %v1117_v51  ;;  %v5730_v15 = vmul.f32 %v5688_v47, %v5668_v37  ;;  %vm846_vm14 = vcmp.ge.f32.partialorder %v5676_v40, 0.0  ;;  %v1119_v30 = vld [vmem:[#allocation2 + $0x130] sm:$0xff]  ;;  %v1120_v46 = vld [vmem:[#allocation2 + $0x138] sm:$0x1] }
 0x13e   : > { %v5604_v58 = vpop.f32.mrb[18].mxu0  ;;  %v756_v9 = vadd.f32 %v5511_v25, %v5602_v57  ;;  %9639 = vst [vmem:[#allocation23_spill] sm:$0xff] %v5724_v10  ;;  %v1308_v20 = vmul.f32 %v5658_v29, %v1117_v51  ;;  %v1309_v22 = vmul.f32 %v5658_v29, %v1118_v63  ;;  %v1225_v57 = vrot.slane %v5707_v54, 1 }
 0x13f   : > { %v5606_v59 = vpop.f32.mrb[19].mxu0  ;;  %vm836_vm13 = vcmp.ge.f32.partialorder %v764_v56, 0.0  ;;  %v875_v7 = vmul.f32 %v5516_v27, %v764_v56  ;;  %v1346_v35 = vrot.slane %v1312_v60, 1  ;;  %v1347_v36 = vrot.slane %v1313_v62, 1 }
 0x140   : > { %v1314_v49 = vmul.f32 %v5658_v29, %v1123_v3  ;;  %v1315_v45 = vmul.f32 %v5658_v29, %v1124_v11  ;;  %v5741_v13 = vsel %vm1220_vm8, %v1465_v0, %v1466_v6  ;;  %vm834_vm15 = vcmp.ge.f32.partialorder %v756_v9, 0.0 }
 0x141   : > { %v907_v17 = vsel %vm836_vm13, %v764_v56, %v875_v7  ;;  %v5746_v63 = vmul.f32 %v5700_v50, %v1121_v34  ;;  %v1274_v60 = vadd.f32 %v1266_v53, %v5641_v23  ;;  %v1310_v62 = vmul.f32 %v5658_v29, %v1119_v30 }
 0x142   : > { %1065 = vst.msk [vmem:[#allocation2 + $0xc0] sm:$0xff] %vm921_vm1, %v907_v17  ;;  %v873_v56 = vmul.f32 %v5516_v27, %v756_v9  ;;  %v1340_v7 = vrot.slane %v1308_v20, 1  ;;  %v1341_v11 = vrot.slane %v1309_v22, 1  ;;  %v5752_v31 = vmul.f32 %v5700_v50, %v1123_v3 }
 0x143   : > { %v767_v0 = vadd.f32 %v5604_v58, %v5511_v25  ;;  %v5757_v17 = vsel %vm1220_vm8, %v1346_v35, %v1347_v36  ;;  %v1349_v6 = vrot.slane %v1314_v49, 1  ;;  %v1311_v34 = vmul.f32 %v5658_v29, %v1120_v46 }
 0x144   : > { %v5644_v5 = vpop.f32.mrb[20].mxu0  ;;  %v905_v51 = vsel %vm834_vm15, %v756_v9, %v873_v56  ;;  %v1350_v23 = vrot.slane %v1315_v45, 1  ;;  %v919_v3 = vsel %vm848_vm12, %v5627_v14, %v5672_v39  ;;  %v5767_v58 = vadd.f32 %v5647_v24, %v1274_v60  ;;  %v5781_v39 = vld [vmem:[#allocation2 + $0x40] sm:$0xff] }
 0x145   : > { %v5662_v32 = vpop.f32.mrb[21].mxu0  ;;  %1063 = vst.msk [vmem:[#allocation2 + $0xa0] sm:$0xff] %vm921_vm1, %v905_v51  ;;  %vm837_vm0 = vcmp.ge.f32.partialorder %v767_v0, 0.0  ;;  %v876_v53 = vmul.f32 %v5516_v27, %v767_v0  ;;  %v5770_v20 = vmul.f32 %v5700_v50, %v1119_v30  ;;  %v1343_v22 = vrot.slane %v1310_v62, 1  ;;  %1060 = vst.msk [vmem:[#allocation2 + $0x71] sm:$0xff] %vm921_vm1, %v919_v3  ;;  %v1129_v56 = vld [vmem:[#allocation2 + $0x180] sm:$0xff] }
 0x146   : > { %v5678_v41 = vpop.f32.mrb[22].mxu0  ;;  %v759_v45 = vadd.f32 %v5511_v25, %v5606_v59  ;;  %v885_v9 = vmul.f32 %v5516_v27, %v5676_v40  ;;  %v815_v35 = vadd.f32 %v5556_v12, %v5511_v25  ;;  %v807_v14 = vadd.f32 %v5511_v25, %v5560_v16  ;;  %v1098_v30 = vld [vmem:[#allocation2 + $0x48] sm:$0x1] }
 0x147   : > { %v5695_v8 = vpop.f32.mrb[23].mxu0  ;;  %v908_v46 = vsel %vm837_vm0, %v767_v0, %v876_v53  ;;  %v1344_v24 = vrot.slane %v1311_v34, 1  ;;  %v780_v59 = vadd.f32 %v5644_v5, %v5511_v25  ;;  %v5788_v49 = vsel %vm1220_vm8, %v1340_v7, %v1341_v11  ;;  %v1093_v0 = vld [vmem:[#allocation2 + $0x20] sm:$0xff] }
 0x148   : > { %1066 = vst.msk [vmem:[#allocation2 + $0xd0] sm:$0xff] %vm921_vm1, %v908_v46  ;;  %vm835_vm4 = vcmp.ge.f32.partialorder %v759_v45, 0.0  ;;  %v874_v36 = vmul.f32 %v5516_v27, %v759_v45  ;;  %v5791_v12 = vsel %vm1220_vm8, %v1349_v6, %v1350_v23  ;;  %v917_v16 = vsel %vm846_vm14, %v5676_v40, %v885_v9  ;;  %v1094_v6 = vld [vmem:[#allocation2 + $0x28] sm:$0x1] }
 0x149   : > { %v5793_v51 = vld [vmem:[#allocation2 + $0xc0] sm:$0xff]  ;;  %vm849_vm5 = vcmp.ge.f32.partialorder %v815_v35, 0.0  ;;  %1058 = vst.msk [vmem:[#allocation2 + $0x51] sm:$0xff] %vm921_vm1, %v917_v16  ;;  %v888_v62 = vmul.f32 %v5516_v27, %v815_v35  ;;  %vm847_vm6 = vcmp.ge.f32.partialorder %v807_v14, 0.0  ;;  %v886_v5 = vmul.f32 %v5516_v27, %v807_v14 }
 0x14a   : > { %v906_v60 = vsel %vm835_vm4, %v759_v45, %v874_v36  ;;  %v5803_v7 = vmul.f32 %v5578_v38, %v5781_v39  ;;  %v5806_v11 = vmul.f32 %v5578_v38, %v1098_v30  ;;  %vm840_vm7 = vcmp.ge.f32.partialorder %v780_v59, 0.0 }
 0x14b   : > { %1064 = vst.msk [vmem:[#allocation2 + $0xb0] sm:$0xff] %vm921_vm1, %v906_v60  ;;  %v879_v40 = vmul.f32 %v5516_v27, %v780_v59  ;;  %v5811_v34 = vsel %vm1220_vm8, %v1343_v22, %v1344_v24  ;;  %v1170_v23 = vmul.f32 %v5589_v44, %v5793_v51  ;;  %v920_v3 = vsel %vm849_vm5, %v815_v35, %v888_v62  ;;  %v1127_v62 = vld [vmem:[#allocation2 + $0x170] sm:$0xff] }
 0x14c   : > { %v5815_v53 = vld [vmem:[#allocation2 + $0xa0] sm:$0xff]  ;;  %v918_v45 = vsel %vm847_vm6, %v807_v14, %v886_v5  ;;  %v5820_v46 = vmul.f32 %v5621_v4, %v5781_v39  ;;  %v1147_v9 = vmul.f32 %v5584_v43, %v5668_v37  ;;  %1061 = vst.msk [vmem:[#allocation2 + $0x81] sm:$0xff] %vm921_vm1, %v920_v3  ;;  %v5829_v24 = vmul.f32 %v5658_v29, %v1129_v56  ;;  %v1130_v37 = vld [vmem:[#allocation2 + $0x188] sm:$0x1]  ;;  %v5899_v10 = vld [vmem:[#allocation2 + $0x70] sm:$0xff] }
 0x14d   : > { %v1168_v36 = vmul.f32 %v5589_v44, %v5815_v53  ;;  %1059 = vst.msk [vmem:[#allocation2 + $0x61] sm:$0xff] %vm921_vm1, %v918_v45  ;;  %v911_v22 = vsel %vm840_vm7, %v780_v59, %v879_v40  ;;  %v1192_v35 = vmul.f32 %v5578_v38, %v1093_v0  ;;  %v1193_v14 = vmul.f32 %v5578_v38, %v1094_v6  ;;  %v5901_v42 = vld [vmem:[#allocation2 + $0x78] sm:$0x1] }
 0x14e   : > { %9640 = vst [vmem:[#allocation24_spill] sm:$0xff] %v5829_v24  ;;  %v1149_v16 = vmul.f32 %v5584_v43, %v5608_v61  ;;  %1069 = vst.msk [vmem:[#allocation2 + $0x100] sm:$0xff] %vm921_vm1, %v911_v22  ;;  %v5837_v60 = vmul.f32 %v5700_v50, %v1129_v56  ;;  %v5842_v59 = vmul.f32 %v5688_v47, %v5781_v39  ;;  %v9642_v45 = vrot.slane %v5692_v48, 1 }
 0x14f   : > { %v1176_v5 = vadd.f32 %v1168_v36, %v1147_v9  ;;  %v5845_v40 = vmul.f32 %v5621_v4, %v1098_v30  ;;  %v5848_v3 = vmul.f32 %v5621_v4, %v1093_v0  ;;  %v1234_v22 = vrot.slane %v5806_v11, 1  ;;  %v5864_v2 = vld [vmem:[#allocation2 + $0xd0] sm:$0xff] }
 0x150   : > { %9641 = vst [vmem:[#allocation25_spill] sm:$0xff] %v5837_v60  ;;  %v1178_v61 = vadd.f32 %v1170_v23, %v1149_v16  ;;  %v1226_v56 = vsel %vm1220_vm8, %v9642_v45, %v1225_v57  ;;  %v5858_v60 = vmul.f32 %v5621_v4, %v1094_v6  ;;  %v5861_v30 = vmul.f32 %v5658_v29, %v1130_v37  ;;  %v1125_v23 = vld [vmem:[#allocation2 + $0x160] sm:$0xff]  ;;  %v1126_v57 = vld [vmem:[#allocation2 + $0x168] sm:$0x1] }
 0x151   : > { %v1254_v9 = vadd.f32 %v1226_v56, %v1176_v5  ;;  %v1227_v16 = vrot.slane %v1192_v35, 1  ;;  %v1228_v54 = vrot.slane %v1193_v14, 1  ;;  %v9644_v11 = vrot.slane %v5634_v19, 1  ;;  %v1131_v35 = vld [vmem:[#allocation2 + $0x190] sm:$0xff] }
 0x152   : > { %9643 = vst [vmem:[#allocation26_spill] sm:$0xff] %v5861_v30  ;;  %v5866_v48 = vld [vmem:[#allocation2 + $0xb0] sm:$0xff]  ;;  %v9645_v45 = vrot.slane %v5631_v18, 1  ;;  %v1148_v37 = vmul.f32 %v5584_v43, %v1093_v0  ;;  %v1386_v36 = vmul.f32 %v5688_v47, %v1093_v0  ;;  %v1270_v19 = vmul.f32 %v5700_v50, %v1125_v23  ;;  %v1132_v18 = vld [vmem:[#allocation2 + $0x198] sm:$0x1] }
 0x153   : > { %v1275_v5 = vadd.f32 %v5770_v20, %v1254_v9  ;;  %v1169_v56 = vmul.f32 %v5589_v44, %v5866_v48  ;;  %v5885_v20 = vld [vmem:[%s9635_s4 + $0x7] ss:$0 sm:$0xff]  ;;  %v1171_v9 = vmul.f32 %v5589_v44, %v5864_v2  ;;  %v1316_v14 = vmul.f32 %v5658_v29, %v1125_v23  ;;  %s6463_s4 = sld [smem:[#allocation5 + $0x15]] }
 0x154   : > { %v1232_v6 = vsel %vm1220_vm8, %v9645_v45, %v9644_v11  ;;  %v1317_v0 = vmul.f32 %v5658_v29, %v1126_v57  ;;  %v5895_v11 = vmul.f32 %v5700_v50, %v1131_v35  ;;  %v1150_v30 = vmul.f32 %v5584_v43, %v5781_v39 }
 0x155   : > { %v1256_v24 = vadd.f32 %v1232_v6, %v1178_v61  ;;  %v1177_v45 = vadd.f32 %v1169_v56, %v1148_v37  ;;  %v1372_v61 = vadd.f32 %v5788_v49, %v5767_v58  ;;  %v1229_v6 = vsel %vm1220_vm8, %v1227_v16, %v1228_v54  ;;  %v1128_v16 = vld [vmem:[#allocation2 + $0x178] sm:$0x1] }
 0x156   : > { %v1296_v23 = vadd.f32 %v5653_v28, %v1275_v5  ;;  %v1322_v57 = vmul.f32 %v5658_v29, %v1131_v35  ;;  %v1323_v56 = vmul.f32 %v5658_v29, %v1132_v18  ;;  %v1406_v49 = vmul.f32 %v5885_v20, %v5815_v53 }
 0x157   : > { %v1255_v37 = vadd.f32 %v1229_v6, %v1177_v45  ;;  %v1277_v58 = vadd.f32 %v5752_v31, %v1256_v24  ;;  %v5910_v54 = vmul.f32 %v5700_v50, %v1127_v62  ;;  %v1318_v39 = vmul.f32 %v5658_v29, %v1127_v62 }
 0x158   : > { %v1179_v47 = vadd.f32 %v1171_v9, %v1150_v30  ;;  %v1393_v28 = vadd.f32 %v5730_v15, %v1372_v61  ;;  %v1202_v5 = vmul.f32 %v5578_v38, %v5899_v10  ;;  %v1203_v31 = vmul.f32 %v5578_v38, %v5901_v42  ;;  %v5928_v61 = vld [vmem:[#allocation2 + $0x100] sm:$0xff] }
 0x159   : > { %v1276_v45 = vadd.f32 %v5746_v63, %v1255_v37  ;;  %v772_v53 = vadd.f32 %v5511_v25, %v5662_v32  ;;  %v1352_v24 = vrot.slane %v1316_v14, 1  ;;  %v1353_v35 = vrot.slane %v1317_v0, 1 }
 0x15a   : > { %v1373_v62 = vadd.f32 %v5811_v34, %v1296_v23  ;;  %v1319_v30 = vmul.f32 %v5658_v29, %v1128_v16  ;;  %v1414_v63 = vadd.f32 %v1406_v49, %v1393_v28  ;;  %v9646_v15 = vrot.slane %v5803_v7, 1 }
 0x15b   : > { %v1297_v50 = vadd.f32 %v5639_v21, %v1276_v45  ;;  %v1298_v9 = vadd.f32 %v5650_v26, %v1277_v58  ;;  %v1361_v6 = vrot.slane %v1322_v57, 1  ;;  %v1362_v37 = vrot.slane %v1323_v56, 1 }
 0x15c   : > { %v1235_v18 = vsel %vm1220_vm8, %v9646_v15, %v1234_v22  ;;  %v9647_v32 = vrot.slane %v5718_v1, 1  ;;  %v9648_v14 = vrot.slane %v5711_v55, 1  ;;  %v1242_v0 = vrot.slane %v1202_v5, 1 }
 0x15d   : > { %v1257_v34 = vadd.f32 %v1235_v18, %v1179_v47  ;;  %v1243_v29 = vrot.slane %v1203_v31, 1  ;;  %v1374_v23 = vadd.f32 %v5757_v17, %v1297_v50  ;;  %v877_v7 = vmul.f32 %v5516_v27, %v772_v53  ;;  %v1099_v47 = vld [vmem:[#allocation2 + $0x50] sm:$0xff]  ;;  %v5945_v17 = vld [vmem:[%s9649_s5] ss:$0 sm:$0xff]  ;;  %s6470_s5 = sld [smem:[#allocation5 + $0x17]] }
 0x15e   : > { %v1461_v21 = vsel %vm1220_vm8, %v9648_v14, %v9647_v32  ;;  %v1394_v22 = vadd.f32 %v1386_v36, %v1373_v62  ;;  %v1153_v26 = vmul.f32 %v5584_v43, %v5899_v10  ;;  %v1174_v57 = vmul.f32 %v5589_v44, %v5928_v61  ;;  %v1100_v62 = vld [vmem:[#allocation2 + $0x58] sm:$0x1] }
 0x15f   : > { %vm838_vm9 = vcmp.ge.f32.partialorder %v772_v53, 0.0  ;;  %v1355_v1 = vrot.slane %v1318_v39, 1  ;;  %v1356_v56 = vrot.slane %v1319_v30, 1  ;;  %v1491_v55 = vadd.f32 %v1461_v21, %v1414_v63 }
 0x160   : > { %v1375_v58 = vadd.f32 %v5791_v12, %v1298_v9  ;;  %v1278_v49 = vadd.f32 %v1270_v19, %v1257_v34  ;;  %v1407_v36 = vmul.f32 %v5885_v20, %v5866_v48  ;;  %v1182_v16 = vadd.f32 %v1174_v57, %v1153_v26  ;;  %v1106_v26 = vld [vmem:[#allocation2 + $0x88] sm:$0x1] }
 0x161   : > { %v783_v45 = vadd.f32 %v5678_v41, %v5511_v25  ;;  %v1354_v39 = vsel %vm1220_vm8, %v1352_v24, %v1353_v35  ;;  %v1395_v28 = vadd.f32 %v5704_v52, %v1374_v23  ;;  %v1244_v12 = vsel %vm1220_vm8, %v1242_v0, %v1243_v29 }
 0x162   : > { %v909_v5 = vsel %vm838_vm9, %v772_v53, %v877_v7  ;;  %v1363_v31 = vsel %vm1220_vm8, %v1361_v6, %v1362_v37  ;;  %v1415_v50 = vadd.f32 %v1407_v36, %v1394_v22  ;;  %v1198_v19 = vmul.f32 %v5578_v38, %v1099_v47  ;;  %v5967_v53 = vld [vmem:[%s9650_s6] ss:$0 sm:$0xff]  ;;  %s6472_s6 = sld [smem:[#allocation5 + $0x18]] }
 0x163   : > { %v1260_v30 = vadd.f32 %v1244_v12, %v1182_v16  ;;  %1067 = vst.msk [vmem:[#allocation2 + $0xe0] sm:$0xff] %vm921_vm1, %v909_v5  ;;  %v5958_v48 = vsel %vm1220_vm8, %v1355_v1, %v1356_v56  ;;  %v1408_v41 = vmul.f32 %v5885_v20, %v5793_v51  ;;  %v1506_v52 = vadd.f32 %v5945_v17, %v1491_v55  ;;  %v1102_v12 = vld [vmem:[#allocation2 + $0x68] sm:$0x1] }
 0x164   : > { %v1396_v24 = vadd.f32 %v5842_v59, %v1375_v58  ;;  %v9651_v35 = vrot.slane %v5845_v40, 1  ;;  %v9652_v63 = vrot.slane %v5820_v46, 1  ;;  %v9653_v18 = vrot.slane %v5858_v60, 1  ;;  %v9656_v58 = vld [vmem:[#allocation21_spill] sm:$0xff] }
 0x165   : > { %v9654_v9 = vrot.slane %v5848_v3, 1  ;;  %v1299_v6 = vadd.f32 %v5665_v33, %v1278_v49  ;;  %vm841_vm10 = vcmp.ge.f32.partialorder %v783_v45, 0.0  ;;  %v1409_v59 = vmul.f32 %v5885_v20, %v5864_v2 }
 0x166   : > { %v1470_v15 = vsel %vm1220_vm8, %v9652_v63, %v9651_v35  ;;  %v1416_v37 = vadd.f32 %v1408_v41, %v1395_v28  ;;  %v1199_v32 = vmul.f32 %v5578_v38, %v1100_v62  ;;  %v880_v40 = vmul.f32 %v5516_v27, %v783_v45  ;;  %v1101_v28 = vld [vmem:[#allocation2 + $0x60] sm:$0xff] }
 0x167   : > { %v1464_v51 = vsel %vm1220_vm8, %v9654_v9, %v9653_v18  ;;  %v1236_v14 = vrot.slane %v1198_v19, 1  ;;  %v1281_v21 = vadd.f32 %v5895_v11, %v1260_v30  ;;  %v775_v60 = vadd.f32 %v5511_v25, %v5695_v8  ;;  %v9655_v11 = vld [vmem:[#allocation22_spill] sm:$0xff]  ;;  %v1105_v8 = vld [vmem:[#allocation2 + $0x80] sm:$0xff] }
 0x168   : > { %v1492_v46 = vadd.f32 %v1464_v51, %v1415_v50  ;;  %v1529_v3 = vmul.f32 %v5967_v53, %v1506_v52  ;;  %v1417_v34 = vadd.f32 %v1409_v59, %v1396_v24  ;;  %v1435_v33 = vmul.f32 %v5621_v4, %v1099_v47 }
 0x169   : > { %v912_v0 = vsel %vm841_vm10, %v783_v45, %v880_v40  ;;  %vm1514_vm11 = vcmp.ge.f32.partialorder %v1506_v52, 0.0  ;;  %v1376_v2 = vadd.f32 %v1354_v39, %v1299_v6  ;;  %vm839_vm12 = vcmp.ge.f32.partialorder %v775_v60, 0.0 }
 0x16a   : > { %1070 = vst.msk [vmem:[#allocation2 + $0x110] sm:$0xff] %vm921_vm1, %v912_v0  ;;  %v878_v29 = vmul.f32 %v5516_v27, %v775_v60  ;;  %v1493_v23 = vadd.f32 %v5741_v13, %v1416_v37  ;;  %v1237_v7 = vrot.slane %v1199_v32, 1  ;;  %v1389_v22 = vmul.f32 %v9655_v11, %v1099_v47  ;;  %v1113_v57 = vld [vmem:[#allocation2 + $0xe0] sm:$0xff] }
 0x16b   : > { %v1436_v25 = vmul.f32 %v5621_v4, %v1100_v62  ;;  %v1507_v1 = vadd.f32 %v5945_v17, %v1492_v46  ;;  %v1151_v56 = vmul.f32 %v5584_v43, %v1099_v47  ;;  %v1172_v55 = vmul.f32 %v5589_v44, %v1113_v57 }
 0x16c   : > { %v1302_v49 = vadd.f32 %v9656_v58, %v1281_v21  ;;  %v5999_v27 = vsel %vm1514_vm11, %v1506_v52, %v1529_v3  ;;  %v1494_v13 = vadd.f32 %v1470_v15, %v1417_v34  ;;  %v1471_v36 = vrot.slane %v1435_v33, 1 }
 0x16d   : > { %v910_v16 = vsel %vm839_vm12, %v775_v60, %v878_v29  ;;  %v1441_v45 = vmul.f32 %v5621_v4, %v1105_v8  ;;  %v1442_v39 = vmul.f32 %v5621_v4, %v1106_v26  ;;  %v1180_v5 = vadd.f32 %v1172_v55, %v1151_v56  ;;  %v9657_v60 = vld [vmem:[#allocation23_spill] sm:$0xff]  ;;  %v1139_v55 = vld [vmem:[#allocation2 + $0x210] sm:$0xff] }
 0x16e   : > { %v1397_v50 = vadd.f32 %v1389_v22, %v1376_v2  ;;  %1068 = vst.msk [vmem:[#allocation2 + $0xf0] sm:$0xff] %vm921_vm1, %v910_v16  ;;  %v1508_v47 = vadd.f32 %v5945_v17, %v1493_v23  ;;  %v1472_v62 = vrot.slane %v1436_v25, 1  ;;  %v1392_v19 = vmul.f32 %v9655_v11, %v1105_v8 }
 0x16f   : > { %v1238_v30 = vsel %vm1220_vm8, %v1236_v14, %v1237_v7  ;;  %v1530_v41 = vmul.f32 %v5967_v53, %v1507_v1  ;;  %v1410_v24 = vmul.f32 %v5885_v20, %v1113_v57  ;;  %v1379_v35 = vadd.f32 %v1363_v31, %v1302_v49 }
 0x170   : > { %v1258_v52 = vadd.f32 %v1238_v30, %v1180_v5  ;;  %v1509_v63 = vadd.f32 %v5945_v17, %v1494_v13  ;;  %vm1515_vm13 = vcmp.ge.f32.partialorder %v1507_v1, 0.0  ;;  %v1200_v15 = vmul.f32 %v5578_v38, %v1101_v28 }
 0x171   : > { %v1201_v18 = vmul.f32 %v5578_v38, %v1102_v12  ;;  %v1480_v9 = vrot.slane %v1441_v45, 1  ;;  %v1481_v51 = vrot.slane %v1442_v39, 1  ;;  %v1418_v59 = vadd.f32 %v1410_v24, %v1397_v50  ;;  %v1116_v46 = vld [vmem:[#allocation2 + $0x110] sm:$0xff]  ;;  %v9659_v50 = vld [vmem:[#allocation20_spill] sm:$0xff] }
 0x172   : > { %v1279_v6 = vadd.f32 %v5910_v54, %v1258_v52  ;;  %v1531_v37 = vmul.f32 %v5967_v53, %v1508_v47  ;;  %v1390_v32 = vmul.f32 %v9655_v11, %v1101_v28  ;;  %v1437_v40 = vmul.f32 %v5621_v4, %v1101_v28  ;;  %v9658_v45 = vld [vmem:[#allocation26_spill] sm:$0xff] }
 0x173   : > { %v1438_v31 = vmul.f32 %v5621_v4, %v1102_v12  ;;  %vm1516_vm14 = vcmp.ge.f32.partialorder %v1508_v47, 0.0  ;;  %v6018_v14 = vsel %vm1515_vm13, %v1507_v1, %v1530_v41  ;;  %v1400_v21 = vadd.f32 %v1392_v19, %v1379_v35  ;;  %v9660_v19 = vld [vmem:[#allocation25_spill] sm:$0xff] }
 0x174   : > { %v1300_v38 = vadd.f32 %v9657_v60, %v1279_v6  ;;  %v1239_v3 = vrot.slane %v1200_v15, 1  ;;  %v1240_v34 = vrot.slane %v1201_v18, 1  ;;  %v1473_v54 = vsel %vm1220_vm8, %v1471_v36, %v1472_v62  ;;  %v9661_v6 = vld [vmem:[#allocation24_spill] sm:$0xff] }
 0x175   : > { %v1114_v33 = vld [vmem:[#allocation2 + $0xf0] sm:$0xff]  ;;  %v1152_v0 = vmul.f32 %v5584_v43, %v1101_v28  ;;  %v1495_v2 = vadd.f32 %v1473_v54, %v1418_v59  ;;  %v1413_v29 = vmul.f32 %v5885_v20, %v1116_v46  ;;  %v1546_v22 = vsel %vm921_vm1, %v6018_v14, 0.0 }
 0x176   : > { %v1173_v23 = vmul.f32 %v5589_v44, %v1114_v33  ;;  %v1377_v7 = vadd.f32 %v5958_v48, %v1300_v38  ;;  %v1474_v25 = vrot.slane %v1437_v40, 1  ;;  %v1475_v8 = vrot.slane %v1438_v31, 1 }
 0x177   : > { %v6029_v26 = vsel %vm1516_vm14, %v1508_v47, %v1531_v37  ;;  %v1421_v57 = vadd.f32 %v1413_v29, %v1400_v21  ;;  %v1411_v43 = vmul.f32 %v5885_v20, %v1114_v33  ;;  %v1545_v58 = vsel %vm921_vm1, %v5999_v27, 0.0 }
 0x178   : > { %v1181_v1 = vadd.f32 %v1173_v23, %v1152_v0  ;;  %v1398_v56 = vadd.f32 %v1390_v32, %v1377_v7  ;;  %vm1517_vm15 = vcmp.ge.f32.partialorder %v1509_v63, 0.0  ;;  %v1532_v44 = vmul.f32 %v5967_v53, %v1509_v63 }
 0x179   : > { %v1241_v48 = vsel %vm1220_vm8, %v1239_v3, %v1240_v34  ;;  %v1547_v49 = vadd.f32 %v1546_v22, %v1545_v58  ;;  %v1510_v13 = vadd.f32 %v5945_v17, %v1495_v2  ;;  %v1359_v39 = vrot.slane %v9658_v45, 1 }
 0x17a   : > { %v1259_v36 = vadd.f32 %v1241_v48, %v1181_v1  ;;  %v1419_v16 = vadd.f32 %v1411_v43, %v1398_v56  ;;  %v1548_v28 = vsel %vm921_vm1, %v6029_v26, 0.0  ;;  %v1482_v12 = vsel %vm1220_vm8, %v1480_v9, %v1481_v51 }
 0x17b   : > { %v1476_v5 = vsel %vm1220_vm8, %v1474_v25, %v1475_v8  ;;  %v1293_v47 = vmul.f32 %v9659_v50, %v1139_v55  ;;  %v1498_v62 = vadd.f32 %v1482_v12, %v1421_v57  ;;  %v6044_v52 = vsel %vm1517_vm15, %v1509_v63, %v1532_v44 }
 0x17c   : > { %v1280_v30 = vadd.f32 %v9660_v19, %v1259_v36  ;;  %v1496_v41 = vadd.f32 %v1476_v5, %v1419_v16  ;;  %v1439_v24 = vmul.f32 %v5621_v4, %v5899_v10  ;;  %v1440_v35 = vmul.f32 %v5621_v4, %v5901_v42 }
 0x17d   : > { %v1533_v15 = vmul.f32 %v5967_v53, %v1510_v13  ;;  %v1549_v18 = vadd.f32 %v1548_v28, %v1547_v49  ;;  %v9662_v59 = vrot.slane %v9661_v6, 1  ;;  %vm1518_vm0 = vcmp.ge.f32.partialorder %v1510_v13, 0.0 }
 0x17e   : > { %v1301_v9 = vadd.f32 %v1293_v47, %v1280_v30  ;;  %v1511_v51 = vadd.f32 %v5945_v17, %v1496_v41  ;;  %v1391_v63 = vmul.f32 %v9655_v11, %v5899_v10  ;;  %v1513_v32 = vadd.f32 %v5945_v17, %v1498_v62 }
 0x17f   : > { %v1360_v37 = vsel %vm1220_vm8, %v9662_v59, %v1359_v39  ;;  %v1550_v4 = vsel %vm921_vm1, %v6044_v52, 0.0  ;;  %v1477_v42 = vrot.slane %v1439_v24, 1  ;;  %v1478_v46 = vrot.slane %v1440_v35, 1  ;;  %v1676_v59 = vld [vmem:[%s9664_s9] sm:$0x3]  ;;  %s6478_s9 = sld [smem:[#allocation5 + $0x1b]] }
 0x180   : > { %v1378_v40 = vadd.f32 %v1360_v37, %v1301_v9  ;;  %v1534_v31 = vmul.f32 %v5967_v53, %v1511_v51  ;;  %vm1519_vm4 = vcmp.ge.f32.partialorder %v1511_v51, 0.0  ;;  %v1412_v21 = vmul.f32 %v5885_v20, %v5928_v61  ;;  %v4778_v37 = vld [vmem:[%s9665_s8] ss:$0 sm:$0xff]  ;;  %s6476_s8 = sld [smem:[#allocation5 + $0x1a]] }
 0x181   : > { %v6063_v60 = vsel %vm1518_vm0, %v1510_v13, %v1533_v15  ;;  %v1551_v38 = vadd.f32 %v1550_v4, %v1549_v18  ;;  %v1536_v10 = vmul.f32 %v5967_v53, %v1513_v32  ;;  %v1479_v54 = vsel %vm1220_vm8, %v1477_v42, %v1478_v46  ;;  %v4780_v4 = vld [vmem:[%s9666_s10] ss:$0 sm:$0xff]  ;;  %s6480_s10 = sld [smem:[#allocation5 + $0x4d]] }
 0x182   : > { %v1399_v3 = vadd.f32 %v1391_v63, %v1378_v40  ;;  %v6066_v34 = vsel %vm1519_vm4, %v1511_v51, %v1534_v31  ;;  %v1552_v33 = vsel %vm921_vm1, %v6063_v60, 0.0  ;;  %vm1521_vm5 = vcmp.ge.f32.partialorder %v1513_v32, 0.0 }
 0x183   : > { %v1553_v0 = vadd.f32 %v1552_v33, %v1551_v38  ;;  %v1554_v20 = vsel %vm921_vm1, %v6066_v34, 0.0  ;;  %v6073_v61 = vsel %vm1521_vm5, %v1513_v32, %v1536_v10  ;;  %v1574_v23 = vsel %vm921_vm1, %v6066_v34, -inf }
 0x184   : > { %v1420_v11 = vadd.f32 %v1412_v21, %v1399_v3  ;;  %v1569_v25 = vsel %vm921_vm1, %v6018_v14, -inf  ;;  %v1572_v8 = vsel %vm921_vm1, %v6063_v60, -inf  ;;  %v1578_v57 = vsel %vm921_vm1, %v6073_v61, -inf }
 0x185   : > { %v1555_v22 = vadd.f32 %v1554_v20, %v1553_v0  ;;  %v1568_v1 = vsel %vm921_vm1, %v5999_v27, -inf  ;;  %v1575_v56 = vmax.f32 %v1569_v25, %v1574_v23  ;;  %v1571_v43 = vsel %vm921_vm1, %v6044_v52, -inf }
 0x186   : > { %v1497_v2 = vadd.f32 %v1479_v54, %v1420_v11  ;;  %v1570_v55 = vsel %vm921_vm1, %v6029_v26, -inf  ;;  %v1573_v48 = vmax.f32 %v1568_v1, %v1572_v8  ;;  %v1579_v13 = vmax.f32 %v1571_v43, %v1578_v57 }
 0x187   : > { %v1558_v36 = vsel %vm921_vm1, %v6073_v61, 0.0  ;;  %v9663_v6 = vmov 0.0   ;;  %vm1688_vm8 = vcmask 1041408   ;;  %vm995_vm7 = vcmask 7168  }
 0x188   : > { %v1512_v29 = vadd.f32 %v5945_v17, %v1497_v2  ;;  %v1580_v45 = vmax.f32 %v1573_v48, %v1575_v56  ;;  %vm997_vm9 = vcmask 5120   ;;  %1033 = vst.msk [vmem:[#allocation3 + $0x120] sm:$0xff] %vm995_vm7, %v9663_v6  ;;  %996 = vst.msk [vmem:[#allocation3] sm:$0xff] %vm995_vm7, %v9663_v6  ;;  %v1772_v33 = vlaneseq }
 0x189   : > { %1034 = vst.msk [vmem:[#allocation3 + $0x128] sm:$0x3f] %vm997_vm9, %v9663_v6  ;;  %998 = vst.msk [vmem:[#allocation3 + $0x8] sm:$0x3f] %vm997_vm9, %v9663_v6  ;;  %v6225_v20 = vstv %s1875_s21  ;;  %v6231_v8 = vstv %s4785_s27  ;;  %v6234_v43 = vstv %s4786_s25  ;;  %s4791_s21 = sld [smem:[#allocation5 + $0x4]]  ;;  %s4793_s27 = sld [smem:[#allocation5 + $0x5]] }
 0x18a   : > { %vm1520_vm6 = vcmp.ge.f32.partialorder %v1512_v29, 0.0  ;;  %v1535_v7 = vmul.f32 %v5967_v53, %v1512_v29  ;;  %999 = vst.msk [vmem:[#allocation3 + $0x10] sm:$0xff] %vm995_vm7, %v9663_v6  ;;  %1001 = vst.msk [vmem:[#allocation3 + $0x20] sm:$0xff] %vm995_vm7, %v9663_v6  ;;  %v1773_v23 = vshrl.u32 %v1772_v33, 7  ;;  %s4794_s25 = sld [smem:[#allocation5 + $0x36]] }
 0x18b   : > { %1000 = vst.msk [vmem:[#allocation3 + $0x18] sm:$0x3f] %vm997_vm9, %v9663_v6  ;;  %1002 = vst.msk [vmem:[#allocation3 + $0x28] sm:$0x3f] %vm997_vm9, %v9663_v6 }
 0x18c   : > { %v6087_v17 = vsel %vm1520_vm6, %v1512_v29, %v1535_v7  ;;  %1003 = vst.msk [vmem:[#allocation3 + $0x30] sm:$0xff] %vm995_vm7, %v9663_v6  ;;  %1005 = vst.msk [vmem:[#allocation3 + $0x40] sm:$0xff] %vm995_vm7, %v9663_v6  ;;  %v6227_v29 = vstv %s4784_s26  ;;  %v1774_v57 = vsub.s32 0, %v1773_v23  ;;  %s4792_s26 = sld [smem:[#allocation5 + $0x35]] }
 0x18d   : > { %v1556_v53 = vsel %vm921_vm1, %v6087_v17, 0.0  ;;  %v1576_v58 = vsel %vm921_vm1, %v6087_v17, -inf  ;;  %1004 = vst.msk [vmem:[#allocation3 + $0x38] sm:$0x3f] %vm997_vm9, %v9663_v6  ;;  %1006 = vst.msk [vmem:[#allocation3 + $0x48] sm:$0x3f] %vm997_vm9, %v9663_v6 }
 0x18e   : > { %v1557_v44 = vadd.f32 %v1556_v53, %v1555_v22  ;;  %v1577_v49 = vmax.f32 %v1570_v55, %v1576_v58  ;;  %1007 = vst.msk [vmem:[#allocation3 + $0x50] sm:$0xff] %vm995_vm7, %v9663_v6  ;;  %1009 = vst.msk [vmem:[#allocation3 + $0x60] sm:$0xff] %vm995_vm7, %v9663_v6 }
 0x18f   : > { %1008 = vst.msk [vmem:[#allocation3 + $0x58] sm:$0x3f] %vm997_vm9, %v9663_v6  ;;  %1010 = vst.msk [vmem:[#allocation3 + $0x68] sm:$0x3f] %vm997_vm9, %v9663_v6  ;;  %v1858_v0 = vld [vmem:[#allocation3] sm:$0xff] }
 0x190   : > { %v1559_v16 = vadd.f32 %v1558_v36, %v1557_v44  ;;  %v1581_v39 = vmax.f32 %v1577_v49, %v1579_v13  ;;  %1011 = vst.msk [vmem:[#allocation3 + $0x70] sm:$0xff] %vm995_vm7, %v9663_v6  ;;  %1013 = vst.msk [vmem:[#allocation3 + $0x80] sm:$0xff] %vm995_vm7, %v9663_v6  ;;  %v1877_v7 = vmul.f32 %v6225_v20, %v1858_v0  ;;  %v1911_v25 = vld [vmem:[#allocation3 + $0x1] sm:$0xff]  ;;  %v6309_v0 = vstv %s4793_s27  ;;  %s4801_s27 = sld [smem:[#allocation5 + $0x9]] }
 0x191   : > { %1012 = vst.msk [vmem:[#allocation3 + $0x78] sm:$0x3f] %vm997_vm9, %v9663_v6  ;;  %1014 = vst.msk [vmem:[#allocation3 + $0x88] sm:$0x3f] %vm997_vm9, %v9663_v6  ;;  %v1929_v56 = vmul.f32 %v6231_v8, %v1911_v25  ;;  %v1963_v36 = vld [vmem:[#allocation3 + $0x2] sm:$0xff]  ;;  %v6320_v25 = vstv %s4794_s25  ;;  %s4802_s25 = sld [smem:[#allocation5 + $0x3a]] }
 0x192   : > { %v1560_v28 = vrot.slane %v1559_v16, 4  ;;  %v1582_v12 = vmax.f32 %v1580_v45, %v1581_v39  ;;  %1015 = vst.msk [vmem:[#allocation3 + $0x90] sm:$0xff] %vm995_vm7, %v9663_v6  ;;  %1017 = vst.msk [vmem:[#allocation3 + $0xa0] sm:$0xff] %vm995_vm7, %v9663_v6  ;;  %v2119_v33 = vld [vmem:[#allocation3 + $0x5] sm:$0xff] }
 0x193   : > { %1016 = vst.msk [vmem:[#allocation3 + $0x98] sm:$0x3f] %vm997_vm9, %v9663_v6  ;;  %1018 = vst.msk [vmem:[#allocation3 + $0xa8] sm:$0x3f] %vm997_vm9, %v9663_v6 }
 0x194   : > { %v1561_v5 = vadd.f32 %v1560_v28, %v1559_v16  ;;  %v1583_v50 = vrot.slane %v1582_v12, 4  ;;  %1019 = vst.msk [vmem:[#allocation3 + $0xb0] sm:$0xff] %vm995_vm7, %v9663_v6  ;;  %1021 = vst.msk [vmem:[#allocation3 + $0xc0] sm:$0xff] %vm995_vm7, %v9663_v6  ;;  %v6247_v16 = vstv %s4787_s0  ;;  %s4795_s0 = sld [smem:[#allocation5 + $0x6]] }
 0x195   : > { %1020 = vst.msk [vmem:[#allocation3 + $0xb8] sm:$0x3f] %vm997_vm9, %v9663_v6  ;;  %1022 = vst.msk [vmem:[#allocation3 + $0xc8] sm:$0x3f] %vm997_vm9, %v9663_v6 }
 0x196   : > { %v1562_v47 = vrot.slane %v1561_v5, 2  ;;  %v1584_v62 = vmax.f32 %v1582_v12, %v1583_v50  ;;  %1023 = vst.msk [vmem:[#allocation3 + $0xd0] sm:$0xff] %vm995_vm7, %v9663_v6  ;;  %1025 = vst.msk [vmem:[#allocation3 + $0xe0] sm:$0xff] %vm995_vm7, %v9663_v6  ;;  %v6258_v12 = vstv %s4788_s28  ;;  %s4796_s28 = sld [smem:[#allocation5 + $0x37]] }
 0x197   : > { %1024 = vst.msk [vmem:[#allocation3 + $0xd8] sm:$0x3f] %vm997_vm9, %v9663_v6  ;;  %1026 = vst.msk [vmem:[#allocation3 + $0xe8] sm:$0x3f] %vm997_vm9, %v9663_v6 }
 0x198   : > { %v1563_v19 = vadd.f32 %v1562_v47, %v1561_v5  ;;  %v1585_v30 = vrot.slane %v1584_v62, 2  ;;  %1027 = vst.msk [vmem:[#allocation3 + $0xf0] sm:$0xff] %vm995_vm7, %v9663_v6  ;;  %1029 = vst.msk [vmem:[#allocation3 + $0x100] sm:$0xff] %vm995_vm7, %v9663_v6 }
 0x199   : > { %1028 = vst.msk [vmem:[#allocation3 + $0xf8] sm:$0x3f] %vm997_vm9, %v9663_v6  ;;  %1030 = vst.msk [vmem:[#allocation3 + $0x108] sm:$0x3f] %vm997_vm9, %v9663_v6 }
 0x19a   : > { %v1564_v41 = vrot.slane %v1563_v19, 1  ;;  %v1586_v24 = vmax.f32 %v1584_v62, %v1585_v30  ;;  %1031 = vst.msk [vmem:[#allocation3 + $0x110] sm:$0xff] %vm995_vm7, %v9663_v6  ;;  %1035 = vst.msk [vmem:[#allocation3 + $0x130] sm:$0xff] %vm995_vm7, %v9663_v6 }
 0x19b   : > { %1032 = vst.msk [vmem:[#allocation3 + $0x118] sm:$0x3f] %vm997_vm9, %v9663_v6  ;;  %1036 = vst.msk [vmem:[#allocation3 + $0x138] sm:$0x3f] %vm997_vm9, %v9663_v6 }
 0x19c   : > { %v1565_v35 = vadd.f32 %v1564_v41, %v1563_v19  ;;  %v1587_v15 = vrot.slane %v1586_v24, 1  ;;  %1037 = vst.msk [vmem:[#allocation3 + $0x140] sm:$0xff] %vm995_vm7, %v9663_v6  ;;  %1039 = vst.msk [vmem:[#allocation3 + $0x150] sm:$0xff] %vm995_vm7, %v9663_v6  ;;  %v2015_v41 = vld [vmem:[#allocation3 + $0x3] sm:$0xff] }
 0x19d   : > { %1038 = vst.msk [vmem:[#allocation3 + $0x148] sm:$0x3f] %vm997_vm9, %v9663_v6  ;;  %1040 = vst.msk [vmem:[#allocation3 + $0x158] sm:$0x3f] %vm997_vm9, %v9663_v6  ;;  %v1867_v2 = vld [vmem:[#allocation3 + $0xe0] sm:$0xff] }
 0x19e   : > { %v1566_v18 = vmul.f32 0.015625, %v1565_v35  ;;  %v1588_v9 = vmax.f32 %v1586_v24, %v1587_v15  ;;  %1041 = vst.msk [vmem:[#allocation3 + $0x160] sm:$0xff] %vm995_vm7, %v9663_v6  ;;  %1043 = vst.msk [vmem:[#allocation3 + $0x170] sm:$0xff] %vm995_vm7, %v9663_v6  ;;  %v1895_v22 = vmul.f32 %v6227_v29, %v1867_v2  ;;  %v1919_v53 = vld [vmem:[#allocation3 + $0xe1] sm:$0xff]  ;;  %v6273_v24 = vstv %s4789_s18  ;;  %s4797_s18 = sld [smem:[#allocation5 + $0x7]] }
 0x19f   : > { %1042 = vst.msk [vmem:[#allocation3 + $0x168] sm:$0x3f] %vm997_vm9, %v9663_v6  ;;  %1044 = vst.msk [vmem:[#allocation3 + $0x178] sm:$0x3f] %vm997_vm9, %v9663_v6  ;;  %v1947_v48 = vmul.f32 %v6234_v43, %v1919_v53  ;;  %v1971_v5 = vld [vmem:[#allocation3 + $0xe2] sm:$0xff] }
 0x1a0   : > { %1567 = vst.msk [vmem:[#allocation4] sm:$0x1] %vm923_vm2, %v1566_v18  ;;  %1589 = vst.msk [vmem:[#allocation4 + $0x1] sm:$0x1] %vm923_vm2, %v1588_v9  ;;  %vm1684_vm2 = vcmask 15360   ;;  %v1903_v1 = vadd.f32 %v1895_v22, %v1877_v7  ;;  %v1999_v30 = vmul.f32 %v6258_v12, %v1971_v5  ;;  %v6280_v18 = vstv %s4790_s20  ;;  %v2023_v9 = vld [vmem:[#allocation3 + $0xe3] sm:$0xff] }
 0x1a1   : > { %1045 = vst.msk [vmem:[#allocation3 + $0x180] sm:$0xff] %vm995_vm7, %v9663_v6  ;;  %1047 = vst.msk [vmem:[#allocation3 + $0x190] sm:$0xff] %vm995_vm7, %v9663_v6  ;;  %v2137_v22 = vmul.f32 %v6309_v0, %v2119_v33  ;;  %s4798_s20 = sld [smem:[#allocation5 + $0x38]]  ;;  %v1972_v33 = vld [vmem:[#allocation3 + $0xf2] sm:$0xff] }
 0x1a2   : > { %1046 = vst.msk [vmem:[#allocation3 + $0x188] sm:$0x3f] %vm997_vm9, %v9663_v6  ;;  %1048 = vst.msk [vmem:[#allocation3 + $0x198] sm:$0x3f] %vm997_vm9, %v9663_v6  ;;  %v1937_v44 = vadd.f32 %v1929_v56, %v1903_v1 }
 0x1a3   : > { %1049 = vst.msk [vmem:[#allocation3 + $0x1a0] sm:$0xff] %vm995_vm7, %v9663_v6  ;;  %1051 = vst.msk [vmem:[#allocation3 + $0x1b0] sm:$0xff] %vm995_vm7, %v9663_v6 }
 0x1a4   : > { %1050 = vst.msk [vmem:[#allocation3 + $0x1a8] sm:$0x3f] %vm997_vm9, %v9663_v6  ;;  %1052 = vst.msk [vmem:[#allocation3 + $0x1b8] sm:$0x3f] %vm997_vm9, %v9663_v6  ;;  %v6333_v5 = vstv %s4797_s18  ;;  %s4805_s18 = sld [smem:[#allocation5 + $0xb]] }
 0x1a5   : > { %9667 = vst [vmem:[#allocation22_spill] sm:$0xff] %v6225_v20  ;;  %9668 = vst [vmem:[#allocation21_spill] sm:$0xff] %v6227_v29 }
 0x1a6   : > { %9669 = vst [vmem:[#allocation23_spill] sm:$0xff] %v6231_v8  ;;  %9670 = vst [vmem:[#allocation26_spill] sm:$0xff] %v6234_v43 }
 0x1a7   : > { %v1590_v51 = vld [vmem:[#allocation4] sm:$0x3]  ;;  %9673 = vst [vmem:[#allocation24_spill] sm:$0xff] %v6247_v16  ;;  %9675 = vst [vmem:[#allocation28_spill] sm:$0xff] %v6258_v12 }
 0x1a8   : > { %4977 = vmatmul.mubr.msk.f32.vlgmr.msra.gmra.mrb[8].mxu1 %vm921_vm1, %v1590_v51  ;;  %9678 = vst [vmem:[#allocation31_spill] sm:$0xff] %v6273_v24  ;;  %9679 = vst [vmem:[#allocation32_spill] sm:$0xff] %v6280_v18 }
 0x1a9   : > { %4981 = vmatprep.mubr.msk.f32.mxu1 %vm5204_vm3, %v9663_v6  ;;  %4980 = vmatpush3.msk.msra.mxu1 %vm1688_vm8, %v1676_v59  ;;  %9684 = vst [vmem:[#allocation37_spill] sm:$0xff] %v6309_v0  ;;  %9686 = vst [vmem:[#allocation39_spill] sm:$0xff] %v6320_v25 }
 0x1aa   : > { %9689 = vst [vmem:[#allocation42_spill] sm:$0xff] %v6333_v5 }
 0x27b   : > { %v1671_v63 = vpop.f32.mrb[8].mxu1 }
 0x27c   : > { %v1672_v32 = vadd.f32 %v4778_v37, %v1671_v63  ;;  %v4978_v40 = vpop.f32.mrb[9].mxu1  ;;  %v2051_v37 = vmul.f32 %v6280_v18, %v2023_v9  ;;  %v2067_v63 = vld [vmem:[#allocation3 + $0x4] sm:$0xff] }
 0x27e   : > { %v1675_v31 = vmax.f32 %v1672_v32, 0.0  ;;  %v6287_v32 = vstv %s4791_s21  ;;  %s4799_s21 = sld [smem:[#allocation5 + $0x8]] }
 0x27f   : > { %9680 = vst [vmem:[#allocation33_spill] sm:$0xff] %v6287_v32 }
 0x280   : > { %4982 = vmatmul.mubr.msk.f32.vlgmr.msra.gmra.mrb[10].mxu1 %vm1684_vm2, %v1675_v31 }
 0x353   : > { %v1758_v42 = vpop.f32.mrb[10].mxu1 }
 0x354   : > { %v1759_v46 = vadd.f32 %v4780_v4, %v1758_v42  ;;  %v4983_v21 = vpop.f32.mrb[11].mxu1 }
 0x355   : > { %v6298_v21 = vstv %s4792_s26  ;;  %s4800_s26 = sld [smem:[#allocation5 + $0x39]] }
 0x356   : > { %v1763_v38 = vrot.slane %v1759_v46, 1  ;;  %9682 = vst [vmem:[#allocation35_spill] sm:$0xff] %v6298_v21 }
 0x358   : > { %v1765_v3 = vadd.f32 %v1763_v38, %v1759_v46  ;;  %v2085_v46 = vmul.f32 %v6287_v32, %v2067_v63  ;;  %v2075_v38 = vld [vmem:[#allocation3 + $0xe4] sm:$0xff] }
 0x35a   : > { %v4783_v10 = vmul.f32 -1.442695, %v1765_v3 }
 0x35c   : > { %5081 = vpow2.f32 %v4783_v10 }
 0x366   : > { %v5082_v11 = vpop.eup %5081 }
 0x367   : > { %v1769_v54 = vadd.f32 1.0, %v5082_v11 }
 0x369   : > { %5083 = vrcp.f32 %v1769_v54  ;;  %v2103_v54 = vmul.f32 %v6298_v21, %v2075_v38 }
 0x373   : > { %v5084_v55 = vpop.eup %5083 }
 0x374   : > { %v6236_v58 = vrot.slane %v5084_v55, %v1774_v57  ;;  %v2127_v57 = vld [vmem:[#allocation3 + $0xe5] sm:$0xff] }
 0x375   : > { %v2171_v55 = vld [vmem:[#allocation3 + $0x6] sm:$0xff] }
 0x376   : > { %v6241_v49 = vmul.f32 %v6236_v58, %v6018_v14  ;;  %v6245_v13 = vmul.f32 %v6236_v58, %v5999_v27  ;;  %v6255_v28 = vmul.f32 %v6236_v58, %v6029_v26  ;;  %v1955_v14 = vadd.f32 %v1947_v48, %v1937_v44 }
 0x377   : > { %v1981_v27 = vmul.f32 %v6247_v16, %v1963_v36  ;;  %v6266_v62 = vmul.f32 %v6236_v58, %v6063_v60  ;;  %v6270_v26 = vmul.f32 %v6236_v58, %v6044_v52  ;;  %v2033_v52 = vmul.f32 %v6273_v24, %v2015_v41 }
 0x378   : > { %9671 = vst [vmem:[#allocation20_spill] sm:$0xff] %v6241_v49  ;;  %9672 = vst [vmem:[#allocation25_spill] sm:$0xff] %v6245_v13  ;;  %v1811_v45 = vsel %vm921_vm1, %v6241_v49, 0.0  ;;  %v1808_v39 = vsel %vm921_vm1, %v6245_v13, 0.0  ;;  %v1814_v50 = vsel %vm921_vm1, %v6255_v28, 0.0  ;;  %v1784_v47 = vsel %vm921_vm1, %v6245_v13, -inf }
 0x379   : > { %9674 = vst [vmem:[#allocation27_spill] sm:$0xff] %v6255_v28  ;;  %1812 = vadd.xlane.f32.xlu1 %v1811_v45  ;;  %1809 = vadd.xlane.f32.xlu0 %v1808_v39  ;;  %9676 = vst [vmem:[#allocation29_spill] sm:$0xff] %v6266_v62  ;;  %v1989_v19 = vadd.f32 %v1981_v27, %v1955_v14  ;;  %v1820_v35 = vsel %vm921_vm1, %v6266_v62, 0.0  ;;  %v1817_v60 = vsel %vm921_vm1, %v6270_v26, 0.0  ;;  %v1790_v51 = vsel %vm921_vm1, %v6255_v28, -inf  ;;  %v2179_v45 = vld [vmem:[#allocation3 + $0xe6] sm:$0xff] }
 0x37a   : > { %9677 = vst [vmem:[#allocation30_spill] sm:$0xff] %v6270_v26  ;;  %v1787_v6 = vsel %vm921_vm1, %v6241_v49, -inf  ;;  %v1796_v40 = vsel %vm921_vm1, %v6266_v62, -inf  ;;  %v1793_v31 = vsel %vm921_vm1, %v6270_v26, -inf  ;;  %v6295_v4 = vmul.f32 %v6236_v58, %v6066_v34  ;;  %v1859_v27 = vld [vmem:[#allocation3 + $0x10] sm:$0xff] }
 0x37b   : > { %v2007_v15 = vadd.f32 %v1999_v30, %v1989_v19  ;;  %v6306_v11 = vmul.f32 %v6236_v58, %v6087_v17  ;;  %v6317_v7 = vmul.f32 %v6236_v58, %v6073_v61  ;;  %v2155_v61 = vmul.f32 %v6320_v25, %v2127_v57 }
 0x37c   : > { %9681 = vst [vmem:[#allocation34_spill] sm:$0xff] %v6295_v4  ;;  %v1823_v3 = vsel %vm921_vm1, %v6295_v4, 0.0  ;;  %v1799_v10 = vsel %vm921_vm1, %v6295_v4, -inf  ;;  %v6327_v58 = vstv %s4795_s0  ;;  %v6330_v36 = vstv %s4796_s28  ;;  %s4803_s0 = sld [smem:[#allocation5 + $0xa]]  ;;  %s4804_s28 = sld [smem:[#allocation5 + $0x3b]] }
 0x37d   : > { %1815 = vadd.xlane.f32.xlu1 %v1814_v50  ;;  %1785 = vmax.xlane.f32.xlu0 %v1784_v47  ;;  %v2041_v59 = vadd.f32 %v2033_v52, %v2007_v15  ;;  %9683 = vst [vmem:[#allocation36_spill] sm:$0xff] %v6306_v11  ;;  %v1826_v2 = vsel %vm921_vm1, %v6306_v11, 0.0  ;;  %v1802_v23 = vsel %vm921_vm1, %v6306_v11, -inf  ;;  %9685 = vst [vmem:[#allocation38_spill] sm:$0xff] %v6317_v7  ;;  %v1829_v1 = vsel %vm921_vm1, %v6317_v7, 0.0  ;;  %v1868_v50 = vld [vmem:[#allocation3 + $0xf0] sm:$0xff] }
 0x37e   : > { %v1805_v56 = vsel %vm921_vm1, %v6317_v7, -inf  ;;  %9687 = vst [vmem:[#allocation40_spill] sm:$0xff] %v6327_v58  ;;  %v2189_v48 = vmul.f32 %v6327_v58, %v2171_v55  ;;  %9688 = vst [vmem:[#allocation41_spill] sm:$0xff] %v6330_v36  ;;  %v2207_v14 = vmul.f32 %v6330_v36, %v2179_v45  ;;  %v2243_v19 = vmul.f32 %v6333_v5, %v1859_v27 }
 0x37f   : > { %v2059_v42 = vadd.f32 %v2051_v37, %v2041_v59  ;;  %v6336_v30 = vstv %s4798_s20  ;;  %v1878_v41 = vmul.f32 %v6225_v20, %v1859_v27  ;;  %v1920_v59 = vld [vmem:[#allocation3 + $0xf1] sm:$0xff]  ;;  %v2000_v57 = vmul.f32 %v6258_v12, %v1972_v33  ;;  %s4806_s20 = sld [smem:[#allocation5 + $0x3c]] }
 0x380   : > { %9690 = vst [vmem:[#allocation43_spill] sm:$0xff] %v6336_v30  ;;  %v2261_v52 = vmul.f32 %v6336_v30, %v1868_v50  ;;  %v6554_v4 = vstv %s6459_s3  ;;  %v6577_v28 = vstv %s6474_s7  ;;  %v6580_v49 = vstv %s6476_s8  ;;  %s8398_s3 = sld [smem:[#allocation5 + $0x1f]]  ;;  %s8558_s7 = sld [smem:[#allocation5 + $0x23]] }
 0x381   : > { %1821 = vadd.xlane.f32.xlu1 %v1820_v35  ;;  %1818 = vadd.xlane.f32.xlu0 %v1817_v60  ;;  %v2093_v34 = vadd.f32 %v2085_v46, %v2059_v42  ;;  %v1896_v35 = vmul.f32 %v6227_v29, %v1868_v50  ;;  %v1912_v60 = vld [vmem:[#allocation3 + $0x11] sm:$0xff]  ;;  %v1948_v42 = vmul.f32 %v6234_v43, %v1920_v59  ;;  %v6583_v13 = vstv %s6478_s9  ;;  %s8600_s8 = sld [smem:[#allocation5 + $0x24]]  ;;  %s8631_s9 = sld [smem:[#allocation5 + $0x25]] }
 0x382   : > { %v1964_v46 = vld [vmem:[#allocation3 + $0x12] sm:$0xff]  ;;  %9723 = vst [vmem:[#allocation76_spill] sm:$0xff] %v6554_v4  ;;  %9728 = vst [vmem:[#allocation81_spill] sm:$0xff] %v6577_v28  ;;  %v6608_v28 = vstv %s6498_s24  ;;  %s9004_s24 = sld [smem:[#allocation5 + $0x61]] }
 0x383   : > { %v2111_v17 = vadd.f32 %v2103_v54, %v2093_v34  ;;  %v1904_v9 = vadd.f32 %v1896_v35, %v1878_v41  ;;  %v1982_v34 = vmul.f32 %v6247_v16, %v1964_v46  ;;  %v6350_v54 = vstv %s4801_s27  ;;  %s4809_s27 = sld [smem:[#allocation5 + $0xd]]  ;;  %9729 = vst [vmem:[#allocation82_spill] sm:$0xff] %v6580_v49  ;;  %9730 = vst [vmem:[#allocation83_spill] sm:$0xff] %v6583_v13 }
 0x384   : > { %9693 = vst [vmem:[#allocation46_spill] sm:$0xff] %v6350_v54  ;;  %v6602_v49 = vstv %s6494_s15  ;;  %9737 = vst [vmem:[#allocation90_spill] sm:$0xff] %v6608_v28  ;;  %s8857_s15 = sld [smem:[#allocation5 + $0x2d]] }
 0x385   : > { %1791 = vmax.xlane.f32.xlu1 %v1790_v51  ;;  %1788 = vmax.xlane.f32.xlu0 %v1787_v6  ;;  %v2145_v53 = vadd.f32 %v2137_v22, %v2111_v17  ;;  %v1930_v51 = vmul.f32 %v6231_v8, %v1912_v60  ;;  %v6342_v6 = vstv %s4799_s21  ;;  %v6353_v17 = vstv %s4802_s25  ;;  %s4807_s21 = sld [smem:[#allocation5 + $0xc]]  ;;  %s4810_s25 = sld [smem:[#allocation5 + $0x3e]]  ;;  %9735 = vst [vmem:[#allocation88_spill] sm:$0xff] %v6602_v49 }
 0x386   : > { %9691 = vst [vmem:[#allocation44_spill] sm:$0xff] %v6342_v6  ;;  %v2295_v63 = vmul.f32 %v6342_v6, %v1912_v60  ;;  %9694 = vst [vmem:[#allocation47_spill] sm:$0xff] %v6353_v17  ;;  %v6622_v49 = vstv %s6512_s14  ;;  %s8789_s14 = sld [smem:[#allocation5 + $0x2a]] }
 0x387   : > { %v2163_v44 = vadd.f32 %v2155_v61, %v2145_v53  ;;  %v2365_v53 = vmul.f32 %v6353_v17, %v1972_v33  ;;  %9741 = vst [vmem:[#allocation94_spill] sm:$0xff] %v6622_v49 }
 0x389   : > { %1797 = vmax.xlane.f32.xlu1 %v1796_v40  ;;  %1794 = vmax.xlane.f32.xlu0 %v1793_v31  ;;  %v2197_v39 = vadd.f32 %v2189_v48, %v2163_v44  ;;  %v6345_v40 = vstv %s4800_s26  ;;  %v1938_v31 = vadd.f32 %v1930_v51, %v1904_v9  ;;  %v6358_v44 = vstv %s4803_s0  ;;  %v2024_v48 = vld [vmem:[#allocation3 + $0xf3] sm:$0xff]  ;;  %s4808_s26 = sld [smem:[#allocation5 + $0x3d]]  ;;  %s4811_s0 = sld [smem:[#allocation5 + $0xe]] }
 0x38a   : > { %9692 = vst [vmem:[#allocation45_spill] sm:$0xff] %v6345_v40  ;;  %9695 = vst [vmem:[#allocation48_spill] sm:$0xff] %v6358_v44  ;;  %v2052_v50 = vmul.f32 %v6280_v18, %v2024_v48 }
 0x38b   : > { %v2215_v47 = vadd.f32 %v2207_v14, %v2197_v39  ;;  %v6361_v14 = vstv %s4804_s28  ;;  %s4812_s28 = sld [smem:[#allocation5 + $0x3f]] }
 0x38c   : > { %9696 = vst [vmem:[#allocation49_spill] sm:$0xff] %v6361_v14  ;;  %v2417_v41 = vmul.f32 %v6361_v14, %v2024_v48  ;;  %v6382_v48 = vstv %s4809_s27  ;;  %s4817_s27 = sld [smem:[#allocation5 + $0x11]] }
 0x38d   : > { %1824 = vadd.xlane.f32.xlu1 %v1823_v3  ;;  %1800 = vmax.xlane.f32.xlu0 %v1799_v10  ;;  %v2251_v15 = vadd.f32 %v2243_v19, %v2215_v47  ;;  %v2313_v3 = vmul.f32 %v6345_v40, %v1920_v59  ;;  %v1956_v10 = vadd.f32 %v1948_v42, %v1938_v31  ;;  %v2068_v47 = vld [vmem:[#allocation3 + $0x14] sm:$0xff]  ;;  %v6369_v59 = vstv %s4806_s20  ;;  %s4814_s20 = sld [smem:[#allocation5 + $0x40]] }
 0x38e   : > { %v2086_v60 = vmul.f32 %v6287_v32, %v2068_v47  ;;  %9698 = vst [vmem:[#allocation51_spill] sm:$0xff] %v6369_v59  ;;  %v2120_v31 = vld [vmem:[#allocation3 + $0x15] sm:$0xff]  ;;  %9701 = vst [vmem:[#allocation54_spill] sm:$0xff] %v6382_v48 }
 0x38f   : > { %v2269_v37 = vadd.f32 %v2261_v52, %v2251_v15  ;;  %v1990_v22 = vadd.f32 %v1982_v34, %v1956_v10  ;;  %v6366_v15 = vstv %s4805_s18  ;;  %v2076_v52 = vld [vmem:[#allocation3 + $0xf4] sm:$0xff]  ;;  %v6374_v10 = vstv %s4807_s21  ;;  %s4813_s18 = sld [smem:[#allocation5 + $0xf]]  ;;  %s4815_s21 = sld [smem:[#allocation5 + $0x10]] }
 0x390   : > { %9697 = vst [vmem:[#allocation50_spill] sm:$0xff] %v6366_v15  ;;  %v2451_v51 = vmul.f32 %v6366_v15, %v2068_v47  ;;  %9699 = vst [vmem:[#allocation52_spill] sm:$0xff] %v6374_v10  ;;  %v2128_v34 = vld [vmem:[#allocation3 + $0xf5] sm:$0xff] }
 0x391   : > { %1827 = vadd.xlane.f32.xlu1 %v1826_v2  ;;  %1803 = vmax.xlane.f32.xlu0 %v1802_v23  ;;  %v2303_v38 = vadd.f32 %v2295_v63, %v2269_v37  ;;  %v2347_v23 = vmul.f32 %v6350_v54, %v1964_v46  ;;  %v2008_v61 = vadd.f32 %v2000_v57, %v1990_v22 }
 0x392   : > { %v2104_v63 = vmul.f32 %v6298_v21, %v2076_v52  ;;  %v2469_v46 = vmul.f32 %v6369_v59, %v2076_v52  ;;  %v2156_v57 = vmul.f32 %v6320_v25, %v2128_v34  ;;  %v1869_v52 = vld [vmem:[#allocation3 + $0x100] sm:$0xff] }
 0x393   : > { %v2321_v2 = vadd.f32 %v2313_v3, %v2303_v38  ;;  %v2138_v3 = vmul.f32 %v6309_v0, %v2120_v31 }
 0x395   : > { %1830 = vadd.xlane.f32.xlu1 %v1829_v1  ;;  %1806 = vmax.xlane.f32.xlu0 %v1805_v56  ;;  %v2016_v1 = vld [vmem:[#allocation3 + $0x13] sm:$0xff]  ;;  %v2355_v56 = vadd.f32 %v2347_v23, %v2321_v2  ;;  %v2503_v2 = vmul.f32 %v6374_v10, %v2120_v31  ;;  %v6377_v23 = vstv %s4808_s26  ;;  %v1897_v31 = vmul.f32 %v6227_v29, %v1869_v52  ;;  %s4816_s26 = sld [smem:[#allocation5 + $0x41]] }
 0x396   : > { %v2034_v55 = vmul.f32 %v6273_v24, %v2016_v1  ;;  %v2399_v39 = vmul.f32 %v6358_v44, %v2016_v1  ;;  %9700 = vst [vmem:[#allocation53_spill] sm:$0xff] %v6377_v23  ;;  %v2172_v1 = vld [vmem:[#allocation3 + $0x16] sm:$0xff] }
 0x397   : > { %v2373_v45 = vadd.f32 %v2365_v53, %v2355_v56  ;;  %v2521_v53 = vmul.f32 %v6377_v23, %v2128_v34 }
 0x398   : > { %v2042_v27 = vadd.f32 %v2034_v55, %v2008_v61  ;;  %v2190_v55 = vmul.f32 %v6327_v58, %v2172_v1 }
 0x399   : > { %v2407_v19 = vadd.f32 %v2399_v39, %v2373_v45  ;;  %v2180_v45 = vld [vmem:[#allocation3 + $0xf6] sm:$0xff] }
 0x39a   : > { %v2060_v35 = vadd.f32 %v2052_v50, %v2042_v27  ;;  %v2555_v27 = vmul.f32 %v6382_v48, %v2172_v1  ;;  %v6385_v50 = vstv %s4810_s25  ;;  %s4818_s25 = sld [smem:[#allocation5 + $0x42]] }
 0x39b   : > { %v2425_v9 = vadd.f32 %v2417_v41, %v2407_v19  ;;  %9702 = vst [vmem:[#allocation55_spill] sm:$0xff] %v6385_v50  ;;  %v2208_v19 = vmul.f32 %v6330_v36, %v2180_v45  ;;  %v1860_v41 = vld [vmem:[#allocation3 + $0x20] sm:$0xff] }
 0x39c   : > { %v2094_v37 = vadd.f32 %v2086_v60, %v2060_v35  ;;  %v2573_v60 = vmul.f32 %v6385_v50, %v2180_v45 }
 0x39d   : > { %v2459_v42 = vadd.f32 %v2451_v51, %v2425_v9  ;;  %v2244_v51 = vmul.f32 %v6333_v5, %v1860_v41 }
 0x39e   : > { %v2112_v38 = vadd.f32 %v2104_v63, %v2094_v37  ;;  %v6390_v37 = vstv %s4811_s0  ;;  %v1879_v63 = vmul.f32 %v6225_v20, %v1860_v41  ;;  %s4819_s0 = sld [smem:[#allocation5 + $0x12]] }
 0x39f   : > { %v2477_v33 = vadd.f32 %v2469_v46, %v2459_v42  ;;  %9703 = vst [vmem:[#allocation56_spill] sm:$0xff] %v6390_v37  ;;  %v2609_v46 = vmul.f32 %v6390_v37, %v1860_v41  ;;  %v1965_v41 = vld [vmem:[#allocation3 + $0x22] sm:$0xff] }
 0x3a0   : > { %v2146_v22 = vadd.f32 %v2138_v3, %v2112_v38  ;;  %v6395_v38 = vstv %s4812_s28  ;;  %v1913_v3 = vld [vmem:[#allocation3 + $0x21] sm:$0xff]  ;;  %s4820_s28 = sld [smem:[#allocation5 + $0x43]] }
 0x3a1   : > { %v2511_v56 = vadd.f32 %v2503_v2, %v2477_v33  ;;  %9704 = vst [vmem:[#allocation57_spill] sm:$0xff] %v6395_v38  ;;  %v2262_v33 = vmul.f32 %v6336_v30, %v1869_v52  ;;  %v1905_v2 = vadd.f32 %v1897_v31, %v1879_v63  ;;  %v2627_v1 = vmul.f32 %v6395_v38, %v1869_v52  ;;  %v1973_v31 = vld [vmem:[#allocation3 + $0x102] sm:$0xff] }
 0x3a2   : > { %v2164_v61 = vadd.f32 %v2156_v57, %v2146_v22  ;;  %v1931_v22 = vmul.f32 %v6231_v8, %v1913_v3 }
 0x3a3   : > { %v2529_v39 = vadd.f32 %v2521_v53, %v2511_v56  ;;  %v1921_v56 = vld [vmem:[#allocation3 + $0x101] sm:$0xff] }
 0x3a4   : > { %v2198_v47 = vadd.f32 %v2190_v55, %v2164_v61  ;;  %v2296_v61 = vmul.f32 %v6342_v6, %v1913_v3  ;;  %v6401_v55 = vstv %s4813_s18  ;;  %v1939_v45 = vadd.f32 %v1931_v22, %v1905_v2  ;;  %s4821_s18 = sld [smem:[#allocation5 + $0x13]] }
 0x3a5   : > { %v2563_v35 = vadd.f32 %v2555_v27, %v2529_v39  ;;  %9705 = vst [vmem:[#allocation58_spill] sm:$0xff] %v6401_v55  ;;  %v1949_v39 = vmul.f32 %v6234_v43, %v1921_v56 }
 0x3a6   : > { %v2216_v9 = vadd.f32 %v2208_v19, %v2198_v47  ;;  %v2661_v47 = vmul.f32 %v6401_v55, %v1913_v3  ;;  %v6405_v19 = vstv %s4814_s20  ;;  %s4822_s20 = sld [smem:[#allocation5 + $0x44]] }
 0x3a7   : > { %v2581_v42 = vadd.f32 %v2573_v60, %v2563_v35  ;;  %9706 = vst [vmem:[#allocation59_spill] sm:$0xff] %v6405_v19  ;;  %v2314_v60 = vmul.f32 %v6345_v40, %v1921_v56  ;;  %v1957_v52 = vadd.f32 %v1949_v39, %v1939_v45  ;;  %v2679_v63 = vmul.f32 %v6405_v19, %v1921_v56 }
 0x3a8   : > { %v2252_v34 = vadd.f32 %v2244_v51, %v2216_v9  ;;  %v1983_v9 = vmul.f32 %v6247_v16, %v1965_v41  ;;  %v2366_v56 = vmul.f32 %v6353_v17, %v1973_v31 }
 0x3a9   : > { %v2617_v57 = vadd.f32 %v2609_v46, %v2581_v42  ;;  %v2348_v46 = vmul.f32 %v6350_v54, %v1965_v41 }
 0x3aa   : > { %v2270_v53 = vadd.f32 %v2262_v33, %v2252_v34  ;;  %v6411_v34 = vstv %s4815_s21  ;;  %v1991_v3 = vadd.f32 %v1983_v9, %v1957_v52  ;;  %v2001_v33 = vmul.f32 %v6258_v12, %v1973_v31  ;;  %s6438_s21 = sld [smem:[#allocation5 + $0x45]] }
 0x3ab   : > { %v2635_v27 = vadd.f32 %v2627_v1, %v2617_v57  ;;  %9707 = vst [vmem:[#allocation60_spill] sm:$0xff] %v6411_v34  ;;  %v2713_v22 = vmul.f32 %v6411_v34, %v1965_v41  ;;  %v6415_v57 = vstv %s4816_s26  ;;  %v2017_v1 = vld [vmem:[#allocation3 + $0x23] sm:$0xff]  ;;  %v6421_v52 = vstv %s4817_s27  ;;  %s6440_s26 = sld [smem:[#allocation5 + $0x46]]  ;;  %s6442_s27 = sld [smem:[#allocation5 + $0x47]] }
 0x3ac   : > { %v2304_v35 = vadd.f32 %v2296_v61, %v2270_v53  ;;  %9708 = vst [vmem:[#allocation61_spill] sm:$0xff] %v6415_v57  ;;  %v2009_v61 = vadd.f32 %v2001_v33, %v1991_v3  ;;  %v2035_v45 = vmul.f32 %v6273_v24, %v2017_v1  ;;  %9709 = vst [vmem:[#allocation62_spill] sm:$0xff] %v6421_v52 }
 0x3ad   : > { %v2669_v51 = vadd.f32 %v2661_v47, %v2635_v27  ;;  %v2731_v27 = vmul.f32 %v6415_v57, %v1973_v31  ;;  %v2025_v47 = vld [vmem:[#allocation3 + $0x103] sm:$0xff] }
 0x3ae   : > { %v2322_v42 = vadd.f32 %v2314_v60, %v2304_v35  ;;  %v2400_v60 = vmul.f32 %v6358_v44, %v2017_v1  ;;  %v2043_v41 = vadd.f32 %v2035_v45, %v2009_v61  ;;  %v2053_v9 = vmul.f32 %v6280_v18, %v2025_v47 }
 0x3af   : > { %v2687_v2 = vadd.f32 %v2679_v63, %v2669_v51  ;;  %v2765_v63 = vmul.f32 %v6421_v52, %v2017_v1  ;;  %v2418_v31 = vmul.f32 %v6361_v14, %v2025_v47 }
 0x3b0   : > { %v2356_v53 = vadd.f32 %v2348_v46, %v2322_v42  ;;  %v6425_v42 = vstv %s4818_s25  ;;  %v2069_v46 = vld [vmem:[#allocation3 + $0x24] sm:$0xff]  ;;  %v2061_v33 = vadd.f32 %v2053_v9, %v2043_v41  ;;  %s6446_s25 = sld [smem:[#allocation5 + $0x48]] }
 0x3b1   : > { %v2721_v39 = vadd.f32 %v2713_v22, %v2687_v2  ;;  %9710 = vst [vmem:[#allocation63_spill] sm:$0xff] %v6425_v42  ;;  %v2087_v2 = vmul.f32 %v6287_v32, %v2069_v46  ;;  %v2452_v45 = vmul.f32 %v6366_v15, %v2069_v46  ;;  %v2121_v41 = vld [vmem:[#allocation3 + $0x25] sm:$0xff]  ;;  %v6634_v15 = vstv %s6523_s13  ;;  %s8756_s13 = sld [smem:[#allocation5 + $0x29]] }
 0x3b2   : > { %v2374_v35 = vadd.f32 %v2366_v56, %v2356_v53  ;;  %v2783_v53 = vmul.f32 %v6425_v42, %v2025_v47  ;;  %v2077_v56 = vld [vmem:[#allocation3 + $0x104] sm:$0xff]  ;;  %9745 = vst [vmem:[#allocation98_spill] sm:$0xff] %v6634_v15 }
 0x3b3   : > { %v2739_v51 = vadd.f32 %v2731_v27, %v2721_v39  ;;  %v6431_v39 = vstv %s4819_s0  ;;  %v2095_v1 = vadd.f32 %v2087_v2, %v2061_v33  ;;  %v2105_v27 = vmul.f32 %v6298_v21, %v2077_v56  ;;  %s6451_s0 = sld [smem:[#allocation5 + $0x14]] }
 0x3b4   : > { %v2408_v3 = vadd.f32 %v2400_v60, %v2374_v35  ;;  %9711 = vst [vmem:[#allocation64_spill] sm:$0xff] %v6431_v39  ;;  %v2817_v35 = vmul.f32 %v6431_v39, %v2069_v46  ;;  %v6435_v60 = vstv %s4820_s28  ;;  %v2470_v47 = vmul.f32 %v6369_v59, %v2077_v56  ;;  %v2129_v46 = vld [vmem:[#allocation3 + $0x105] sm:$0xff]  ;;  %s6453_s28 = sld [smem:[#allocation5 + $0x49]] }
 0x3b5   : > { %v2773_v22 = vadd.f32 %v2765_v63, %v2739_v51  ;;  %9712 = vst [vmem:[#allocation65_spill] sm:$0xff] %v6435_v60  ;;  %v2113_v51 = vadd.f32 %v2105_v27, %v2095_v1  ;;  %v2139_v63 = vmul.f32 %v6309_v0, %v2121_v41  ;;  %v2504_v2 = vmul.f32 %v6374_v10, %v2121_v41 }
 0x3b6   : > { %v2426_v61 = vadd.f32 %v2418_v31, %v2408_v3  ;;  %v2835_v31 = vmul.f32 %v6435_v60, %v2077_v56  ;;  %v2522_v27 = vmul.f32 %v6377_v23, %v2129_v46 }
 0x3b7   : > { %v2791_v7 = vadd.f32 %v2783_v53, %v2773_v22  ;;  %v6449_v22 = vstv %s4821_s18  ;;  %v2157_v53 = vmul.f32 %v6320_v25, %v2129_v46  ;;  %s6465_s18 = sld [smem:[#allocation5 + $0x16]] }
 0x3b8   : > { %v2460_v9 = vadd.f32 %v2452_v45, %v2426_v61  ;;  %9713 = vst [vmem:[#allocation66_spill] sm:$0xff] %v6449_v22  ;;  %v2869_v61 = vmul.f32 %v6449_v22, %v2121_v41  ;;  %v6467_v45 = vstv %s4822_s20  ;;  %s6483_s20 = sld [smem:[#allocation5 + $0x4e]]  ;;  %v6588_v22 = vstv %s6480_s10 }
 0x3b9   : > { %v2825_v3 = vadd.f32 %v2817_v35, %v2791_v7  ;;  %v2147_v7 = vadd.f32 %v2139_v63, %v2113_v51  ;;  %9714 = vst [vmem:[#allocation67_spill] sm:$0xff] %v6467_v45  ;;  %v2173_v35 = vld [vmem:[#allocation3 + $0x26] sm:$0xff]  ;;  %v6490_v11 = vstv %s6451_s0  ;;  %s6510_s0 = sld [smem:[#allocation5 + $0x53]]  ;;  %9731 = vst [vmem:[#allocation84_spill] sm:$0xff] %v6588_v22  ;;  %s8661_s10 = sld [smem:[#allocation5 + $0x26]] }
 0x3ba   : > { %v2478_v33 = vadd.f32 %v2470_v47, %v2460_v9  ;;  %v2887_v47 = vmul.f32 %v6467_v45, %v2129_v46  ;;  %9715 = vst [vmem:[#allocation68_spill] sm:$0xff] %v6490_v11 }
 0x3bb   : > { %v2843_v56 = vadd.f32 %v2835_v31, %v2825_v3  ;;  %v2165_v41 = vadd.f32 %v2157_v53, %v2147_v7  ;;  %v2181_v3 = vld [vmem:[#allocation3 + $0x106] sm:$0xff]  ;;  %v2191_v31 = vmul.f32 %v6327_v58, %v2173_v35  ;;  %v6506_v53 = vstv %s6438_s21  ;;  %s6516_s21 = sld [smem:[#allocation5 + $0x55]] }
 0x3bc   : > { %v2512_v1 = vadd.f32 %v2504_v2, %v2478_v33  ;;  %v2556_v2 = vmul.f32 %v6382_v48, %v2173_v35  ;;  %9716 = vst [vmem:[#allocation69_spill] sm:$0xff] %v6506_v53 }
 0x3bd   : > { %v2877_v9 = vadd.f32 %v2869_v61, %v2843_v56  ;;  %v2921_v61 = vmul.f32 %v6490_v11, %v2173_v35 }
 0x3be   : > { %v2530_v33 = vadd.f32 %v2522_v27, %v2512_v1  ;;  %v2199_v27 = vadd.f32 %v2191_v31, %v2165_v41  ;;  %v6526_v41 = vstv %s6440_s26  ;;  %v6532_v31 = vstv %s6446_s25  ;;  %s6549_s26 = sld [smem:[#allocation5 + $0x5b]]  ;;  %s9033_s25 = sld [smem:[#allocation5 + $0x62]] }
 0x3bf   : > { %v2895_v56 = vadd.f32 %v2887_v47, %v2877_v9  ;;  %9717 = vst [vmem:[#allocation70_spill] sm:$0xff] %v6526_v41  ;;  %v6529_v47 = vstv %s6442_s27  ;;  %9719 = vst [vmem:[#allocation72_spill] sm:$0xff] %v6532_v31  ;;  %s6551_s27 = sld [smem:[#allocation5 + $0x5c]]  ;;  %v6591_v39 = vstv %s6483_s20  ;;  %s10597_s20 = sld [smem:[#allocation325_spill]] }
 0x3c0   : > { %9718 = vst [vmem:[#allocation71_spill] sm:$0xff] %v6529_v47  ;;  %9732 = vst [vmem:[#allocation85_spill] sm:$0xff] %v6591_v39 }
 0x3c1   : > { %v6625_v10 = vstv %s6516_s21 }
 0x3c2   : > { %9742 = vst [vmem:[#allocation95_spill] sm:$0xff] %v6625_v10 }
 0x3c4   : > { %v6643_v49 = vstv %s6549_s26  ;;  %s10602_s26 = sld [smem:[#allocation12_spill]] }
 0x3c5   : > { %9748 = vst [vmem:[#allocation101_spill] sm:$0xff] %v6643_v49 }
 0x406   : > { %v1813_v51 = vpop.xlane.xlu1 %1812  ;;  %v1810_v63 = vpop.xlane.xlu0 %1809 }
 0x407   : > { %v1833_v46 = vmul.f32 0.03125, %v1813_v51  ;;  %v1832_v7 = vmul.f32 0.03125, %v1810_v63  ;;  %v2209_v51 = vmul.f32 %v6330_v36, %v2181_v3  ;;  %v2564_v63 = vadd.f32 %v2556_v2, %v2530_v33 }
 0x408   : > { %v6535_v33 = vstv %s6453_s28  ;;  %v6542_v2 = vstv %s6455_s1  ;;  %s6563_s1 = sld [smem:[#allocation5 + $0x5d]] }
 0x409   : > { %1851 = vst.msk [vmem:[#allocation3 + $0x123] sm:$0xff] %vm995_vm7, %v1833_v46  ;;  %1850 = vst.msk [vmem:[#allocation3 + $0x113] sm:$0xff] %vm995_vm7, %v1832_v7  ;;  %v2574_v46 = vmul.f32 %v6385_v50, %v2181_v3  ;;  %v6545_v7 = vstv %s6457_s2  ;;  %v6556_v62 = vadd.f32 %v2209_v51, %v2199_v27  ;;  %s6565_s2 = sld [smem:[#allocation5 + $0x5e]]  ;;  %v6571_v27 = vstv %s6470_s5  ;;  %s8482_s5 = sld [smem:[#allocation5 + $0x21]] }
 0x40a   : > { %v1816_v1 = vpop.xlane.xlu1 %1815  ;;  %v1786_v9 = vpop.xlane.xlu0 %1785  ;;  %9720 = vst [vmem:[#allocation73_spill] sm:$0xff] %v6535_v33  ;;  %9721 = vst [vmem:[#allocation74_spill] sm:$0xff] %v6542_v2 }
 0x40b   : > { %v1834_v35 = vmul.f32 0.03125, %v1816_v1  ;;  %1841 = vst.msk [vmem:[#allocation3 + $0x33] sm:$0xff] %vm995_vm7, %v1786_v9  ;;  %9722 = vst [vmem:[#allocation75_spill] sm:$0xff] %v6545_v7  ;;  %v2929_v1 = vadd.f32 %v2921_v61, %v2895_v56  ;;  %v2939_v9 = vmul.f32 %v6506_v53, %v2181_v3  ;;  %v6558_v26 = vadd.f32 %v2574_v46, %v2564_v63 }
 0x40c   : > { %v6568_v61 = vstv %s6465_s18  ;;  %9726 = vst [vmem:[#allocation79_spill] sm:$0xff] %v6571_v27  ;;  %v6574_v46 = vstv %s6472_s6  ;;  %v6646_v27 = vstv %s6551_s27  ;;  %s8525_s6 = sld [smem:[#allocation5 + $0x22]]  ;;  %s472_s27 = sand.u32 1, %s10602_s26  }
 0x40d   : > { %1852 = vst.msk [vmem:[#allocation3 + $0x133] sm:$0xff] %vm995_vm7, %v1834_v35  ;;  %v6561_v35 = vstv %s6463_s4  ;;  %9725 = vst [vmem:[#allocation78_spill] sm:$0xff] %v6568_v61  ;;  %v6585_v11 = vadd.f32 %v2939_v9, %v2929_v1  ;;  %v6605_v1 = vstv %s6496_s19  ;;  %s8449_s4 = sld [smem:[#allocation5 + $0x20]]  ;;  %s8978_s19 = sld [smem:[#allocation5 + $0x5f]] }
 0x40e   : > { %9724 = vst [vmem:[#allocation77_spill] sm:$0xff] %v6561_v35  ;;  %v1822_v56 = vpop.xlane.xlu1 %1821  ;;  %v1819_v3 = vpop.xlane.xlu0 %1818  ;;  %9727 = vst [vmem:[#allocation80_spill] sm:$0xff] %v6574_v46  ;;  %v6655_v0 = vstv %s6563_s1  ;;  %s4729_s1 = sshll.u32 %s472_s27, 6 }
 0x40f   : > { %v1836_v51 = vmul.f32 0.03125, %v1822_v56  ;;  %v1835_v63 = vmul.f32 0.03125, %v1819_v3  ;;  %v6594_v56 = vstv %s6485_s11  ;;  %v6599_v3 = vstv %s6492_s22  ;;  %9736 = vst [vmem:[#allocation89_spill] sm:$0xff] %v6605_v1  ;;  %9749 = vst [vmem:[#allocation102_spill] sm:$0xff] %v6646_v27  ;;  %s8696_s11 = sld [smem:[#allocation5 + $0x27]]  ;;  %s8990_s22 = sld [smem:[#allocation5 + $0x60]] }
 0x410   : > { %9733 = vst [vmem:[#allocation86_spill] sm:$0xff] %v6594_v56  ;;  %9734 = vst [vmem:[#allocation87_spill] sm:$0xff] %v6599_v3  ;;  %v1922_v46 = vld [vmem:[#allocation3 + $0x111] sm:$0xff]  ;;  %v6619_v1 = vstv %s6510_s0  ;;  %v6658_v15 = vstv %s6565_s2  ;;  %v6716_v56 = vld [vmem:[#allocation3 + $0x122] sm:$0xff] }
 0x411   : > { %1854 = vst.msk [vmem:[#allocation3 + $0x153] sm:$0xff] %vm995_vm7, %v1836_v51  ;;  %1853 = vst.msk [vmem:[#allocation3 + $0x143] sm:$0xff] %vm995_vm7, %v1835_v63  ;;  %v1974_v48 = vld [vmem:[#allocation3 + $0x112] sm:$0xff]  ;;  %v6613_v51 = vstv %s6500_s29  ;;  %v6616_v63 = vstv %s6502_s16  ;;  %v6649_v44 = vmul.f32 %v6234_v43, %v1922_v46  ;;  %v6670_v49 = vmul.f32 %v6345_v40, %v1922_v46  ;;  %v6718_v39 = vld [vmem:[#allocation3 + $0x123] sm:$0xff]  ;;  %s8808_s29 = sld [smem:[#allocation5 + $0x2b]]  ;;  %s8867_s16 = sld [smem:[#allocation5 + $0x2e]] }
 0x412   : > { %v1792_v9 = vpop.xlane.xlu1 %1791  ;;  %v1789_v13 = vpop.xlane.xlu0 %1788  ;;  %9738 = vst [vmem:[#allocation91_spill] sm:$0xff] %v6613_v51  ;;  %9739 = vst [vmem:[#allocation92_spill] sm:$0xff] %v6616_v63  ;;  %v1870_v3 = vld [vmem:[#allocation3 + $0x110] sm:$0xff]  ;;  %v6637_v63 = vstv %s6537_s30  ;;  %v6652_v10 = vmul.f32 %v6258_v12, %v1974_v48  ;;  %v6740_v24 = vmul.f32 %v6532_v31, %v1974_v48  ;;  %v6755_v22 = vld [vmem:[#allocation3 + $0x125] sm:$0xff]  ;;  %s8830_s30 = sld [smem:[#allocation5 + $0x2c]] }
 0x413   : > { %1843 = vst.msk [vmem:[#allocation3 + $0x53] sm:$0xff] %vm995_vm7, %v1792_v9  ;;  %1842 = vst.msk [vmem:[#allocation3 + $0x43] sm:$0xff] %vm995_vm7, %v1789_v13  ;;  %v2026_v28 = vld [vmem:[#allocation3 + $0x113] sm:$0xff]  ;;  %v6628_v9 = vstv %s6518_s23  ;;  %v6631_v13 = vstv %s6521_s17  ;;  %v6667_v27 = vmul.f32 %v6336_v30, %v1870_v3  ;;  %s8886_s17 = sld [smem:[#allocation5 + $0x2f]]  ;;  %s8996_s23 = sld [smem:[#allocation5 + $0x30]] }
 0x414   : > { %9740 = vst [vmem:[#allocation93_spill] sm:$0xff] %v6619_v1  ;;  %v2078_v52 = vld [vmem:[#allocation3 + $0x114] sm:$0xff]  ;;  %9743 = vst [vmem:[#allocation96_spill] sm:$0xff] %v6628_v9  ;;  %v6640_v1 = vstv %s6539_s12  ;;  %s8719_s12 = sld [smem:[#allocation5 + $0x28]] }
 0x415   : > { %9744 = vst [vmem:[#allocation97_spill] sm:$0xff] %v6631_v13  ;;  %v2130_v51 = vld [vmem:[#allocation3 + $0x115] sm:$0xff]  ;;  %9746 = vst [vmem:[#allocation99_spill] sm:$0xff] %v6637_v63  ;;  %v6661_v63 = vmul.f32 %v6280_v18, %v2026_v28  ;;  %v6687_v32 = vmul.f32 %v6369_v59, %v2078_v52 }
 0x416   : > { %v2182_v58 = vld [vmem:[#allocation3 + $0x116] sm:$0xff]  ;;  %9747 = vst [vmem:[#allocation100_spill] sm:$0xff] %v6640_v1  ;;  %9750 = vst [vmem:[#allocation103_spill] sm:$0xff] %v6652_v10  ;;  %v1798_v9 = vpop.xlane.xlu1 %1797  ;;  %v1795_v13 = vpop.xlane.xlu0 %1794  ;;  %v6664_v1 = vmul.f32 %v6298_v21, %v2078_v52  ;;  %v6690_v34 = vmul.f32 %v6377_v23, %v2130_v51  ;;  %v6721_v10 = vmul.f32 %v6467_v45, %v2130_v51 }
 0x417   : > { %9751 = vst [vmem:[#allocation104_spill] sm:$0xff] %v6655_v0  ;;  %9752 = vst [vmem:[#allocation105_spill] sm:$0xff] %v6658_v15  ;;  %v6675_v0 = vmul.f32 %v6320_v25, %v2130_v51  ;;  %v6678_v15 = vmul.f32 %v6330_v36, %v2182_v58  ;;  %v6734_v54 = vld [vmem:[#allocation3 + $0x132] sm:$0xff] }
 0x418   : > { %9753 = vst [vmem:[#allocation106_spill] sm:$0xff] %v6661_v63  ;;  %9754 = vst [vmem:[#allocation107_spill] sm:$0xff] %v6664_v1  ;;  %v6681_v63 = vmul.f32 %v6353_v17, %v1974_v48  ;;  %v6684_v1 = vmul.f32 %v6361_v14, %v2026_v28 }
 0x419   : > { %9755 = vst [vmem:[#allocation108_spill] sm:$0xff] %v6670_v49  ;;  %1845 = vst.msk [vmem:[#allocation3 + $0x73] sm:$0xff] %vm995_vm7, %v1798_v9  ;;  %v6693_v9 = vmul.f32 %v6385_v50, %v2182_v58  ;;  %v6736_v49 = vld [vmem:[#allocation3 + $0x124] sm:$0xff] }
 0x41a   : > { %1844 = vst.msk [vmem:[#allocation3 + $0x63] sm:$0xff] %vm995_vm7, %v1795_v13  ;;  %9756 = vst [vmem:[#allocation109_spill] sm:$0xff] %v6675_v0  ;;  %v6696_v13 = vmul.f32 %v6395_v38, %v1870_v3  ;;  %v6698_v0 = vld [vmem:[#allocation3 + $0x120] sm:$0xff]  ;;  %v1801_v61 = vpop.xlane.xlu0 %1800 }
 0x41b   : > { %9757 = vst [vmem:[#allocation110_spill] sm:$0xff] %v6678_v15  ;;  %9758 = vst [vmem:[#allocation111_spill] sm:$0xff] %v6681_v63  ;;  %v6700_v15 = vld [vmem:[#allocation3 + $0x121] sm:$0xff]  ;;  %v6703_v63 = vmul.f32 %v6405_v19, %v1922_v46 }
 0x41c   : > { %9759 = vst [vmem:[#allocation112_spill] sm:$0xff] %v6684_v1  ;;  %9760 = vst [vmem:[#allocation113_spill] sm:$0xff] %v6687_v32  ;;  %v6706_v1 = vmul.f32 %v6415_v57, %v1974_v48  ;;  %v6709_v32 = vmul.f32 %v6425_v42, %v2026_v28  ;;  %v1898_v48 = vmul.f32 %v6227_v29, %v1870_v3 }
 0x41d   : > { %9761 = vst [vmem:[#allocation114_spill] sm:$0xff] %v6690_v34  ;;  %9762 = vst [vmem:[#allocation115_spill] sm:$0xff] %v6693_v9  ;;  %v6712_v34 = vmul.f32 %v6435_v60, %v2078_v52  ;;  %v6714_v9 = vld [vmem:[#allocation3 + $0x130] sm:$0xff] }
 0x41e   : > { %9763 = vst [vmem:[#allocation116_spill] sm:$0xff] %v6703_v63  ;;  %9764 = vst [vmem:[#allocation117_spill] sm:$0xff] %v6706_v1  ;;  %v6724_v63 = vmul.f32 %v6506_v53, %v2182_v58  ;;  %v6727_v1 = vmul.f32 %v6526_v41, %v1870_v3 }
 0x41f   : > { %9765 = vst [vmem:[#allocation118_spill] sm:$0xff] %v6709_v32  ;;  %9766 = vst [vmem:[#allocation119_spill] sm:$0xff] %v6712_v34  ;;  %v6730_v32 = vmul.f32 %v6529_v47, %v1922_v46  ;;  %v6732_v34 = vld [vmem:[#allocation3 + $0x131] sm:$0xff]  ;;  %v6749_v46 = vmul.f32 %v6545_v7, %v2130_v51 }
 0x420   : > { %9767 = vst [vmem:[#allocation120_spill] sm:$0xff] %v6721_v10  ;;  %9768 = vst [vmem:[#allocation121_spill] sm:$0xff] %v6724_v63  ;;  %v6743_v10 = vmul.f32 %v6535_v33, %v2026_v28  ;;  %v6746_v63 = vmul.f32 %v6542_v2, %v2078_v52  ;;  %v6763_v28 = vmul.f32 %v6227_v29, %v6698_v0  ;;  %v6769_v51 = vld [vmem:[#allocation3 + $0x135] sm:$0xff] }
 0x421   : > { %9769 = vst [vmem:[#allocation122_spill] sm:$0xff] %v6727_v1  ;;  %9770 = vst [vmem:[#allocation123_spill] sm:$0xff] %v6730_v32  ;;  %v6751_v32 = vld [vmem:[#allocation3 + $0x133] sm:$0xff]  ;;  %v6767_v52 = vmul.f32 %v6227_v29, %v6714_v9  ;;  %v6781_v3 = vmul.f32 %v6234_v43, %v6732_v34  ;;  %v6789_v29 = vmul.f32 %v6258_v12, %v6734_v54 }
 0x422   : > { %1846 = vst.msk [vmem:[#allocation3 + $0x83] sm:$0xff] %vm995_vm7, %v1801_v61  ;;  %9771 = vst [vmem:[#allocation124_spill] sm:$0xff] %v6746_v63  ;;  %v6753_v1 = vld [vmem:[#allocation3 + $0x134] sm:$0xff]  ;;  %v6758_v61 = vmul.f32 %v6554_v4, %v2182_v58  ;;  %v6777_v58 = vmul.f32 %v6234_v43, %v6700_v15  ;;  %v6801_v43 = vmul.f32 %v6298_v21, %v6736_v49 }
 0x423   : > { %9772 = vst [vmem:[#allocation125_spill] sm:$0xff] %v6749_v46  ;;  %9774 = vst [vmem:[#allocation127_spill] sm:$0xff] %v6763_v28  ;;  %v6771_v46 = vld [vmem:[#allocation3 + $0x126] sm:$0xff]  ;;  %v6773_v63 = vld [vmem:[#allocation3 + $0x136] sm:$0xff]  ;;  %v6785_v28 = vmul.f32 %v6258_v12, %v6716_v56  ;;  %v6810_v12 = vmul.f32 %v6320_v25, %v6755_v22 }
 0x424   : > { %9773 = vst [vmem:[#allocation126_spill] sm:$0xff] %v6758_v61  ;;  %9775 = vst [vmem:[#allocation128_spill] sm:$0xff] %v6767_v52  ;;  %v1804_v52 = vpop.xlane.xlu0 %1803  ;;  %v6793_v61 = vmul.f32 %v6280_v18, %v6718_v39 }
 0x425   : > { %9776 = vst [vmem:[#allocation129_spill] sm:$0xff] %v6777_v58  ;;  %9777 = vst [vmem:[#allocation130_spill] sm:$0xff] %v6781_v3  ;;  %v6797_v58 = vmul.f32 %v6280_v18, %v6751_v32  ;;  %v6818_v18 = vmul.f32 %v6330_v36, %v6771_v46 }
 0x426   : > { %9778 = vst [vmem:[#allocation131_spill] sm:$0xff] %v6785_v28  ;;  %9779 = vst [vmem:[#allocation132_spill] sm:$0xff] %v6789_v29  ;;  %v6805_v28 = vmul.f32 %v6298_v21, %v6753_v1  ;;  %v6866_v21 = vmul.f32 %v6377_v23, %v6755_v22  ;;  %v6948_v29 = vmul.f32 %v6529_v47, %v6700_v15 }
 0x427   : > { %9780 = vst [vmem:[#allocation133_spill] sm:$0xff] %v6793_v61  ;;  %9781 = vst [vmem:[#allocation134_spill] sm:$0xff] %v6797_v58  ;;  %v6814_v61 = vmul.f32 %v6320_v25, %v6769_v51  ;;  %v6834_v25 = vmul.f32 %v6345_v40, %v6700_v15  ;;  %v6910_v58 = vmul.f32 %v6425_v42, %v6751_v32 }
 0x428   : > { %9782 = vst [vmem:[#allocation135_spill] sm:$0xff] %v6801_v43  ;;  %9783 = vst [vmem:[#allocation136_spill] sm:$0xff] %v6805_v28  ;;  %v6822_v43 = vmul.f32 %v6330_v36, %v6773_v63  ;;  %v6826_v28 = vmul.f32 %v6336_v30, %v6698_v0  ;;  %v6842_v36 = vmul.f32 %v6353_v17, %v6716_v56 }
 0x429   : > { %1847 = vst.msk [vmem:[#allocation3 + $0x93] sm:$0xff] %vm995_vm7, %v1804_v52  ;;  %9784 = vst [vmem:[#allocation137_spill] sm:$0xff] %v6810_v12  ;;  %v6830_v52 = vmul.f32 %v6336_v30, %v6714_v9  ;;  %v6838_v12 = vmul.f32 %v6345_v40, %v6732_v34 }
 0x42a   : > { %9785 = vst [vmem:[#allocation138_spill] sm:$0xff] %v6814_v61  ;;  %9786 = vst [vmem:[#allocation139_spill] sm:$0xff] %v6818_v18  ;;  %v6846_v18 = vmul.f32 %v6353_v17, %v6734_v54  ;;  %v6858_v61 = vmul.f32 %v6369_v59, %v6736_v49 }
 0x42b   : > { %9787 = vst [vmem:[#allocation140_spill] sm:$0xff] %v6822_v43  ;;  %9788 = vst [vmem:[#allocation141_spill] sm:$0xff] %v6826_v28  ;;  %v6850_v43 = vmul.f32 %v6361_v14, %v6718_v39  ;;  %v6965_v28 = vmul.f32 %v6535_v33, %v6718_v39 }
 0x42c   : > { %9789 = vst [vmem:[#allocation142_spill] sm:$0xff] %v6830_v52  ;;  %9790 = vst [vmem:[#allocation143_spill] sm:$0xff] %v6834_v25  ;;  %v6854_v52 = vmul.f32 %v6361_v14, %v6751_v32 }
 0x42d   : > { %9791 = vst [vmem:[#allocation144_spill] sm:$0xff] %v6838_v12  ;;  %9792 = vst [vmem:[#allocation145_spill] sm:$0xff] %v6842_v36  ;;  %v6862_v12 = vmul.f32 %v6369_v59, %v6753_v1  ;;  %v6902_v36 = vmul.f32 %v6415_v57, %v6734_v54 }
 0x42e   : > { %9793 = vst [vmem:[#allocation146_spill] sm:$0xff] %v6846_v18  ;;  %9794 = vst [vmem:[#allocation147_spill] sm:$0xff] %v6850_v43  ;;  %v6870_v18 = vmul.f32 %v6377_v23, %v6769_v51  ;;  %v6874_v43 = vmul.f32 %v6385_v50, %v6771_v46 }
 0x42f   : > { %9795 = vst [vmem:[#allocation148_spill] sm:$0xff] %v6854_v52  ;;  %9796 = vst [vmem:[#allocation149_spill] sm:$0xff] %v6858_v61  ;;  %v6878_v52 = vmul.f32 %v6385_v50, %v6773_v63  ;;  %v6882_v61 = vmul.f32 %v6395_v38, %v6698_v0 }
 0x430   : > { %9797 = vst [vmem:[#allocation150_spill] sm:$0xff] %v6862_v12  ;;  %9798 = vst [vmem:[#allocation151_spill] sm:$0xff] %v6866_v21  ;;  %v6886_v12 = vmul.f32 %v6395_v38, %v6714_v9  ;;  %v1861_v21 = vld [vmem:[#allocation3 + $0x30] sm:$0xff] }
 0x431   : > { %9799 = vst [vmem:[#allocation152_spill] sm:$0xff] %v6870_v18  ;;  %9800 = vst [vmem:[#allocation153_spill] sm:$0xff] %v6874_v43  ;;  %v6890_v18 = vmul.f32 %v6405_v19, %v6700_v15  ;;  %v6894_v43 = vmul.f32 %v6405_v19, %v6732_v34  ;;  %v1880_v25 = vmul.f32 %v6225_v20, %v1861_v21 }
 0x432   : > { %9801 = vst [vmem:[#allocation154_spill] sm:$0xff] %v6878_v52  ;;  %9802 = vst [vmem:[#allocation155_spill] sm:$0xff] %v6882_v61  ;;  %v6898_v52 = vmul.f32 %v6415_v57, %v6716_v56 }
 0x433   : > { %9803 = vst [vmem:[#allocation156_spill] sm:$0xff] %v6886_v12  ;;  %9804 = vst [vmem:[#allocation157_spill] sm:$0xff] %v6890_v18  ;;  %v6906_v12 = vmul.f32 %v6425_v42, %v6718_v39  ;;  %v6914_v18 = vmul.f32 %v6435_v60, %v6736_v49  ;;  %v1906_v61 = vadd.f32 %v1898_v48, %v1880_v25 }
 0x434   : > { %9805 = vst [vmem:[#allocation158_spill] sm:$0xff] %v6894_v43  ;;  %9806 = vst [vmem:[#allocation159_spill] sm:$0xff] %v6898_v52  ;;  %v6918_v43 = vmul.f32 %v6435_v60, %v6753_v1  ;;  %v1914_v52 = vld [vmem:[#allocation3 + $0x31] sm:$0xff]  ;;  %v6970_v25 = vmul.f32 %v6535_v33, %v6751_v32  ;;  %v6983_v39 = vmul.f32 %v6545_v7, %v6755_v22 }
 0x435   : > { %9807 = vst [vmem:[#allocation160_spill] sm:$0xff] %v6902_v36  ;;  %9808 = vst [vmem:[#allocation161_spill] sm:$0xff] %v6906_v12  ;;  %v6922_v36 = vmul.f32 %v6467_v45, %v6755_v22  ;;  %v6926_v12 = vmul.f32 %v6467_v45, %v6769_v51  ;;  %v6997_v22 = vmul.f32 %v6554_v4, %v6771_v46 }
 0x436   : > { %9809 = vst [vmem:[#allocation162_spill] sm:$0xff] %v6910_v58  ;;  %9810 = vst [vmem:[#allocation163_spill] sm:$0xff] %v6914_v18  ;;  %v6930_v58 = vmul.f32 %v6506_v53, %v6771_v46  ;;  %v6935_v18 = vmul.f32 %v6506_v53, %v6773_v63  ;;  %v9833_v46 = vld [vmem:[#allocation108_spill] sm:$0xff] }
 0x437   : > { %9811 = vst [vmem:[#allocation164_spill] sm:$0xff] %v6918_v43  ;;  %9812 = vst [vmem:[#allocation165_spill] sm:$0xff] %v6922_v36  ;;  %v6939_v43 = vmul.f32 %v6526_v41, %v6698_v0  ;;  %v6943_v36 = vmul.f32 %v6526_v41, %v6714_v9 }
 0x438   : > { %9813 = vst [vmem:[#allocation166_spill] sm:$0xff] %v6926_v12  ;;  %9814 = vst [vmem:[#allocation167_spill] sm:$0xff] %v6930_v58  ;;  %v2245_v12 = vmul.f32 %v6333_v5, %v1861_v21  ;;  %v6952_v58 = vmul.f32 %v6529_v47, %v6732_v34  ;;  %v6974_v34 = vmul.f32 %v6542_v2, %v6736_v49  ;;  %v7064_v5 = vld [vmem:[#allocation3 + $0x153] sm:$0xff] }
 0x439   : > { %9815 = vst [vmem:[#allocation168_spill] sm:$0xff] %v6935_v18  ;;  %9816 = vst [vmem:[#allocation169_spill] sm:$0xff] %v6939_v43  ;;  %v1932_v18 = vmul.f32 %v6231_v8, %v1914_v52  ;;  %v6957_v43 = vmul.f32 %v6532_v31, %v6716_v56 }
 0x43a   : > { %9817 = vst [vmem:[#allocation170_spill] sm:$0xff] %v6943_v36  ;;  %9818 = vst [vmem:[#allocation171_spill] sm:$0xff] %v6948_v29  ;;  %v6961_v36 = vmul.f32 %v6532_v31, %v6734_v54  ;;  %v1966_v29 = vld [vmem:[#allocation3 + $0x32] sm:$0xff]  ;;  %v2253_v3 = vadd.f32 %v2245_v12, %v6556_v62  ;;  %v6979_v54 = vmul.f32 %v6542_v2, %v6753_v1 }
 0x43b   : > { %9819 = vst [vmem:[#allocation172_spill] sm:$0xff] %v6952_v58  ;;  %9820 = vst [vmem:[#allocation173_spill] sm:$0xff] %v6957_v43  ;;  %v1940_v48 = vadd.f32 %v1932_v18, %v1906_v61  ;;  %v2610_v58 = vmul.f32 %v6390_v37, %v1861_v21  ;;  %v2297_v62 = vmul.f32 %v6342_v6, %v1914_v52  ;;  %v9845_v43 = vld [vmem:[#allocation33_spill] sm:$0xff] }
 0x43c   : > { %9821 = vst [vmem:[#allocation174_spill] sm:$0xff] %v6961_v36  ;;  %9822 = vst [vmem:[#allocation175_spill] sm:$0xff] %v6965_v28  ;;  %v2271_v12 = vadd.f32 %v6667_v27, %v2253_v3  ;;  %v1984_v49 = vmul.f32 %v6247_v16, %v1966_v29  ;;  %v2973_v61 = vmul.f32 %v6561_v35, %v1861_v21  ;;  %v2174_v28 = vld [vmem:[#allocation3 + $0x36] sm:$0xff] }
 0x43d   : > { %9823 = vst [vmem:[#allocation176_spill] sm:$0xff] %v6970_v25  ;;  %9824 = vst [vmem:[#allocation177_spill] sm:$0xff] %v6974_v34  ;;  %v1958_v32 = vadd.f32 %v6649_v44, %v1940_v48  ;;  %v2018_v25 = vld [vmem:[#allocation3 + $0x33] sm:$0xff]  ;;  %v2618_v18 = vadd.f32 %v2610_v58, %v6558_v26  ;;  %v6993_v1 = vmul.f32 %v6545_v7, %v6769_v51  ;;  %v9830_v58 = vld [vmem:[#allocation84_spill] sm:$0xff] }
 0x43e   : > { %9825 = vst [vmem:[#allocation178_spill] sm:$0xff] %v6979_v54  ;;  %9826 = vst [vmem:[#allocation179_spill] sm:$0xff] %v6983_v39  ;;  %v7001_v27 = vmul.f32 %v6554_v4, %v6773_v63  ;;  %v2305_v44 = vadd.f32 %v2297_v62, %v2271_v12  ;;  %v2662_v26 = vmul.f32 %v6401_v55, %v1914_v52  ;;  %v9834_v39 = vld [vmem:[#allocation46_spill] sm:$0xff]  ;;  %v9835_v63 = vld [vmem:[#allocation103_spill] sm:$0xff] }
 0x43f   : > { %9827 = vst [vmem:[#allocation180_spill] sm:$0xff] %v6993_v1  ;;  %9828 = vst [vmem:[#allocation181_spill] sm:$0xff] %v6997_v22  ;;  %v1992_v3 = vadd.f32 %v1984_v49, %v1958_v32  ;;  %v2636_v48 = vadd.f32 %v6696_v13, %v2618_v18  ;;  %v2981_v21 = vadd.f32 %v2973_v61, %v6585_v11  ;;  %v9832_v1 = vld [vmem:[#allocation31_spill] sm:$0xff]  ;;  %v9836_v13 = vld [vmem:[#allocation122_spill] sm:$0xff] }
 0x440   : > { %9829 = vst [vmem:[#allocation182_spill] sm:$0xff] %v7001_v27  ;;  %v7008_v51 = vmul.f32 %v9830_v58, %v6698_v0  ;;  %v2036_v54 = vmul.f32 %v9832_v1, %v2018_v25  ;;  %v2323_v22 = vadd.f32 %v9833_v46, %v2305_v44  ;;  %v2349_v34 = vmul.f32 %v9834_v39, %v1966_v29  ;;  %v2070_v12 = vld [vmem:[#allocation3 + $0x34] sm:$0xff]  ;;  %v9839_v0 = vld [vmem:[#allocation85_spill] sm:$0xff] }
 0x441   : > { %v2010_v27 = vadd.f32 %v9835_v63, %v1992_v3  ;;  %v2122_v62 = vld [vmem:[#allocation3 + $0x35] sm:$0xff]  ;;  %v2670_v32 = vadd.f32 %v2662_v26, %v2636_v48  ;;  %v2999_v49 = vadd.f32 %v9836_v13, %v2981_v21  ;;  %v7018_v11 = vmul.f32 %v9830_v58, %v6714_v9  ;;  %v9843_v48 = vld [vmem:[#allocation116_spill] sm:$0xff]  ;;  %v9846_v9 = vld [vmem:[#allocation37_spill] sm:$0xff] }
 0x442   : > { %9831 = vst [vmem:[#allocation183_spill] sm:$0xff] %v7008_v51  ;;  %v9837_v18 = vld [vmem:[#allocation78_spill] sm:$0xff]  ;;  %v7022_v61 = vmul.f32 %v9839_v0, %v6700_v15  ;;  %v2357_v3 = vadd.f32 %v2349_v34, %v2323_v22  ;;  %v9844_v21 = vld [vmem:[#allocation60_spill] sm:$0xff]  ;;  %v2088_v51 = vmul.f32 %v9845_v43, %v2070_v12  ;;  %v9855_v39 = vld [vmem:[#allocation117_spill] sm:$0xff] }
 0x443   : > { %v3025_v36 = vmul.f32 %v9837_v18, %v1914_v52  ;;  %9838 = vst [vmem:[#allocation108_spill] sm:$0xff] %v7018_v11  ;;  %v9841_v44 = vld [vmem:[#allocation86_spill] sm:$0xff]  ;;  %v2044_v63 = vadd.f32 %v2036_v54, %v2010_v27  ;;  %v2688_v26 = vadd.f32 %v9843_v48, %v2670_v32  ;;  %v2714_v13 = vmul.f32 %v9844_v21, %v1966_v29  ;;  %v9847_v18 = vld [vmem:[#allocation111_spill] sm:$0xff]  ;;  %v9848_v15 = vld [vmem:[#allocation48_spill] sm:$0xff] }
 0x444   : > { %9840 = vst [vmem:[#allocation103_spill] sm:$0xff] %v7022_v61  ;;  %v7026_v46 = vmul.f32 %v9841_v44, %v6716_v56  ;;  %v2140_v11 = vmul.f32 %v9846_v9, %v2122_v62  ;;  %v2375_v35 = vadd.f32 %v9847_v18, %v2357_v3  ;;  %v2401_v0 = vmul.f32 %v9848_v15, %v2018_v25  ;;  %v9849_v61 = vld [vmem:[#allocation106_spill] sm:$0xff]  ;;  %v9850_v44 = vld [vmem:[#allocation123_spill] sm:$0xff]  ;;  %v9852_v27 = vld [vmem:[#allocation40_spill] sm:$0xff] }
 0x445   : > { %v3033_v52 = vadd.f32 %v3025_v36, %v2999_v49  ;;  %v2062_v55 = vadd.f32 %v9849_v61, %v2044_v63  ;;  %v2722_v56 = vadd.f32 %v2714_v13, %v2688_v26  ;;  %v9851_v54 = vld [vmem:[#allocation79_spill] sm:$0xff]  ;;  %v7038_v32 = vmul.f32 %v9852_v27, %v2174_v28  ;;  %v9853_v36 = vld [vmem:[#allocation50_spill] sm:$0xff]  ;;  %v9857_v61 = vld [vmem:[#allocation112_spill] sm:$0xff]  ;;  %9869 = vst [vmem:[#allocation123_spill] sm:$0xff] %v7064_v5 }
 0x446   : > { %9842 = vst [vmem:[#allocation122_spill] sm:$0xff] %v7026_v46  ;;  %v3077_v22 = vmul.f32 %v9851_v54, %v1966_v29  ;;  %v2409_v48 = vadd.f32 %v2401_v0, %v2375_v35  ;;  %v2453_v49 = vmul.f32 %v9853_v36, %v2070_v12  ;;  %v9854_v46 = vld [vmem:[#allocation52_spill] sm:$0xff]  ;;  %v9856_v3 = vld [vmem:[#allocation62_spill] sm:$0xff]  ;;  %v9862_v0 = vld [vmem:[#allocation107_spill] sm:$0xff] }
 0x447   : > { %v3051_v34 = vadd.f32 %v9850_v44, %v3033_v52  ;;  %v2505_v21 = vmul.f32 %v9854_v46, %v2122_v62  ;;  %v2096_v37 = vadd.f32 %v2088_v51, %v2062_v55  ;;  %v2740_v18 = vadd.f32 %v9855_v39, %v2722_v56  ;;  %v9858_v26 = vld [vmem:[#allocation54_spill] sm:$0xff]  ;;  %v9859_v29 = vld [vmem:[#allocation64_spill] sm:$0xff] }
 0x448   : > { %v2766_v15 = vmul.f32 %v9856_v3, %v2018_v25  ;;  %v2427_v63 = vadd.f32 %v9857_v61, %v2409_v48  ;;  %v7046_v44 = vmul.f32 %v9858_v26, %v2174_v28  ;;  %v2818_v13 = vmul.f32 %v9859_v29, %v2070_v12  ;;  %v9860_v52 = vld [vmem:[#allocation66_spill] sm:$0xff]  ;;  %v9863_v39 = vld [vmem:[#allocation80_spill] sm:$0xff]  ;;  %v9867_v29 = vld [vmem:[#allocation81_spill] sm:$0xff] }
 0x449   : > { %v3085_v6 = vadd.f32 %v3077_v22, %v3051_v34  ;;  %v2870_v54 = vmul.f32 %v9860_v52, %v2122_v62  ;;  %v7050_v35 = vld [vmem:[#allocation3 + $0x150] sm:$0xff]  ;;  %v2114_v36 = vadd.f32 %v9862_v0, %v2096_v37  ;;  %v3129_v51 = vmul.f32 %v9863_v39, %v2018_v25  ;;  %v9866_v48 = vld [vmem:[#allocation68_spill] sm:$0xff]  ;;  %v9872_v25 = vld [vmem:[#allocation83_spill] sm:$0xff] }
 0x44a   : > { %9861 = vst [vmem:[#allocation116_spill] sm:$0xff] %v7050_v35  ;;  %v2774_v46 = vadd.f32 %v2766_v15, %v2740_v18  ;;  %v7055_v56 = vld [vmem:[#allocation3 + $0x151] sm:$0xff]  ;;  %v2461_v22 = vadd.f32 %v2453_v49, %v2427_v63  ;;  %v7060_v61 = vmul.f32 %v9866_v48, %v2174_v28  ;;  %v3181_v3 = vmul.f32 %v9867_v29, %v2070_v12 }
 0x44b   : > { %v3103_v55 = vadd.f32 %v6740_v24, %v3085_v6  ;;  %9864 = vst [vmem:[#allocation111_spill] sm:$0xff] %v7055_v56  ;;  %v7057_v34 = vld [vmem:[#allocation3 + $0x152] sm:$0xff]  ;;  %v7070_v18 = vmul.f32 %v9872_v25, %v2174_v28  ;;  %v7078_v63 = vmul.f32 %v6395_v38, %v7050_v35  ;;  %v2148_v12 = vadd.f32 %v2140_v11, %v2114_v36 }
 0x44c   : > { %9865 = vst [vmem:[#allocation106_spill] sm:$0xff] %v7057_v34  ;;  %v9868_v52 = vld [vmem:[#allocation82_spill] sm:$0xff]  ;;  %v7083_v29 = vmul.f32 %v6405_v19, %v7055_v56 }
 0x44d   : > { %v3233_v26 = vmul.f32 %v9868_v52, %v2122_v62  ;;  %v7066_v37 = vld [vmem:[#allocation3 + $0x154] sm:$0xff]  ;;  %v3137_v6 = vadd.f32 %v3129_v51, %v3103_v55  ;;  %v9876_v62 = vld [vmem:[#allocation113_spill] sm:$0xff]  ;;  %v7092_v51 = vmul.f32 %v6425_v42, %v7064_v5 }
 0x44e   : > { %9870 = vst [vmem:[#allocation117_spill] sm:$0xff] %v7066_v37  ;;  %v9871_v15 = vld [vmem:[#allocation118_spill] sm:$0xff]  ;;  %v2479_v52 = vadd.f32 %v9876_v62, %v2461_v22  ;;  %9877 = vst [vmem:[#allocation113_spill] sm:$0xff] %v7083_v29  ;;  %v7096_v11 = vmul.f32 %v6435_v60, %v7066_v37  ;;  %v7111_v62 = vld [vmem:[#allocation3 + $0x140] sm:$0xff] }
 0x44f   : > { %v2792_v24 = vadd.f32 %v9871_v15, %v2774_v46  ;;  %v7072_v0 = vld [vmem:[#allocation3 + $0x155] sm:$0xff]  ;;  %9875 = vst [vmem:[#allocation118_spill] sm:$0xff] %v7078_v63  ;;  %v7087_v46 = vmul.f32 %v6415_v57, %v7057_v34  ;;  %v3155_v55 = vadd.f32 %v6743_v10, %v3137_v6  ;;  %9879 = vst [vmem:[#allocation185_spill] sm:$0xff] %v7092_v51  ;;  %v7113_v51 = vld [vmem:[#allocation3 + $0x141] sm:$0xff] }
 0x450   : > { %9873 = vst [vmem:[#allocation112_spill] sm:$0xff] %v7072_v0  ;;  %v7074_v49 = vld [vmem:[#allocation3 + $0x156] sm:$0xff]  ;;  %9880 = vst [vmem:[#allocation186_spill] sm:$0xff] %v7096_v11  ;;  %v2513_v36 = vadd.f32 %v2505_v21, %v2479_v52  ;;  %v7100_v22 = vmul.f32 %v6467_v45, %v7072_v0  ;;  %v7108_v10 = vmul.f32 %v6526_v41, %v7050_v35  ;;  %v7115_v21 = vld [vmem:[#allocation3 + $0x142] sm:$0xff] }
 0x451   : > { %9874 = vst [vmem:[#allocation107_spill] sm:$0xff] %v7074_v49  ;;  %9878 = vst [vmem:[#allocation184_spill] sm:$0xff] %v7087_v46  ;;  %v2826_v28 = vadd.f32 %v2818_v13, %v2792_v24  ;;  %v7104_v15 = vmul.f32 %v6506_v53, %v7074_v49  ;;  %v9884_v13 = vld [vmem:[#allocation119_spill] sm:$0xff]  ;;  %v3189_v6 = vadd.f32 %v3181_v3, %v3155_v55  ;;  %v7130_v3 = vld [vmem:[#allocation3 + $0x145] sm:$0xff] }
 0x452   : > { %9881 = vst [vmem:[#allocation187_spill] sm:$0xff] %v7100_v22  ;;  %9883 = vst [vmem:[#allocation189_spill] sm:$0xff] %v7108_v10  ;;  %v7119_v52 = vmul.f32 %v6529_v47, %v7055_v56  ;;  %v9890_v22 = vld [vmem:[#allocation109_spill] sm:$0xff]  ;;  %v7134_v55 = vmul.f32 %v6535_v33, %v7064_v5  ;;  %v7149_v29 = vmul.f32 %v6554_v4, %v7074_v49  ;;  %v9901_v63 = vld [vmem:[#allocation114_spill] sm:$0xff] }
 0x453   : > { %9882 = vst [vmem:[#allocation188_spill] sm:$0xff] %v7104_v15  ;;  %v2844_v24 = vadd.f32 %v9884_v13, %v2826_v28  ;;  %9885 = vst [vmem:[#allocation119_spill] sm:$0xff] %v7111_v62  ;;  %v7123_v15 = vmul.f32 %v6532_v31, %v7057_v34  ;;  %v2166_v11 = vadd.f32 %v9890_v22, %v2148_v12  ;;  %v7126_v10 = vld [vmem:[#allocation3 + $0x143] sm:$0xff]  ;;  %v9965_v56 = vld [vmem:[#allocation79_spill] sm:$0xff] }
 0x454   : > { %9886 = vst [vmem:[#allocation190_spill] sm:$0xff] %v7113_v51  ;;  %9887 = vst [vmem:[#allocation191_spill] sm:$0xff] %v7115_v21  ;;  %v7128_v28 = vld [vmem:[#allocation3 + $0x144] sm:$0xff]  ;;  %v7138_v13 = vmul.f32 %v6542_v2, %v7066_v37  ;;  %v2531_v34 = vadd.f32 %v9901_v63, %v2513_v36  ;;  %v7178_v36 = vmul.f32 %v6377_v23, %v7130_v3  ;;  %v9973_v37 = vld [vmem:[#allocation87_spill] sm:$0xff] }
 0x455   : > { %9888 = vst [vmem:[#allocation192_spill] sm:$0xff] %v7119_v52  ;;  %9889 = vst [vmem:[#allocation193_spill] sm:$0xff] %v7123_v15  ;;  %v7142_v52 = vmul.f32 %v6545_v7, %v7072_v0  ;;  %v2878_v15 = vadd.f32 %v2870_v54, %v2844_v24  ;;  %v9897_v12 = vld [vmem:[#allocation124_spill] sm:$0xff]  ;;  %v7162_v54 = vmul.f32 %v6345_v40, %v7113_v51  ;;  %v9968_v49 = vld [vmem:[#allocation81_spill] sm:$0xff] }
 0x456   : > { %9891 = vst [vmem:[#allocation109_spill] sm:$0xff] %v7126_v10  ;;  %9892 = vst [vmem:[#allocation194_spill] sm:$0xff] %v7128_v28  ;;  %v3207_v22 = vadd.f32 %v9897_v12, %v3189_v6  ;;  %v7145_v46 = vld [vmem:[#allocation3 + $0x146] sm:$0xff]  ;;  %v7166_v24 = vmul.f32 %v6353_v17, %v7115_v21  ;;  %v7170_v12 = vmul.f32 %v6361_v14, %v7126_v10  ;;  %v9970_v0 = vld [vmem:[#allocation82_spill] sm:$0xff] }
 0x457   : > { %9893 = vst [vmem:[#allocation195_spill] sm:$0xff] %v7130_v3  ;;  %9894 = vst [vmem:[#allocation196_spill] sm:$0xff] %v7134_v55  ;;  %v7153_v55 = vmul.f32 %v9830_v58, %v7050_v35  ;;  %v7174_v63 = vmul.f32 %v6369_v59, %v7128_v28  ;;  %v7184_v17 = vmul.f32 %v6385_v50, %v7145_v46  ;;  %v9932_v50 = vld [vmem:[#allocation42_spill] sm:$0xff]  ;;  %v9939_v14 = vld [vmem:[#allocation48_spill] sm:$0xff] }
 0x458   : > { %9895 = vst [vmem:[#allocation197_spill] sm:$0xff] %v7138_v13  ;;  %9896 = vst [vmem:[#allocation198_spill] sm:$0xff] %v7142_v52  ;;  %v7158_v13 = vmul.f32 %v6336_v30, %v7111_v62  ;;  %v3241_v6 = vadd.f32 %v3233_v26, %v3207_v22  ;;  %v9908_v52 = vld [vmem:[#allocation120_spill] sm:$0xff]  ;;  %v7188_v26 = vmul.f32 %v6395_v38, %v7111_v62  ;;  %v1863_v38 = vld [vmem:[#allocation3 + $0x50] sm:$0xff] }
 0x459   : > { %9898 = vst [vmem:[#allocation124_spill] sm:$0xff] %v7145_v46  ;;  %9899 = vst [vmem:[#allocation199_spill] sm:$0xff] %v7149_v29  ;;  %v2200_v29 = vadd.f32 %v7038_v32, %v2166_v11  ;;  %v7192_v22 = vmul.f32 %v6405_v19, %v7113_v51  ;;  %v7196_v23 = vmul.f32 %v6415_v57, %v7115_v21  ;;  %v9943_v30 = vld [vmem:[#allocation52_spill] sm:$0xff] }
 0x45a   : > { %9900 = vst [vmem:[#allocation200_spill] sm:$0xff] %v7153_v55  ;;  %9902 = vst [vmem:[#allocation114_spill] sm:$0xff] %v7158_v13  ;;  %v2896_v55 = vadd.f32 %v9908_v52, %v2878_v15  ;;  %v7200_v32 = vmul.f32 %v6425_v42, %v7126_v10  ;;  %v7204_v11 = vmul.f32 %v6435_v60, %v7128_v28  ;;  %v9915_v52 = vld [vmem:[#allocation125_spill] sm:$0xff]  ;;  %v1968_v42 = vld [vmem:[#allocation3 + $0x52] sm:$0xff] }
 0x45b   : > { %9903 = vst [vmem:[#allocation201_spill] sm:$0xff] %v7162_v54  ;;  %9904 = vst [vmem:[#allocation202_spill] sm:$0xff] %v7166_v24  ;;  %v2565_v15 = vadd.f32 %v7046_v44, %v2531_v34  ;;  %v7218_v60 = vmul.f32 %v6526_v41, %v7111_v62  ;;  %v7222_v44 = vmul.f32 %v6529_v47, %v7113_v51  ;;  %v9941_v24 = vld [vmem:[#allocation50_spill] sm:$0xff]  ;;  %v2019_v51 = vld [vmem:[#allocation3 + $0x43] sm:$0xff] }
 0x45c   : > { %9905 = vst [vmem:[#allocation203_spill] sm:$0xff] %v7170_v12  ;;  %9906 = vst [vmem:[#allocation204_spill] sm:$0xff] %v7174_v63  ;;  %v7226_v34 = vmul.f32 %v6532_v31, %v7115_v21  ;;  %v9937_v63 = vld [vmem:[#allocation46_spill] sm:$0xff]  ;;  %v1967_v21 = vld [vmem:[#allocation3 + $0x42] sm:$0xff]  ;;  %v7330_v35 = vmul.f32 %v9965_v56, %v1968_v42  ;;  %v7345_v5 = vmul.f32 %v9973_v37, %v1863_v38 }
 0x45d   : > { %9907 = vst [vmem:[#allocation205_spill] sm:$0xff] %v7178_v36  ;;  %9909 = vst [vmem:[#allocation120_spill] sm:$0xff] %v7184_v17  ;;  %v1916_v17 = vld [vmem:[#allocation3 + $0x51] sm:$0xff]  ;;  %v7285_v59 = vmul.f32 %v9937_v63, %v1968_v42 }
 0x45e   : > { %9910 = vst [vmem:[#allocation206_spill] sm:$0xff] %v7188_v26  ;;  %9911 = vst [vmem:[#allocation207_spill] sm:$0xff] %v7192_v22  ;;  %v3259_v26 = vadd.f32 %v9915_v52, %v3241_v6  ;;  %v7210_v22 = vmul.f32 %v6467_v45, %v7130_v3  ;;  %v7230_v6 = vmul.f32 %v6535_v33, %v7126_v10  ;;  %v9922_v52 = vld [vmem:[#allocation110_spill] sm:$0xff]  ;;  %v2175_v10 = vld [vmem:[#allocation3 + $0x46] sm:$0xff] }
 0x45f   : > { %9912 = vst [vmem:[#allocation208_spill] sm:$0xff] %v7196_v23  ;;  %9913 = vst [vmem:[#allocation209_spill] sm:$0xff] %v7200_v32  ;;  %v7214_v23 = vmul.f32 %v6506_v53, %v7145_v46  ;;  %v2020_v32 = vld [vmem:[#allocation3 + $0x53] sm:$0xff]  ;;  %v7233_v53 = vadd.f32 %v9922_v52, %v2200_v29  ;;  %v7250_v29 = vmul.f32 %v9830_v58, %v7111_v62 }
 0x460   : > { %9914 = vst [vmem:[#allocation210_spill] sm:$0xff] %v7204_v11  ;;  %9916 = vst [vmem:[#allocation125_spill] sm:$0xff] %v7210_v22  ;;  %v2072_v45 = vld [vmem:[#allocation3 + $0x54] sm:$0xff]  ;;  %v7238_v11 = vmul.f32 %v6542_v2, %v7128_v28  ;;  %v7264_v57 = vmul.f32 %v9832_v1, %v2020_v32  ;;  %v7288_v12 = vmul.f32 %v9939_v14, %v2020_v32  ;;  %v2071_v28 = vld [vmem:[#allocation3 + $0x44] sm:$0xff] }
 0x461   : > { %9917 = vst [vmem:[#allocation211_spill] sm:$0xff] %v7214_v23  ;;  %9918 = vst [vmem:[#allocation212_spill] sm:$0xff] %v7218_v60  ;;  %v2930_v23 = vadd.f32 %v7060_v61, %v2896_v55  ;;  %v2124_v22 = vld [vmem:[#allocation3 + $0x55] sm:$0xff]  ;;  %v1882_v61 = vmul.f32 %v6225_v20, %v1863_v38  ;;  %v7254_v55 = vmul.f32 %v6231_v8, %v1916_v17 }
 0x462   : > { %9919 = vst [vmem:[#allocation213_spill] sm:$0xff] %v7222_v44  ;;  %9920 = vst [vmem:[#allocation214_spill] sm:$0xff] %v7226_v34  ;;  %v2176_v60 = vld [vmem:[#allocation3 + $0x56] sm:$0xff]  ;;  %v7242_v44 = vmul.f32 %v6545_v7, %v7130_v3  ;;  %v7246_v34 = vmul.f32 %v6554_v4, %v7145_v46  ;;  %v7291_v40 = vmul.f32 %v9941_v24, %v2072_v45 }
 0x463   : > { %9921 = vst [vmem:[#allocation215_spill] sm:$0xff] %v7230_v6  ;;  %9923 = vst [vmem:[#allocation110_spill] sm:$0xff] %v7238_v11  ;;  %v9927_v52 = vld [vmem:[#allocation115_spill] sm:$0xff]  ;;  %v3293_v11 = vadd.f32 %v7070_v18, %v3259_v26  ;;  %v7273_v19 = vmul.f32 %v9852_v27, %v2176_v60  ;;  %v9935_v26 = vld [vmem:[#allocation44_spill] sm:$0xff]  ;;  %v7294_v54 = vmul.f32 %v9943_v30, %v2124_v22 }
 0x464   : > { %9924 = vst [vmem:[#allocation216_spill] sm:$0xff] %v7242_v44  ;;  %9925 = vst [vmem:[#allocation217_spill] sm:$0xff] %v7246_v34  ;;  %v7257_v6 = vadd.f32 %v9927_v52, %v2565_v15  ;;  %v7261_v44 = vmul.f32 %v6247_v16, %v1968_v42  ;;  %v7267_v34 = vmul.f32 %v9845_v43, %v2072_v45  ;;  %v9934_v52 = vld [vmem:[#allocation121_spill] sm:$0xff]  ;;  %v9945_v13 = vld [vmem:[#allocation54_spill] sm:$0xff] }
 0x465   : > { %9926 = vst [vmem:[#allocation218_spill] sm:$0xff] %v7250_v29  ;;  %9928 = vst [vmem:[#allocation115_spill] sm:$0xff] %v7264_v57  ;;  %v7270_v29 = vmul.f32 %v9846_v9, %v2124_v22  ;;  %v7276_v15 = vmul.f32 %v9932_v50, %v1863_v38  ;;  %v7279_v18 = vadd.f32 %v9934_v52, %v2930_v23  ;;  %v9947_v23 = vld [vmem:[#allocation56_spill] sm:$0xff]  ;;  %v9963_v62 = vld [vmem:[#allocation78_spill] sm:$0xff] }
 0x466   : > { %9929 = vst [vmem:[#allocation219_spill] sm:$0xff] %v7267_v34  ;;  %9931 = vst [vmem:[#allocation221_spill] sm:$0xff] %v7273_v19  ;;  %v7282_v36 = vmul.f32 %v9935_v26, %v1916_v17  ;;  %v7300_v52 = vmul.f32 %v9947_v23, %v1863_v38  ;;  %v9949_v19 = vld [vmem:[#allocation126_spill] sm:$0xff]  ;;  %v9975_v57 = vld [vmem:[#allocation88_spill] sm:$0xff] }
 0x467   : > { %9930 = vst [vmem:[#allocation220_spill] sm:$0xff] %v7270_v29  ;;  %9933 = vst [vmem:[#allocation42_spill] sm:$0xff] %v7276_v15  ;;  %v7297_v15 = vmul.f32 %v9945_v13, %v2176_v60  ;;  %v1862_v29 = vld [vmem:[#allocation3 + $0x40] sm:$0xff]  ;;  %v7441_v58 = vld [vmem:[#allocation3 + $0x76] sm:$0xff] }
 0x468   : > { %9936 = vst [vmem:[#allocation121_spill] sm:$0xff] %v7282_v36  ;;  %9938 = vst [vmem:[#allocation222_spill] sm:$0xff] %v7285_v59  ;;  %v7303_v36 = vadd.f32 %v9949_v19, %v3293_v11  ;;  %v9950_v59 = vld [vmem:[#allocation58_spill] sm:$0xff]  ;;  %v7321_v19 = vmul.f32 %v9866_v48, %v2176_v60  ;;  %v9961_v11 = vld [vmem:[#allocation77_spill] sm:$0xff] }
 0x469   : > { %9940 = vst [vmem:[#allocation223_spill] sm:$0xff] %v7288_v12  ;;  %9942 = vst [vmem:[#allocation224_spill] sm:$0xff] %v7291_v40  ;;  %v7306_v4 = vmul.f32 %v9950_v59, %v1916_v17  ;;  %v9952_v12 = vld [vmem:[#allocation60_spill] sm:$0xff]  ;;  %v9954_v40 = vld [vmem:[#allocation62_spill] sm:$0xff] }
 0x46a   : > { %9944 = vst [vmem:[#allocation225_spill] sm:$0xff] %v7294_v54  ;;  %9946 = vst [vmem:[#allocation226_spill] sm:$0xff] %v7297_v15  ;;  %v7309_v7 = vmul.f32 %v9952_v12, %v1968_v42  ;;  %v7312_v34 = vmul.f32 %v9954_v40, %v2020_v32  ;;  %v1915_v54 = vld [vmem:[#allocation3 + $0x41] sm:$0xff]  ;;  %v1881_v42 = vmul.f32 %v6225_v20, %v1862_v29  ;;  %v7432_v20 = vld [vmem:[#allocation3 + $0x74] sm:$0xff] }
 0x46b   : > { %9948 = vst [vmem:[#allocation227_spill] sm:$0xff] %v7300_v52  ;;  %9951 = vst [vmem:[#allocation126_spill] sm:$0xff] %v7306_v4  ;;  %v9956_v15 = vld [vmem:[#allocation64_spill] sm:$0xff]  ;;  %v9958_v52 = vld [vmem:[#allocation66_spill] sm:$0xff]  ;;  %v7324_v4 = vmul.f32 %v9961_v11, %v1863_v38 }
 0x46c   : > { %9953 = vst [vmem:[#allocation228_spill] sm:$0xff] %v7309_v7  ;;  %9955 = vst [vmem:[#allocation229_spill] sm:$0xff] %v7312_v34  ;;  %v7315_v46 = vmul.f32 %v9956_v15, %v2072_v45  ;;  %v7318_v3 = vmul.f32 %v9958_v52, %v2124_v22  ;;  %v2123_v7 = vld [vmem:[#allocation3 + $0x45] sm:$0xff]  ;;  %v7327_v34 = vmul.f32 %v9963_v62, %v1916_v17 }
 0x46d   : > { %9960 = vst [vmem:[#allocation232_spill] sm:$0xff] %v7321_v19  ;;  %9962 = vst [vmem:[#allocation233_spill] sm:$0xff] %v7324_v4  ;;  %v7339_v19 = vmul.f32 %v9970_v0, %v2124_v22  ;;  %v7342_v4 = vmul.f32 %v9872_v25, %v2176_v60  ;;  %v7359_v22 = vmul.f32 %v9832_v1, %v2019_v51  ;;  %v7412_v1 = vld [vmem:[#allocation3 + $0x70] sm:$0xff] }
 0x46e   : > { %9957 = vst [vmem:[#allocation230_spill] sm:$0xff] %v7315_v46  ;;  %9959 = vst [vmem:[#allocation231_spill] sm:$0xff] %v7318_v3  ;;  %v7333_v46 = vmul.f32 %v9863_v39, %v2020_v32  ;;  %v7336_v3 = vmul.f32 %v9968_v49, %v2072_v45  ;;  %v7356_v45 = vmul.f32 %v6247_v16, %v1967_v21  ;;  %v7414_v16 = vld [vmem:[#allocation3 + $0x71] sm:$0xff] }
 0x46f   : > { %9964 = vst [vmem:[#allocation234_spill] sm:$0xff] %v7327_v34  ;;  %9966 = vst [vmem:[#allocation235_spill] sm:$0xff] %v7330_v35  ;;  %v7348_v34 = vmul.f32 %v9975_v57, %v1916_v17  ;;  %v9977_v35 = vld [vmem:[#allocation128_spill] sm:$0xff]  ;;  %v7362_v60 = vmul.f32 %v9845_v43, %v2071_v28  ;;  %v7365_v38 = vmul.f32 %v9846_v9, %v2123_v7 }
 0x470   : > { %9967 = vst [vmem:[#allocation236_spill] sm:$0xff] %v7333_v46  ;;  %9969 = vst [vmem:[#allocation237_spill] sm:$0xff] %v7336_v3  ;;  %v1908_v32 = vadd.f32 %v9977_v35, %v1882_v61  ;;  %v7353_v46 = vmul.f32 %v6231_v8, %v1915_v54  ;;  %v7368_v17 = vmul.f32 %v9852_v27, %v2175_v10 }
 0x471   : > { %9971 = vst [vmem:[#allocation238_spill] sm:$0xff] %v7339_v19  ;;  %9972 = vst [vmem:[#allocation239_spill] sm:$0xff] %v7342_v4  ;;  %v2246_v35 = vmul.f32 %v9932_v50, %v1862_v29  ;;  %v7372_v61 = vmul.f32 %v9935_v26, %v1915_v54  ;;  %v7381_v4 = vmul.f32 %v9941_v24, %v2071_v28 }
 0x472   : > { %9974 = vst [vmem:[#allocation240_spill] sm:$0xff] %v7345_v5  ;;  %9976 = vst [vmem:[#allocation241_spill] sm:$0xff] %v7348_v34  ;;  %v7375_v34 = vmul.f32 %v9937_v63, %v1967_v21  ;;  %v7378_v5 = vmul.f32 %v9939_v14, %v2019_v51  ;;  %v7384_v19 = vmul.f32 %v9943_v30, %v2123_v7 }
 0x473   : > { %9978 = vst [vmem:[#allocation128_spill] sm:$0xff] %v7359_v22  ;;  %9979 = vst [vmem:[#allocation242_spill] sm:$0xff] %v7362_v60  ;;  %v7387_v3 = vmul.f32 %v9945_v13, %v2175_v10  ;;  %v2611_v27 = vmul.f32 %v9947_v23, %v1862_v29  ;;  %v7391_v9 = vmul.f32 %v9950_v59, %v1915_v54  ;;  %v7430_v22 = vld [vmem:[#allocation3 + $0x73] sm:$0xff] }
 0x474   : > { %9980 = vst [vmem:[#allocation243_spill] sm:$0xff] %v7365_v38  ;;  %9981 = vst [vmem:[#allocation244_spill] sm:$0xff] %v7368_v17  ;;  %v7394_v17 = vmul.f32 %v9952_v12, %v1967_v21  ;;  %v7397_v38 = vmul.f32 %v9954_v40, %v2019_v51  ;;  %v2974_v60 = vmul.f32 %v9961_v11, %v1862_v29 }
 0x475   : > { %9982 = vst [vmem:[#allocation245_spill] sm:$0xff] %v7375_v34  ;;  %9983 = vst [vmem:[#allocation246_spill] sm:$0xff] %v7378_v5  ;;  %v7400_v5 = vmul.f32 %v9956_v15, %v2071_v28  ;;  %v7410_v43 = vmul.f32 %v9963_v62, %v1915_v54  ;;  %v7422_v8 = vmul.f32 %v9863_v39, %v2019_v51 }
 0x476   : > { %9984 = vst [vmem:[#allocation247_spill] sm:$0xff] %v7381_v4  ;;  %9985 = vst [vmem:[#allocation248_spill] sm:$0xff] %v7384_v19  ;;  %v1825_v4 = vpop.xlane.xlu1 %1824  ;;  %v7403_v19 = vmul.f32 %v9958_v52, %v2123_v7  ;;  %v7437_v34 = vmul.f32 %v9872_v25, %v2175_v10  ;;  %v3391_v51 = vmul.f32 %v9975_v57, %v1915_v54  ;;  %v7499_v57 = vld [vmem:[#allocation3 + $0x65] sm:$0xff] }
 0x477   : > { %9986 = vst [vmem:[#allocation249_spill] sm:$0xff] %v7387_v3  ;;  %9987 = vst [vmem:[#allocation250_spill] sm:$0xff] %v7394_v17  ;;  %v7406_v3 = vmul.f32 %v9866_v48, %v2175_v10  ;;  %v7434_v17 = vld [vmem:[#allocation3 + $0x75] sm:$0xff]  ;;  %v1942_v2 = vadd.f32 %v7254_v55, %v1908_v32  ;;  %v2254_v33 = vadd.f32 %v2246_v35, %v7233_v53  ;;  %v7476_v55 = vld [vmem:[#allocation3 + $0x60] sm:$0xff] }
 0x478   : > { %9988 = vst [vmem:[#allocation251_spill] sm:$0xff] %v7397_v38  ;;  %9989 = vst [vmem:[#allocation252_spill] sm:$0xff] %v7400_v5  ;;  %v7416_v38 = vld [vmem:[#allocation3 + $0x72] sm:$0xff]  ;;  %v7419_v5 = vmul.f32 %v9965_v56, %v1967_v21  ;;  %v7451_v10 = vmul.f32 %v9947_v23, %v7412_v1  ;;  %v7465_v54 = vmul.f32 %v9954_v40, %v7430_v22  ;;  %v7480_v32 = vld [vmem:[#allocation3 + $0x62] sm:$0xff] }
 0x479   : > { %9990 = vst [vmem:[#allocation253_spill] sm:$0xff] %v7403_v19  ;;  %9991 = vst [vmem:[#allocation254_spill] sm:$0xff] %v7406_v3  ;;  %v7425_v19 = vmul.f32 %v9968_v49, %v2071_v28  ;;  %v7428_v3 = vmul.f32 %v9970_v0, %v2123_v7  ;;  %v9998_v28 = vld [vmem:[#allocation89_spill] sm:$0xff]  ;;  %v9999_v7 = vld [vmem:[#allocation127_spill] sm:$0xff]  ;;  %v7469_v53 = vmul.f32 %v9956_v15, %v7432_v20 }
 0x47a   : > { %9992 = vst [vmem:[#allocation255_spill] sm:$0xff] %v7419_v5  ;;  %9993 = vst [vmem:[#allocation256_spill] sm:$0xff] %v7422_v8  ;;  %v3339_v5 = vmul.f32 %v9973_v37, %v1862_v29  ;;  %v1837_v8 = vmul.f32 0.03125, %v1825_v4  ;;  %v2619_v29 = vadd.f32 %v2611_v27, %v7257_v6  ;;  %v7456_v4 = vmul.f32 %v9950_v59, %v7414_v16 }
 0x47b   : > { %9994 = vst [vmem:[#allocation257_spill] sm:$0xff] %v7425_v19  ;;  %9995 = vst [vmem:[#allocation258_spill] sm:$0xff] %v7428_v3  ;;  %v7444_v19 = vmul.f32 %v9998_v28, %v1967_v21  ;;  %v1907_v3 = vadd.f32 %v9999_v7, %v1881_v42  ;;  %v7460_v21 = vmul.f32 %v9952_v12, %v7416_v38  ;;  %v7478_v42 = vld [vmem:[#allocation3 + $0x61] sm:$0xff] }
 0x47c   : > { %9996 = vst [vmem:[#allocation259_spill] sm:$0xff] %v7430_v22  ;;  %9997 = vst [vmem:[#allocation260_spill] sm:$0xff] %v7437_v34  ;;  %v7473_v27 = vmul.f32 %v9958_v52, %v7434_v17  ;;  %v3347_v6 = vadd.f32 %v3339_v5, %v7303_v36  ;;  %v7488_v35 = vmul.f32 %v9961_v11, %v7412_v1  ;;  %v7495_v5 = vld [vmem:[#allocation3 + $0x63] sm:$0xff] }
 0x47d   : > { %10000 = vst [vmem:[#allocation127_spill] sm:$0xff] %v7451_v10  ;;  %10001 = vst [vmem:[#allocation261_spill] sm:$0xff] %v7456_v4  ;;  %v2982_v7 = vadd.f32 %v2974_v60, %v7279_v18  ;;  %v7493_v28 = vmul.f32 %v9963_v62, %v7414_v16  ;;  %v7497_v36 = vld [vmem:[#allocation3 + $0x64] sm:$0xff]  ;;  %v7503_v34 = vmul.f32 %v9965_v56, %v7416_v38  ;;  %v10017_v4 = vld [vmem:[#allocation183_spill] sm:$0xff] }
 0x47e   : > { %10002 = vst [vmem:[#allocation262_spill] sm:$0xff] %v7460_v21  ;;  %1855 = vst.msk [vmem:[#allocation3 + $0x163] sm:$0xff] %vm995_vm7, %v1837_v8  ;;  %v7484_v8 = vmul.f32 %v9866_v48, %v7441_v58  ;;  %v7511_v18 = vmul.f32 %v9968_v49, %v7432_v20  ;;  %v7515_v60 = vmul.f32 %v9970_v0, %v7434_v17 }
 0x47f   : > { %10003 = vst [vmem:[#allocation263_spill] sm:$0xff] %v7465_v54  ;;  %10004 = vst [vmem:[#allocation264_spill] sm:$0xff] %v7469_v53  ;;  %v1828_v53 = vpop.xlane.xlu1 %1827  ;;  %v7527_v54 = vld [vmem:[#allocation3 + $0x66] sm:$0xff]  ;;  %v3365_v10 = vadd.f32 %v10017_v4, %v3347_v6 }
 0x480   : > { %10005 = vst [vmem:[#allocation265_spill] sm:$0xff] %v7473_v27  ;;  %10006 = vst [vmem:[#allocation266_spill] sm:$0xff] %v7484_v8  ;;  %v7507_v8 = vmul.f32 %v9863_v39, %v7430_v22  ;;  %v10015_v27 = vld [vmem:[#allocation130_spill] sm:$0xff] }
 0x481   : > { %10007 = vst [vmem:[#allocation267_spill] sm:$0xff] %v7488_v35  ;;  %10008 = vst [vmem:[#allocation268_spill] sm:$0xff] %v7493_v28  ;;  %v7519_v28 = vmul.f32 %v9872_v25, %v7441_v58  ;;  %v7523_v35 = vmul.f32 %v9973_v37, %v7412_v1  ;;  %v3399_v6 = vadd.f32 %v3391_v51, %v3365_v10 }
 0x482   : > { %10009 = vst [vmem:[#allocation269_spill] sm:$0xff] %v7503_v34  ;;  %10010 = vst [vmem:[#allocation270_spill] sm:$0xff] %v7507_v8  ;;  %v1941_v34 = vadd.f32 %v7353_v46, %v1907_v3  ;;  %v1960_v8 = vadd.f32 %v10015_v27, %v1942_v2  ;;  %v7541_v46 = vmul.f32 %v9937_v63, %v7480_v32  ;;  %v10021_v27 = vld [vmem:[#allocation155_spill] sm:$0xff] }
 0x483   : > { %10011 = vst [vmem:[#allocation271_spill] sm:$0xff] %v7511_v18  ;;  %10012 = vst [vmem:[#allocation272_spill] sm:$0xff] %v7515_v60  ;;  %v7531_v18 = vmul.f32 %v9932_v50, %v7476_v55  ;;  %v10016_v60 = vld [vmem:[#allocation141_spill] sm:$0xff]  ;;  %v7545_v2 = vmul.f32 %v9939_v14, %v7495_v5  ;;  %v7549_v3 = vmul.f32 %v9941_v24, %v7497_v36 }
 0x484   : > { %10013 = vst [vmem:[#allocation273_spill] sm:$0xff] %v7519_v28  ;;  %10014 = vst [vmem:[#allocation274_spill] sm:$0xff] %v7523_v35  ;;  %v2272_v21 = vadd.f32 %v10016_v60, %v2254_v33  ;;  %v7536_v28 = vmul.f32 %v9935_v26, %v7478_v42  ;;  %v7553_v33 = vmul.f32 %v9943_v30, %v7499_v57  ;;  %v10022_v35 = vld [vmem:[#allocation169_spill] sm:$0xff]  ;;  %v1838_v26 = vmul.f32 0.03125, %v1828_v53 }
 0x485   : > { %10018 = vst [vmem:[#allocation130_spill] sm:$0xff] %v7545_v2  ;;  %10019 = vst [vmem:[#allocation141_spill] sm:$0xff] %v7549_v3  ;;  %v2637_v60 = vadd.f32 %v10021_v27, %v2619_v29  ;;  %v3000_v4 = vadd.f32 %v10022_v35, %v2982_v7  ;;  %v7559_v63 = vmul.f32 %v9945_v13, %v7527_v54  ;;  %v7590_v35 = vld [vmem:[#allocation3 + $0x160] sm:$0xff] }
 0x486   : > { %10020 = vst [vmem:[#allocation183_spill] sm:$0xff] %v7553_v33  ;;  %v7563_v14 = vmul.f32 %v9947_v23, %v7476_v55  ;;  %v7567_v24 = vmul.f32 %v9950_v59, %v7478_v42  ;;  %v7571_v33 = vmul.f32 %v9952_v12, %v7480_v32  ;;  %v7575_v51 = vmul.f32 %v9954_v40, %v7495_v5  ;;  %v7613_v40 = vld [vmem:[#allocation3 + $0x162] sm:$0xff]  ;;  %v10054_v12 = vld [vmem:[#allocation143_spill] sm:$0xff] }
 0x487   : > { %10023 = vst [vmem:[#allocation155_spill] sm:$0xff] %v7559_v63  ;;  %v7579_v10 = vmul.f32 %v9956_v15, %v7497_v36  ;;  %v7583_v29 = vmul.f32 %v9958_v52, %v7499_v57  ;;  %v7587_v53 = vmul.f32 %v9866_v48, %v7527_v54  ;;  %1856 = vst.msk [vmem:[#allocation3 + $0x173] sm:$0xff] %vm995_vm7, %v1838_v26  ;;  %v10033_v15 = vld [vmem:[#allocation129_spill] sm:$0xff]  ;;  %v7604_v48 = vld [vmem:[#allocation3 + $0x161] sm:$0xff] }
 0x488   : > { %10024 = vst [vmem:[#allocation169_spill] sm:$0xff] %v7563_v14  ;;  %10025 = vst [vmem:[#allocation275_spill] sm:$0xff] %v7567_v24  ;;  %v7594_v7 = vmul.f32 %v9961_v11, %v7476_v55  ;;  %v7598_v27 = vmul.f32 %v9963_v62, %v7478_v42  ;;  %v1994_v52 = vadd.f32 %v7261_v44, %v1960_v8  ;;  %v7627_v8 = vld [vmem:[#allocation3 + $0x81] sm:$0xff]  ;;  %v10055_v24 = vld [vmem:[#allocation157_spill] sm:$0xff] }
 0x489   : > { %10026 = vst [vmem:[#allocation276_spill] sm:$0xff] %v7571_v33  ;;  %10027 = vst [vmem:[#allocation277_spill] sm:$0xff] %v7575_v51  ;;  %v7608_v26 = vmul.f32 %v9965_v56, %v7480_v32  ;;  %v3034_v51 = vadd.f32 %v7410_v43, %v3000_v4  ;;  %v7621_v44 = vmul.f32 %v9968_v49, %v7497_v36  ;;  %v7632_v43 = vld [vmem:[#allocation3 + $0x164] sm:$0xff]  ;;  %v10056_v14 = vld [vmem:[#allocation171_spill] sm:$0xff] }
 0x48a   : > { %10028 = vst [vmem:[#allocation278_spill] sm:$0xff] %v7579_v10  ;;  %10029 = vst [vmem:[#allocation279_spill] sm:$0xff] %v7583_v29  ;;  %v1959_v10 = vadd.f32 %v10033_v15, %v1941_v34  ;;  %v7602_v29 = vld [vmem:[#allocation3 + $0x80] sm:$0xff]  ;;  %v7617_v34 = vmul.f32 %v9863_v39, %v7495_v5  ;;  %v7625_v15 = vmul.f32 %v9970_v0, %v7499_v57  ;;  %v10057_v63 = vld [vmem:[#allocation73_spill] sm:$0xff] }
 0x48b   : > { %10030 = vst [vmem:[#allocation280_spill] sm:$0xff] %v7587_v53  ;;  %10031 = vst [vmem:[#allocation281_spill] sm:$0xff] %v7594_v7  ;;  %v2306_v53 = vadd.f32 %v7372_v61, %v2272_v21  ;;  %v2671_v7 = vadd.f32 %v7391_v9, %v2637_v60  ;;  %v10039_v61 = vld [vmem:[#allocation103_spill] sm:$0xff]  ;;  %v7630_v21 = vld [vmem:[#allocation3 + $0x163] sm:$0xff]  ;;  %v7636_v60 = vmul.f32 %v9872_v25, %v7527_v54 }
 0x48c   : > { %10032 = vst [vmem:[#allocation282_spill] sm:$0xff] %v7598_v27  ;;  %10034 = vst [vmem:[#allocation129_spill] sm:$0xff] %v7608_v26  ;;  %v3417_v9 = vadd.f32 %v10039_v61, %v3399_v6  ;;  %v7640_v4 = vmul.f32 %v9973_v37, %v7476_v55  ;;  %v7650_v6 = vmul.f32 %v9961_v11, %v7602_v29  ;;  %v7660_v26 = vld [vmem:[#allocation3 + $0x85] sm:$0xff]  ;;  %v10147_v2 = vld [vmem:[#allocation219_spill] sm:$0xff] }
 0x48d   : > { %10035 = vst [vmem:[#allocation283_spill] sm:$0xff] %v7613_v40  ;;  %10036 = vst [vmem:[#allocation284_spill] sm:$0xff] %v7617_v34  ;;  %v7654_v61 = vmul.f32 %v6529_v47, %v7604_v48  ;;  %v7656_v34 = vld [vmem:[#allocation3 + $0x83] sm:$0xff]  ;;  %v7667_v11 = vmul.f32 %v6532_v31, %v7613_v40  ;;  %v2689_v59 = vadd.f32 %v10055_v24, %v2671_v7  ;;  %v3486_v7 = vld [vmem:[#allocation3 + $0x133] sm:$0xff] }
 0x48e   : > { %10037 = vst [vmem:[#allocation285_spill] sm:$0xff] %v7621_v44  ;;  %10038 = vst [vmem:[#allocation286_spill] sm:$0xff] %v7625_v15  ;;  %v7644_v44 = vmul.f32 %v6526_v41, %v7590_v35  ;;  %v7646_v15 = vld [vmem:[#allocation3 + $0x82] sm:$0xff]  ;;  %v3451_v33 = vadd.f32 %v7444_v19, %v3417_v9  ;;  %v3052_v23 = vadd.f32 %v10056_v14, %v3034_v51  ;;  %v1831_v9 = vpop.xlane.xlu1 %1830 }
 0x48f   : > { %10040 = vst [vmem:[#allocation103_spill] sm:$0xff] %v7630_v21  ;;  %10041 = vst [vmem:[#allocation287_spill] sm:$0xff] %v7632_v43  ;;  %v10051_v27 = vld [vmem:[#allocation132_spill] sm:$0xff]  ;;  %v7676_v13 = vmul.f32 %v10057_v63, %v7630_v21  ;;  %v7692_v14 = vmul.f32 %v9965_v56, %v7646_v15  ;;  %v7696_v24 = vmul.f32 %v9863_v39, %v7656_v34  ;;  %v10071_v39 = vld [vmem:[#allocation115_spill] sm:$0xff] }
 0x490   : > { %10042 = vst [vmem:[#allocation288_spill] sm:$0xff] %v7636_v60  ;;  %10043 = vst [vmem:[#allocation289_spill] sm:$0xff] %v7640_v4  ;;  %v7658_v60 = vld [vmem:[#allocation3 + $0x84] sm:$0xff]  ;;  %v1993_v4 = vadd.f32 %v7356_v45, %v1959_v10 }
 0x491   : > { %10044 = vst [vmem:[#allocation290_spill] sm:$0xff] %v7644_v44  ;;  %10045 = vst [vmem:[#allocation291_spill] sm:$0xff] %v7646_v15  ;;  %v2012_v44 = vadd.f32 %v10051_v27, %v1994_v52  ;;  %v10059_v52 = vld [vmem:[#allocation74_spill] sm:$0xff]  ;;  %v10061_v19 = vld [vmem:[#allocation84_spill] sm:$0xff]  ;;  %v7688_v27 = vmul.f32 %v9963_v62, %v7627_v8  ;;  %v7700_v51 = vmul.f32 %v9968_v49, %v7658_v60 }
 0x492   : > { %10046 = vst [vmem:[#allocation292_spill] sm:$0xff] %v7650_v6  ;;  %10047 = vst [vmem:[#allocation293_spill] sm:$0xff] %v7654_v61  ;;  %v7669_v6 = vld [vmem:[#allocation3 + $0x86] sm:$0xff]  ;;  %v2324_v61 = vadd.f32 %v10054_v12, %v2306_v53  ;;  %v7680_v45 = vmul.f32 %v10059_v52, %v7632_v43  ;;  %v7684_v10 = vmul.f32 %v10061_v19, %v7590_v35  ;;  %v10074_v62 = vld [vmem:[#allocation255_spill] sm:$0xff] }
 0x493   : > { %10048 = vst [vmem:[#allocation294_spill] sm:$0xff] %v7656_v34  ;;  %10049 = vst [vmem:[#allocation295_spill] sm:$0xff] %v7658_v60  ;;  %v3485_v12 = vld [vmem:[#allocation3 + $0x123] sm:$0xff]  ;;  %v7704_v53 = vmul.f32 %v9970_v0, %v7660_v26  ;;  %v10073_v0 = vld [vmem:[#allocation250_spill] sm:$0xff] }
 0x494   : > { %10050 = vst [vmem:[#allocation296_spill] sm:$0xff] %v7660_v26  ;;  %10052 = vst [vmem:[#allocation132_spill] sm:$0xff] %v7667_v11  ;;  %v2046_v11 = vadd.f32 %v10071_v39, %v2012_v44  ;;  %v3537_v49 = vld [vmem:[#allocation3 + $0x124] sm:$0xff]  ;;  %v10075_v26 = vld [vmem:[#allocation90_spill] sm:$0xff] }
 0x495   : > { %10053 = vst [vmem:[#allocation297_spill] sm:$0xff] %v7669_v6  ;;  %10058 = vst [vmem:[#allocation143_spill] sm:$0xff] %v7676_v13  ;;  %v10070_v13 = vld [vmem:[#allocation131_spill] sm:$0xff]  ;;  %v10072_v56 = vld [vmem:[#allocation245_spill] sm:$0xff]  ;;  %v7720_v30 = vmul.f32 %v10075_v26, %v3485_v12 }
 0x496   : > { %10060 = vst [vmem:[#allocation157_spill] sm:$0xff] %v7680_v45  ;;  %10062 = vst [vmem:[#allocation171_spill] sm:$0xff] %v7684_v10  ;;  %v7708_v10 = vmul.f32 %v9872_v25, %v7669_v6  ;;  %v7712_v45 = vmul.f32 %v9973_v37, %v7602_v29  ;;  %v3590_v25 = vld [vmem:[#allocation3 + $0x135] sm:$0xff]  ;;  %v7722_v6 = vld [vmem:[#allocation3 + $0x165] sm:$0xff] }
 0x497   : > { %10063 = vst [vmem:[#allocation73_spill] sm:$0xff] %v7688_v27  ;;  %10064 = vst [vmem:[#allocation298_spill] sm:$0xff] %v7692_v14  ;;  %v2358_v14 = vadd.f32 %v10072_v56, %v2324_v61  ;;  %v3086_v27 = vadd.f32 %v10074_v62, %v3052_v23  ;;  %v7733_v56 = vmul.f32 %v10075_v26, %v7630_v21  ;;  %v1839_v62 = vmul.f32 0.03125, %v1831_v9  ;;  %v10082_v23 = vld [vmem:[#allocation91_spill] sm:$0xff]  ;;  %v10085_v61 = vld [vmem:[#allocation117_spill] sm:$0xff] }
 0x498   : > { %10065 = vst [vmem:[#allocation299_spill] sm:$0xff] %v7696_v24  ;;  %10066 = vst [vmem:[#allocation300_spill] sm:$0xff] %v7700_v51  ;;  %v2011_v24 = vadd.f32 %v10070_v13, %v1993_v4  ;;  %v3538_v51 = vld [vmem:[#allocation3 + $0x134] sm:$0xff]  ;;  %v7736_v44 = vmul.f32 %v10082_v23, %v3537_v49  ;;  %v7743_v12 = vmul.f32 %v10082_v23, %v10085_v61  ;;  %v10091_v49 = vld [vmem:[#allocation112_spill] sm:$0xff] }
 0x499   : > { %10067 = vst [vmem:[#allocation301_spill] sm:$0xff] %v7704_v53  ;;  %10068 = vst [vmem:[#allocation302_spill] sm:$0xff] %v7708_v10  ;;  %v2723_v53 = vadd.f32 %v10073_v0, %v2689_v59  ;;  %v3589_v10 = vld [vmem:[#allocation3 + $0x125] sm:$0xff]  ;;  %v10079_v13 = vld [vmem:[#allocation123_spill] sm:$0xff]  ;;  %v7739_v4 = vmul.f32 %v10082_v23, %v3538_v51 }
 0x49a   : > { %10069 = vst [vmem:[#allocation303_spill] sm:$0xff] %v7712_v45  ;;  %10076 = vst [vmem:[#allocation131_spill] sm:$0xff] %v7720_v30  ;;  %v7725_v45 = vmul.f32 %v10075_v26, %v3486_v7  ;;  %v7729_v39 = vmul.f32 %v10075_v26, %v10079_v13  ;;  %v3641_v59 = vld [vmem:[#allocation3 + $0x126] sm:$0xff]  ;;  %v3642_v0 = vld [vmem:[#allocation3 + $0x136] sm:$0xff]  ;;  %v7747_v7 = vmul.f32 %v10082_v23, %v7632_v43 }
 0x49b   : > { %10077 = vst [vmem:[#allocation115_spill] sm:$0xff] %v7722_v6  ;;  %10081 = vst [vmem:[#allocation255_spill] sm:$0xff] %v7733_v56  ;;  %v3695_v13 = vld [vmem:[#allocation3 + $0x130] sm:$0xff]  ;;  %v10146_v34 = vld [vmem:[#allocation31_spill] sm:$0xff] }
 0x49c   : > { %10078 = vst [vmem:[#allocation245_spill] sm:$0xff] %v7725_v45  ;;  %10080 = vst [vmem:[#allocation250_spill] sm:$0xff] %v7729_v39  ;;  %v10088_v39 = vld [vmem:[#allocation92_spill] sm:$0xff]  ;;  %v3747_v61 = vld [vmem:[#allocation3 + $0x131] sm:$0xff] }
 0x49d   : > { %10083 = vst [vmem:[#allocation90_spill] sm:$0xff] %v7736_v44  ;;  %10084 = vst [vmem:[#allocation123_spill] sm:$0xff] %v7739_v4  ;;  %v7750_v56 = vmul.f32 %v10088_v39, %v3589_v10  ;;  %v7753_v9 = vmul.f32 %v10088_v39, %v3590_v25  ;;  %v7757_v44 = vmul.f32 %v10088_v39, %v10091_v49  ;;  %v10099_v49 = vld [vmem:[#allocation122_spill] sm:$0xff]  ;;  %v10116_v30 = vld [vmem:[#allocation21_spill] sm:$0xff] }
 0x49e   : > { %10086 = vst [vmem:[#allocation91_spill] sm:$0xff] %v7743_v12  ;;  %10087 = vst [vmem:[#allocation117_spill] sm:$0xff] %v7747_v7  ;;  %v7761_v51 = vmul.f32 %v10088_v39, %v7722_v6  ;;  %v10094_v12 = vld [vmem:[#allocation93_spill] sm:$0xff]  ;;  %v10101_v4 = vld [vmem:[#allocation94_spill] sm:$0xff] }
 0x49f   : > { %10089 = vst [vmem:[#allocation304_spill] sm:$0xff] %v7750_v56  ;;  %10090 = vst [vmem:[#allocation305_spill] sm:$0xff] %v7753_v9  ;;  %v7765_v7 = vmul.f32 %v10094_v12, %v3641_v59  ;;  %v7768_v10 = vmul.f32 %v10094_v12, %v3642_v0  ;;  %v10097_v56 = vld [vmem:[#allocation107_spill] sm:$0xff]  ;;  %v3799_v9 = vld [vmem:[#allocation3 + $0x132] sm:$0xff]  ;;  %v7778_v45 = vmul.f32 %v10101_v4, %v3695_v13 }
 0x4a0   : > { %10092 = vst [vmem:[#allocation112_spill] sm:$0xff] %v7757_v44  ;;  %10093 = vst [vmem:[#allocation306_spill] sm:$0xff] %v7761_v51  ;;  %v7772_v25 = vmul.f32 %v10094_v12, %v10097_v56  ;;  %v7775_v44 = vadd.f32 %v10099_v49, %v3451_v33  ;;  %v10103_v51 = vld [vmem:[#allocation116_spill] sm:$0xff]  ;;  %v10105_v59 = vld [vmem:[#allocation22_spill] sm:$0xff]  ;;  %v7790_v56 = vmul.f32 %v10101_v4, %v7590_v35 }
 0x4a1   : > { %1857 = vst.msk [vmem:[#allocation3 + $0x183] sm:$0xff] %vm995_vm7, %v1839_v62  ;;  %10095 = vst [vmem:[#allocation307_spill] sm:$0xff] %v7765_v7  ;;  %v7782_v62 = vmul.f32 %v10101_v4, %v10103_v51  ;;  %v1883_v7 = vmul.f32 %v7476_v55, %v10105_v59  ;;  %v1884_v0 = vmul.f32 %v7412_v1, %v10105_v59  ;;  %v10109_v49 = vld [vmem:[#allocation111_spill] sm:$0xff]  ;;  %v7835_v43 = vld [vmem:[#allocation3 + $0x151] sm:$0xff] }
 0x4a2   : > { %10096 = vst [vmem:[#allocation308_spill] sm:$0xff] %v7768_v10  ;;  %10098 = vst [vmem:[#allocation107_spill] sm:$0xff] %v7772_v25  ;;  %v10107_v25 = vld [vmem:[#allocation95_spill] sm:$0xff]  ;;  %v10114_v10 = vld [vmem:[#allocation106_spill] sm:$0xff] }
 0x4a3   : > { %10100 = vst [vmem:[#allocation122_spill] sm:$0xff] %v7775_v44  ;;  %10102 = vst [vmem:[#allocation309_spill] sm:$0xff] %v7778_v45  ;;  %v7793_v33 = vmul.f32 %v10107_v25, %v3747_v61  ;;  %v7797_v13 = vmul.f32 %v10107_v25, %v10109_v49  ;;  %v10112_v45 = vld [vmem:[#allocation96_spill] sm:$0xff]  ;;  %v1902_v61 = vmul.f32 %v10103_v51, %v10116_v30 }
 0x4a4   : > { %10104 = vst [vmem:[#allocation116_spill] sm:$0xff] %v7782_v62  ;;  %10106 = vst [vmem:[#allocation22_spill] sm:$0xff] %v7790_v56  ;;  %v7801_v62 = vmul.f32 %v10107_v25, %v7604_v48  ;;  %v7804_v55 = vmul.f32 %v10112_v45, %v3799_v9  ;;  %v7808_v59 = vmul.f32 %v10112_v45, %v10114_v10  ;;  %v10117_v56 = vld [vmem:[#allocation119_spill] sm:$0xff]  ;;  %v10121_v9 = vld [vmem:[#allocation194_spill] sm:$0xff] }
 0x4a5   : > { %10108 = vst [vmem:[#allocation310_spill] sm:$0xff] %v7793_v33  ;;  %10110 = vst [vmem:[#allocation111_spill] sm:$0xff] %v7797_v13  ;;  %v1901_v44 = vmul.f32 %v10117_v56, %v10116_v30  ;;  %v7816_v49 = vmul.f32 %v10112_v45, %v7613_v40  ;;  %v10119_v13 = vld [vmem:[#allocation109_spill] sm:$0xff]  ;;  %v10123_v10 = vld [vmem:[#allocation195_spill] sm:$0xff]  ;;  %v2039_v40 = vmul.f32 %v7495_v5, %v10146_v34 }
 0x4a6   : > { %10111 = vst [vmem:[#allocation311_spill] sm:$0xff] %v7801_v62  ;;  %10113 = vst [vmem:[#allocation312_spill] sm:$0xff] %v7804_v55  ;;  %v7820_v33 = vmul.f32 %v10075_v26, %v10119_v13  ;;  %v7824_v55 = vmul.f32 %v10082_v23, %v10121_v9  ;;  %v10125_v62 = vld [vmem:[#allocation124_spill] sm:$0xff]  ;;  %v7839_v13 = vmul.f32 %v10101_v4, %v10117_v56  ;;  %v10129_v9 = vld [vmem:[#allocation190_spill] sm:$0xff] }
 0x4a7   : > { %10115 = vst [vmem:[#allocation106_spill] sm:$0xff] %v7808_v59  ;;  %10118 = vst [vmem:[#allocation21_spill] sm:$0xff] %v7816_v49  ;;  %v7828_v59 = vmul.f32 %v10088_v39, %v10123_v10  ;;  %v7832_v37 = vmul.f32 %v10094_v12, %v10125_v62  ;;  %v10127_v30 = vld [vmem:[#allocation128_spill] sm:$0xff]  ;;  %v1909_v6 = vadd.f32 %v1901_v44, %v1883_v7  ;;  %v10131_v10 = vld [vmem:[#allocation191_spill] sm:$0xff] }
 0x4a8   : > { %10120 = vst [vmem:[#allocation119_spill] sm:$0xff] %v7820_v33  ;;  %10122 = vst [vmem:[#allocation109_spill] sm:$0xff] %v7824_v55  ;;  %v2045_v51 = vadd.f32 %v10127_v30, %v2011_v24  ;;  %v1910_v49 = vadd.f32 %v1902_v61, %v1884_v0  ;;  %v7843_v55 = vmul.f32 %v10107_v25, %v10129_v9  ;;  %v10133_v62 = vld [vmem:[#allocation134_spill] sm:$0xff]  ;;  %v10134_v33 = vld [vmem:[#allocation145_spill] sm:$0xff] }
 0x4a9   : > { %10124 = vst [vmem:[#allocation194_spill] sm:$0xff] %v7828_v59  ;;  %10126 = vst [vmem:[#allocation195_spill] sm:$0xff] %v7832_v37  ;;  %v7847_v59 = vmul.f32 %v10112_v45, %v10131_v10  ;;  %v2064_v37 = vadd.f32 %v10133_v62, %v2046_v11  ;;  %v7851_v24 = vadd.f32 %v10134_v33, %v2358_v14  ;;  %v10135_v44 = vld [vmem:[#allocation159_spill] sm:$0xff]  ;;  %v7860_v30 = vld [vmem:[#allocation3 + $0x152] sm:$0xff] }
 0x4aa   : > { %10128 = vst [vmem:[#allocation124_spill] sm:$0xff] %v7839_v13  ;;  %10130 = vst [vmem:[#allocation128_spill] sm:$0xff] %v7843_v55  ;;  %v7854_v7 = vadd.f32 %v10135_v44, %v2723_v53  ;;  %v10137_v0 = vld [vmem:[#allocation23_spill] sm:$0xff]  ;;  %v10139_v55 = vld [vmem:[#allocation173_spill] sm:$0xff] }
 0x4ab   : > { %10132 = vst [vmem:[#allocation190_spill] sm:$0xff] %v7847_v59  ;;  %v1935_v56 = vmul.f32 %v7478_v42, %v10137_v0  ;;  %v1936_v61 = vmul.f32 %v7414_v16, %v10137_v0  ;;  %10138 = vst [vmem:[#allocation134_spill] sm:$0xff] %v7860_v30  ;;  %v7863_v13 = vadd.f32 %v10139_v55, %v3086_v27  ;;  %v10141_v59 = vld [vmem:[#allocation26_spill] sm:$0xff]  ;;  %v10142_v33 = vld [vmem:[#allocation24_spill] sm:$0xff] }
 0x4ac   : > { %10136 = vst [vmem:[#allocation191_spill] sm:$0xff] %v7854_v7  ;;  %v1953_v11 = vmul.f32 %v10129_v9, %v10141_v59  ;;  %v1954_v14 = vmul.f32 %v10141_v59, %v7835_v43  ;;  %v1987_v53 = vmul.f32 %v7480_v32, %v10142_v33  ;;  %v2029_v62 = vld [vmem:[#allocation3 + $0x143] sm:$0xff]  ;;  %v7871_v44 = vld [vmem:[#allocation3 + $0x153] sm:$0xff]  ;;  %v1988_v27 = vmul.f32 %v7416_v38, %v10142_v33 }
 0x4ad   : > { %10140 = vst [vmem:[#allocation145_spill] sm:$0xff] %v7863_v13  ;;  %10143 = vst [vmem:[#allocation159_spill] sm:$0xff] %v7871_v44  ;;  %v7873_v42 = vld [vmem:[#allocation3 + $0x180] sm:$0xff]  ;;  %v1943_v7 = vadd.f32 %v1935_v56, %v1909_v6  ;;  %v1944_v60 = vadd.f32 %v1936_v61, %v1910_v49  ;;  %v10144_v55 = vld [vmem:[#allocation133_spill] sm:$0xff]  ;;  %v2098_v6 = vadd.f32 %v10147_v2, %v2064_v37 }
 0x4ae   : > { %v7875_v0 = vld [vmem:[#allocation3 + $0x181] sm:$0xff]  ;;  %v2063_v9 = vadd.f32 %v10144_v55, %v2045_v51  ;;  %v2040_v51 = vmul.f32 %v7430_v22, %v10146_v34 }
 0x4af   : > { %v2081_v13 = vld [vmem:[#allocation3 + $0x144] sm:$0xff]  ;;  %v7904_v37 = vmul.f32 %v6529_v47, %v7875_v0  ;;  %v10152_v34 = vld [vmem:[#allocation35_spill] sm:$0xff]  ;;  %v1962_v22 = vadd.f32 %v1954_v14, %v1944_v60 }
 0x4b0   : > { %v7880_v3 = vld [vmem:[#allocation3 + $0x182] sm:$0xff] }
 0x4b1   : > { %v10145_v59 = vld [vmem:[#allocation28_spill] sm:$0xff]  ;;  %10151 = vst [vmem:[#allocation173_spill] sm:$0xff] %v7904_v37  ;;  %v1996_v60 = vadd.f32 %v1988_v27, %v1962_v22 }
 0x4b2   : > { %v2005_v32 = vmul.f32 %v10131_v10, %v10145_v59  ;;  %v2006_v21 = vmul.f32 %v10145_v59, %v7860_v30  ;;  %v7889_v49 = vld [vmem:[#allocation3 + $0x183] sm:$0xff]  ;;  %v7900_v59 = vmul.f32 %v6526_v41, %v7873_v42  ;;  %v10154_v30 = vld [vmem:[#allocation242_spill] sm:$0xff] }
 0x4b3   : > { %v3178_v56 = vld [vmem:[#allocation3 + $0x184] sm:$0xff]  ;;  %v2097_v41 = vadd.f32 %v10154_v30, %v2063_v9 }
 0x4b4   : > { %v10148_v61 = vld [vmem:[#allocation32_spill] sm:$0xff]  ;;  %v10149_v10 = vld [vmem:[#allocation33_spill] sm:$0xff]  ;;  %10150 = vst [vmem:[#allocation23_spill] sm:$0xff] %v7900_v59  ;;  %v7916_v59 = vmul.f32 %v10057_v63, %v7889_v49  ;;  %v7919_v37 = vmul.f32 %v10059_v52, %v3178_v56 }
 0x4b5   : > { %v2057_v33 = vmul.f32 %v10148_v61, %v2029_v62  ;;  %v2058_v55 = vmul.f32 %v10148_v61, %v7871_v44  ;;  %v2091_v15 = vmul.f32 %v7497_v36, %v10149_v10  ;;  %v3230_v5 = vld [vmem:[#allocation3 + $0x185] sm:$0xff]  ;;  %v2092_v2 = vmul.f32 %v7432_v20, %v10149_v10 }
 0x4b6   : > { %v2109_v62 = vmul.f32 %v10152_v34, %v2081_v13  ;;  %v7911_v61 = vmul.f32 %v6532_v31, %v7880_v3  ;;  %v3282_v44 = vld [vmem:[#allocation3 + $0x186] sm:$0xff]  ;;  %v1961_v36 = vadd.f32 %v1953_v11, %v1943_v7  ;;  %10155 = vst [vmem:[#allocation24_spill] sm:$0xff] %v7916_v59  ;;  %10156 = vst [vmem:[#allocation133_spill] sm:$0xff] %v7919_v37  ;;  %v10159_v31 = vld [vmem:[#allocation75_spill] sm:$0xff] }
 0x4b7   : > { %v7923_v10 = vmul.f32 %v10061_v19, %v7873_v42  ;;  %v10158_v13 = vld [vmem:[#allocation136_spill] sm:$0xff]  ;;  %v10161_v11 = vld [vmem:[#allocation135_spill] sm:$0xff]  ;;  %v10164_v59 = vld [vmem:[#allocation85_spill] sm:$0xff] }
 0x4b8   : > { %10153 = vst [vmem:[#allocation26_spill] sm:$0xff] %v7911_v61  ;;  %v2116_v47 = vadd.f32 %v10158_v13, %v2098_v6  ;;  %v7927_v61 = vmul.f32 %v10159_v31, %v3230_v5  ;;  %v1995_v7 = vadd.f32 %v1987_v53, %v1961_v36  ;;  %v2115_v30 = vadd.f32 %v10161_v11, %v2097_v41  ;;  %v10162_v14 = vld [vmem:[#allocation76_spill] sm:$0xff]  ;;  %v10166_v37 = vld [vmem:[#allocation86_spill] sm:$0xff]  ;;  %v10170_v41 = vld [vmem:[#allocation243_spill] sm:$0xff] }
 0x4b9   : > { %10157 = vst [vmem:[#allocation28_spill] sm:$0xff] %v7923_v10  ;;  %v7931_v9 = vmul.f32 %v10162_v14, %v3282_v44  ;;  %v7935_v52 = vmul.f32 %v10164_v59, %v7875_v0  ;;  %v7939_v19 = vmul.f32 %v10166_v37, %v7880_v3  ;;  %v10168_v10 = vld [vmem:[#allocation220_spill] sm:$0xff]  ;;  %v7944_v13 = vmul.f32 %v10075_v26, %v7889_v49 }
 0x4ba   : > { %10160 = vst [vmem:[#allocation31_spill] sm:$0xff] %v7927_v61  ;;  %v2150_v6 = vadd.f32 %v10168_v10, %v2116_v47  ;;  %v2013_v22 = vadd.f32 %v2005_v32, %v1995_v7  ;;  %v2014_v53 = vadd.f32 %v2006_v21, %v1996_v60  ;;  %v2149_v27 = vadd.f32 %v10170_v41, %v2115_v30  ;;  %v10174_v61 = vld [vmem:[#allocation138_spill] sm:$0xff]  ;;  %v10176_v21 = vld [vmem:[#allocation137_spill] sm:$0xff] }
 0x4bb   : > { %10163 = vst [vmem:[#allocation219_spill] sm:$0xff] %v7931_v9  ;;  %10165 = vst [vmem:[#allocation32_spill] sm:$0xff] %v7935_v52  ;;  %v7948_v36 = vmul.f32 %v10082_v23, %v3178_v56  ;;  %v7951_v11 = vmul.f32 %v10088_v39, %v3230_v5  ;;  %v7954_v9 = vmul.f32 %v10094_v12, %v3282_v44  ;;  %v10179_v41 = vld [vmem:[#allocation97_spill] sm:$0xff]  ;;  %v10395_v39 = vld [vmem:[#allocation82_spill] sm:$0xff] }
 0x4bc   : > { %10167 = vst [vmem:[#allocation33_spill] sm:$0xff] %v7939_v19  ;;  %10169 = vst [vmem:[#allocation35_spill] sm:$0xff] %v7944_v13  ;;  %v2168_v19 = vadd.f32 %v10174_v61, %v2150_v6  ;;  %v7959_v47 = vmul.f32 %v10101_v4, %v7873_v42  ;;  %v2047_v10 = vadd.f32 %v2039_v40, %v2013_v22  ;;  %v7974_v61 = vld [vmem:[#allocation3 + $0x154] sm:$0xff]  ;;  %v10181_v6 = vld [vmem:[#allocation221_spill] sm:$0xff] }
 0x4bd   : > { %10171 = vst [vmem:[#allocation242_spill] sm:$0xff] %v7948_v36  ;;  %10172 = vst [vmem:[#allocation136_spill] sm:$0xff] %v7951_v11  ;;  %v2048_v32 = vadd.f32 %v2040_v51, %v2014_v53  ;;  %v2167_v7 = vadd.f32 %v10176_v21, %v2149_v27  ;;  %v7964_v60 = vmul.f32 %v10107_v25, %v7875_v0  ;;  %v10182_v40 = vld [vmem:[#allocation98_spill] sm:$0xff]  ;;  %v10184_v27 = vld [vmem:[#allocation244_spill] sm:$0xff] }
 0x4be   : > { %10173 = vst [vmem:[#allocation75_spill] sm:$0xff] %v7954_v9  ;;  %10175 = vst [vmem:[#allocation135_spill] sm:$0xff] %v7959_v47  ;;  %v7968_v30 = vmul.f32 %v10112_v45, %v7880_v3  ;;  %v7972_v9 = vmul.f32 %v10179_v41, %v7889_v49  ;;  %v2202_v11 = vadd.f32 %v10181_v6, %v2168_v19  ;;  %v10185_v36 = vld [vmem:[#allocation99_spill] sm:$0xff]  ;;  %v10189_v52 = vld [vmem:[#allocation101_spill] sm:$0xff] }
 0x4bf   : > { %10177 = vst [vmem:[#allocation76_spill] sm:$0xff] %v7964_v60  ;;  %v7978_v51 = vmul.f32 %v10182_v40, %v3178_v56  ;;  %v2065_v22 = vadd.f32 %v2057_v33, %v2047_v10  ;;  %v2066_v53 = vadd.f32 %v2058_v55, %v2048_v32  ;;  %v2201_v21 = vadd.f32 %v10184_v27, %v2167_v7  ;;  %v10187_v60 = vld [vmem:[#allocation100_spill] sm:$0xff]  ;;  %v7994_v55 = vld [vmem:[#allocation3 + $0x155] sm:$0xff]  ;;  %v10195_v7 = vld [vmem:[#allocation37_spill] sm:$0xff] }
 0x4c0   : > { %10178 = vst [vmem:[#allocation85_spill] sm:$0xff] %v7968_v30  ;;  %10180 = vst [vmem:[#allocation86_spill] sm:$0xff] %v7972_v9  ;;  %v7982_v13 = vmul.f32 %v10185_v36, %v3230_v5  ;;  %v7985_v30 = vmul.f32 %v10187_v60, %v3282_v44  ;;  %v7989_v9 = vmul.f32 %v10189_v52, %v7873_v42  ;;  %v10191_v47 = vld [vmem:[#allocation140_spill] sm:$0xff]  ;;  %v10192_v10 = vld [vmem:[#allocation139_spill] sm:$0xff] }
 0x4c1   : > { %10183 = vst [vmem:[#allocation220_spill] sm:$0xff] %v7978_v51  ;;  %v2220_v41 = vadd.f32 %v10191_v47, %v2202_v11  ;;  %v2099_v19 = vadd.f32 %v2091_v15, %v2065_v22  ;;  %v2100_v6 = vadd.f32 %v2092_v2, %v2066_v53  ;;  %v2110_v56 = vmul.f32 %v10152_v34, %v7974_v61  ;;  %v2133_v33 = vld [vmem:[#allocation3 + $0x145] sm:$0xff]  ;;  %v10193_v32 = vld [vmem:[#allocation102_spill] sm:$0xff] }
 0x4c2   : > { %10186 = vst [vmem:[#allocation243_spill] sm:$0xff] %v7982_v13  ;;  %10188 = vst [vmem:[#allocation138_spill] sm:$0xff] %v7985_v30  ;;  %v2219_v5 = vadd.f32 %v10192_v10, %v2201_v21  ;;  %v7999_v44 = vmul.f32 %v10193_v32, %v7875_v0  ;;  %v2143_v42 = vmul.f32 %v7499_v57, %v10195_v7  ;;  %v10196_v34 = vld [vmem:[#allocation42_spill] sm:$0xff]  ;;  %v10198_v21 = vld [vmem:[#allocation104_spill] sm:$0xff] }
 0x4c3   : > { %10190 = vst [vmem:[#allocation137_spill] sm:$0xff] %v7989_v9  ;;  %v2144_v11 = vmul.f32 %v7434_v17, %v10195_v7  ;;  %v2256_v15 = vadd.f32 %v7531_v18, %v2220_v41  ;;  %v2117_v2 = vadd.f32 %v2109_v62, %v2099_v19  ;;  %v2118_v47 = vadd.f32 %v2110_v56, %v2100_v6  ;;  %v10197_v53 = vld [vmem:[#allocation246_spill] sm:$0xff]  ;;  %v10200_v0 = vld [vmem:[#allocation39_spill] sm:$0xff]  ;;  %v2185_v62 = vld [vmem:[#allocation3 + $0x146] sm:$0xff] }
 0x4c4   : > { %10194 = vst [vmem:[#allocation221_spill] sm:$0xff] %v7999_v44  ;;  %v2255_v22 = vadd.f32 %v10196_v34, %v2219_v5  ;;  %v2410_v27 = vadd.f32 %v10197_v53, %v7851_v24  ;;  %v8011_v10 = vmul.f32 %v10198_v21, %v7880_v3  ;;  %v2161_v30 = vmul.f32 %v10200_v0, %v2133_v33  ;;  %v10201_v13 = vld [vmem:[#allocation114_spill] sm:$0xff]  ;;  %v10203_v56 = vld [vmem:[#allocation147_spill] sm:$0xff]  ;;  %v10204_v5 = vld [vmem:[#allocation105_spill] sm:$0xff] }
 0x4c5   : > { %v2162_v57 = vmul.f32 %v10200_v0, %v7994_v55  ;;  %v2274_v7 = vadd.f32 %v10201_v13, %v2256_v15  ;;  %v2151_v51 = vadd.f32 %v2143_v42, %v2117_v2  ;;  %v2152_v18 = vadd.f32 %v2144_v11, %v2118_v47  ;;  %v8017_v41 = vld [vmem:[#allocation3 + $0x156] sm:$0xff]  ;;  %v10206_v34 = vld [vmem:[#allocation40_spill] sm:$0xff]  ;;  %v10207_v2 = vld [vmem:[#allocation121_spill] sm:$0xff] }
 0x4c6   : > { %10199 = vst [vmem:[#allocation244_spill] sm:$0xff] %v8011_v10  ;;  %v10202_v19 = vld [vmem:[#allocation142_spill] sm:$0xff]  ;;  %v2428_v24 = vadd.f32 %v10203_v56, %v2410_v27  ;;  %v8023_v3 = vmul.f32 %v10204_v5, %v7889_v49  ;;  %v2195_v33 = vmul.f32 %v7527_v54, %v10206_v34  ;;  %v2196_v53 = vmul.f32 %v7441_v58, %v10206_v34  ;;  %v10209_v27 = vld [vmem:[#allocation41_spill] sm:$0xff]  ;;  %v10258_v40 = vld [vmem:[#allocation152_spill] sm:$0xff] }
 0x4c7   : > { %v2273_v6 = vadd.f32 %v10202_v19, %v2255_v22  ;;  %v2308_v13 = vadd.f32 %v7536_v28, %v2274_v7  ;;  %v2169_v42 = vadd.f32 %v2161_v30, %v2151_v51  ;;  %v2170_v11 = vadd.f32 %v2162_v57, %v2152_v18  ;;  %v2239_v15 = vld [vmem:[#allocation3 + $0x150] sm:$0xff]  ;;  %v10208_v22 = vld [vmem:[#allocation247_spill] sm:$0xff]  ;;  %v10211_v28 = vld [vmem:[#allocation144_spill] sm:$0xff] }
 0x4c8   : > { %10205 = vst [vmem:[#allocation140_spill] sm:$0xff] %v8023_v3  ;;  %v2462_v0 = vadd.f32 %v10208_v22, %v2428_v24  ;;  %v2213_v19 = vmul.f32 %v10209_v27, %v2185_v62  ;;  %v2214_v49 = vmul.f32 %v10209_v27, %v8017_v41  ;;  %v2249_v54 = vmul.f32 %v7412_v1, %v9932_v50  ;;  %v10210_v56 = vld [vmem:[#allocation201_spill] sm:$0xff]  ;;  %v10213_v18 = vld [vmem:[#allocation43_spill] sm:$0xff]  ;;  %v10214_v22 = vld [vmem:[#allocation222_spill] sm:$0xff] }
 0x4c9   : > { %v2307_v47 = vadd.f32 %v10207_v2, %v2273_v6  ;;  %v2326_v3 = vadd.f32 %v10210_v56, %v2308_v13  ;;  %v2203_v34 = vadd.f32 %v2195_v33, %v2169_v42  ;;  %v2204_v5 = vadd.f32 %v2196_v53, %v2170_v11  ;;  %v10212_v51 = vld [vmem:[#allocation149_spill] sm:$0xff]  ;;  %v10215_v33 = vld [vmem:[#allocation248_spill] sm:$0xff]  ;;  %v1807_v56 = vpop.xlane.xlu0 %1806 }
 0x4ca   : > { %v2480_v57 = vadd.f32 %v10212_v51, %v2462_v0  ;;  %v2250_v7 = vmul.f32 %v7602_v29, %v9932_v50  ;;  %v2267_v6 = vmul.f32 %v10213_v18, %v2239_v15  ;;  %v2268_v62 = vmul.f32 %v7590_v35, %v10213_v18  ;;  %v10216_v42 = vld [vmem:[#allocation44_spill] sm:$0xff]  ;;  %v10217_v50 = vld [vmem:[#allocation45_spill] sm:$0xff]  ;;  %v10218_v0 = vld [vmem:[#allocation202_spill] sm:$0xff]  ;;  %1848 = vst.msk [vmem:[#allocation3 + $0xa3] sm:$0xff] %vm995_vm7, %v1807_v56 }
 0x4cb   : > { %v2325_v30 = vadd.f32 %v10211_v28, %v2307_v47  ;;  %v2360_v24 = vadd.f32 %v7541_v46, %v2326_v3  ;;  %v2221_v2 = vadd.f32 %v2213_v19, %v2203_v34  ;;  %v2222_v1 = vadd.f32 %v2214_v49, %v2204_v5  ;;  %v10219_v3 = vld [vmem:[#allocation146_spill] sm:$0xff]  ;;  %v10220_v19 = vld [vmem:[#allocation151_spill] sm:$0xff]  ;;  %v10229_v56 = vld [vmem:[#allocation48_spill] sm:$0xff] }
 0x4cc   : > { %v2514_v53 = vadd.f32 %v10215_v33, %v2480_v57  ;;  %v2301_v11 = vmul.f32 %v7414_v16, %v10216_v42  ;;  %v2302_v47 = vmul.f32 %v7627_v8, %v10216_v42  ;;  %v2319_v15 = vmul.f32 %v10217_v50, %v7835_v43  ;;  %v10221_v34 = vld [vmem:[#allocation46_spill] sm:$0xff]  ;;  %v10222_v51 = vld [vmem:[#allocation291_spill] sm:$0xff]  ;;  %v10238_v44 = vld [vmem:[#allocation141_spill] sm:$0xff] }
 0x4cd   : > { %v2359_v13 = vadd.f32 %v10214_v22, %v2325_v30  ;;  %v2378_v27 = vadd.f32 %v10218_v0, %v2360_v24  ;;  %v2257_v28 = vadd.f32 %v2249_v54, %v2221_v2  ;;  %v2258_v46 = vadd.f32 %v2250_v7, %v2222_v1  ;;  %v10223_v18 = vld [vmem:[#allocation130_spill] sm:$0xff]  ;;  %v10224_v7 = vld [vmem:[#allocation223_spill] sm:$0xff]  ;;  %v10225_v1 = vld [vmem:[#allocation249_spill] sm:$0xff] }
 0x4ce   : > { %v2532_v49 = vadd.f32 %v10220_v19, %v2514_v53  ;;  %v2320_v16 = vmul.f32 %v7604_v48, %v10217_v50  ;;  %v2353_v30 = vmul.f32 %v7416_v38, %v10221_v34  ;;  %v2354_v57 = vmul.f32 %v10222_v51, %v10221_v34  ;;  %v10226_v33 = vld [vmem:[#allocation134_spill] sm:$0xff]  ;;  %v10227_v53 = vld [vmem:[#allocation47_spill] sm:$0xff] }
 0x4cf   : > { %v2377_v5 = vadd.f32 %v10219_v3, %v2359_v13  ;;  %v2412_v24 = vadd.f32 %v10223_v18, %v2378_v27  ;;  %v2275_v22 = vadd.f32 %v2267_v6, %v2257_v28  ;;  %v2276_v54 = vadd.f32 %v2268_v62, %v2258_v46  ;;  %v10228_v0 = vld [vmem:[#allocation283_spill] sm:$0xff]  ;;  %v10232_v27 = vld [vmem:[#allocation148_spill] sm:$0xff]  ;;  %v10233_v62 = vld [vmem:[#allocation153_spill] sm:$0xff] }
 0x4d0   : > { %v2566_v13 = vadd.f32 %v10225_v1, %v2532_v49  ;;  %v2371_v42 = vmul.f32 %v10227_v53, %v10226_v33  ;;  %v2372_v50 = vmul.f32 %v10228_v0, %v10227_v53  ;;  %v10230_v3 = vld [vmem:[#allocation259_spill] sm:$0xff]  ;;  %v10234_v46 = vld [vmem:[#allocation294_spill] sm:$0xff]  ;;  %v10236_v18 = vld [vmem:[#allocation49_spill] sm:$0xff] }
 0x4d1   : > { %v2411_v2 = vadd.f32 %v10224_v7, %v2377_v5  ;;  %v2405_v38 = vmul.f32 %v10230_v3, %v10229_v56  ;;  %v10231_v19 = vld [vmem:[#allocation203_spill] sm:$0xff]  ;;  %v2309_v34 = vadd.f32 %v2301_v11, %v2275_v22  ;;  %v2310_v21 = vadd.f32 %v2302_v47, %v2276_v54  ;;  %v10241_v54 = vld [vmem:[#allocation50_spill] sm:$0xff] }
 0x4d2   : > { %v2430_v10 = vadd.f32 %v10231_v19, %v2412_v24  ;;  %v2584_v28 = vadd.f32 %v10233_v62, %v2566_v13  ;;  %v2406_v5 = vmul.f32 %v10234_v46, %v10229_v56  ;;  %v10235_v49 = vld [vmem:[#allocation159_spill] sm:$0xff]  ;;  %v10239_v24 = vld [vmem:[#allocation224_spill] sm:$0xff] }
 0x4d3   : > { %v2429_v6 = vadd.f32 %v10232_v27, %v2411_v2  ;;  %v2423_v7 = vmul.f32 %v10236_v18, %v10235_v49  ;;  %v10237_v1 = vld [vmem:[#allocation103_spill] sm:$0xff]  ;;  %v2327_v3 = vadd.f32 %v2319_v15, %v2309_v34  ;;  %v2328_v32 = vadd.f32 %v2320_v16, %v2310_v21  ;;  %v10244_v62 = vld [vmem:[#allocation204_spill] sm:$0xff] }
 0x4d4   : > { %v2424_v53 = vmul.f32 %v10237_v1, %v10236_v18  ;;  %v2464_v9 = vadd.f32 %v10238_v44, %v2430_v10  ;;  %v10240_v47 = vld [vmem:[#allocation227_spill] sm:$0xff]  ;;  %v2457_v2 = vmul.f32 %v7432_v20, %v10241_v54  ;;  %v10245_v44 = vld [vmem:[#allocation150_spill] sm:$0xff]  ;;  %v10246_v21 = vld [vmem:[#allocation156_spill] sm:$0xff] }
 0x4d5   : > { %v2463_v11 = vadd.f32 %v10239_v24, %v2429_v6  ;;  %v2620_v22 = vadd.f32 %v10240_v47, %v2584_v28  ;;  %v10242_v13 = vld [vmem:[#allocation295_spill] sm:$0xff]  ;;  %v2361_v18 = vadd.f32 %v2353_v30, %v2327_v3  ;;  %v2362_v52 = vadd.f32 %v2354_v57, %v2328_v32  ;;  %v10248_v6 = vld [vmem:[#allocation52_spill] sm:$0xff]  ;;  %v10253_v32 = vld [vmem:[#allocation126_spill] sm:$0xff] }
 0x4d6   : > { %v2458_v56 = vmul.f32 %v10242_v13, %v10241_v54  ;;  %v10243_v19 = vld [vmem:[#allocation51_spill] sm:$0xff]  ;;  %v2482_v49 = vadd.f32 %v10244_v62, %v2464_v9  ;;  %v2509_v20 = vmul.f32 %v7434_v17, %v10248_v6  ;;  %v10252_v9 = vld [vmem:[#allocation225_spill] sm:$0xff]  ;;  %v10254_v3 = vld [vmem:[#allocation296_spill] sm:$0xff] }
 0x4d7   : > { %v2475_v27 = vmul.f32 %v10243_v19, %v7974_v61  ;;  %v2481_v10 = vadd.f32 %v10245_v44, %v2463_v11  ;;  %v2638_v15 = vadd.f32 %v10246_v21, %v2620_v22  ;;  %v10247_v16 = vld [vmem:[#allocation287_spill] sm:$0xff]  ;;  %v2379_v61 = vadd.f32 %v2371_v42, %v2361_v18  ;;  %v10255_v22 = vld [vmem:[#allocation53_spill] sm:$0xff]  ;;  %v10259_v42 = vld [vmem:[#allocation158_spill] sm:$0xff] }
 0x4d8   : > { %v2476_v34 = vmul.f32 %v10247_v16, %v10243_v19  ;;  %v10249_v28 = vld [vmem:[#allocation183_spill] sm:$0xff]  ;;  %v2380_v36 = vadd.f32 %v2372_v50, %v2362_v52  ;;  %v2510_v11 = vmul.f32 %v10254_v3, %v10248_v6  ;;  %v2527_v19 = vmul.f32 %v10255_v22, %v7994_v55  ;;  %v10256_v62 = vld [vmem:[#allocation205_spill] sm:$0xff] }
 0x4d9   : > { %v2516_v24 = vadd.f32 %v10249_v28, %v2482_v49  ;;  %v10250_v47 = vld [vmem:[#allocation191_spill] sm:$0xff]  ;;  %v2515_v30 = vadd.f32 %v10252_v9, %v2481_v10  ;;  %v2672_v57 = vadd.f32 %v10253_v32, %v2638_v15  ;;  %v10257_v17 = vld [vmem:[#allocation161_spill] sm:$0xff]  ;;  %v2413_v49 = vadd.f32 %v2405_v38, %v2379_v61  ;;  %v10261_v10 = vld [vmem:[#allocation54_spill] sm:$0xff] }
 0x4da   : > { %v10251_v54 = vld [vmem:[#allocation251_spill] sm:$0xff]  ;;  %v2414_v28 = vadd.f32 %v2406_v5, %v2380_v36  ;;  %v2561_v15 = vmul.f32 %v7441_v58, %v10261_v10  ;;  %v10263_v9 = vld [vmem:[#allocation252_spill] sm:$0xff]  ;;  %v10266_v5 = vld [vmem:[#allocation297_spill] sm:$0xff] }
 0x4db   : > { %v2775_v60 = vadd.f32 %v10251_v54, %v10250_v47  ;;  %v2534_v44 = vadd.f32 %v10256_v62, %v2516_v24  ;;  %v2533_v47 = vadd.f32 %v10258_v40, %v2515_v30  ;;  %v2690_v52 = vadd.f32 %v10259_v42, %v2672_v57  ;;  %v10260_v50 = vld [vmem:[#allocation115_spill] sm:$0xff]  ;;  %v8117_v62 = vld [vmem:[#allocation3 + $0x166] sm:$0xff] }
 0x4dc   : > { %v2528_v18 = vmul.f32 %v10260_v50, %v10255_v22  ;;  %v10262_v6 = vld [vmem:[#allocation155_spill] sm:$0xff]  ;;  %v2431_v32 = vadd.f32 %v2423_v7, %v2413_v49  ;;  %v2432_v24 = vadd.f32 %v2424_v53, %v2414_v28  ;;  %v10265_v38 = vld [vmem:[#allocation228_spill] sm:$0xff]  ;;  %v2562_v61 = vmul.f32 %v10266_v5, %v10261_v10  ;;  %v10270_v7 = vld [vmem:[#allocation154_spill] sm:$0xff] }
 0x4dd   : > { %v2793_v21 = vadd.f32 %v10257_v17, %v2775_v60  ;;  %v2568_v54 = vadd.f32 %v10262_v6, %v2534_v44  ;;  %v10264_v60 = vld [vmem:[#allocation226_spill] sm:$0xff]  ;;  %v2724_v40 = vadd.f32 %v10265_v38, %v2690_v52  ;;  %v10267_v30 = vld [vmem:[#allocation55_spill] sm:$0xff]  ;;  %v10268_v22 = vld [vmem:[#allocation120_spill] sm:$0xff] }
 0x4de   : > { %v2567_v36 = vadd.f32 %v10264_v60, %v2533_v47  ;;  %v2579_v57 = vmul.f32 %v10267_v30, %v8017_v41  ;;  %v10269_v17 = vld [vmem:[#allocation163_spill] sm:$0xff]  ;;  %v2465_v42 = vadd.f32 %v2457_v2, %v2431_v32  ;;  %v8128_v49 = vld [vmem:[#allocation3 + $0x90] sm:$0xff]  ;;  %v10271_v28 = vld [vmem:[#allocation160_spill] sm:$0xff]  ;;  %v2580_v52 = vmul.f32 %v10267_v30, %v8117_v62 }
 0x4df   : > { %v2827_v55 = vadd.f32 %v10263_v9, %v2793_v21  ;;  %v2586_v58 = vadd.f32 %v10268_v22, %v2568_v54  ;;  %v2466_v21 = vadd.f32 %v2458_v56, %v2432_v24  ;;  %v2742_v47 = vadd.f32 %v10271_v28, %v2724_v40  ;;  %v10272_v6 = vld [vmem:[#allocation56_spill] sm:$0xff]  ;;  %v10273_v9 = vld [vmem:[#allocation127_spill] sm:$0xff]  ;;  %v10274_v60 = vld [vmem:[#allocation253_spill] sm:$0xff] }
 0x4e0   : > { %v2585_v53 = vadd.f32 %v10270_v7, %v2567_v36  ;;  %v2615_v10 = vmul.f32 %v7602_v29, %v10272_v6  ;;  %v2483_v38 = vadd.f32 %v2475_v27, %v2465_v42  ;;  %v8137_v2 = vld [vmem:[#allocation3 + $0x170] sm:$0xff]  ;;  %v2616_v40 = vmul.f32 %v10272_v6, %v8128_v49 }
 0x4e1   : > { %v2845_v44 = vadd.f32 %v10269_v17, %v2827_v55  ;;  %v2622_v41 = vadd.f32 %v10273_v9, %v2586_v58  ;;  %v2484_v55 = vadd.f32 %v2476_v34, %v2466_v21  ;;  %v10275_v56 = vld [vmem:[#allocation169_spill] sm:$0xff]  ;;  %v10278_v17 = vld [vmem:[#allocation118_spill] sm:$0xff] }
 0x4e2   : > { %v2621_v32 = vadd.f32 %v10275_v56, %v2585_v53  ;;  %v10276_v24 = vld [vmem:[#allocation229_spill] sm:$0xff]  ;;  %v2517_v28 = vadd.f32 %v2509_v20, %v2483_v38  ;;  %v10280_v27 = vld [vmem:[#allocation206_spill] sm:$0xff] }
 0x4e3   : > { %v2879_v54 = vadd.f32 %v10274_v60, %v2845_v44  ;;  %v2776_v36 = vadd.f32 %v10276_v24, %v2742_v47  ;;  %v10277_v22 = vld [vmem:[#allocation57_spill] sm:$0xff]  ;;  %v2640_v29 = vadd.f32 %v10278_v17, %v2622_v41  ;;  %v2518_v44 = vadd.f32 %v2510_v11, %v2484_v55  ;;  %v10281_v21 = vld [vmem:[#allocation162_spill] sm:$0xff]  ;;  %v10285_v11 = vld [vmem:[#allocation275_spill] sm:$0xff] }
 0x4e4   : > { %v2633_v30 = vmul.f32 %v7590_v35, %v10277_v22  ;;  %v10279_v7 = vld [vmem:[#allocation165_spill] sm:$0xff]  ;;  %v2639_v34 = vadd.f32 %v10280_v27, %v2621_v32  ;;  %v2634_v47 = vmul.f32 %v10277_v22, %v8137_v2  ;;  %v10282_v9 = vld [vmem:[#allocation58_spill] sm:$0xff]  ;;  %v2535_v24 = vadd.f32 %v2527_v19, %v2517_v28  ;;  %v10287_v17 = vld [vmem:[#allocation59_spill] sm:$0xff] }
 0x4e5   : > { %v2897_v58 = vadd.f32 %v10279_v7, %v2879_v54  ;;  %v8148_v42 = vld [vmem:[#allocation3 + $0x91] sm:$0xff]  ;;  %v2794_v53 = vadd.f32 %v10281_v21, %v2776_v36  ;;  %v2667_v6 = vmul.f32 %v7627_v8, %v10282_v9  ;;  %v2536_v54 = vadd.f32 %v2528_v18, %v2518_v44  ;;  %v10289_v27 = vld [vmem:[#allocation167_spill] sm:$0xff]  ;;  %v10291_v44 = vld [vmem:[#allocation164_spill] sm:$0xff] }
 0x4e6   : > { %v10283_v60 = vld [vmem:[#allocation261_spill] sm:$0xff]  ;;  %v10284_v56 = vld [vmem:[#allocation254_spill] sm:$0xff]  ;;  %v2673_v38 = vadd.f32 %v10285_v11, %v2639_v34  ;;  %v2668_v36 = vmul.f32 %v10282_v9, %v8148_v42  ;;  %v2685_v22 = vmul.f32 %v7604_v48, %v10287_v17  ;;  %v2569_v21 = vadd.f32 %v2561_v15, %v2535_v24  ;;  %v10290_v19 = vld [vmem:[#allocation207_spill] sm:$0xff] }
 0x4e7   : > { %v2674_v35 = vadd.f32 %v10283_v60, %v2640_v29  ;;  %v2931_v41 = vadd.f32 %v10284_v56, %v2897_v58  ;;  %v8157_v20 = vld [vmem:[#allocation3 + $0x171] sm:$0xff]  ;;  %v2570_v58 = vadd.f32 %v2562_v61, %v2536_v54  ;;  %v10292_v60 = vld [vmem:[#allocation60_spill] sm:$0xff]  ;;  %v10296_v54 = vld [vmem:[#allocation231_spill] sm:$0xff] }
 0x4e8   : > { %v10286_v55 = vld [vmem:[#allocation230_spill] sm:$0xff]  ;;  %v10288_v7 = vld [vmem:[#allocation113_spill] sm:$0xff]  ;;  %v2691_v18 = vadd.f32 %v10290_v19, %v2673_v38  ;;  %v2719_v9 = vmul.f32 %v10222_v51, %v10292_v60  ;;  %v10295_v61 = vld [vmem:[#allocation276_spill] sm:$0xff] }
 0x4e9   : > { %v2828_v32 = vadd.f32 %v10286_v55, %v2794_v53  ;;  %v2692_v8 = vadd.f32 %v10288_v7, %v2674_v35  ;;  %v2949_v29 = vadd.f32 %v10289_v27, %v2931_v41  ;;  %v8168_v28 = vld [vmem:[#allocation3 + $0x92] sm:$0xff]  ;;  %v2686_v53 = vmul.f32 %v10287_v17, %v8157_v20  ;;  %v10294_v11 = vld [vmem:[#allocation233_spill] sm:$0xff]  ;;  %v10298_v27 = vld [vmem:[#allocation184_spill] sm:$0xff] }
 0x4ea   : > { %v10293_v56 = vld [vmem:[#allocation262_spill] sm:$0xff]  ;;  %v2587_v55 = vadd.f32 %v2579_v57, %v2569_v21  ;;  %v2588_v41 = vadd.f32 %v2580_v52, %v2570_v58  ;;  %v2725_v24 = vadd.f32 %v10295_v61, %v2691_v18  ;;  %v10297_v7 = vld [vmem:[#allocation61_spill] sm:$0xff]  ;;  %v10300_v57 = vld [vmem:[#allocation208_spill] sm:$0xff] }
 0x4eb   : > { %v2846_v34 = vadd.f32 %v10291_v44, %v2828_v32  ;;  %v2726_v48 = vadd.f32 %v10293_v56, %v2692_v8  ;;  %v2983_v35 = vadd.f32 %v10294_v11, %v2949_v29  ;;  %v8177_v15 = vld [vmem:[#allocation3 + $0x172] sm:$0xff]  ;;  %v2720_v32 = vmul.f32 %v10292_v60, %v8168_v28 }
 0x4ec   : > { %v2737_v17 = vmul.f32 %v10228_v0, %v10297_v7  ;;  %v10299_v19 = vld [vmem:[#allocation170_spill] sm:$0xff]  ;;  %v2623_v44 = vadd.f32 %v2615_v10, %v2587_v55  ;;  %v2624_v29 = vadd.f32 %v2616_v40, %v2588_v41  ;;  %v2743_v52 = vadd.f32 %v10300_v57, %v2725_v24  ;;  %v10303_v0 = vld [vmem:[#allocation263_spill] sm:$0xff]  ;;  %v10305_v40 = vld [vmem:[#allocation277_spill] sm:$0xff] }
 0x4ed   : > { %v2880_v38 = vadd.f32 %v10296_v54, %v2846_v34  ;;  %v2744_v51 = vadd.f32 %v10298_v27, %v2726_v48  ;;  %v3001_v8 = vadd.f32 %v10299_v19, %v2983_v35  ;;  %v8188_v21 = vld [vmem:[#allocation3 + $0x93] sm:$0xff]  ;;  %v8193_v34 = vmul.f32 %v10297_v7, %v8177_v15  ;;  %v10306_v41 = vld [vmem:[#allocation232_spill] sm:$0xff]  ;;  %v10307_v7 = vld [vmem:[#allocation185_spill] sm:$0xff] }
 0x4ee   : > { %v10301_v58 = vld [vmem:[#allocation166_spill] sm:$0xff]  ;;  %v2641_v35 = vadd.f32 %v2633_v30, %v2623_v44  ;;  %v2642_v10 = vadd.f32 %v2634_v47, %v2624_v29  ;;  %v2777_v55 = vadd.f32 %v10305_v40, %v2743_v52  ;;  %v10308_v19 = vld [vmem:[#allocation172_spill] sm:$0xff]  ;;  %v10309_v57 = vld [vmem:[#allocation145_spill] sm:$0xff] }
 0x4ef   : > { %v2898_v18 = vadd.f32 %v10301_v58, %v2880_v38  ;;  %v10302_v60 = vld [vmem:[#allocation62_spill] sm:$0xff]  ;;  %v2778_v11 = vadd.f32 %v10303_v0, %v2744_v51  ;;  %v10310_v51 = vld [vmem:[#allocation256_spill] sm:$0xff]  ;;  %v10311_v30 = vld [vmem:[#allocation63_spill] sm:$0xff] }
 0x4f0   : > { %v2771_v56 = vmul.f32 %v10234_v46, %v10302_v60  ;;  %v10304_v48 = vld [vmem:[#allocation234_spill] sm:$0xff]  ;;  %v8205_v38 = vmul.f32 %v10302_v60, %v8188_v21  ;;  %v3138_v58 = vadd.f32 %v10310_v51, %v10309_v57  ;;  %v2789_v47 = vmul.f32 %v10237_v1, %v10311_v30  ;;  %v10312_v44 = vld [vmem:[#allocation209_spill] sm:$0xff]  ;;  %v10313_v52 = vld [vmem:[#allocation168_spill] sm:$0xff] }
 0x4f1   : > { %v3035_v61 = vadd.f32 %v10304_v48, %v3001_v8  ;;  %v2932_v24 = vadd.f32 %v10306_v41, %v2898_v18  ;;  %v8201_v54 = vld [vmem:[#allocation3 + $0x173] sm:$0xff]  ;;  %v2796_v27 = vadd.f32 %v10307_v7, %v2778_v11  ;;  %v2675_v8 = vadd.f32 %v2667_v6, %v2641_v35  ;;  %v10314_v60 = vld [vmem:[#allocation264_spill] sm:$0xff]  ;;  %v10318_v57 = vld [vmem:[#allocation281_spill] sm:$0xff] }
 0x4f2   : > { %v2795_v29 = vadd.f32 %v10312_v44, %v2777_v55  ;;  %v2676_v0 = vadd.f32 %v2668_v36, %v2642_v10  ;;  %v8215_v48 = vld [vmem:[#allocation3 + $0x94] sm:$0xff]  ;;  %v8222_v6 = vmul.f32 %v10311_v30, %v8201_v54  ;;  %v10319_v51 = vld [vmem:[#allocation64_spill] sm:$0xff] }
 0x4f3   : > { %v3053_v46 = vadd.f32 %v10308_v19, %v3035_v61  ;;  %v2950_v18 = vadd.f32 %v10313_v52, %v2932_v24  ;;  %v2830_v40 = vadd.f32 %v10314_v60, %v2796_v27  ;;  %v10315_v41 = vld [vmem:[#allocation235_spill] sm:$0xff]  ;;  %v2693_v19 = vadd.f32 %v2685_v22, %v2675_v8  ;;  %v10317_v35 = vld [vmem:[#allocation278_spill] sm:$0xff]  ;;  %v10322_v52 = vld [vmem:[#allocation257_spill] sm:$0xff] }
 0x4f4   : > { %v10316_v7 = vld [vmem:[#allocation175_spill] sm:$0xff]  ;;  %v2829_v1 = vadd.f32 %v10317_v35, %v2795_v29  ;;  %v2823_v36 = vmul.f32 %v10242_v13, %v10319_v51  ;;  %v10320_v10 = vld [vmem:[#allocation186_spill] sm:$0xff]  ;;  %v8235_v22 = vmul.f32 %v10319_v51, %v8215_v48  ;;  %v10324_v29 = vld [vmem:[#allocation212_spill] sm:$0xff] }
 0x4f5   : > { %v3087_v11 = vadd.f32 %v10315_v41, %v3053_v46  ;;  %v3156_v61 = vadd.f32 %v10316_v7, %v3138_v58  ;;  %v2984_v55 = vadd.f32 %v10318_v57, %v2950_v18  ;;  %v2848_v24 = vadd.f32 %v10320_v10, %v2830_v40  ;;  %v10321_v44 = vld [vmem:[#allocation174_spill] sm:$0xff]  ;;  %v10325_v7 = vld [vmem:[#allocation265_spill] sm:$0xff]  ;;  %v10326_v35 = vld [vmem:[#allocation236_spill] sm:$0xff] }
 0x4f6   : > { %v2727_v60 = vadd.f32 %v2719_v9, %v2693_v19  ;;  %v8231_v58 = vld [vmem:[#allocation3 + $0x174] sm:$0xff]  ;;  %v2694_v41 = vadd.f32 %v2686_v53, %v2676_v0  ;;  %v10327_v57 = vld [vmem:[#allocation177_spill] sm:$0xff] }
 0x4f7   : > { %v3105_v27 = vadd.f32 %v10321_v44, %v3087_v11  ;;  %v3190_v46 = vadd.f32 %v10322_v52, %v3156_v61  ;;  %v10323_v8 = vld [vmem:[#allocation210_spill] sm:$0xff]  ;;  %v3002_v18 = vadd.f32 %v10324_v29, %v2984_v55  ;;  %v2882_v13 = vadd.f32 %v10325_v7, %v2848_v24  ;;  %v10328_v61 = vld [vmem:[#allocation65_spill] sm:$0xff]  ;;  %v10329_v19 = vld [vmem:[#allocation279_spill] sm:$0xff] }
 0x4f8   : > { %v2847_v30 = vadd.f32 %v10323_v8, %v2829_v1  ;;  %v2745_v10 = vadd.f32 %v2737_v17, %v2727_v60  ;;  %v2841_v9 = vmul.f32 %v10247_v16, %v10328_v61  ;;  %v10330_v52 = vld [vmem:[#allocation282_spill] sm:$0xff]  ;;  %v8248_v1 = vmul.f32 %v10328_v61, %v8231_v58  ;;  %v10331_v53 = vld [vmem:[#allocation187_spill] sm:$0xff]  ;;  %v10332_v24 = vld [vmem:[#allocation176_spill] sm:$0xff] }
 0x4f9   : > { %v3139_v40 = vadd.f32 %v10326_v35, %v3105_v27  ;;  %v3208_v11 = vadd.f32 %v10327_v57, %v3190_v46  ;;  %v3036_v51 = vadd.f32 %v10330_v52, %v3002_v18  ;;  %v8250_v55 = vld [vmem:[#allocation3 + $0x95] sm:$0xff]  ;;  %v2900_v0 = vadd.f32 %v10331_v53, %v2882_v13  ;;  %v10335_v29 = vld [vmem:[#allocation125_spill] sm:$0xff] }
 0x4fa   : > { %v2881_v44 = vadd.f32 %v10329_v19, %v2847_v30  ;;  %v10333_v8 = vld [vmem:[#allocation258_spill] sm:$0xff]  ;;  %v2779_v17 = vadd.f32 %v2771_v56, %v2745_v10  ;;  %v10336_v7 = vld [vmem:[#allocation213_spill] sm:$0xff]  ;;  %v2728_v35 = vadd.f32 %v2720_v32, %v2694_v41  ;;  %v10339_v13 = vld [vmem:[#allocation179_spill] sm:$0xff] }
 0x4fb   : > { %v3157_v27 = vadd.f32 %v10332_v24, %v3139_v40  ;;  %v3242_v46 = vadd.f32 %v10333_v8, %v3208_v11  ;;  %v10334_v60 = vld [vmem:[#allocation66_spill] sm:$0xff]  ;;  %v3054_v18 = vadd.f32 %v10336_v7, %v3036_v51  ;;  %v10338_v52 = vld [vmem:[#allocation237_spill] sm:$0xff]  ;;  %v10340_v11 = vld [vmem:[#allocation280_spill] sm:$0xff] }
 0x4fc   : > { %v2875_v16 = vmul.f32 %v10254_v3, %v10334_v60  ;;  %v2899_v30 = vadd.f32 %v10335_v29, %v2881_v44  ;;  %v8259_v57 = vld [vmem:[#allocation3 + $0x175] sm:$0xff]  ;;  %v2797_v40 = vadd.f32 %v2789_v47, %v2779_v17  ;;  %v8266_v56 = vmul.f32 %v10334_v60, %v8250_v55  ;;  %v10341_v10 = vld [vmem:[#allocation129_spill] sm:$0xff]  ;;  %v10344_v51 = vld [vmem:[#allocation188_spill] sm:$0xff] }
 0x4fd   : > { %v10337_v61 = vld [vmem:[#allocation266_spill] sm:$0xff]  ;;  %v3191_v45 = vadd.f32 %v10338_v52, %v3157_v27  ;;  %v3260_v53 = vadd.f32 %v10339_v13, %v3242_v46  ;;  %v3088_v44 = vadd.f32 %v10341_v10, %v3054_v18  ;;  %v10342_v24 = vld [vmem:[#allocation67_spill] sm:$0xff]  ;;  %v10346_v29 = vld [vmem:[#allocation260_spill] sm:$0xff] }
 0x4fe   : > { %v2934_v19 = vadd.f32 %v10337_v61, %v2900_v0  ;;  %v2933_v3 = vadd.f32 %v10340_v11, %v2899_v30  ;;  %v2893_v32 = vmul.f32 %v10260_v50, %v10342_v24  ;;  %v8272_v41 = vld [vmem:[#allocation3 + $0x96] sm:$0xff]  ;;  %v2831_v47 = vadd.f32 %v2823_v36, %v2797_v40  ;;  %v10350_v52 = vld [vmem:[#allocation68_spill] sm:$0xff] }
 0x4ff   : > { %10343 = vst [vmem:[#allocation139_spill] sm:$0xff] %v8272_v41  ;;  %v10345_v8 = vld [vmem:[#allocation178_spill] sm:$0xff]  ;;  %v3294_v46 = vadd.f32 %v10346_v29, %v3260_v53  ;;  %v8279_v17 = vmul.f32 %v10342_v24, %v8259_v57  ;;  %v10347_v60 = vld [vmem:[#allocation211_spill] sm:$0xff]  ;;  %v2746_v61 = vadd.f32 %v8193_v34, %v2728_v35  ;;  %v10351_v13 = vld [vmem:[#allocation292_spill] sm:$0xff]  ;;  %v8292_v40 = vmul.f32 %v10350_v52, %v8272_v41 }
 0x500   : > { %v2952_v0 = vadd.f32 %v10344_v51, %v2934_v19  ;;  %v3209_v27 = vadd.f32 %v10345_v8, %v3191_v45  ;;  %v2951_v30 = vadd.f32 %v10347_v60, %v2933_v3  ;;  %v10348_v7 = vld [vmem:[#allocation214_spill] sm:$0xff]  ;;  %v2927_v19 = vmul.f32 %v10266_v5, %v10350_v52  ;;  %v10353_v10 = vld [vmem:[#allocation267_spill] sm:$0xff]  ;;  %v10354_v24 = vld [vmem:[#allocation284_spill] sm:$0xff] }
 0x501   : > { %v3106_v18 = vadd.f32 %v10348_v7, %v3088_v44  ;;  %v8284_v50 = vld [vmem:[#allocation3 + $0x176] sm:$0xff]  ;;  %v2849_v36 = vadd.f32 %v2841_v9, %v2831_v47  ;;  %v10355_v34 = vld [vmem:[#allocation69_spill] sm:$0xff]  ;;  %v10357_v29 = vld [vmem:[#allocation180_spill] sm:$0xff] }
 0x502   : > { %10349 = vst [vmem:[#allocation37_spill] sm:$0xff] %v8284_v50  ;;  %v2986_v45 = vadd.f32 %v10351_v13, %v2952_v0  ;;  %v10352_v11 = vld [vmem:[#allocation238_spill] sm:$0xff]  ;;  %v2985_v3 = vadd.f32 %v10353_v10, %v2951_v30  ;;  %v2945_v35 = vmul.f32 %v10355_v34, %v8117_v62  ;;  %v10358_v60 = vld [vmem:[#allocation181_spill] sm:$0xff]  ;;  %v8303_v9 = vmul.f32 %v10355_v34, %v8284_v50  ;;  %v10360_v52 = vld [vmem:[#allocation215_spill] sm:$0xff] }
 0x503   : > { %v3243_v53 = vadd.f32 %v10352_v11, %v3209_v27  ;;  %v3140_v44 = vadd.f32 %v10354_v24, %v3106_v18  ;;  %v10356_v51 = vld [vmem:[#allocation290_spill] sm:$0xff]  ;;  %v3312_v0 = vadd.f32 %v10358_v60, %v3294_v46  ;;  %v2883_v7 = vadd.f32 %v2875_v16, %v2849_v36  ;;  %v10359_v27 = vld [vmem:[#allocation189_spill] sm:$0xff]  ;;  %v10362_v10 = vld [vmem:[#allocation239_spill] sm:$0xff] }
 0x504   : > { %v3004_v8 = vadd.f32 %v10356_v51, %v2986_v45  ;;  %v3003_v47 = vadd.f32 %v10359_v27, %v2985_v3  ;;  %v2780_v18 = vadd.f32 %v8205_v38, %v2746_v61  ;;  %v10361_v13 = vld [vmem:[#allocation73_spill] sm:$0xff]  ;;  %v10363_v45 = vld [vmem:[#allocation240_spill] sm:$0xff]  ;;  %v10367_v3 = vld [vmem:[#allocation70_spill] sm:$0xff] }
 0x505   : > { %v3261_v5 = vadd.f32 %v10357_v29, %v3243_v53  ;;  %v3158_v30 = vadd.f32 %v10360_v52, %v3140_v44  ;;  %v3348_v51 = vadd.f32 %v10363_v45, %v3312_v0  ;;  %v2901_v53 = vadd.f32 %v2893_v32, %v2883_v7  ;;  %v10364_v46 = vld [vmem:[#allocation77_spill] sm:$0xff]  ;;  %v10365_v36 = vld [vmem:[#allocation268_spill] sm:$0xff]  ;;  %v10368_v44 = vld [vmem:[#allocation78_spill] sm:$0xff] }
 0x506   : > { %v3038_v11 = vadd.f32 %v10361_v13, %v3004_v8  ;;  %v2979_v16 = vmul.f32 %v10364_v46, %v8128_v49  ;;  %v3037_v29 = vadd.f32 %v10365_v36, %v3003_v47  ;;  %v10366_v34 = vld [vmem:[#allocation285_spill] sm:$0xff]  ;;  %v2997_v27 = vmul.f32 %v10367_v3, %v8137_v2  ;;  %v10370_v52 = vld [vmem:[#allocation182_spill] sm:$0xff]  ;;  %v10371_v32 = vld [vmem:[#allocation71_spill] sm:$0xff] }
 0x507   : > { %v3295_v24 = vadd.f32 %v10362_v10, %v3261_v5  ;;  %v3192_v60 = vadd.f32 %v10366_v34, %v3158_v30  ;;  %v3031_v38 = vmul.f32 %v10368_v44, %v8148_v42  ;;  %v10369_v61 = vld [vmem:[#allocation293_spill] sm:$0xff]  ;;  %v2935_v13 = vadd.f32 %v2927_v19, %v2901_v53  ;;  %v10372_v7 = vld [vmem:[#allocation192_spill] sm:$0xff]  ;;  %v10373_v47 = vld [vmem:[#allocation110_spill] sm:$0xff] }
 0x508   : > { %v3056_v8 = vadd.f32 %v10369_v61, %v3038_v11  ;;  %v8323_v0 = vmul.f32 %v10371_v32, %v8157_v20  ;;  %v3055_v10 = vadd.f32 %v10372_v7, %v3037_v29  ;;  %v2798_v30 = vadd.f32 %v8222_v6, %v2780_v18  ;;  %v10374_v36 = vld [vmem:[#allocation298_spill] sm:$0xff]  ;;  %v10375_v3 = vld [vmem:[#allocation289_spill] sm:$0xff]  ;;  %v10376_v44 = vld [vmem:[#allocation108_spill] sm:$0xff] }
 0x509   : > { %v3313_v5 = vadd.f32 %v10370_v52, %v3295_v24  ;;  %v3210_v45 = vadd.f32 %v10373_v47, %v3192_v60  ;;  %v3366_v25 = vadd.f32 %v10376_v44, %v3348_v51  ;;  %v2953_v11 = vadd.f32 %v2945_v35, %v2935_v13  ;;  %v10377_v24 = vld [vmem:[#allocation79_spill] sm:$0xff]  ;;  %v10378_v53 = vld [vmem:[#allocation269_spill] sm:$0xff]  ;;  %v10379_v52 = vld [vmem:[#allocation286_spill] sm:$0xff] }
 0x50a   : > { %v3090_v34 = vadd.f32 %v10374_v36, %v3056_v8  ;;  %v8333_v19 = vmul.f32 %v10377_v24, %v8168_v28  ;;  %v3089_v61 = vadd.f32 %v10378_v53, %v3055_v10  ;;  %v8337_v29 = vld [vmem:[#allocation3 + $0x61] sm:$0xff]  ;;  %v10384_v35 = vld [vmem:[#allocation218_spill] sm:$0xff]  ;;  %v10385_v7 = vld [vmem:[#allocation193_spill] sm:$0xff]  ;;  %v8352_v10 = vmul.f32 %v10057_v63, %v8201_v54 }
 0x50b   : > { %v3349_v46 = vadd.f32 %v10375_v3, %v3313_v5  ;;  %v3244_v32 = vadd.f32 %v10379_v52, %v3210_v45  ;;  %10380 = vst [vmem:[#allocation42_spill] sm:$0xff] %v8337_v29  ;;  %v10381_v60 = vld [vmem:[#allocation72_spill] sm:$0xff]  ;;  %v2987_v13 = vadd.f32 %v2979_v16, %v2953_v11  ;;  %v2832_v3 = vadd.f32 %v8235_v22, %v2798_v30  ;;  %v10387_v53 = vld [vmem:[#allocation299_spill] sm:$0xff]  ;;  %v10389_v24 = vld [vmem:[#allocation241_spill] sm:$0xff] }
 0x50c   : > { %v8341_v6 = vmul.f32 %v10381_v60, %v8177_v15  ;;  %v10382_v18 = vld [vmem:[#allocation132_spill] sm:$0xff]  ;;  %v3107_v47 = vadd.f32 %v10385_v7, %v3089_v61  ;;  %v3382_v60 = vld [vmem:[#allocation3 + $0x131] sm:$0xff] }
 0x50d   : > { %v3108_v8 = vadd.f32 %v10382_v18, %v3090_v34  ;;  %v10383_v5 = vld [vmem:[#allocation80_spill] sm:$0xff]  ;;  %v3367_v44 = vadd.f32 %v10384_v35, %v3349_v46  ;;  %v3400_v46 = vadd.f32 %v10389_v24, %v3366_v25  ;;  %v10390_v16 = vld [vmem:[#allocation270_spill] sm:$0xff]  ;;  %v10391_v61 = vld [vmem:[#allocation81_spill] sm:$0xff]  ;;  %v3005_v7 = vadd.f32 %v2997_v27, %v2987_v13 }
 0x50e   : > { %v8346_v51 = vmul.f32 %v10383_v5, %v8188_v21  ;;  %v10386_v45 = vld [vmem:[#allocation216_spill] sm:$0xff]  ;;  %v3141_v11 = vadd.f32 %v10390_v16, %v3107_v47  ;;  %v8363_v35 = vmul.f32 %v10391_v61, %v8215_v48  ;;  %v10392_v63 = vld [vmem:[#allocation74_spill] sm:$0xff]  ;;  %v10397_v61 = vld [vmem:[#allocation217_spill] sm:$0xff]  ;;  %v2850_v12 = vadd.f32 %v8248_v1, %v2832_v3 }
 0x50f   : > { %v3262_v36 = vadd.f32 %v10386_v45, %v3244_v32  ;;  %v3142_v52 = vadd.f32 %v10387_v53, %v3108_v8  ;;  %v3228_v34 = vld [vmem:[#allocation3 + $0x165] sm:$0xff]  ;;  %v8367_v32 = vmul.f32 %v10392_v63, %v8231_v58  ;;  %v10394_v45 = vld [vmem:[#allocation143_spill] sm:$0xff]  ;;  %v3410_v63 = vmul.f32 %v10164_v59, %v3382_v60  ;;  %v8385_v13 = vld [vmem:[#allocation3 + $0x71] sm:$0xff] }
 0x510   : > { %v10388_v18 = vld [vmem:[#allocation88_spill] sm:$0xff]  ;;  %v3256_v16 = vmul.f32 %v10159_v31, %v3228_v34  ;;  %v8383_v27 = vmul.f32 %v10159_v31, %v8259_v57  ;;  %v10402_v60 = vld [vmem:[#allocation274_spill] sm:$0xff]  ;;  %v3039_v31 = vadd.f32 %v3031_v38, %v3005_v7  ;;  %v8413_v7 = vmul.f32 %v10162_v14, %v8284_v50 }
 0x511   : > { %v3393_v5 = vmul.f32 %v10388_v18, %v8337_v29  ;;  %v10393_v22 = vld [vmem:[#allocation288_spill] sm:$0xff]  ;;  %v3160_v53 = vadd.f32 %v10394_v45, %v3142_v52  ;;  %v8373_v29 = vmul.f32 %v10395_v39, %v8250_v55  ;;  %v10400_v52 = vld [vmem:[#allocation271_spill] sm:$0xff]  ;;  %v3418_v3 = vadd.f32 %v3410_v63, %v3400_v46  ;;  %v10403_v45 = vld [vmem:[#allocation157_spill] sm:$0xff] }
 0x512   : > { %v3296_v30 = vadd.f32 %v10393_v22, %v3262_v36  ;;  %v3383_v8 = vld [vmem:[#allocation3 + $0x141] sm:$0xff]  ;;  %v2884_v63 = vadd.f32 %v8266_v56, %v2850_v12  ;;  %10408 = vst [vmem:[#allocation39_spill] sm:$0xff] %v8413_v7  ;;  %v3057_v56 = vadd.f32 %v8323_v0, %v3039_v31  ;;  %v10412_v7 = vld [vmem:[#allocation198_spill] sm:$0xff]  ;;  %v3464_v31 = vmul.f32 %v10166_v37, %v10226_v33 }
 0x513   : > { %v3401_v25 = vadd.f32 %v3393_v5, %v3367_v44  ;;  %v10396_v24 = vld [vmem:[#allocation196_spill] sm:$0xff]  ;;  %v3411_v5 = vmul.f32 %v10164_v59, %v3383_v8  ;;  %v8388_v44 = vld [vmem:[#allocation3 + $0x52] sm:$0xff]  ;;  %v3308_v8 = vmul.f32 %v10162_v14, %v8117_v62  ;;  %v10411_v14 = vld [vmem:[#allocation87_spill] sm:$0xff] }
 0x514   : > { %v3159_v47 = vadd.f32 %v10396_v24, %v3141_v11  ;;  %v3314_v4 = vadd.f32 %v10397_v61, %v3296_v30  ;;  %v10398_v36 = vld [vmem:[#allocation300_spill] sm:$0xff]  ;;  %10399 = vst [vmem:[#allocation246_spill] sm:$0xff] %v8388_v44  ;;  %v10401_v11 = vld [vmem:[#allocation83_spill] sm:$0xff] }
 0x515   : > { %v3194_v22 = vadd.f32 %v10398_v36, %v3160_v53  ;;  %v8393_v61 = vmul.f32 %v10401_v11, %v8272_v41  ;;  %v8396_v30 = vld [vmem:[#allocation3 + $0x62] sm:$0xff]  ;;  %v3419_v24 = vadd.f32 %v3411_v5, %v3401_v25  ;;  %v10404_v36 = vld [vmem:[#allocation197_spill] sm:$0xff]  ;;  %v3394_v11 = vmul.f32 %v10388_v18, %v8385_v13  ;;  %v3434_v25 = vld [vmem:[#allocation3 + $0x132] sm:$0xff] }
 0x516   : > { %v3193_v34 = vadd.f32 %v10400_v52, %v3159_v47  ;;  %v3350_v1 = vadd.f32 %v10402_v60, %v3314_v4  ;;  %v10405_v52 = vld [vmem:[#allocation200_spill] sm:$0xff]  ;;  %v10406_v4 = vld [vmem:[#allocation89_spill] sm:$0xff] }
 0x517   : > { %v3212_v53 = vadd.f32 %v10403_v45, %v3194_v22  ;;  %v3444_v46 = vmul.f32 %v10406_v4, %v8388_v44  ;;  %v10407_v60 = vld [vmem:[#allocation301_spill] sm:$0xff]  ;;  %v8415_v22 = vld [vmem:[#allocation3 + $0x72] sm:$0xff]  ;;  %v3445_v5 = vmul.f32 %v10406_v4, %v8396_v30 }
 0x518   : > { %v3211_v47 = vadd.f32 %v10404_v36, %v3193_v34  ;;  %v3368_v39 = vadd.f32 %v10405_v52, %v3350_v1  ;;  %v10409_v34 = vld [vmem:[#allocation272_spill] sm:$0xff]  ;;  %v3412_v36 = vmul.f32 %v10164_v59, %v7835_v43  ;;  %v8428_v41 = vld [vmem:[#allocation3 + $0xb0] sm:$0xff]  ;;  %v3462_v43 = vmul.f32 %v10166_v37, %v3434_v25 }
 0x519   : > { %v3246_v38 = vadd.f32 %v10407_v60, %v3212_v53  ;;  %v8422_v52 = vld [vmem:[#allocation3 + $0x142] sm:$0xff]  ;;  %v3452_v12 = vadd.f32 %v3444_v46, %v3418_v3  ;;  %v3344_v60 = vmul.f32 %v10411_v14, %v8128_v49  ;;  %v3453_v50 = vadd.f32 %v3445_v5, %v3419_v24  ;;  %10413 = vst [vmem:[#allocation142_spill] sm:$0xff] %v8428_v41  ;;  %v10414_v3 = vld [vmem:[#allocation302_spill] sm:$0xff] }
 0x51a   : > { %v3245_v1 = vadd.f32 %v10409_v34, %v3211_v47  ;;  %v3402_v45 = vadd.f32 %v3394_v11, %v3368_v39  ;;  %10410 = vst [vmem:[#allocation114_spill] sm:$0xff] %v8422_v52  ;;  %v3446_v39 = vmul.f32 %v10406_v4, %v8415_v22  ;;  %v2902_v11 = vadd.f32 %v8279_v17, %v2884_v63  ;;  %v3477_v24 = vld [vmem:[#allocation3 + $0x43] sm:$0xff]  ;;  %v8439_v46 = vld [vmem:[#allocation3 + $0x53] sm:$0xff] }
 0x51b   : > { %v3264_v53 = vadd.f32 %v3256_v16, %v3246_v38  ;;  %v3463_v16 = vmul.f32 %v10166_v37, %v8422_v52  ;;  %10415 = vst [vmem:[#allocation147_spill] sm:$0xff] %v8439_v46  ;;  %v10416_v38 = vld [vmem:[#allocation273_spill] sm:$0xff]  ;;  %v3470_v34 = vadd.f32 %v3462_v43, %v3452_v12  ;;  %v8444_v25 = vld [vmem:[#allocation3 + $0x73] sm:$0xff]  ;;  %v8447_v17 = vstv %s8398_s3  ;;  %v8462_v52 = vld [vmem:[#allocation3 + $0x81] sm:$0xff] }
 0x51c   : > { %v3263_v44 = vadd.f32 %v10412_v7, %v3245_v1  ;;  %v3420_v47 = vadd.f32 %v3412_v36, %v3402_v45  ;;  %v8442_v1 = vld [vmem:[#allocation3 + $0x63] sm:$0xff]  ;;  %10418 = vst [vmem:[#allocation121_spill] sm:$0xff] %v8444_v25  ;;  %v3091_v63 = vadd.f32 %v8333_v19, %v3057_v56  ;;  %v8454_v33 = vmul.f32 %v10411_v14, %v8428_v41 }
 0x51d   : > { %v3298_v0 = vadd.f32 %v10414_v3, %v3264_v53  ;;  %10417 = vst [vmem:[#allocation40_spill] sm:$0xff] %v8442_v1  ;;  %v3471_v36 = vadd.f32 %v3463_v16, %v3453_v50  ;;  %v10420_v53 = vld [vmem:[#allocation199_spill] sm:$0xff]  ;;  %v3495_v12 = vmul.f32 %v8447_v17, %v3477_v24  ;;  %v10421_v3 = vld [vmem:[#allocation84_spill] sm:$0xff]  ;;  %v3498_v50 = vmul.f32 %v8447_v17, %v8444_v25 }
 0x51e   : > { %v3297_v7 = vadd.f32 %v10416_v38, %v3263_v44  ;;  %v3454_v5 = vadd.f32 %v3446_v39, %v3420_v47  ;;  %10419 = vst [vmem:[#allocation247_spill] sm:$0xff] %v8454_v33  ;;  %v3496_v39 = vmul.f32 %v8447_v17, %v8439_v46  ;;  %v3362_v38 = vmul.f32 %v10421_v3, %v8137_v2  ;;  %v3385_v19 = vld [vmem:[#allocation3 + $0x161] sm:$0xff] }
 0x51f   : > { %v3316_v45 = vadd.f32 %v3308_v8, %v3298_v0  ;;  %v3497_v8 = vmul.f32 %v8447_v17, %v8442_v1  ;;  %v8469_v56 = vadd.f32 %v8292_v40, %v2902_v11  ;;  %v10422_v0 = vld [vmem:[#allocation303_spill] sm:$0xff]  ;;  %v3109_v14 = vadd.f32 %v8341_v6, %v3091_v63  ;;  %v8521_v41 = vld [vmem:[#allocation3 + $0x65] sm:$0xff] }
 0x520   : > { %v3315_v44 = vadd.f32 %v10420_v53, %v3297_v7  ;;  %v3472_v47 = vadd.f32 %v3464_v31, %v3454_v5  ;;  %v8472_v31 = vld [vmem:[#allocation3 + $0x82] sm:$0xff]  ;;  %v3504_v7 = vadd.f32 %v3496_v39, %v3470_v34  ;;  %v10424_v1 = vld [vmem:[#allocation171_spill] sm:$0xff]  ;;  %v3395_v40 = vmul.f32 %v10388_v18, %v8462_v52  ;;  %10434 = vst [vmem:[#allocation43_spill] sm:$0xff] %v8521_v41 }
 0x521   : > { %v3352_v43 = vadd.f32 %v3344_v60, %v3316_v45  ;;  %v10423_v60 = vld [vmem:[#allocation122_spill] sm:$0xff]  ;;  %v3396_v45 = vmul.f32 %v10388_v18, %v8148_v42  ;;  %v3505_v53 = vadd.f32 %v3497_v8, %v3471_v36  ;;  %v3413_v11 = vmul.f32 %v10164_v59, %v3385_v19  ;;  %v10429_v19 = vld [vmem:[#allocation119_spill] sm:$0xff] }
 0x522   : > { %v3351_v16 = vadd.f32 %v10422_v0, %v3315_v44  ;;  %v3503_v24 = vadd.f32 %v3495_v12, %v10423_v60  ;;  %v3506_v33 = vadd.f32 %v3498_v50, %v3472_v47  ;;  %v3529_v44 = vld [vmem:[#allocation3 + $0x44] sm:$0xff]  ;;  %v3414_v12 = vmul.f32 %v10164_v59, %v8157_v20  ;;  %v10425_v47 = vld [vmem:[#allocation131_spill] sm:$0xff] }
 0x523   : > { %v3370_v5 = vadd.f32 %v3362_v38, %v3352_v43  ;;  %v3447_v36 = vmul.f32 %v10406_v4, %v8472_v31  ;;  %v8489_v63 = vld [vmem:[#allocation3 + $0x54] sm:$0xff]  ;;  %v10428_v43 = vld [vmem:[#allocation245_spill] sm:$0xff]  ;;  %v3523_v8 = vadd.f32 %v10429_v19, %v3505_v53  ;;  %v8498_v0 = vstv %s8449_s4  ;;  %v3437_v60 = vld [vmem:[#allocation3 + $0x162] sm:$0xff]  ;;  %s10607_s4 = sld [smem:[#allocation326_spill]] }
 0x524   : > { %v3369_v25 = vadd.f32 %v10424_v1, %v3351_v16  ;;  %v3521_v6 = vadd.f32 %v10425_v47, %v3503_v24  ;;  %10426 = vst [vmem:[#allocation41_spill] sm:$0xff] %v8489_v63  ;;  %v8491_v1 = vld [vmem:[#allocation3 + $0x64] sm:$0xff]  ;;  %v3522_v38 = vadd.f32 %v10428_v43, %v3504_v7  ;;  %v8495_v50 = vld [vmem:[#allocation3 + $0x74] sm:$0xff]  ;;  %v3547_v47 = vmul.f32 %v8498_v0, %v3529_v44 }
 0x525   : > { %v3404_v34 = vadd.f32 %v3396_v45, %v3370_v5  ;;  %10427 = vst [vmem:[#allocation201_spill] sm:$0xff] %v8491_v1  ;;  %10430 = vst [vmem:[#allocation144_spill] sm:$0xff] %v8495_v50  ;;  %v3448_v5 = vmul.f32 %v10406_v4, %v8168_v28  ;;  %v10431_v45 = vld [vmem:[#allocation250_spill] sm:$0xff]  ;;  %v3143_v46 = vadd.f32 %v8346_v51, %v3109_v14 }
 0x526   : > { %v3403_v39 = vadd.f32 %v3395_v40, %v3369_v25  ;;  %v3524_v24 = vadd.f32 %v10431_v45, %v3506_v33  ;;  %v8505_v40 = vld [vmem:[#allocation3 + $0x83] sm:$0xff]  ;;  %v3548_v7 = vmul.f32 %v8498_v0, %v8489_v63  ;;  %v3549_v53 = vmul.f32 %v8498_v0, %v8491_v1  ;;  %v8519_v63 = vld [vmem:[#allocation3 + $0x55] sm:$0xff] }
 0x527   : > { %v3422_v16 = vadd.f32 %v3414_v12, %v3404_v34  ;;  %v3466_v12 = vmul.f32 %v10166_v37, %v8177_v15  ;;  %v3550_v33 = vmul.f32 %v8498_v0, %v8495_v50  ;;  %v3555_v43 = vadd.f32 %v3547_v47, %v3521_v6  ;;  %10433 = vst [vmem:[#allocation149_spill] sm:$0xff] %v8519_v63  ;;  %v8523_v50 = vld [vmem:[#allocation3 + $0x75] sm:$0xff]  ;;  %v10438_v47 = vld [vmem:[#allocation109_spill] sm:$0xff] }
 0x528   : > { %v3421_v25 = vadd.f32 %v3413_v11, %v3403_v39  ;;  %v3465_v51 = vmul.f32 %v10166_v37, %v3437_v60  ;;  %v3556_v14 = vadd.f32 %v3548_v7, %v3522_v38  ;;  %v3557_v11 = vadd.f32 %v3549_v53, %v3523_v8  ;;  %v3581_v39 = vld [vmem:[#allocation3 + $0x45] sm:$0xff]  ;;  %10435 = vst [vmem:[#allocation222_spill] sm:$0xff] %v8523_v50  ;;  %v10437_v8 = vld [vmem:[#allocation123_spill] sm:$0xff] }
 0x529   : > { %v3456_v34 = vadd.f32 %v3448_v5, %v3422_v16  ;;  %v3499_v45 = vmul.f32 %v8447_v17, %v8505_v40  ;;  %v3558_v1 = vadd.f32 %v3550_v33, %v3524_v24  ;;  %v10432_v16 = vld [vmem:[#allocation90_spill] sm:$0xff]  ;;  %v8529_v38 = vld [vmem:[#allocation3 + $0x84] sm:$0xff]  ;;  %v8534_v24 = vstv %s8482_s5  ;;  %s10608_s5 = sld [smem:[#allocation15_spill]] }
 0x52a   : > { %v3455_v44 = vadd.f32 %v3447_v36, %v3421_v25  ;;  %v3573_v5 = vadd.f32 %v10432_v16, %v3555_v43  ;;  %v8527_v36 = vld [vmem:[#allocation3 + $0x190] sm:$0xff]  ;;  %10436 = vst [vmem:[#allocation248_spill] sm:$0xff] %v8529_v38  ;;  %v3574_v60 = vadd.f32 %v10437_v8, %v3556_v14  ;;  %v3575_v25 = vadd.f32 %v10438_v47, %v3557_v11  ;;  %v10441_v16 = vld [vmem:[#allocation255_spill] sm:$0xff] }
 0x52b   : > { %v3474_v19 = vadd.f32 %v3466_v12, %v3456_v34  ;;  %v3161_v7 = vadd.f32 %v8352_v10, %v3143_v46  ;;  %v3500_v53 = vmul.f32 %v8447_v17, %v8188_v21  ;;  %v10439_v34 = vld [vmem:[#allocation91_spill] sm:$0xff]  ;;  %v3599_v33 = vmul.f32 %v8534_v24, %v3581_v39  ;;  %v8541_v43 = vld [vmem:[#allocation3 + $0xb1] sm:$0xff] }
 0x52c   : > { %v3473_v6 = vadd.f32 %v3465_v51, %v3455_v44  ;;  %v3576_v12 = vadd.f32 %v10439_v34, %v3558_v1  ;;  %v3600_v51 = vmul.f32 %v8534_v24, %v8519_v63  ;;  %v3601_v14 = vmul.f32 %v8534_v24, %v8521_v41  ;;  %v8553_v46 = vld [vmem:[#allocation3 + $0x191] sm:$0xff] }
 0x52d   : > { %v3602_v11 = vmul.f32 %v8534_v24, %v8523_v50  ;;  %v8551_v10 = vmul.f32 %v10421_v3, %v8527_v36  ;;  %v3508_v1 = vadd.f32 %v3500_v53, %v3474_v19  ;;  %v3551_v39 = vmul.f32 %v8498_v0, %v8529_v38  ;;  %v3585_v53 = vld [vmem:[#allocation3 + $0x85] sm:$0xff] }
 0x52e   : > { %v3507_v44 = vadd.f32 %v3499_v45, %v3473_v6  ;;  %v3607_v45 = vadd.f32 %v3599_v33, %v3573_v5  ;;  %v3608_v8 = vadd.f32 %v3600_v51, %v3574_v60  ;;  %v3609_v47 = vadd.f32 %v3601_v14, %v3575_v25  ;;  %v3633_v60 = vld [vmem:[#allocation3 + $0x46] sm:$0xff]  ;;  %v8571_v25 = vld [vmem:[#allocation3 + $0x56] sm:$0xff] }
 0x52f   : > { %10440 = vst [vmem:[#allocation44_spill] sm:$0xff] %v8551_v10  ;;  %v3610_v34 = vadd.f32 %v3602_v11, %v3576_v12  ;;  %v8562_v50 = vadd.f32 %v8303_v9, %v8469_v56  ;;  %v3195_v3 = vadd.f32 %v8363_v35, %v3161_v7  ;;  %v8567_v19 = vmul.f32 %v10388_v18, %v8541_v43  ;;  %v10446_v56 = vld [vmem:[#allocation304_spill] sm:$0xff]  ;;  %v8581_v51 = vld [vmem:[#allocation3 + $0x76] sm:$0xff]  ;;  %v10452_v63 = vld [vmem:[#allocation117_spill] sm:$0xff] }
 0x530   : > { %v3525_v6 = vadd.f32 %v10441_v16, %v3507_v44  ;;  %v3518_v5 = vmul.f32 %v10075_v26, %v8201_v54  ;;  %10444 = vst [vmem:[#allocation146_spill] sm:$0xff] %v8571_v25  ;;  %v8575_v12 = vmul.f32 %v10164_v59, %v8553_v46  ;;  %v3625_v33 = vadd.f32 %v10446_v56, %v3607_v45  ;;  %v10447_v44 = vld [vmem:[#allocation305_spill] sm:$0xff]  ;;  %v10450_v11 = vld [vmem:[#allocation194_spill] sm:$0xff] }
 0x531   : > { %10442 = vst [vmem:[#allocation45_spill] sm:$0xff] %v8562_v50  ;;  %10443 = vst [vmem:[#allocation202_spill] sm:$0xff] %v8567_v19  ;;  %v3626_v35 = vadd.f32 %v10447_v44, %v3608_v8  ;;  %v8579_v7 = vld [vmem:[#allocation3 + $0x66] sm:$0xff]  ;;  %v3627_v16 = vadd.f32 %v10450_v11, %v3609_v47  ;;  %v8586_v10 = vstv %s8525_s6  ;;  %v3603_v59 = vmul.f32 %v8534_v24, %v3585_v53  ;;  %v8607_v11 = vld [vmem:[#allocation3 + $0x70] sm:$0xff]  ;;  %s474_s6 = scalar_lea.vmem [#allocation8], %s4729_s1 }
 0x532   : > { %10445 = vst [vmem:[#allocation151_spill] sm:$0xff] %v8575_v12  ;;  %v3559_v9 = vadd.f32 %v3551_v39, %v3525_v6  ;;  %10448 = vst [vmem:[#allocation46_spill] sm:$0xff] %v8579_v7  ;;  %v3526_v14 = vadd.f32 %v3518_v5, %v3508_v1  ;;  %v10451_v19 = vld [vmem:[#allocation112_spill] sm:$0xff]  ;;  %v3651_v45 = vmul.f32 %v8586_v10, %v3633_v60  ;;  %v3686_v60 = vld [vmem:[#allocation3 + $0x50] sm:$0xff] }
 0x533   : > { %10449 = vst [vmem:[#allocation291_spill] sm:$0xff] %v8581_v51  ;;  %v3628_v41 = vadd.f32 %v10451_v19, %v3610_v34  ;;  %v3637_v39 = vld [vmem:[#allocation3 + $0x86] sm:$0xff]  ;;  %v3652_v6 = vmul.f32 %v8586_v10, %v8571_v25  ;;  %v3213_v8 = vadd.f32 %v8367_v32, %v3195_v3  ;;  %v3552_v1 = vmul.f32 %v8498_v0, %v8215_v48  ;;  %v10455_v25 = vld [vmem:[#allocation307_spill] sm:$0xff] }
 0x534   : > { %v3577_v18 = vadd.f32 %v10452_v63, %v3559_v9  ;;  %v3653_v47 = vmul.f32 %v8586_v10, %v8579_v7  ;;  %v3654_v34 = vmul.f32 %v8586_v10, %v8581_v51  ;;  %v3570_v63 = vmul.f32 %v10082_v23, %v8231_v58  ;;  %v8605_v44 = vld [vmem:[#allocation3 + $0x60] sm:$0xff]  ;;  %v10454_v7 = vld [vmem:[#allocation306_spill] sm:$0xff] }
 0x535   : > { %v3659_v5 = vadd.f32 %v3651_v45, %v3625_v33  ;;  %v3660_v53 = vadd.f32 %v3652_v6, %v3626_v35  ;;  %v3560_v32 = vadd.f32 %v3552_v1, %v3526_v14  ;;  %v3655_v3 = vmul.f32 %v8586_v10, %v3637_v39  ;;  %v8609_v51 = vld [vmem:[#allocation3 + $0x80] sm:$0xff]  ;;  %v10458_v35 = vld [vmem:[#allocation93_spill] sm:$0xff] }
 0x536   : > { %v3611_v19 = vadd.f32 %v3603_v59, %v3577_v18  ;;  %v3661_v9 = vadd.f32 %v3653_v47, %v3627_v16  ;;  %v3662_v56 = vadd.f32 %v3654_v34, %v3628_v41  ;;  %10453 = vst [vmem:[#allocation130_spill] sm:$0xff] %v8609_v51  ;;  %v10456_v50 = vld [vmem:[#allocation308_spill] sm:$0xff]  ;;  %v8615_v33 = vstv %s8558_s7  ;;  %v10459_v59 = vld [vmem:[#allocation195_spill] sm:$0xff]  ;;  %s4903_s7 = sshll.u32 %s10608_s5, 10 }
 0x537   : > { %v3677_v38 = vadd.f32 %v10455_v25, %v3659_v5  ;;  %v3678_v18 = vadd.f32 %v10456_v50, %v3660_v53  ;;  %10457 = vst [vmem:[#allocation223_spill] sm:$0xff] %v8615_v33  ;;  %v3673_v14 = vmul.f32 %v10458_v35, %v8117_v62  ;;  %v10460_v41 = vld [vmem:[#allocation107_spill] sm:$0xff]  ;;  %v3705_v45 = vmul.f32 %v8615_v33, %v3686_v60 }
 0x538   : > { %v3629_v12 = vadd.f32 %v10454_v7, %v3611_v19  ;;  %v3679_v16 = vadd.f32 %v10459_v59, %v3661_v9  ;;  %v3680_v39 = vadd.f32 %v10460_v41, %v3662_v56  ;;  %v3706_v1 = vmul.f32 %v8615_v33, %v8605_v44  ;;  %v10461_v56 = vld [vmem:[#allocation94_spill] sm:$0xff]  ;;  %v10465_v41 = vld [vmem:[#allocation116_spill] sm:$0xff] }
 0x539   : > { %v3707_v25 = vmul.f32 %v8615_v33, %v8607_v11  ;;  %v3708_v50 = vmul.f32 %v8615_v33, %v8609_v51  ;;  %v3247_v7 = vadd.f32 %v8373_v29, %v3213_v8  ;;  %v3578_v62 = vadd.f32 %v3570_v63, %v3560_v32  ;;  %v10462_v8 = vld [vmem:[#allocation309_spill] sm:$0xff]  ;;  %v3648_v51 = vld [vmem:[#allocation3 + $0x196] sm:$0xff] }
 0x53a   : > { %v3663_v6 = vadd.f32 %v3655_v3, %v3629_v12  ;;  %v3709_v47 = vmul.f32 %v8615_v33, %v8128_v49  ;;  %v3713_v34 = vadd.f32 %v3705_v45, %v3677_v38  ;;  %v8633_v12 = vld [vmem:[#allocation3 + $0xb2] sm:$0xff]  ;;  %v3714_v5 = vadd.f32 %v3706_v1, %v3678_v18  ;;  %v10464_v38 = vld [vmem:[#allocation124_spill] sm:$0xff] }
 0x53b   : > { %v3715_v53 = vadd.f32 %v3707_v25, %v3679_v16  ;;  %v3716_v60 = vadd.f32 %v3708_v50, %v3680_v39  ;;  %v3739_v3 = vld [vmem:[#allocation3 + $0x51] sm:$0xff]  ;;  %v3604_v9 = vmul.f32 %v8534_v24, %v8250_v55  ;;  %v3727_v29 = vmul.f32 %v10461_v56, %v8137_v2 }
 0x53c   : > { %v3681_v19 = vadd.f32 %v3673_v14, %v3663_v6  ;;  %v3731_v63 = vadd.f32 %v10462_v8, %v3713_v34  ;;  %v8641_v32 = vstv %s8600_s8  ;;  %v3732_v59 = vadd.f32 %v10464_v38, %v3714_v5  ;;  %v10466_v14 = vld [vmem:[#allocation22_spill] sm:$0xff]  ;;  %s4649_s8 = sshll.u32 %s474_s6, 4  ;;  %s9277_s8 = int_to_ptr.vmem [resolvable:$true] %s4649_s8 }
 0x53d   : > { %10463 = vst [vmem:[#allocation249_spill] sm:$0xff] %v8641_v32  ;;  %v3733_v45 = vadd.f32 %v10465_v41, %v3715_v53  ;;  %v3734_v18 = vadd.f32 %v10466_v14, %v3716_v60  ;;  %v8648_v16 = vmul.f32 %v10406_v4, %v8633_v12  ;;  %v3757_v39 = vmul.f32 %v8641_v32, %v3739_v3  ;;  %v10467_v6 = vld [vmem:[#allocation42_spill] sm:$0xff]  ;;  %v10471_v41 = vld [vmem:[#allocation311_spill] sm:$0xff] }
 0x53e   : > { %v3717_v49 = vadd.f32 %v3709_v47, %v3681_v19  ;;  %v3758_v2 = vmul.f32 %v8641_v32, %v10467_v6  ;;  %v3760_v1 = vmul.f32 %v8641_v32, %v8462_v52  ;;  %v8655_v25 = vld [vmem:[#allocation3 + $0x192] sm:$0xff]  ;;  %v3612_v50 = vadd.f32 %v3604_v9, %v3578_v62  ;;  %v10468_v62 = vld [vmem:[#allocation92_spill] sm:$0xff] }
 0x53f   : > { %v3759_v34 = vmul.f32 %v8641_v32, %v8385_v13  ;;  %v3761_v19 = vmul.f32 %v8641_v32, %v8148_v42  ;;  %v3265_v5 = vadd.f32 %v8383_v27, %v3247_v7  ;;  %v8664_v53 = vld [vmem:[#allocation3 + $0xb3] sm:$0xff]  ;;  %v3765_v60 = vadd.f32 %v3757_v39, %v3731_v63  ;;  %v10470_v27 = vld [vmem:[#allocation128_spill] sm:$0xff] }
 0x540   : > { %v3735_v47 = vadd.f32 %v3727_v29, %v3717_v49  ;;  %v3766_v3 = vadd.f32 %v3758_v2, %v3732_v59  ;;  %v3768_v52 = vadd.f32 %v3760_v1, %v3734_v18  ;;  %v8666_v8 = vld [vmem:[#allocation3 + $0x193] sm:$0xff]  ;;  %v3622_v9 = vmul.f32 %v10468_v62, %v8259_v57 }
 0x541   : > { %v3767_v29 = vadd.f32 %v3759_v34, %v3733_v45  ;;  %v10469_v49 = vld [vmem:[#allocation95_spill] sm:$0xff]  ;;  %v8674_v42 = vmul.f32 %v10166_v37, %v8655_v25  ;;  %v8679_v59 = vstv %s8631_s9  ;;  %v8683_v14 = vmul.f32 %v8447_v17, %v8664_v53  ;;  %v10474_v37 = vld [vmem:[#allocation310_spill] sm:$0xff] }
 0x542   : > { %v3769_v13 = vadd.f32 %v3761_v19, %v3735_v47  ;;  %v3779_v38 = vmul.f32 %v10469_v49, %v8157_v20  ;;  %v3784_v7 = vadd.f32 %v10470_v27, %v3766_v3  ;;  %v3786_v63 = vadd.f32 %v10471_v41, %v3768_v52  ;;  %10472 = vst [vmem:[#allocation134_spill] sm:$0xff] %v8679_v59  ;;  %v10475_v47 = vld [vmem:[#allocation139_spill] sm:$0xff] }
 0x543   : > { %v3630_v18 = vadd.f32 %v3622_v9, %v3612_v50  ;;  %v3810_v39 = vmul.f32 %v8679_v59, %v8396_v30  ;;  %v8689_v20 = vmul.f32 %v10075_v26, %v8666_v8  ;;  %v3783_v6 = vadd.f32 %v10474_v37, %v3765_v60  ;;  %v10476_v19 = vld [vmem:[#allocation111_spill] sm:$0xff]  ;;  %v10477_v60 = vld [vmem:[#allocation246_spill] sm:$0xff] }
 0x544   : > { %v3787_v45 = vadd.f32 %v3779_v38, %v3769_v13  ;;  %v3812_v2 = vmul.f32 %v8679_v59, %v8472_v31  ;;  %v3813_v1 = vmul.f32 %v8679_v59, %v8168_v28  ;;  %v3299_v50 = vadd.f32 %v8393_v61, %v3265_v5  ;;  %v8702_v52 = vld [vmem:[#allocation3 + $0xb4] sm:$0xff]  ;;  %v10478_v28 = vld [vmem:[#allocation96_spill] sm:$0xff] }
 0x545   : > { %10473 = vst [vmem:[#allocation47_spill] sm:$0xff] %v8689_v20  ;;  %v3656_v34 = vmul.f32 %v8586_v10, %v10475_v47  ;;  %v3785_v3 = vadd.f32 %v10476_v19, %v3767_v29  ;;  %v3818_v26 = vadd.f32 %v3810_v39, %v3784_v7  ;;  %v3809_v9 = vmul.f32 %v8679_v59, %v10477_v60  ;;  %v3544_v27 = vld [vmem:[#allocation3 + $0x194] sm:$0xff]  ;;  %v10537_v20 = vld [vmem:[#allocation81_spill] sm:$0xff] }
 0x546   : > { %v3820_v31 = vadd.f32 %v3812_v2, %v3786_v63  ;;  %v3821_v13 = vadd.f32 %v3813_v1, %v3787_v45  ;;  %v3831_v38 = vmul.f32 %v10478_v28, %v8177_v15  ;;  %v8708_v41 = vld [vmem:[#allocation3 + $0xb5] sm:$0xff]  ;;  %v3811_v5 = vmul.f32 %v8679_v59, %v8415_v22  ;;  %v10481_v63 = vld [vmem:[#allocation21_spill] sm:$0xff] }
 0x547   : > { %v3664_v61 = vadd.f32 %v3656_v34, %v3630_v18  ;;  %v10479_v37 = vld [vmem:[#allocation190_spill] sm:$0xff]  ;;  %v8714_v7 = vstv %s8661_s10  ;;  %v3817_v60 = vadd.f32 %v3809_v9, %v3783_v6  ;;  %v10482_v18 = vld [vmem:[#allocation39_spill] sm:$0xff]  ;;  %v8724_v22 = vmul.f32 %v8498_v0, %v8702_v52  ;;  %v10484_v34 = vld [vmem:[#allocation37_spill] sm:$0xff] }
 0x548   : > { %v3836_v29 = vadd.f32 %v10479_v37, %v3818_v26  ;;  %10480 = vst [vmem:[#allocation283_spill] sm:$0xff] %v8714_v7  ;;  %v3596_v39 = vld [vmem:[#allocation3 + $0x195] sm:$0xff]  ;;  %v3838_v45 = vadd.f32 %v10481_v63, %v3820_v31  ;;  %v3839_v2 = vadd.f32 %v3831_v38, %v3821_v13  ;;  %v3865_v15 = vmul.f32 %v8714_v7, %v8188_v21  ;;  %v10487_v31 = vld [vmem:[#allocation97_spill] sm:$0xff] }
 0x549   : > { %v3640_v19 = vld [vmem:[#allocation3 + $0xb6] sm:$0xff]  ;;  %v3317_v1 = vadd.f32 %v10482_v18, %v3299_v50  ;;  %10483 = vst [vmem:[#allocation48_spill] sm:$0xff] %v8724_v22  ;;  %v3674_v26 = vmul.f32 %v10458_v35, %v10484_v34  ;;  %v3819_v37 = vadd.f32 %v3811_v5, %v3785_v3  ;;  %v8729_v6 = vmul.f32 %v10082_v23, %v3544_v27  ;;  %v10492_v18 = vld [vmem:[#allocation312_spill] sm:$0xff] }
 0x54a   : > { %v8733_v9 = vmul.f32 %v8534_v24, %v8708_v41  ;;  %v3873_v21 = vadd.f32 %v3865_v15, %v3839_v2  ;;  %v3883_v13 = vmul.f32 %v10487_v31, %v8201_v54  ;;  %v8738_v50 = vmul.f32 %v10468_v62, %v3596_v39  ;;  %v10491_v23 = vld [vmem:[#allocation142_spill] sm:$0xff] }
 0x54b   : > { %10485 = vst [vmem:[#allocation259_spill] sm:$0xff] %v8729_v6  ;;  %v8741_v38 = vmul.f32 %v8586_v10, %v3640_v19  ;;  %v8744_v63 = vmul.f32 %v10458_v35, %v3648_v51  ;;  %v8746_v3 = vadd.f32 %v3674_v26, %v3664_v61  ;;  %v8750_v5 = vmul.f32 %v8615_v33, %v10491_v23  ;;  %v10493_v35 = vld [vmem:[#allocation106_spill] sm:$0xff]  ;;  %v10495_v26 = vld [vmem:[#allocation147_spill] sm:$0xff]  ;;  %v10524_v6 = vld [vmem:[#allocation173_spill] sm:$0xff] }
 0x54c   : > { %10486 = vst [vmem:[#allocation203_spill] sm:$0xff] %v8733_v9  ;;  %10488 = vst [vmem:[#allocation148_spill] sm:$0xff] %v8738_v50  ;;  %v3835_v2 = vadd.f32 %v10492_v18, %v3817_v60  ;;  %v3891_v15 = vadd.f32 %v3883_v13, %v3873_v21  ;;  %v8754_v9 = vstv %s8696_s11  ;;  %v8760_v54 = vmul.f32 %v10461_v56, %v8527_v36  ;;  %v10496_v13 = vld [vmem:[#allocation40_spill] sm:$0xff]  ;;  %v10497_v18 = vld [vmem:[#allocation121_spill] sm:$0xff] }
 0x54d   : > { %10489 = vst [vmem:[#allocation153_spill] sm:$0xff] %v8741_v38  ;;  %10490 = vst [vmem:[#allocation294_spill] sm:$0xff] %v8744_v63  ;;  %v8764_v51 = vmul.f32 %v8641_v32, %v8541_v43  ;;  %v3837_v62 = vadd.f32 %v10493_v35, %v3819_v37  ;;  %v3917_v61 = vmul.f32 %v8754_v9, %v8215_v48  ;;  %v8800_v63 = vstv %s8719_s12  ;;  %s10610_s12 = sld [smem:[#allocation327_spill]] }
 0x54e   : > { %v8771_v39 = vmul.f32 %v10469_v49, %v8553_v46  ;;  %v8775_v19 = vmul.f32 %v8679_v59, %v8633_v12  ;;  %v8779_v60 = vmul.f32 %v10478_v28, %v8655_v25  ;;  %v3861_v21 = vmul.f32 %v8714_v7, %v10495_v26  ;;  %v10498_v49 = vld [vmem:[#allocation98_spill] sm:$0xff]  ;;  %v2962_v12 = vld [vmem:[#allocation3 + $0xa0] sm:$0xff] }
 0x54f   : > { %v3862_v37 = vmul.f32 %v8714_v7, %v10496_v13  ;;  %v3863_v48 = vmul.f32 %v8714_v7, %v10497_v18  ;;  %v3925_v35 = vadd.f32 %v3917_v61, %v3891_v15  ;;  %v3935_v56 = vmul.f32 %v10498_v49, %v8231_v58 }
 0x550   : > { %10494 = vst [vmem:[#allocation159_spill] sm:$0xff] %v8779_v60  ;;  %v3864_v25 = vmul.f32 %v8714_v7, %v8505_v40  ;;  %v8795_v28 = vmul.f32 %v8714_v7, %v8664_v53  ;;  %v8797_v26 = vadd.f32 %v3861_v21, %v3835_v2  ;;  %v3969_v61 = vmul.f32 %v8800_v63, %v8250_v55 }
 0x551   : > { %v8802_v38 = vadd.f32 %v3862_v37, %v3836_v29  ;;  %v8804_v15 = vadd.f32 %v3863_v48, %v3837_v62  ;;  %v3943_v58 = vadd.f32 %v3935_v56, %v3925_v35  ;;  %v8814_v53 = vmul.f32 %v10487_v31, %v8666_v8  ;;  %v10504_v29 = vld [vmem:[#allocation77_spill] sm:$0xff]  ;;  %v8832_v8 = vld [vmem:[#allocation3 + $0xa1] sm:$0xff] }
 0x552   : > { %10499 = vst [vmem:[#allocation49_spill] sm:$0xff] %v8795_v28  ;;  %v8810_v40 = vadd.f32 %v3864_v25, %v3838_v45  ;;  %v8817_v2 = vmul.f32 %v10498_v49, %v3544_v27  ;;  %v2980_v21 = vmul.f32 %v10504_v29, %v2962_v12  ;;  %v10505_v37 = vld [vmem:[#allocation41_spill] sm:$0xff]  ;;  %v10507_v45 = vld [vmem:[#allocation99_spill] sm:$0xff]  ;;  %v10508_v27 = vld [vmem:[#allocation144_spill] sm:$0xff]  ;;  %v8839_v25 = vstv %s8756_s13 }
 0x553   : > { %10500 = vst [vmem:[#allocation103_spill] sm:$0xff] %v8804_v15  ;;  %10502 = vst [vmem:[#allocation224_spill] sm:$0xff] %v8814_v53  ;;  %v8822_v62 = vmul.f32 %v8754_v9, %v10505_v37  ;;  %v10506_v56 = vld [vmem:[#allocation201_spill] sm:$0xff]  ;;  %v3977_v18 = vadd.f32 %v3969_v61, %v3943_v58  ;;  %v3987_v48 = vmul.f32 %v10507_v45, %v8259_v57  ;;  %v10512_v53 = vld [vmem:[#allocation248_spill] sm:$0xff]  ;;  %v8914_v22 = vstv %s8857_s15  ;;  %s9275_s13 = scalar_lea.hbm %s10610_s12, %s4903_s7 }
 0x554   : > { %10501 = vst [vmem:[#allocation141_spill] sm:$0xff] %v8810_v40  ;;  %10503 = vst [vmem:[#allocation227_spill] sm:$0xff] %v8817_v2  ;;  %v8826_v55 = vmul.f32 %v8754_v9, %v10506_v56  ;;  %v8836_v35 = vmul.f32 %v8754_v9, %v10508_v27  ;;  %v10510_v29 = vld [vmem:[#allocation45_spill] sm:$0xff]  ;;  %v10511_v2 = vld [vmem:[#allocation87_spill] sm:$0xff]  ;;  %v8845_v58 = vmul.f32 %v8754_v9, %v10512_v53 }
 0x555   : > { %v2988_v37 = vadd.f32 %v2980_v21, %v10510_v29  ;;  %v3345_v40 = vmul.f32 %v10511_v2, %v2962_v12  ;;  %v8849_v57 = vmul.f32 %v8754_v9, %v8702_v52  ;;  %v3995_v61 = vadd.f32 %v3987_v48, %v3977_v18  ;;  %v10516_v21 = vld [vmem:[#allocation23_spill] sm:$0xff]  ;;  %v10517_v53 = vld [vmem:[#allocation78_spill] sm:$0xff]  ;;  %v10518_v52 = vld [vmem:[#allocation100_spill] sm:$0xff] }
 0x556   : > { %10509 = vst [vmem:[#allocation50_spill] sm:$0xff] %v8836_v35  ;;  %10513 = vst [vmem:[#allocation295_spill] sm:$0xff] %v8845_v58  ;;  %v4021_v50 = vmul.f32 %v8839_v25, %v10475_v47  ;;  %v8855_v27 = vmul.f32 %v8800_v63, %v8708_v41  ;;  %v3032_v29 = vmul.f32 %v10517_v53, %v8832_v8  ;;  %v8865_v48 = vstv %s8789_s14  ;;  %v8869_v47 = vld [vmem:[#allocation3 + $0xa2] sm:$0xff]  ;;  %s9284_s14 = scalar_lea.sflag [#allocation6], %s472_s27 }
 0x557   : > { %10514 = vst [vmem:[#allocation51_spill] sm:$0xff] %v8849_v57  ;;  %v3006_v2 = vadd.f32 %v10516_v21, %v2988_v37  ;;  %v3353_v58 = vadd.f32 %v3345_v40, %v3317_v1  ;;  %v4039_v18 = vmul.f32 %v10518_v52, %v10484_v34  ;;  %v3710_v41 = vmul.f32 %v8615_v33, %v2962_v12  ;;  %v10521_v53 = vld [vmem:[#allocation28_spill] sm:$0xff] }
 0x558   : > { %10515 = vst [vmem:[#allocation204_spill] sm:$0xff] %v8855_v27  ;;  %v4029_v28 = vadd.f32 %v4021_v50, %v3995_v61  ;;  %v10519_v27 = vld [vmem:[#allocation101_spill] sm:$0xff]  ;;  %v10522_v50 = vld [vmem:[#allocation88_spill] sm:$0xff]  ;;  %v8881_v61 = vmul.f32 %v8865_v48, %v10491_v23  ;;  %v8884_v57 = vstv %s8808_s29  ;;  %s5133_s29 = scalar_lea.vmem %s9277_s8, 1024 }
 0x559   : > { %v8874_v37 = vmul.f32 %v10519_v27, %v8527_v36  ;;  %v3040_v21 = vadd.f32 %v3032_v29, %v3006_v2  ;;  %v3371_v1 = vadd.f32 %v10521_v53, %v3353_v58  ;;  %v3397_v40 = vmul.f32 %v10522_v50, %v8832_v8  ;;  %v10525_v2 = vld [vmem:[#allocation79_spill] sm:$0xff]  ;;  %p5134_p9 = scmp.ne.s32.totalorder %s9277_s8, %s5133_s29 }
 0x55a   : > { %v4047_v34 = vadd.f32 %v4039_v18, %v4029_v28  ;;  %10523 = vst [vmem:[#allocation156_spill] sm:$0xff] %v8881_v61  ;;  %v3718_v33 = vadd.f32 %v3710_v41, %v8746_v3  ;;  %v3084_v29 = vmul.f32 %v10525_v2, %v8869_v47  ;;  %v4075_v53 = vmul.f32 %v8865_v48, %v2962_v12  ;;  %v3851_v28 = vld [vmem:[#allocation3 + $0x133] sm:$0xff] }
 0x55b   : > { %10520 = vst [vmem:[#allocation150_spill] sm:$0xff] %v8874_v37  ;;  %v3058_v36 = vadd.f32 %v10524_v6, %v3040_v21  ;;  %v3405_v58 = vadd.f32 %v3397_v40, %v3371_v1  ;;  %v10526_v18 = vld [vmem:[#allocation102_spill] sm:$0xff]  ;;  %v8898_v50 = vstv %s8830_s30  ;;  %v8900_v37 = vld [vmem:[#allocation3 + $0xa3] sm:$0xff]  ;;  %v10528_v61 = vld [vmem:[#allocation135_spill] sm:$0xff]  ;;  %v3762_v6 = vmul.f32 %v8641_v32, %v8832_v8  ;;  %p5135_p10 = pnand %p5134_p9, %p5322_p5  ;;  %s5206_s30 = smov [#allocation8]  }
 0x55c   : > { %v8895_v23 = vmul.f32 %v10526_v18, %v8553_v46  ;;  %v3736_v3 = vadd.f32 %v10528_v61, %v3718_v33  ;;  %v10529_v21 = vld [vmem:[#allocation32_spill] sm:$0xff]  ;;  %v3449_v12 = vmul.f32 %v10406_v4, %v8869_v47  ;;  %v4083_v40 = vadd.f32 %v4075_v53, %v4047_v34  ;;  %v10531_v33 = vld [vmem:[#allocation26_spill] sm:$0xff]  ;;  %s5137_s15 = sshll.u32 %s5206_s30, 4  ;;  %s5138_s15 = int_to_ptr.vmem [resolvable:$false] %s5137_s15 }
 0x55d   : > { %v3092_v41 = vadd.f32 %v3084_v29, %v3058_v36  ;;  %v3423_v1 = vadd.f32 %v10529_v21, %v3405_v58  ;;  %v8910_v46 = vmul.f32 %v8884_v57, %v8541_v43  ;;  %v10532_v32 = vld [vmem:[#allocation80_spill] sm:$0xff]  ;;  %v5205_v58 = vmov 0   ;;  %v3903_v4 = vld [vmem:[#allocation3 + $0x134] sm:$0xff]  ;;  %p5136_p12 = pneg %p5135_p10  ;;  %p5140_p13 = scmp.lt.s32.totalorder %s9277_s8, %s5138_s15 }
 0x55e   : > { %10527 = vst [vmem:[#allocation287_spill] sm:$0xff] %v8895_v23  ;;  %v3770_v2 = vadd.f32 %v3762_v6, %v3736_v3  ;;  %v3879_v23 = vmul.f32 %v10487_v31, %v3851_v28  ;;  %v3136_v36 = vmul.f32 %v10532_v32, %v8900_v37  ;;  %5060 = vset.pattern.permute.xlu0 %v5205_v58  ;;  %v8920_v34 = vstv %s8867_s16  ;;  %v3170_v53 = vld [vmem:[#allocation3 + $0xa4] sm:$0xff]  ;;  %s5139_s16 = scalar_lea.vmem %s5138_s15, 2048 }
 0x55f   : > { %10530 = vst [vmem:[#allocation52_spill] sm:$0xff] %v8910_v46  ;;  %v3110_v61 = vadd.f32 %v10531_v33, %v3092_v41  ;;  %v3457_v29 = vadd.f32 %v3449_v12, %v3423_v1  ;;  %v10533_v43 = vld [vmem:[#allocation76_spill] sm:$0xff]  ;;  %v3814_v28 = vmul.f32 %v8679_v59, %v8869_v47  ;;  %5061 = vset.pattern.permute.xlu1 %v5205_v58  ;;  %v10534_v41 = vld [vmem:[#allocation33_spill] sm:$0xff]  ;;  %v8931_v46 = vstv %s8886_s17  ;;  %p5141_p0 = scmp.lt.s32.totalorder %s5139_s16, %s5133_s29 }
 0x560   : > { %v3788_v21 = vadd.f32 %v10533_v43, %v3770_v2  ;;  %v3887_v3 = vadd.f32 %v3879_v23, %v8797_v26  ;;  %v3501_v32 = vmul.f32 %v8447_v17, %v8900_v37  ;;  %v10535_v1 = vld [vmem:[#allocation137_spill] sm:$0xff]  ;;  %v3931_v2 = vmul.f32 %v10498_v49, %v3903_v4  ;;  %v10536_v43 = vld [vmem:[#allocation24_spill] sm:$0xff] }
 0x561   : > { %v3144_v6 = vadd.f32 %v3136_v36, %v3110_v61  ;;  %v3475_v33 = vadd.f32 %v10534_v41, %v3457_v29  ;;  %v4101_v12 = vadd.f32 %v10535_v1, %v4083_v40  ;;  %v3188_v26 = vmul.f32 %v10537_v20, %v3170_v53  ;;  %v3222_v23 = vld [vmem:[#allocation3 + $0xa5] sm:$0xff]  ;;  %v3955_v29 = vld [vmem:[#allocation3 + $0x135] sm:$0xff]  ;;  %p5142_p1 = por %p5141_p0, %p5140_p13 }
 0x562   : > { %v3822_v35 = vadd.f32 %v3814_v28, %v3788_v21  ;;  %v3921_v60 = vadd.f32 %v8822_v62, %v3887_v3  ;;  %v4127_v36 = vmul.f32 %v8884_v57, %v8832_v8  ;;  %v8939_v17 = vld [vmem:[#allocation3 + $0xa6] sm:$0xff]  ;;  %v3866_v21 = vmul.f32 %v8714_v7, %v8900_v37  ;;  %v10543_v7 = vld [vmem:[#allocation83_spill] sm:$0xff] }
 0x563   : > { %v3162_v59 = vadd.f32 %v10536_v43, %v3144_v6  ;;  %v3509_v61 = vadd.f32 %v3501_v32, %v3475_v33  ;;  %v10538_v40 = vld [vmem:[#allocation85_spill] sm:$0xff]  ;;  %v10540_v6 = vld [vmem:[#allocation35_spill] sm:$0xff]  ;;  %v3553_v41 = vmul.f32 %v8498_v0, %v3170_v53  ;;  %v10541_v32 = vld [vmem:[#allocation82_spill] sm:$0xff]  ;;  %v3983_v15 = vmul.f32 %v10507_v45, %v3955_v29  ;;  %p5143_p2 = pnand %p5142_p1, %p5136_p12 }
 0x564   : > { %v3840_v58 = vadd.f32 %v10538_v40, %v3822_v35  ;;  %v3939_v62 = vadd.f32 %v3931_v2, %v3921_v60  ;;  %v10539_v28 = vld [vmem:[#allocation149_spill] sm:$0xff]  ;;  %v4135_v33 = vadd.f32 %v4127_v36, %v4101_v12  ;;  %v3240_v8 = vmul.f32 %v10541_v32, %v3222_v23  ;;  %v10545_v36 = vld [vmem:[#allocation146_spill] sm:$0xff]  ;;  %v10548_v32 = vld [vmem:[#allocation31_spill] sm:$0xff] }
 0x565   : > { %v3965_v4 = vmul.f32 %v8800_v63, %v10539_v28  ;;  %v3196_v3 = vadd.f32 %v3188_v26, %v3162_v59  ;;  %v3527_v20 = vadd.f32 %v10540_v6, %v3509_v61  ;;  %v10542_v35 = vld [vmem:[#allocation133_spill] sm:$0xff]  ;;  %v3292_v60 = vmul.f32 %v10543_v7, %v8939_v17  ;;  %v4007_v59 = vld [vmem:[#allocation3 + $0x136] sm:$0xff] }
 0x566   : > { %v3874_v1 = vadd.f32 %v3866_v21, %v3840_v58  ;;  %v3605_v28 = vmul.f32 %v8534_v24, %v3222_v23  ;;  %v10544_v26 = vld [vmem:[#allocation86_spill] sm:$0xff]  ;;  %v3918_v0 = vmul.f32 %v8754_v9, %v3170_v53  ;;  %v4017_v58 = vmul.f32 %v8839_v25, %v10545_v36 }
 0x567   : > { %v3973_v43 = vadd.f32 %v3965_v4, %v3939_v62  ;;  %v3214_v40 = vadd.f32 %v10542_v35, %v3196_v3  ;;  %v3561_v2 = vadd.f32 %v3553_v41, %v3527_v20  ;;  %v10546_v62 = vld [vmem:[#allocation242_spill] sm:$0xff]  ;;  %v3657_v4 = vmul.f32 %v8586_v10, %v8939_v17  ;;  %v10547_v3 = vld [vmem:[#allocation221_spill] sm:$0xff]  ;;  %v4061_v35 = vld [vmem:[#allocation3 + $0x140] sm:$0xff] }
 0x568   : > { %v3892_v61 = vadd.f32 %v10544_v26, %v3874_v1  ;;  %v4153_v7 = vadd.f32 %v10547_v3, %v4135_v33  ;;  %v3970_v24 = vmul.f32 %v8800_v63, %v3222_v23  ;;  %v4035_v41 = vmul.f32 %v10518_v52, %v4007_v59  ;;  %v4217_v10 = vld [vmem:[#allocation3 + $0x143] sm:$0xff] }
 0x569   : > { %v3991_v12 = vadd.f32 %v3983_v15, %v3973_v43  ;;  %v3248_v21 = vadd.f32 %v3240_v8, %v3214_v40  ;;  %v3579_v29 = vadd.f32 %v10546_v62, %v3561_v2  ;;  %v8967_v43 = vmul.f32 %v8839_v25, %v8939_v17  ;;  %v4113_v26 = vld [vmem:[#allocation3 + $0x141] sm:$0xff] }
 0x56a   : > { %v3926_v6 = vadd.f32 %v3918_v0, %v3892_v61  ;;  %v4179_v8 = vmul.f32 %v8898_v50, %v8869_v47  ;;  %v4231_v33 = vmul.f32 %v8914_v22, %v8900_v37  ;;  %v8974_v40 = vmul.f32 %v8920_v34, %v3170_v53  ;;  %v10549_v0 = vld [vmem:[#allocation136_spill] sm:$0xff] }
 0x56b   : > { %v4025_v20 = vadd.f32 %v4017_v58, %v3991_v12  ;;  %v3266_v1 = vadd.f32 %v10548_v32, %v3248_v21  ;;  %v3613_v15 = vadd.f32 %v3605_v28, %v3579_v29  ;;  %v4071_v59 = vmul.f32 %v8865_v48, %v8605_v44  ;;  %v4105_v28 = vld [vmem:[#allocation3 + $0x61] sm:$0xff] }
 0x56c   : > { %v4187_v47 = vadd.f32 %v4179_v8, %v4153_v7  ;;  %v8982_v36 = vmul.f32 %v8931_v46, %v3222_v23  ;;  %v10550_v58 = vld [vmem:[#allocation220_spill] sm:$0xff]  ;;  %v4089_v53 = vmul.f32 %v10519_v27, %v4061_v35  ;;  %v3880_v62 = vmul.f32 %v4217_v10, %v10487_v31  ;;  %v10551_v29 = vld [vmem:[#allocation219_spill] sm:$0xff] }
 0x56d   : > { %v4043_v2 = vadd.f32 %v4035_v41, %v4025_v20  ;;  %v3300_v61 = vadd.f32 %v3292_v60, %v3266_v1  ;;  %v3631_v12 = vadd.f32 %v10549_v0, %v3613_v15  ;;  %v3944_v37 = vadd.f32 %v10550_v58, %v3926_v6  ;;  %v4269_v41 = vld [vmem:[#allocation3 + $0x144] sm:$0xff]  ;;  %v10552_v6 = vld [vmem:[#allocation114_spill] sm:$0xff]  ;;  %v10554_v8 = vld [vmem:[#allocation247_spill] sm:$0xff] }
 0x56e   : > { %v4123_v20 = vmul.f32 %v8884_v57, %v4105_v28  ;;  %v4141_v60 = vmul.f32 %v10526_v18, %v4113_v26  ;;  %v4175_v23 = vmul.f32 %v8898_v50, %v8396_v30  ;;  %v10553_v32 = vld [vmem:[#allocation104_spill] sm:$0xff]  ;;  %v3888_v15 = vadd.f32 %v3880_v62, %v8802_v38  ;;  %v10555_v35 = vld [vmem:[#allocation75_spill] sm:$0xff] }
 0x56f   : > { %v4079_v21 = vadd.f32 %v4071_v59, %v4043_v2  ;;  %v3318_v44 = vadd.f32 %v10551_v29, %v3300_v61  ;;  %v3665_v3 = vadd.f32 %v3657_v4, %v3631_v12  ;;  %v4193_v1 = vmul.f32 %v10553_v32, %v10552_v6  ;;  %v10556_v59 = vld [vmem:[#allocation244_spill] sm:$0xff]  ;;  %v10561_v6 = vld [vmem:[#allocation243_spill] sm:$0xff] }
 0x570   : > { %v4205_v28 = vadd.f32 %v10556_v59, %v4187_v47  ;;  %v4227_v26 = vmul.f32 %v8914_v22, %v10496_v13  ;;  %v3978_v30 = vadd.f32 %v3970_v24, %v3944_v37  ;;  %v3922_v0 = vadd.f32 %v8826_v55, %v3888_v15  ;;  %v10557_v58 = vld [vmem:[#allocation44_spill] sm:$0xff]  ;;  %v10559_v37 = vld [vmem:[#allocation43_spill] sm:$0xff] }
 0x571   : > { %v4097_v7 = vadd.f32 %v4089_v53, %v4079_v21  ;;  %v3354_v4 = vadd.f32 %v10554_v8, %v3318_v44  ;;  %v3683_v2 = vadd.f32 %v10555_v35, %v3665_v3  ;;  %v3932_v12 = vmul.f32 %v4269_v41, %v10498_v49  ;;  %v10558_v53 = vld [vmem:[#allocation105_spill] sm:$0xff]  ;;  %v10560_v3 = vld [vmem:[#allocation202_spill] sm:$0xff] }
 0x572   : > { %v4245_v62 = vmul.f32 %v10558_v53, %v4217_v10  ;;  %v4279_v47 = vmul.f32 %v8920_v34, %v10506_v56  ;;  %v4321_v29 = vld [vmem:[#allocation3 + $0x145] sm:$0xff]  ;;  %v9014_v44 = vstv %s8978_s19  ;;  %v3966_v55 = vmul.f32 %v8800_v63, %v10559_v37 }
 0x573   : > { %v4131_v61 = vadd.f32 %v4123_v20, %v4097_v7  ;;  %v3372_v38 = vadd.f32 %v10557_v58, %v3354_v4  ;;  %v3719_v21 = vadd.f32 %v8750_v5, %v3683_v2  ;;  %v3940_v24 = vadd.f32 %v3932_v12, %v3922_v0  ;;  %v10562_v4 = vld [vmem:[#allocation151_spill] sm:$0xff] }
 0x574   : > { %v4239_v5 = vadd.f32 %v4231_v33, %v4205_v28  ;;  %v4331_v10 = vmul.f32 %v8931_v46, %v10559_v37  ;;  %v3996_v56 = vadd.f32 %v10561_v6, %v3978_v30  ;;  %v4297_v59 = vmul.f32 %v9014_v44, %v4269_v41  ;;  %v4218_v12 = vld [vmem:[#allocation3 + $0x153] sm:$0xff] }
 0x575   : > { %v4149_v13 = vadd.f32 %v4141_v60, %v4131_v61  ;;  %v3406_v20 = vadd.f32 %v10560_v3, %v3372_v38  ;;  %v3737_v7 = vadd.f32 %v8760_v54, %v3719_v21  ;;  %v3974_v8 = vadd.f32 %v3966_v55, %v3940_v24  ;;  %v4373_v54 = vld [vmem:[#allocation3 + $0x146] sm:$0xff] }
 0x576   : > { %v3984_v60 = vmul.f32 %v4321_v29, %v10507_v45  ;;  %v9028_v61 = vstv %s8990_s22  ;;  %v9031_v28 = vstv %s8996_s23  ;;  %v9041_v41 = vstv %s9004_s24 }
 0x577   : > { %v4183_v15 = vadd.f32 %v4175_v23, %v4149_v13  ;;  %v3424_v35 = vadd.f32 %v10562_v4, %v3406_v20  ;;  %v3771_v2 = vadd.f32 %v8764_v51, %v3737_v7  ;;  %v10563_v23 = vld [vmem:[#allocation46_spill] sm:$0xff]  ;;  %v10564_v51 = vld [vmem:[#allocation140_spill] sm:$0xff]  ;;  %v4030_v13 = vadd.f32 %v8967_v43, %v3996_v56 }
 0x578   : > { %v3992_v30 = vadd.f32 %v3984_v60, %v3974_v8  ;;  %v4018_v0 = vmul.f32 %v8839_v25, %v10563_v23  ;;  %v4257_v21 = vadd.f32 %v10564_v51, %v4239_v5  ;;  %v4036_v37 = vmul.f32 %v4373_v54, %v10518_v52  ;;  %v4062_v7 = vld [vmem:[#allocation3 + $0x150] sm:$0xff] }
 0x579   : > { %v4201_v33 = vadd.f32 %v4193_v1, %v4183_v15  ;;  %v3458_v58 = vadd.f32 %v8648_v16, %v3424_v35  ;;  %v3789_v38 = vadd.f32 %v8771_v39, %v3771_v2  ;;  %v4349_v20 = vmul.f32 %v9028_v61, %v4321_v29  ;;  %v4106_v29 = vld [vmem:[#allocation3 + $0x71] sm:$0xff]  ;;  %v10565_v15 = vld [vmem:[#allocation103_spill] sm:$0xff] }
 0x57a   : > { %v4026_v24 = vadd.f32 %v4018_v0, %v3992_v30  ;;  %v3881_v16 = vmul.f32 %v4218_v12, %v10487_v31  ;;  %v4383_v5 = vmul.f32 %v9031_v28, %v10563_v23  ;;  %v4072_v43 = vmul.f32 %v8865_v48, %v8607_v11  ;;  %v3949_v11 = vld [vmem:[#allocation3 + $0x75] sm:$0xff] }
 0x57b   : > { %v4235_v1 = vadd.f32 %v4227_v26, %v4201_v33  ;;  %v3476_v55 = vadd.f32 %v8674_v42, %v3458_v58  ;;  %v3823_v3 = vadd.f32 %v8775_v19, %v3789_v38  ;;  %v4270_v26 = vld [vmem:[#allocation3 + $0x154] sm:$0xff]  ;;  %v9055_v42 = vadd.f32 %v8974_v40, %v4257_v21 }
 0x57c   : > { %v4044_v6 = vadd.f32 %v4036_v37, %v4026_v24  ;;  %v4401_v19 = vmul.f32 %v9041_v41, %v4373_v54  ;;  %v3889_v8 = vadd.f32 %v3881_v16, %v10565_v15  ;;  %v4090_v2 = vmul.f32 %v10519_v27, %v4062_v7  ;;  %v4114_v33 = vld [vmem:[#allocation3 + $0x151] sm:$0xff]  ;;  %v10567_v30 = vld [vmem:[#allocation47_spill] sm:$0xff]  ;;  %v10570_v24 = vld [vmem:[#allocation48_spill] sm:$0xff] }
 0x57d   : > { %v4253_v39 = vadd.f32 %v4245_v62, %v4235_v1  ;;  %v3510_v56 = vadd.f32 %v8683_v14, %v3476_v55  ;;  %v10566_v62 = vld [vmem:[#allocation138_spill] sm:$0xff]  ;;  %v10568_v14 = vld [vmem:[#allocation159_spill] sm:$0xff]  ;;  %v3933_v54 = vmul.f32 %v4270_v26, %v10498_v49  ;;  %v9066_v21 = vstv %s9033_s25 }
 0x57e   : > { %v4048_v60 = vadd.f32 %v10566_v62, %v4030_v13  ;;  %v4080_v35 = vadd.f32 %v4072_v43, %v4044_v6  ;;  %v3841_v0 = vadd.f32 %v10568_v14, %v3823_v3  ;;  %v4158_v40 = vld [vmem:[#allocation3 + $0x72] sm:$0xff]  ;;  %v4142_v55 = vmul.f32 %v10526_v18, %v4114_v33  ;;  %v10571_v6 = vld [vmem:[#allocation156_spill] sm:$0xff] }
 0x57f   : > { %v4287_v4 = vadd.f32 %v4279_v47, %v4253_v39  ;;  %v3528_v23 = vadd.f32 %v10567_v30, %v3510_v56  ;;  %v10569_v58 = vld [vmem:[#allocation50_spill] sm:$0xff]  ;;  %v4124_v47 = vmul.f32 %v8884_v57, %v4106_v29  ;;  %v3967_v3 = vmul.f32 %v8800_v63, %v3949_v11 }
 0x580   : > { %v3923_v38 = vadd.f32 %v10569_v58, %v3889_v8  ;;  %v4098_v1 = vadd.f32 %v4090_v2, %v4080_v35  ;;  %v4322_v13 = vld [vmem:[#allocation3 + $0x155] sm:$0xff]  ;;  %v4084_v43 = vadd.f32 %v10571_v6, %v4048_v60 }
 0x581   : > { %v4305_v51 = vadd.f32 %v4297_v59, %v4287_v4  ;;  %v3562_v37 = vadd.f32 %v10570_v24, %v3528_v23  ;;  %v4166_v7 = vld [vmem:[#allocation3 + $0x152] sm:$0xff]  ;;  %v4176_v59 = vmul.f32 %v8898_v50, %v4158_v40  ;;  %v10572_v8 = vld [vmem:[#allocation259_spill] sm:$0xff]  ;;  %v10573_v4 = vld [vmem:[#allocation49_spill] sm:$0xff]  ;;  %v3985_v30 = vmul.f32 %v4322_v13, %v10507_v45 }
 0x582   : > { %v4210_v16 = vld [vmem:[#allocation3 + $0x73] sm:$0xff]  ;;  %v3941_v39 = vadd.f32 %v3933_v54, %v3923_v38  ;;  %v4132_v15 = vadd.f32 %v4124_v47, %v4098_v1  ;;  %v3875_v29 = vadd.f32 %v10573_v4, %v3841_v0  ;;  %v4194_v14 = vmul.f32 %v10553_v32, %v4166_v7 }
 0x583   : > { %v4339_v56 = vadd.f32 %v4331_v10, %v4305_v51  ;;  %v3580_v62 = vadd.f32 %v10572_v8, %v3562_v37  ;;  %v4262_v35 = vld [vmem:[#allocation3 + $0x74] sm:$0xff]  ;;  %v4228_v11 = vmul.f32 %v8914_v22, %v4210_v16  ;;  %v4246_v38 = vmul.f32 %v10558_v53, %v4218_v12  ;;  %v4219_v37 = vld [vmem:[#allocation3 + $0x163] sm:$0xff] }
 0x584   : > { %v3975_v2 = vadd.f32 %v3967_v3, %v3941_v39  ;;  %v4150_v23 = vadd.f32 %v4142_v55, %v4132_v15  ;;  %v4374_v58 = vld [vmem:[#allocation3 + $0x156] sm:$0xff]  ;;  %v10577_v55 = vld [vmem:[#allocation148_spill] sm:$0xff]  ;;  %v4298_v15 = vmul.f32 %v9014_v44, %v4270_v26  ;;  %v4350_v26 = vmul.f32 %v9028_v61, %v4322_v13 }
 0x585   : > { %v4357_v33 = vadd.f32 %v4349_v20, %v4339_v56  ;;  %v10574_v60 = vld [vmem:[#allocation203_spill] sm:$0xff]  ;;  %v10576_v0 = vld [vmem:[#allocation150_spill] sm:$0xff]  ;;  %v4280_v20 = vmul.f32 %v8920_v34, %v4262_v35  ;;  %v10578_v39 = vld [vmem:[#allocation224_spill] sm:$0xff]  ;;  %v4037_v6 = vmul.f32 %v4374_v58, %v10518_v52 }
 0x586   : > { %v3614_v10 = vadd.f32 %v10574_v60, %v3580_v62  ;;  %v3993_v40 = vadd.f32 %v3985_v30, %v3975_v2  ;;  %v10575_v54 = vld [vmem:[#allocation291_spill] sm:$0xff]  ;;  %v4102_v1 = vadd.f32 %v10576_v0, %v4084_v43  ;;  %v4184_v24 = vadd.f32 %v4176_v59, %v4150_v23  ;;  %v10579_v8 = vld [vmem:[#allocation222_spill] sm:$0xff]  ;;  %v10582_v30 = vld [vmem:[#allocation52_spill] sm:$0xff] }
 0x587   : > { %v4019_v51 = vmul.f32 %v8839_v25, %v10575_v54  ;;  %v4391_v47 = vadd.f32 %v4383_v5, %v4357_v33  ;;  %v3893_v16 = vadd.f32 %v10578_v39, %v3875_v29  ;;  %v4332_v62 = vmul.f32 %v8931_v46, %v10579_v8  ;;  %v4063_v43 = vld [vmem:[#allocation3 + $0x160] sm:$0xff]  ;;  %v10580_v5 = vld [vmem:[#allocation153_spill] sm:$0xff]  ;;  %v10581_v35 = vld [vmem:[#allocation130_spill] sm:$0xff] }
 0x588   : > { %v3632_v7 = vadd.f32 %v10577_v55, %v3614_v10  ;;  %v4202_v12 = vadd.f32 %v4194_v14, %v4184_v24  ;;  %v4073_v2 = vmul.f32 %v8865_v48, %v10581_v35  ;;  %v3882_v29 = vmul.f32 %v4219_v37, %v10487_v31  ;;  %v4107_v14 = vld [vmem:[#allocation3 + $0x81] sm:$0xff]  ;;  %v10584_v24 = vld [vmem:[#allocation141_spill] sm:$0xff] }
 0x589   : > { %v4027_v3 = vadd.f32 %v4019_v51, %v3993_v40  ;;  %v4409_v56 = vadd.f32 %v4401_v19, %v4391_v47  ;;  %v4136_v33 = vadd.f32 %v10582_v30, %v4102_v1  ;;  %v4271_v60 = vld [vmem:[#allocation3 + $0x164] sm:$0xff]  ;;  %v10583_v10 = vld [vmem:[#allocation51_spill] sm:$0xff]  ;;  %v4091_v0 = vmul.f32 %v10519_v27, %v4063_v43 }
 0x58a   : > { %v9092_v59 = vadd.f32 %v10580_v5, %v3632_v7  ;;  %v4236_v23 = vadd.f32 %v4228_v11, %v4202_v12  ;;  %v3927_v40 = vadd.f32 %v10583_v10, %v3893_v16  ;;  %v4115_v47 = vld [vmem:[#allocation3 + $0x161] sm:$0xff]  ;;  %v3890_v55 = vadd.f32 %v3882_v29, %v10584_v24 }
 0x58b   : > { %v4045_v4 = vadd.f32 %v4037_v6, %v4027_v3  ;;  %v4419_v19 = vadd.f32 %v9066_v21, %v4409_v56  ;;  %v4384_v1 = vmul.f32 %v9031_v28, %v10575_v54  ;;  %v4402_v3 = vmul.f32 %v9041_v41, %v4374_v58  ;;  %v4315_v11 = vld [vmem:[#allocation3 + $0x85] sm:$0xff]  ;;  %v10585_v8 = vld [vmem:[#allocation295_spill] sm:$0xff] }
 0x58c   : > { %v4254_v39 = vadd.f32 %v4246_v38, %v4236_v23  ;;  %v4125_v13 = vmul.f32 %v8884_v57, %v4107_v14  ;;  %v4159_v56 = vld [vmem:[#allocation3 + $0x82] sm:$0xff]  ;;  %v3924_v5 = vadd.f32 %v10585_v8, %v3890_v55  ;;  %v3934_v43 = vmul.f32 %v4271_v60, %v10498_v49  ;;  %v10587_v29 = vld [vmem:[#allocation227_spill] sm:$0xff] }
 0x58d   : > { %v4081_v51 = vadd.f32 %v4073_v2, %v4045_v4  ;;  %v4882_v7 = vmul.f32 -1.442695, %v4419_v19  ;;  %v4167_v12 = vld [vmem:[#allocation3 + $0x162] sm:$0xff]  ;;  %v10586_v4 = vld [vmem:[#allocation287_spill] sm:$0xff]  ;;  %v4143_v2 = vmul.f32 %v10526_v18, %v4115_v47  ;;  %v3945_v58 = vadd.f32 %v10587_v29, %v3927_v40  ;;  %v4162_v40 = vld [vmem:[#allocation3 + $0xb2] sm:$0xff] }
 0x58e   : > { %v4211_v16 = vld [vmem:[#allocation3 + $0x83] sm:$0xff]  ;;  %v4154_v35 = vadd.f32 %v10586_v4, %v4136_v33  ;;  %v4288_v38 = vadd.f32 %v4280_v20, %v4254_v39  ;;  %v3942_v23 = vadd.f32 %v3934_v43, %v3924_v5  ;;  %v3968_v14 = vmul.f32 %v4315_v11, %v8800_v63  ;;  %v4214_v4 = vld [vmem:[#allocation3 + $0xb3] sm:$0xff] }
 0x58f   : > { %v4099_v6 = vadd.f32 %v4091_v0, %v4081_v51  ;;  %5085 = vpow2.f32 %v4882_v7  ;;  %v4323_v54 = vld [vmem:[#allocation3 + $0x165] sm:$0xff]  ;;  %v4177_v51 = vmul.f32 %v8898_v50, %v4159_v56  ;;  %v4195_v0 = vmul.f32 %v10553_v32, %v4167_v12  ;;  %v4170_v12 = vld [vmem:[#allocation3 + $0x192] sm:$0xff] }
 0x590   : > { %v4263_v19 = vld [vmem:[#allocation3 + $0x84] sm:$0xff]  ;;  %v4306_v10 = vadd.f32 %v4298_v15, %v4288_v38  ;;  %v4229_v24 = vmul.f32 %v8914_v22, %v4211_v16  ;;  %v4247_v20 = vmul.f32 %v10558_v53, %v4219_v37  ;;  %v3976_v47 = vadd.f32 %v3968_v14, %v3942_v23  ;;  %v4222_v14 = vld [vmem:[#allocation3 + $0x193] sm:$0xff] }
 0x591   : > { %v4133_v30 = vadd.f32 %v4125_v13, %v4099_v6  ;;  %v4367_v33 = vld [vmem:[#allocation3 + $0x86] sm:$0xff]  ;;  %v3986_v7 = vmul.f32 %v4323_v54, %v10507_v45  ;;  %v4281_v6 = vmul.f32 %v8920_v34, %v4263_v19  ;;  %v4299_v13 = vmul.f32 %v9014_v44, %v4271_v60  ;;  %v4055_v60 = vld [vmem:[#allocation3 + $0x90] sm:$0xff] }
 0x592   : > { %v4340_v39 = vadd.f32 %v4332_v62, %v4306_v10  ;;  %v9121_v15 = vmul.f32 %v8931_v46, %v4315_v11  ;;  %v4375_v56 = vld [vmem:[#allocation3 + $0x166] sm:$0xff]  ;;  %v4020_v37 = vmul.f32 %v4367_v33, %v8839_v25  ;;  %v9128_v62 = vmul.f32 %v9028_v61, %v4323_v54  ;;  %v4064_v19 = vld [vmem:[#allocation3 + $0x170] sm:$0xff] }
 0x593   : > { %v4151_v55 = vadd.f32 %v4143_v2, %v4133_v30  ;;  %v10588_v8 = vld [vmem:[#allocation204_spill] sm:$0xff]  ;;  %v3994_v43 = vadd.f32 %v3986_v7, %v3976_v47  ;;  %v9131_v2 = vmul.f32 %v9031_v28, %v4367_v33  ;;  %v4180_v11 = vmul.f32 %v8898_v50, %v4162_v40  ;;  %v4108_v54 = vld [vmem:[#allocation3 + $0x91] sm:$0xff] }
 0x594   : > { %v9124_v16 = vadd.f32 %v10588_v8, %v3945_v58  ;;  %v4358_v38 = vadd.f32 %v4350_v26, %v4340_v39  ;;  %v4038_v58 = vmul.f32 %v4375_v56, %v10518_v52  ;;  %v4198_v23 = vmul.f32 %v10553_v32, %v4170_v12  ;;  %v4266_v39 = vld [vmem:[#allocation3 + $0xb4] sm:$0xff] }
 0x595   : > { %v4185_v5 = vadd.f32 %v4177_v51, %v4151_v55  ;;  %v4028_v30 = vadd.f32 %v4020_v37, %v3994_v43  ;;  %v9137_v26 = vmul.f32 %v9041_v41, %v4375_v56  ;;  %v4188_v51 = vadd.f32 %v4180_v11, %v4154_v35  ;;  %v10589_v55 = vld [vmem:[#allocation294_spill] sm:$0xff]  ;;  %v5117_v11 = vld [vmem:[#allocation3 + $0x184] sm:$0xff] }
 0x596   : > { %v4392_v10 = vadd.f32 %v4384_v1, %v4358_v38  ;;  %v4232_v33 = vmul.f32 %v8914_v22, %v4214_v4  ;;  %v9142_v47 = vadd.f32 %v10589_v55, %v9092_v59  ;;  %v4074_v40 = vmul.f32 %v8865_v48, %v4055_v60  ;;  %v9148_v59 = vld [vmem:[#allocation3 + $0x195] sm:$0xff] }
 0x597   : > { %v4203_v29 = vadd.f32 %v4195_v0, %v4185_v5  ;;  %v4046_v7 = vadd.f32 %v4038_v58, %v4028_v30  ;;  %v4092_v1 = vmul.f32 %v10519_v27, %v4064_v19  ;;  %v4116_v5 = vld [vmem:[#allocation3 + $0x171] sm:$0xff]  ;;  %v4206_v56 = vadd.f32 %v4198_v23, %v4188_v51 }
 0x598   : > { %v4410_v12 = vadd.f32 %v4402_v3, %v4392_v10  ;;  %v4250_v43 = vmul.f32 %v10558_v53, %v4222_v14  ;;  %v4126_v38 = vmul.f32 %v8884_v57, %v4108_v54  ;;  %v4301_v60 = vmul.f32 %v5117_v11, %v9014_v44  ;;  %v4274_v3 = vld [vmem:[#allocation3 + $0x194] sm:$0xff] }
 0x599   : > { %v4237_v0 = vadd.f32 %v4229_v24, %v4203_v29  ;;  %v5086_v8 = vpop.eup %5085  ;;  %v4082_v4 = vadd.f32 %v4074_v40, %v4046_v7  ;;  %v4240_v29 = vadd.f32 %v4232_v33, %v4206_v56  ;;  %v4284_v30 = vmul.f32 %v8920_v34, %v4266_v39  ;;  %v9153_v58 = vld [vmem:[#allocation3 + $0xb6] sm:$0xff] }
 0x59a   : > { %v4451_v35 = vadd.f32 1.0, %v5086_v8  ;;  %v4420_v24 = vadd.f32 %v9066_v21, %v4410_v12  ;;  %v9156_v14 = vld [vmem:[#allocation3 + $0x196] sm:$0xff]  ;;  %v4309_v55 = vadd.f32 %v4301_v60, %v9055_v42  ;;  %v3989_v33 = vmul.f32 %v9148_v59, %v10507_v45 }
 0x59b   : > { %v4255_v37 = vadd.f32 %v4247_v20, %v4237_v0  ;;  %v4100_v23 = vadd.f32 %v4092_v1, %v4082_v4  ;;  %v4144_v20 = vmul.f32 %v10526_v18, %v4116_v5  ;;  %v4160_v54 = vld [vmem:[#allocation3 + $0x92] sm:$0xff]  ;;  %v4258_v0 = vadd.f32 %v4250_v43, %v4240_v29  ;;  %v4325_v1 = vld [vmem:[#allocation3 + $0x185] sm:$0xff] }
 0x59c   : > { %5087 = vrcp.f32 %v4451_v35  ;;  %v4883_v10 = vmul.f32 -1.442695, %v4420_v24  ;;  %v4168_v51 = vld [vmem:[#allocation3 + $0x172] sm:$0xff]  ;;  %v4302_v8 = vmul.f32 %v9014_v44, %v4274_v3  ;;  %v3997_v56 = vadd.f32 %v3989_v33, %v9124_v16 }
 0x59d   : > { %v4289_v19 = vadd.f32 %v4281_v6, %v4255_v37  ;;  %v4134_v40 = vadd.f32 %v4126_v38, %v4100_v23  ;;  %v4212_v39 = vld [vmem:[#allocation3 + $0x93] sm:$0xff]  ;;  %v4023_v6 = vmul.f32 %v9153_v58, %v8839_v25  ;;  %v4292_v5 = vadd.f32 %v4284_v30, %v4258_v0  ;;  %v4058_v38 = vld [vmem:[#allocation3 + $0xc0] sm:$0xff] }
 0x59e   : > { %5089 = vpow2.f32 %v4883_v10  ;;  %v4220_v12 = vld [vmem:[#allocation3 + $0x173] sm:$0xff]  ;;  %v4041_v42 = vmul.f32 %v9156_v14, %v10518_v52  ;;  %v4196_v37 = vmul.f32 %v10553_v32, %v4168_v51  ;;  %v4230_v24 = vmul.f32 %v8914_v22, %v4212_v39  ;;  %v4067_v10 = vld [vmem:[#allocation3 + $0x1a0] sm:$0xff] }
 0x59f   : > { %v4307_v7 = vadd.f32 %v4299_v13, %v4289_v19  ;;  %v4152_v35 = vadd.f32 %v4144_v20, %v4134_v40  ;;  %v4178_v13 = vmul.f32 %v8898_v50, %v4160_v54  ;;  %v4318_v4 = vld [vmem:[#allocation3 + $0xb5] sm:$0xff]  ;;  %v4343_v29 = vadd.f32 %v8982_v36, %v4309_v55  ;;  %v4377_v54 = vld [vmem:[#allocation3 + $0x186] sm:$0xff] }
 0x5a0   : > { %v4264_v11 = vld [vmem:[#allocation3 + $0x94] sm:$0xff]  ;;  %v4031_v3 = vadd.f32 %v4023_v6, %v3997_v56  ;;  %v4077_v16 = vmul.f32 %v8865_v48, %v4058_v38  ;;  %v4353_v20 = vmul.f32 %v9028_v61, %v4325_v1  ;;  %v4310_v51 = vadd.f32 %v4302_v8, %v4292_v5  ;;  %v4111_v39 = vld [vmem:[#allocation3 + $0xc1] sm:$0xff] }
 0x5a1   : > { %v4341_v43 = vadd.f32 %v9121_v15, %v4307_v7  ;;  %v4272_v60 = vld [vmem:[#allocation3 + $0x174] sm:$0xff]  ;;  %v4186_v19 = vadd.f32 %v4178_v13, %v4152_v35  ;;  %v4248_v15 = vmul.f32 %v10558_v53, %v4220_v12  ;;  %v4336_v0 = vmul.f32 %v8931_v46, %v4318_v4  ;;  %v4119_v35 = vld [vmem:[#allocation3 + $0x1a1] sm:$0xff] }
 0x5a2   : > { %v4316_v23 = vld [vmem:[#allocation3 + $0x95] sm:$0xff]  ;;  %v4049_v33 = vadd.f32 %v4041_v42, %v4031_v3  ;;  %v4095_v7 = vmul.f32 %v10519_v27, %v4067_v10  ;;  %v4282_v40 = vmul.f32 %v8920_v34, %v4264_v11  ;;  %v4361_v12 = vadd.f32 %v4353_v20, %v4343_v29  ;;  %v4163_v3 = vld [vmem:[#allocation3 + $0xc2] sm:$0xff] }
 0x5a3   : > { %v4359_v30 = vadd.f32 %v9128_v62, %v4341_v43  ;;  %v4204_v55 = vadd.f32 %v4196_v37, %v4186_v19  ;;  %v4300_v62 = vmul.f32 %v9014_v44, %v4272_v60  ;;  %v4334_v6 = vmul.f32 %v8931_v46, %v4316_v23 }
 0x5a4   : > { %v4085_v1 = vadd.f32 %v4077_v16, %v4049_v33  ;;  %v4129_v56 = vmul.f32 %v8884_v57, %v4111_v39  ;;  %v4387_v43 = vmul.f32 %v9031_v28, %v8939_v17  ;;  %v4344_v13 = vadd.f32 %v4336_v0, %v4310_v51  ;;  %v10591_v16 = vld [vmem:[#allocation94_spill] sm:$0xff] }
 0x5a5   : > { %v4393_v36 = vadd.f32 %v9131_v2, %v4359_v30  ;;  %v4238_v42 = vadd.f32 %v4230_v24, %v4204_v55  ;;  %v4405_v2 = vmul.f32 %v9041_v41, %v4377_v54  ;;  %v4354_v37 = vmul.f32 %v9028_v61, %v9148_v59  ;;  %v10592_v54 = vld [vmem:[#allocation249_spill] sm:$0xff]  ;;  %v4324_v55 = vld [vmem:[#allocation3 + $0x175] sm:$0xff] }
 0x5a6   : > { %v5088_v8 = vpop.eup %5087  ;;  %v4103_v4 = vadd.f32 %v4095_v7, %v4085_v1  ;;  %v4147_v11 = vmul.f32 %v10526_v18, %v4119_v35  ;;  %v3730_v30 = vmul.f32 %v4067_v10, %v10591_v16  ;;  %v4395_v19 = vadd.f32 %v4387_v43, %v4361_v12  ;;  %v4171_v7 = vld [vmem:[#allocation3 + $0x1a2] sm:$0xff] }
 0x5a7   : > { %v4411_v5 = vadd.f32 %v9137_v26, %v4393_v36  ;;  %4477 = vperm.xlu0 %5060, %v5088_v8   ;;  %v4256_v29 = vadd.f32 %v4248_v15, %v4238_v42  ;;  %v10590_v26 = vld [vmem:[#allocation223_spill] sm:$0xff]  ;;  %v4181_v20 = vmul.f32 %v8898_v50, %v4163_v3  ;;  %v3764_v51 = vmul.f32 %v4111_v39, %v10592_v54 }
 0x5a8   : > { %v3712_v24 = vmul.f32 %v4058_v38, %v10590_v26  ;;  %v5090_v17 = vpop.eup %5089  ;;  %v4137_v23 = vadd.f32 %v4129_v56, %v4103_v4  ;;  %v4362_v15 = vadd.f32 %v4354_v37, %v4344_v13  ;;  %v4388_v38 = vmul.f32 %v9031_v28, %v9153_v58  ;;  %v4215_v56 = vld [vmem:[#allocation3 + $0xc3] sm:$0xff]  ;;  %v4368_v42 = vld [vmem:[#allocation3 + $0x96] sm:$0xff] }
 0x5a9   : > { %v4421_v60 = vadd.f32 %v9066_v21, %v4411_v5  ;;  %v4452_v0 = vadd.f32 1.0, %v5090_v17  ;;  %v4290_v33 = vadd.f32 %v4282_v40, %v4256_v29  ;;  %v4199_v10 = vmul.f32 %v10553_v32, %v4171_v7  ;;  %v10593_v5 = vld [vmem:[#allocation95_spill] sm:$0xff]  ;;  %v4223_v37 = vld [vmem:[#allocation3 + $0x1a3] sm:$0xff] }
 0x5aa   : > { %v3720_v36 = vadd.f32 %v3712_v24, %v9142_v47  ;;  %v4155_v1 = vadd.f32 %v4147_v11, %v4137_v23  ;;  %v3782_v39 = vmul.f32 %v4119_v35, %v10593_v5  ;;  %v4413_v40 = vadd.f32 %v4405_v2, %v4395_v19  ;;  %v10594_v11 = vld [vmem:[#allocation134_spill] sm:$0xff] }
 0x5ab   : > { %v4884_v59 = vmul.f32 -1.442695, %v4421_v60  ;;  %5091 = vrcp.f32 %v4452_v0  ;;  %v4308_v12 = vadd.f32 %v4300_v62, %v4290_v33  ;;  %v4233_v47 = vmul.f32 %v8914_v22, %v4215_v56  ;;  %v4376_v29 = vld [vmem:[#allocation3 + $0x176] sm:$0xff]  ;;  %v4275_v0 = vld [vmem:[#allocation3 + $0x1a4] sm:$0xff] }
 0x5ac   : > { %v3738_v8 = vadd.f32 %v3730_v30, %v3720_v36  ;;  %v4189_v43 = vadd.f32 %v4181_v20, %v4155_v1  ;;  %v4352_v13 = vmul.f32 %v9028_v61, %v4324_v55  ;;  %v3816_v60 = vmul.f32 %v4163_v3, %v10594_v11  ;;  %v4267_v30 = vld [vmem:[#allocation3 + $0xc4] sm:$0xff] }
 0x5ad   : > { %5093 = vpow2.f32 %v4884_v59  ;;  %v4342_v4 = vadd.f32 %v4334_v6, %v4308_v12  ;;  %v4396_v26 = vadd.f32 %v4388_v38, %v4362_v15  ;;  %v4406_v62 = vmul.f32 %v9041_v41, %v9156_v14  ;;  %v10595_v6 = vld [vmem:[#allocation96_spill] sm:$0xff]  ;;  %v10596_v59 = vld [vmem:[#allocation283_spill] sm:$0xff] }
 0x5ae   : > { %v3772_v58 = vadd.f32 %v3764_v51, %v3738_v8  ;;  %v4207_v24 = vadd.f32 %v4199_v10, %v4189_v43  ;;  %v4251_v35 = vmul.f32 %v10558_v53, %v4223_v37  ;;  %v4386_v2 = vmul.f32 %v9031_v28, %v4368_v42  ;;  %v4319_v1 = vld [vmem:[#allocation3 + $0xc5] sm:$0xff] }
 0x5af   : > { %v4360_v16 = vadd.f32 %v4352_v13, %v4342_v4  ;;  %v3834_v19 = vmul.f32 %v4171_v7, %v10595_v6  ;;  %v4423_v23 = vadd.f32 %v9066_v21, %v4413_v40  ;;  %v4285_v3 = vmul.f32 %v8920_v34, %v4267_v30  ;;  %v4327_v40 = vld [vmem:[#allocation3 + $0x1a5] sm:$0xff] }
 0x5b0   : > { %v3790_v17 = vadd.f32 %v3782_v39, %v3772_v58  ;;  %v4241_v20 = vadd.f32 %v4233_v47, %v4207_v24  ;;  %v4404_v51 = vmul.f32 %v9041_v41, %v4376_v29  ;;  %v3868_v33 = vmul.f32 %v4215_v56, %v10596_v59  ;;  %v4379_v24 = vld [vmem:[#allocation3 + $0x1a6] sm:$0xff] }
 0x5b1   : > { %v4394_v54 = vadd.f32 %v4386_v2, %v4360_v16  ;;  %v4414_v36 = vadd.f32 %v4406_v62, %v4396_v26  ;;  %v4303_v15 = vmul.f32 %v9014_v44, %v4275_v0  ;;  %v3886_v7 = vmul.f32 %v4223_v37, %v10487_v31  ;;  %v4371_v37 = vld [vmem:[#allocation3 + $0xc6] sm:$0xff] }
 0x5b2   : > { %v3824_v14 = vadd.f32 %v3816_v60, %v3790_v17  ;;  %v4259_v55 = vadd.f32 %v4251_v35, %v4241_v20  ;;  %v4886_v12 = vmul.f32 -1.442695, %v4423_v23  ;;  %v4337_v5 = vmul.f32 %v8931_v46, %v4319_v1 }
 0x5b3   : > { %v4412_v38 = vadd.f32 %v4404_v51, %v4394_v54  ;;  %v3920_v56 = vmul.f32 %v4267_v30, %v8754_v9  ;;  %v4424_v4 = vadd.f32 %v9066_v21, %v4414_v36  ;;  %v4355_v58 = vmul.f32 %v9028_v61, %v4327_v40 }
 0x5b4   : > { %v3842_v10 = vadd.f32 %v3834_v19, %v3824_v14  ;;  %v4293_v8 = vadd.f32 %v4285_v3, %v4259_v55  ;;  %v3938_v29 = vmul.f32 %v4275_v0, %v10498_v49  ;;  %5095 = vpow2.f32 %v4886_v12  ;;  %v4059_v3 = vld [vmem:[#allocation3 + $0xd0] sm:$0xff] }
 0x5b5   : > { %v5092_v39 = vpop.eup %5091  ;;  %v4422_v42 = vadd.f32 %v9066_v21, %v4412_v38  ;;  %v4389_v62 = vmul.f32 %v9031_v28, %v4371_v37  ;;  %v3972_v35 = vmul.f32 %v4319_v1, %v8800_v63  ;;  %v4887_v16 = vmul.f32 -1.442695, %v4424_v4  ;;  %v4068_v0 = vld [vmem:[#allocation3 + $0x1b0] sm:$0xff] }
 0x5b6   : > { %v3876_v43 = vadd.f32 %v3868_v33, %v3842_v10  ;;  %4482 = vperm.xlu1 %5061, %v5092_v39   ;;  %v4311_v13 = vadd.f32 %v4303_v15, %v4293_v8  ;;  %v4407_v30 = vmul.f32 %v9041_v41, %v4379_v24  ;;  %v3990_v6 = vmul.f32 %v4327_v40, %v10507_v45  ;;  %v4112_v55 = vld [vmem:[#allocation3 + $0xd1] sm:$0xff] }
 0x5b7   : > { %v5094_v47 = vpop.eup %5093  ;;  %v4885_v31 = vmul.f32 -1.442695, %v4422_v42  ;;  %v4024_v49 = vmul.f32 %v4371_v37, %v8839_v25  ;;  %v4042_v51 = vmul.f32 %v4379_v24, %v10518_v52  ;;  %v4078_v59 = vmul.f32 %v8865_v48, %v4059_v3  ;;  %v4120_v1 = vld [vmem:[#allocation3 + $0x1b1] sm:$0xff]  ;;  %v5079_v52 = vld [vmem:[%s10597_s20] sm:$0xff]  }
 0x5b8   : > { %v4453_v11 = vadd.f32 1.0, %v5094_v47  ;;  %v3894_v60 = vadd.f32 %v3886_v7, %v3876_v43  ;;  %v4345_v26 = vadd.f32 %v4337_v5, %v4311_v13  ;;  %v4096_v38 = vmul.f32 %v10519_v27, %v4068_v0  ;;  %v4164_v8 = vld [vmem:[#allocation3 + $0xd2] sm:$0xff]  ;;  %4984 = vmatprep.subr.bf16.mxu1 %v5079_v52 }
 0x5b9   : > { %v4130_v48 = vmul.f32 %v8884_v57, %v4112_v55  ;;  %v4148_v39 = vmul.f32 %v10526_v18, %v4120_v1  ;;  %4985 = vmatpush3.bf16.msra.mxu1 %v5079_v52  ;;  %v4172_v42 = vld [vmem:[#allocation3 + $0x1b2] sm:$0xff]  ;;  %v4182_v43 = vmul.f32 %v8898_v50, %v4164_v8  ;;  %v10600_v1 = vld [vmem:[#allocation27_spill] sm:$0xff]  ;;  %v10603_v8 = vld [vmem:[#allocation29_spill] sm:$0xff] }
 0x5ba   : > { %5097 = vrcp.f32 %v4453_v11  ;;  %v3928_v9 = vadd.f32 %v3920_v56, %v3894_v60  ;;  %v4363_v2 = vadd.f32 %v4355_v58, %v4345_v26  ;;  %v4216_v56 = vld [vmem:[#allocation3 + $0xd3] sm:$0xff]  ;;  %v4200_v13 = vmul.f32 %v10553_v32, %v4172_v42 }
 0x5bb   : > { %5099 = vpow2.f32 %v4885_v31  ;;  %v4224_v58 = vld [vmem:[#allocation3 + $0x1b3] sm:$0xff]  ;;  %v4234_v11 = vmul.f32 %v8914_v22, %v4216_v56  ;;  %v10605_v56 = vld [vmem:[#allocation36_spill] sm:$0xff] }
 0x5bc   : > { %v3946_v17 = vadd.f32 %v3938_v29, %v3928_v9  ;;  %v4397_v19 = vadd.f32 %v4389_v62, %v4363_v2  ;;  %5101 = vpow2.f32 %v4887_v16  ;;  %v4268_v37 = vld [vmem:[#allocation3 + $0xd4] sm:$0xff]  ;;  %v4252_v29 = vmul.f32 %v10558_v53, %v4224_v58  ;;  %v5080_v2 = vld [vmem:[%s10597_s20 + $0x8] sm:$0xff]  }
 0x5bd   : > { %v4276_v26 = vld [vmem:[#allocation3 + $0x1b4] sm:$0xff]  ;;  %v4286_v50 = vmul.f32 %v8920_v34, %v4268_v37  ;;  %4986 = vmatprep.subr.bf16.mxu1 %v5080_v2 }
 0x5be   : > { %v3980_v23 = vadd.f32 %v3972_v35, %v3946_v17  ;;  %v4415_v20 = vadd.f32 %v4407_v30, %v4397_v19  ;;  %v5096_v33 = vpop.eup %5095  ;;  %v4320_v9 = vld [vmem:[#allocation3 + $0xd5] sm:$0xff]  ;;  %v4304_v16 = vmul.f32 %v9014_v44, %v4276_v26  ;;  %4987 = vmatpush3.bf16.msra.mxu1 %v5080_v2 }
 0x5bf   : > { %v4455_v7 = vadd.f32 1.0, %v5096_v33  ;;  %v4328_v22 = vld [vmem:[#allocation3 + $0x1b5] sm:$0xff]  ;;  %v4338_v53 = vmul.f32 %v8931_v46, %v4320_v9 }
 0x5c0   : > { %v3998_v54 = vadd.f32 %v3990_v6, %v3980_v23  ;;  %v4425_v63 = vadd.f32 %v9066_v21, %v4415_v20  ;;  %v4372_v17 = vld [vmem:[#allocation3 + $0xd6] sm:$0xff]  ;;  %v4356_v34 = vmul.f32 %v9028_v61, %v4328_v22 }
 0x5c1   : > { %v4380_v19 = vld [vmem:[#allocation3 + $0x1b6] sm:$0xff]  ;;  %v4390_v44 = vmul.f32 %v9031_v28, %v4372_v17  ;;  %v10598_v28 = vld [vmem:[#allocation25_spill] sm:$0xff] }
 0x5c2   : > { %v4032_v14 = vadd.f32 %v4024_v49, %v3998_v54  ;;  %v4888_v36 = vmul.f32 -1.442695, %v4425_v63  ;;  %v4408_v3 = vmul.f32 %v9041_v41, %v4380_v19  ;;  %v10601_v52 = vld [vmem:[#allocation30_spill] sm:$0xff] }
 0x5c4   : > { %v5098_v45 = vpop.eup %5097  ;;  %v4050_v15 = vadd.f32 %v4042_v51, %v4032_v14  ;;  %5103 = vpow2.f32 %v4888_v36 }
 0x5c5   : > { %v5100_v25 = vpop.eup %5099  ;;  %4487 = vperm.xlu1 %5061, %v5098_v45   ;;  %v10599_v45 = vld [vmem:[#allocation20_spill] sm:$0xff] }
 0x5c6   : > { %v4454_v10 = vadd.f32 1.0, %v5100_v25  ;;  %v4086_v12 = vadd.f32 %v4078_v59, %v4050_v15  ;;  %v5102_v27 = vpop.eup %5101 }
 0x5c7   : > { %v4456_v47 = vadd.f32 1.0, %v5102_v27 }
 0x5c8   : > { %5105 = vrcp.f32 %v4454_v10  ;;  %v4104_v5 = vadd.f32 %v4096_v38, %v4086_v12 }
 0x5c9   : > { %5107 = vrcp.f32 %v4455_v7 }
 0x5ca   : > { %v4138_v40 = vadd.f32 %v4130_v48, %v4104_v5  ;;  %5109 = vrcp.f32 %v4456_v47 }
 0x5cc   : > { %v4156_v4 = vadd.f32 %v4148_v39, %v4138_v40  ;;  %v10604_v39 = vld [vmem:[#allocation34_spill] sm:$0xff] }
 0x5ce   : > { %v4190_v57 = vadd.f32 %v4182_v43, %v4156_v4  ;;  %v5104_v31 = vpop.eup %5103  ;;  %v10606_v4 = vld [vmem:[#allocation38_spill] sm:$0xff] }
 0x5cf   : > { %v4457_v18 = vadd.f32 1.0, %v5104_v31 }
 0x5d0   : > { %v4208_v60 = vadd.f32 %v4200_v13, %v4190_v57  ;;  %v4890_v57 = vld [vmem:[%s10607_s4] ss:$0 sm:$0xff] }
 0x5d1   : > { %5111 = vrcp.f32 %v4457_v18 }
 0x5d2   : > { %v5106_v62 = vpop.eup %5105  ;;  %v4242_v24 = vadd.f32 %v4234_v11, %v4208_v60 }
 0x5d3   : > { %4492 = vperm.xlu1 %5061, %v5106_v62   ;;  %v5108_v35 = vpop.eup %5107 }
 0x5d4   : > { %v4260_v32 = vadd.f32 %v4252_v29, %v4242_v24  ;;  %v5110_v23 = vpop.eup %5109 }
 0x5d6   : > { %v4294_v30 = vadd.f32 %v4286_v50, %v4260_v32 }
 0x5d7   : > { %4497 = vperm.xlu1 %5061, %v5108_v35  }
 0x5d8   : > { %v4312_v6 = vadd.f32 %v4304_v16, %v4294_v30 }
 0x5da   : > { %v4346_v49 = vadd.f32 %v4338_v53, %v4312_v6 }
 0x5db   : > { %4502 = vperm.xlu1 %5061, %v5110_v23   ;;  %v5112_v54 = vpop.eup %5111 }
 0x5dc   : > { %v4364_v20 = vadd.f32 %v4356_v34, %v4346_v49 }
 0x5de   : > { %v4398_v51 = vadd.f32 %v4390_v44, %v4364_v20 }
 0x5df   : > { %4507 = vperm.xlu1 %5061, %v5112_v54  }
 0x5e0   : > { %v4416_v46 = vadd.f32 %v4408_v3, %v4398_v51 }
 0x5e2   : > { %v4426_v63 = vadd.f32 %v9066_v21, %v4416_v46 }
 0x5e4   : > { %v4889_v0 = vmul.f32 -1.442695, %v4426_v63 }
 0x5e6   : > { %5113 = vpow2.f32 %v4889_v0 }
 0x5f0   : > { %v5114_v14 = vpop.eup %5113 }
 0x5f1   : > { %v4458_v61 = vadd.f32 1.0, %v5114_v14 }
 0x5f3   : > { %5115 = vrcp.f32 %v4458_v61 }
 0x5fd   : > { %v5116_v59 = vpop.eup %5115 }
 0x5fe   : > { %4512 = vperm.xlu1 %5061, %v5116_v59  }
 0x626   : > { %v4478_v33 = vpop.permute.xlu0 %4477 }
 0x627   : > { %v4515_v55 = vmul.f32 %v4478_v33, %v10598_v28 }
 0x635   : > { %v4483_v36 = vpop.permute.xlu1 %4482 }
 0x636   : > { %v4516_v15 = vmul.f32 %v4483_v36, %v10599_v45 }
 0x638   : > { %v4523_v41 = vpack.c.bf16 %v4516_v15, %v4515_v55 }
 0x63a   : > { %4988 = vmatprep.mubr.msk.bf16.mxu1 %vm921_vm1, %v4523_v41 }
 0x644   : > { %v4488_v38 = vpop.permute.xlu1 %4487 }
 0x645   : > { %v4517_v21 = vmul.f32 %v4488_v38, %v10600_v1 }
 0x652   : > { %v4493_v25 = vpop.permute.xlu1 %4492 }
 0x653   : > { %v4518_v10 = vmul.f32 %v4493_v25, %v10601_v52 }
 0x655   : > { %v4524_v7 = vpack.c.bf16 %v4518_v10, %v4517_v21 }
 0x656   : > { %v4498_v12 = vpop.permute.xlu1 %4497 }
 0x657   : > { %4989 = vmatmul.mubr.msk.bf16.vlgmr.msra.gmra.mrb[12].mxu1 %vm921_vm1, %v4524_v7  ;;  %v4519_v5 = vmul.f32 %v4498_v12, %v10603_v8 }
 0x65a   : > { %v4503_v48 = vpop.permute.xlu1 %4502 }
 0x65b   : > { %v4520_v27 = vmul.f32 %v4503_v48, %v10604_v39 }
 0x65d   : > { %v4525_v42 = vpack.c.bf16 %v4520_v27, %v4519_v5 }
 0x65e   : > { %v4508_v40 = vpop.permute.xlu1 %4507 }
 0x65f   : > { %4992 = vmatprep.mubr.msk.bf16.mxu1 %vm921_vm1, %v4525_v42  ;;  %v4521_v47 = vmul.f32 %v4508_v40, %v10605_v56 }
 0x67d   : > { %v4513_v43 = vpop.permute.xlu1 %4512 }
 0x67e   : > { %v4522_v13 = vmul.f32 %v4513_v43, %v10606_v4 }
 0x680   : > { %v4526_v58 = vpack.c.bf16 %v4522_v13, %v4521_v47 }
 0x682   : > { %4993 = vmatmul.mubr.msk.bf16.gmra.mrb[16].mxu1 %vm921_vm1, %v4526_v58 }
 0x72a   : > { %v4990_v11 = vpop.f32.mrb[12].mxu1 }
 0x72b   : > { %v4605_v31 = vadd.f32 %v4990_v11, %v4890_v57  ;;  %v4596_v37 = vpop.f32.mrb[13].mxu1 }
 0x72c   : > { %v4597_v18 = vadd.f32 %v4890_v57, %v4596_v37  ;;  %v4991_v60 = vpop.f32.mrb[14].mxu1 }
 0x72d   : > { %4629 = vst.msk [vmem:[%s474_s6 + $0x10] sm:$0xff] %vm921_vm1, %v4605_v31  ;;  %v4608_v29 = vadd.f32 %v4991_v60, %v4890_v57  ;;  %v4599_v26 = vpop.f32.mrb[15].mxu1 }
 0x72e   : > { %4627 = vst.msk [vmem:[%s474_s6] sm:$0xff] %vm921_vm1, %v4597_v18  ;;  %v4600_v62 = vadd.f32 %v4890_v57, %v4599_v26 }
 0x72f   : > { %4630 = vst.msk [vmem:[%s474_s6 + $0x18] sm:$0xff] %vm921_vm1, %v4608_v29 }
 0x730   : > { %4628 = vst.msk [vmem:[%s474_s6 + $0x8] sm:$0xff] %vm921_vm1, %v4600_v62 }
 0x755   : > { %v4994_v24 = vpop.f32.mrb[16].mxu1 }
 0x756   : > { %v4621_v50 = vadd.f32 %v4994_v24, %v4890_v57  ;;  %v4612_v9 = vpop.f32.mrb[17].mxu1 }
 0x757   : > { %v4613_v35 = vadd.f32 %v4890_v57, %v4612_v9  ;;  %v4995_v32 = vpop.f32.mrb[18].mxu1 }
 0x758   : > { %4633 = vst.msk [vmem:[%s474_s6 + $0x30] sm:$0xff] %vm921_vm1, %v4621_v50  ;;  %v4624_v16 = vadd.f32 %v4995_v32, %v4890_v57  ;;  %v4615_v22 = vpop.f32.mrb[19].mxu1 }
 0x759   : > { %4631 = vst.msk [vmem:[%s474_s6 + $0x20] sm:$0xff] %vm921_vm1, %v4613_v35  ;;  %v4616_v2 = vadd.f32 %v4890_v57, %v4615_v22 }
 0x75a   : > { %4634 = vst.msk [vmem:[%s474_s6 + $0x38] sm:$0xff] %vm921_vm1, %v4624_v16 }
 0x75b   : > { %4632 = vst.msk [vmem:[%s474_s6 + $0x28] sm:$0xff] %vm921_vm1, %v4616_v2 }
 0x75c   : > { %5146 = shalt.err (!%p5143_p2)
}
 0x75d   : > { %s5147_s17 = scalar_lea.hbm %s9275_s13, 1024  ;;  %s5151_s23 = scalar_lea.hbm %s10610_s12, 2048 }
 0x75e   : > { %p5148_p3 = scmp.ne.s32.totalorder %s9275_s13, %s5147_s17  ;;  %p5152_p8 = scmp.lt.u32.totalorder %s9275_s13, %s10610_s12 }
 0x75f   : > { %p5153_p11 = scmp.lt.u32.totalorder %s5151_s23, %s5147_s17  ;;  %p5155_p10 = scmp.lt.u32.totalorder %s5147_s17, %s9275_s13 }
 0x760   : > { %p5149_p4 = pnand %p5148_p3, %p5322_p5 }
 0x761   : > { %p5154_p9 = por %p5153_p11, %p5152_p8 }
 0x762   : > { %p5150_p7 = pneg %p5149_p4 }
 0x763   : > { %p5156_p12 = por %p5155_p10, %p5154_p9 }
 0x765   : > { %p5157_p13 = pnand %p5156_p12, %p5150_p7 }
 0x767   : > { %5160 = shalt.err (!%p5157_p13)
}
 0x768   : > { %s5207_s28 = smov 128   ;;  %s5208_s18 = smov 8  }
 0x769   : > { %5008 = dma.vmem_to_hbm [thread:$0]  (%p5322_p5), %s9277_s8, 1024, %s9275_s13, %s9284_s14, %s5207_s28, %s5207_s28, %s5208_s18  }
 0x76a PF: > { %s10611_s0 = sld [smem:[#allocation14_spill]]  ;;  %s10612_s21 = sld [smem:[#allocation11_spill]] }
 0x770   : > { %p5020_p0 = scmp.ge.s32.totalorder %s10611_s0, 2  ;;  %s4664_s27 = sand.u32 1, %s10612_s21  }
 0x771   : > { %s4665_s1 = scalar_lea.sflag [#allocation6], %s4664_s27 }
 0x772   : > { %p5015_p1 = pnand %p5020_p0, %p5326_p6 }
 0x774   : > { %5182 = dma.done.wait (!%p5015_p1), %s4665_s1, 1024  }
 0x775   : > { %5184 = vsyncadd (!%p5015_p1), %s4665_s1, 4294966272  ;;  %s10614_s16 = sld [smem:[#allocation16_spill]]  ;;  %s10615_s29 = sld [smem:[#allocation12_spill]] }
 0x776   : > { %s10616_s30 = sld [smem:[#allocation13_spill]]  ;;  %s10617_s15 = sld [smem:[#allocation17_spill]] }
 0x77b   : > { %p25_p2 = scmp.ge.s32.totalorder %s10614_s16, 4  }
 0x77d   :  { %27 = sbr.rel (!%p25_p2) target bundleno = 20 (0x14), region = 134 }
 0x784   :  { %4670 = vsyncpa [#allocation6], 1 }
 0x785   :  { %4672 = vsyncpa [#allocation6 + $0x1], 1 }
 0x786   :  { %4673 = vsyncpa [#allocation7], 1 }
 0x787   :  { %4675 = vsyncpa [#allocation7 + $0x1], 1 }

</bundles_post_ra>
